<compile_context>
chip_gen: v7x
topology: tpu7x:2x2x1
jax: 0.10.0
libtpu: 0.0.40
codegen_flags: <defaults>
</compile_context>

<pallas_src>
import numpy as np
import jax
import jax.numpy as jnp
from jax.experimental import pallas as pl
from jax.experimental.pallas import tpu as pltpu

BN_EPS = 1e-5


# ---------------------------------------------------------------------------
# Kernel
# ---------------------------------------------------------------------------
def _make_kernel(scale, width, n_batch, hw, tap_offsets):
    nums = 1 if scale == 1 else scale - 1

    def kernel(x_ref, m_ref, w1_ref, s1_ref, b1_ref,
               wc_ref, sc_ref, bc_ref,
               wrep_ref, brep_ref, srep_ref, brepbn_ref,
               fc1_ref, fc2_ref, o_ref):
        R, C = x_ref.shape
        x = x_ref[...]
        relu = lambda t: jnp.maximum(t, 0.0)

        # Per-tap validity masks (R, 1); load once, reuse for every conv.
        masks = [m_ref[d] for d in range(9)]

        def im2col(inp):
            # (R, Cin) -> (R, 9*Cin): 9 spatially-shifted, boundary-masked copies of
            # the input concatenated along channels.  Shift = sublane roll (XLU);
            # the mask zeroes out-of-image taps (incl. cross-image wrap, since the
            # batch is folded into the row axis).
            cols = []
            for d, off in enumerate(tap_offsets):
                sh = inp if off == 0 else pltpu.roll(inp, (-off) % R, 0)
                cols.append(sh if d == 4 else sh * masks[d])
            return jnp.concatenate(cols, axis=1)

        # conv1 -> bn1 -> relu : a single (R, 9*Cin) @ (9*Cin, C) MXU matmul.
        out1 = jnp.dot(im2col(x), w1_ref[...], preferred_element_type=jnp.float32)
        out1 = relu(out1 * s1_ref[...] + b1_ref[...])

        # Res2Net split (static lane slices) + inner 3x3 convs (fused-tap matmuls).
        chunks = []
        sp = None
        for i in range(nums):
            spx_i = out1[:, i * width:(i + 1) * width]
            sp = spx_i if i == 0 else sp + spx_i
            sp = jnp.dot(im2col(sp), wc_ref[i], preferred_element_type=jnp.float32)
            sp = relu(sp * sc_ref[i] + bc_ref[i])
            chunks.append(sp)
        if scale != 1:
            chunks.append(out1[:, nums * width:scale * width])
        out = chunks[0] if len(chunks) == 1 else jnp.concatenate(chunks, axis=1)

        # rep branch (downsample is None): 1x1 conv (+bias) -> bn -> relu, + residual.
        rep = jnp.dot(x, wrep_ref[...], preferred_element_type=jnp.float32) + brep_ref[...]
        resid = relu(rep * srep_ref[...] + brepbn_ref[...]) + x

        # SE per image: global avg pool -> fc1 -> relu -> fc2 -> sigmoid -> scale,
        # then add rep+residual, final relu, store each image's row block.
        for n in range(n_batch):
            r0, r1 = n * hw, (n + 1) * hw
            blk = out[r0:r1, :]
            y = jnp.sum(blk, axis=0, keepdims=True) * (1.0 / hw)            # (1, C)
            y = relu(jnp.dot(y, fc1_ref[...], preferred_element_type=jnp.float32))
            y = jax.nn.sigmoid(jnp.dot(y, fc2_ref[...], preferred_element_type=jnp.float32))
            o_ref[r0:r1, :] = relu(blk * y + resid[r0:r1, :]).astype(o_ref.dtype)

    return kernel


# ---------------------------------------------------------------------------
# Wrapper (glue)
# ---------------------------------------------------------------------------
def _tap_offsets(W):
    # tap d = kh*3 + kw  <->  flat spatial offset (kh-1)*W + (kw-1)
    return [(kh - 1) * W + (kw - 1) for kh in range(3) for kw in range(3)]


def rep_se_basic_block(x_nchw, kparams, scale):
    N, C, H, W = x_nchw.shape
    HW = H * W
    width = C // scale

    # NCHW -> channels-last, batch folded into rows: (N*H*W, C)
    x2d = jnp.transpose(x_nchw, (0, 2, 3, 1)).reshape(N * HW, C)

    out = pl.pallas_call(
        _make_kernel(scale, width, N, HW, _tap_offsets(W)),
        out_shape=jax.ShapeDtypeStruct((N * HW, C), jnp.float32),
    )(x2d, kparams["masks"], kparams["w1_pack"], kparams["s1"], kparams["b1"],
      kparams["wc_pack"], kparams["sc"], kparams["bc"],
      kparams["wrep"], kparams["brep"], kparams["srep"], kparams["brepbn"],
      kparams["fc1"], kparams["fc2"])

    return jnp.transpose(out.reshape(N, H, W, C), (0, 3, 1, 2))


# ---------------------------------------------------------------------------
# Deterministic parameter construction (shapes follow the PyTorch __init__)
# ---------------------------------------------------------------------------
def init_params(key, inplanes, planes, scale):
    width = planes // scale
    nums = 1 if scale == 1 else scale - 1
    C = planes
    keys = list(jax.random.split(key, 40))
    it = iter(keys)

    def nrm(shape, s=0.1):
        return jax.random.normal(next(it), shape, jnp.float32) * s

    def bn_params(c):
        g = 1.0 + 0.1 * jax.random.normal(next(it), (c,), jnp.float32)
        b = 0.1 * jax.random.normal(next(it), (c,), jnp.float32)
        m = 0.1 * jax.random.normal(next(it), (c,), jnp.float32)
        v = 0.5 + jax.random.uniform(next(it), (c,), jnp.float32)
        return (g, b, m, v)

    p = dict(
        w1=nrm((C, inplanes, 3, 3)),                       # conv3x3(inplanes, width*scale)
        bn1=bn_params(C),
        wc=[nrm((width, width, 3, 3)) for _ in range(nums)],
        bnc=[bn_params(width) for _ in range(nums)],
        wrep=nrm((inplanes, inplanes, 1, 1)),              # 1x1 conv with bias
        brep=nrm((inplanes,)),
        bn_rep=bn_params(inplanes),
        fc1=nrm((max(C // 16, 1), C)),                     # Linear(C, C//16, bias=False)
        fc2=nrm((C, max(C // 16, 1))),                     # Linear(C//16, C, bias=False)
        width=width, scale=scale,
    )
    return p


def _fold_bn(bn):
    g, b, m, v = bn
    s = g / jnp.sqrt(v + BN_EPS)
    return s, b - m * s


def _conv_taps(w_oihw):
    # OIHW -> (9, Cin, Cout) with tap d = kh*3 + kw  <->  spatial offset (kh-1, kw-1)
    o, i, _, _ = w_oihw.shape
    return jnp.transpose(w_oihw, (2, 3, 1, 0)).reshape(9, i, o)


def _tap_masks(N, H, W):
    # (9, N*H*W, 1) validity masks for a 3x3 conv with padding=1, batch folded into rows.
    HW = H * W
    p = np.arange(HW)
    h, w = p // W, p % W
    m = np.zeros((9, HW), np.float32)
    for kh in range(3):
        for kw in range(3):
            dh, dw = kh - 1, kw - 1
            valid = (h + dh >= 0) & (h + dh < H) & (w + dw >= 0) & (w + dw < W)
            m[kh * 3 + kw, valid] = 1.0
    m = np.tile(m, (1, N))                                 # row index = n*HW + p
    return jnp.asarray(m.reshape(9, N * HW, 1))


def pack_kernel_params(p, N, H, W):
    C = p["w1"].shape[0]
    cin = p["w1"].shape[1]
    width, scale = p["width"], p["scale"]
    nums = 1 if scale == 1 else scale - 1
    s1, b1 = _fold_bn(p["bn1"])
    sc = jnp.stack([_fold_bn(bn)[0] for bn in p["bnc"]]).reshape(nums, 1, width)
    bc = jnp.stack([_fold_bn(bn)[1] for bn in p["bnc"]]).reshape(nums, 1, width)
    srep, brepbn = _fold_bn(p["bn_rep"])
    return dict(
        masks=_tap_masks(N, H, W),                                    # (9, N*HW, 1)
        w1_pack=_conv_taps(p["w1"]).reshape(9 * cin, C),              # fused-tap weights
        s1=s1.reshape(1, C), b1=b1.reshape(1, C),
        wc_pack=jnp.stack([_conv_taps(w).reshape(9 * width, width) for w in p["wc"]]),
        sc=sc, bc=bc,
        wrep=p["wrep"][:, :, 0, 0].T,
        brep=p["brep"].reshape(1, C),
        srep=srep.reshape(1, C), brepbn=brepbn.reshape(1, C),
        fc1=p["fc1"].T, fc2=p["fc2"].T,
    )


# ---------------------------------------------------------------------------
# Pure-JAX reference (mirrors the PyTorch forward, eval-mode BN)
# ---------------------------------------------------------------------------
def reference_forward(x, p):
    relu = lambda t: jnp.maximum(t, 0.0)

    def bn(t, bnp):
        g, b, m, v = bnp
        s = g / jnp.sqrt(v + BN_EPS)
        return t * s[None, :, None, None] + (b - m * s)[None, :, None, None]

    def conv(t, w, pad):
        return jax.lax.conv_general_dilated(
            t, w, (1, 1), ((pad, pad), (pad, pad)),
            dimension_numbers=("NCHW", "OIHW", "NCHW"))

    width, scale = p["width"], p["scale"]
    nums = 1 if scale == 1 else scale - 1
    residual = x
    out = relu(bn(conv(x, p["w1"], 1), p["bn1"]))
    spx = [out[:, i * width:(i + 1) * width] for i in range(scale)]
    outs = []
    sp = None
    for i in range(nums):
        sp = spx[i] if i == 0 else sp + spx[i]
        sp = relu(bn(conv(sp, p["wc"][i], 1), p["bnc"][i]))
        outs.append(sp)
    if scale != 1:
        outs.append(spx[nums])
    out = jnp.concatenate(outs, axis=1)
    # SE
    y = jnp.mean(out, axis=(2, 3))
    y = relu(y @ p["fc1"].T)
    y = jax.nn.sigmoid(y @ p["fc2"].T)
    out = out * y[:, :, None, None]
    # rep branch
    rep = conv(x, p["wrep"], 0) + p["brep"][None, :, None, None]
    rep = relu(bn(rep, p["bn_rep"]))
    out = out + rep + residual
    return relu(out)


# ---------------------------------------------------------------------------
if __name__ == "__main__":
    N, C, H, W = 2, 16, 8, 8          # inplanes = planes = 16, scale = 4 -> width = 4
    scale = 4

    key = jax.random.PRNGKey(0)
    kx, kp = jax.random.split(key)
    x = jax.random.normal(kx, (N, C, H, W), jnp.float32)

    torch_like_params = init_params(kp, C, C, scale)
    kparams = pack_kernel_params(torch_like_params, N, H, W)

    out = rep_se_basic_block(x, kparams, scale)
    out = jax.block_until_ready(out)

    ref = reference_forward(x, torch_like_params)
    err = float(jnp.max(jnp.abs(out - ref)))
    if err > 1e-3:
        raise AssertionError(f"kernel/reference mismatch: max abs err {err}")

    print("KERNEL_OK")
</pallas_src>

<mosaic_0001>
module attributes {stable_mosaic.version = 11 : i64} {
  func.func @kernel(%arg0: memref<128x16xf32, #tpu.memory_space<vmem>>, %arg1: memref<9x128x1xf32, #tpu.memory_space<vmem>>, %arg2: memref<144x16xf32, #tpu.memory_space<vmem>>, %arg3: memref<1x16xf32, #tpu.memory_space<vmem>>, %arg4: memref<1x16xf32, #tpu.memory_space<vmem>>, %arg5: memref<3x36x4xf32, #tpu.memory_space<vmem>>, %arg6: memref<3x1x4xf32, #tpu.memory_space<vmem>>, %arg7: memref<3x1x4xf32, #tpu.memory_space<vmem>>, %arg8: memref<16x16xf32, #tpu.memory_space<vmem>>, %arg9: memref<1x16xf32, #tpu.memory_space<vmem>>, %arg10: memref<1x16xf32, #tpu.memory_space<vmem>>, %arg11: memref<1x16xf32, #tpu.memory_space<vmem>>, %arg12: memref<16x1xf32, #tpu.memory_space<vmem>>, %arg13: memref<1x16xf32, #tpu.memory_space<vmem>>, %arg14: memref<128x16xf32, #tpu.memory_space<vmem>>) attributes {dimension_semantics = [], scalar_prefetch = 0 : i64, scratch_operands = 0 : i64, tpu.core_type = #tpu.core_type<tc>} {
    %c0 = arith.constant 0 : index
    %c0_0 = arith.constant 0 : index
    %0 = vector.load %arg0[%c0, %c0_0] : memref<128x16xf32, #tpu.memory_space<vmem>>, vector<128x16xf32>
    %c0_1 = arith.constant 0 : index
    %c0_2 = arith.constant 0 : index
    %c0_3 = arith.constant 0 : index
    %1 = vector.load %arg1[%c0_1, %c0_2, %c0_3] : memref<9x128x1xf32, #tpu.memory_space<vmem>>, vector<1x128x1xf32>
    %2 = vector.shape_cast %1 : vector<1x128x1xf32> to vector<128x1xf32>
    %c1 = arith.constant 1 : index
    %c0_4 = arith.constant 0 : index
    %c0_5 = arith.constant 0 : index
    %3 = vector.load %arg1[%c1, %c0_4, %c0_5] : memref<9x128x1xf32, #tpu.memory_space<vmem>>, vector<1x128x1xf32>
    %4 = vector.shape_cast %3 : vector<1x128x1xf32> to vector<128x1xf32>
    %c2 = arith.constant 2 : index
    %c0_6 = arith.constant 0 : index
    %c0_7 = arith.constant 0 : index
    %5 = vector.load %arg1[%c2, %c0_6, %c0_7] : memref<9x128x1xf32, #tpu.memory_space<vmem>>, vector<1x128x1xf32>
    %6 = vector.shape_cast %5 : vector<1x128x1xf32> to vector<128x1xf32>
    %c3 = arith.constant 3 : index
    %c0_8 = arith.constant 0 : index
    %c0_9 = arith.constant 0 : index
    %7 = vector.load %arg1[%c3, %c0_8, %c0_9] : memref<9x128x1xf32, #tpu.memory_space<vmem>>, vector<1x128x1xf32>
    %8 = vector.shape_cast %7 : vector<1x128x1xf32> to vector<128x1xf32>
    %c5 = arith.constant 5 : index
    %c0_10 = arith.constant 0 : index
    %c0_11 = arith.constant 0 : index
    %9 = vector.load %arg1[%c5, %c0_10, %c0_11] : memref<9x128x1xf32, #tpu.memory_space<vmem>>, vector<1x128x1xf32>
    %10 = vector.shape_cast %9 : vector<1x128x1xf32> to vector<128x1xf32>
    %c6 = arith.constant 6 : index
    %c0_12 = arith.constant 0 : index
    %c0_13 = arith.constant 0 : index
    %11 = vector.load %arg1[%c6, %c0_12, %c0_13] : memref<9x128x1xf32, #tpu.memory_space<vmem>>, vector<1x128x1xf32>
    %12 = vector.shape_cast %11 : vector<1x128x1xf32> to vector<128x1xf32>
    %c7 = arith.constant 7 : index
    %c0_14 = arith.constant 0 : index
    %c0_15 = arith.constant 0 : index
    %13 = vector.load %arg1[%c7, %c0_14, %c0_15] : memref<9x128x1xf32, #tpu.memory_space<vmem>>, vector<1x128x1xf32>
    %14 = vector.shape_cast %13 : vector<1x128x1xf32> to vector<128x1xf32>
    %c8 = arith.constant 8 : index
    %c0_16 = arith.constant 0 : index
    %c0_17 = arith.constant 0 : index
    %15 = vector.load %arg1[%c8, %c0_16, %c0_17] : memref<9x128x1xf32, #tpu.memory_space<vmem>>, vector<1x128x1xf32>
    %16 = vector.shape_cast %15 : vector<1x128x1xf32> to vector<128x1xf32>
    %c9_i32 = arith.constant 9 : i32
    %17 = tpu.dynamic_rotate %0 by %c9_i32 dim 0 : vector<128x16xf32>, i32 -> vector<128x16xf32>
    %18 = vector.broadcast %2 : vector<128x1xf32> to vector<128x16xf32>
    %19 = arith.mulf %17, %18 : vector<128x16xf32>
    %c8_i32 = arith.constant 8 : i32
    %20 = tpu.dynamic_rotate %0 by %c8_i32 dim 0 : vector<128x16xf32>, i32 -> vector<128x16xf32>
    %21 = vector.broadcast %4 : vector<128x1xf32> to vector<128x16xf32>
    %22 = arith.mulf %20, %21 : vector<128x16xf32>
    %c7_i32 = arith.constant 7 : i32
    %23 = tpu.dynamic_rotate %0 by %c7_i32 dim 0 : vector<128x16xf32>, i32 -> vector<128x16xf32>
    %24 = vector.broadcast %6 : vector<128x1xf32> to vector<128x16xf32>
    %25 = arith.mulf %23, %24 : vector<128x16xf32>
    %c1_i32 = arith.constant 1 : i32
    %26 = tpu.dynamic_rotate %0 by %c1_i32 dim 0 : vector<128x16xf32>, i32 -> vector<128x16xf32>
    %27 = vector.broadcast %8 : vector<128x1xf32> to vector<128x16xf32>
    %28 = arith.mulf %26, %27 : vector<128x16xf32>
    %c127_i32 = arith.constant 127 : i32
    %29 = tpu.dynamic_rotate %0 by %c127_i32 dim 0 : vector<128x16xf32>, i32 -> vector<128x16xf32>
    %30 = vector.broadcast %10 : vector<128x1xf32> to vector<128x16xf32>
    %31 = arith.mulf %29, %30 : vector<128x16xf32>
    %c121_i32 = arith.constant 121 : i32
    %32 = tpu.dynamic_rotate %0 by %c121_i32 dim 0 : vector<128x16xf32>, i32 -> vector<128x16xf32>
    %33 = vector.broadcast %12 : vector<128x1xf32> to vector<128x16xf32>
    %34 = arith.mulf %32, %33 : vector<128x16xf32>
    %c120_i32 = arith.constant 120 : i32
    %35 = tpu.dynamic_rotate %0 by %c120_i32 dim 0 : vector<128x16xf32>, i32 -> vector<128x16xf32>
    %36 = vector.broadcast %14 : vector<128x1xf32> to vector<128x16xf32>
    %37 = arith.mulf %35, %36 : vector<128x16xf32>
    %c119_i32 = arith.constant 119 : i32
    %38 = tpu.dynamic_rotate %0 by %c119_i32 dim 0 : vector<128x16xf32>, i32 -> vector<128x16xf32>
    %39 = vector.broadcast %16 : vector<128x1xf32> to vector<128x16xf32>
    %40 = arith.mulf %38, %39 : vector<128x16xf32>
    %41 = tpu.concatenate %19, %22, %25, %28, %0, %31, %34, %37, %40 in 1 : vector<128x16xf32>, vector<128x16xf32>, vector<128x16xf32>, vector<128x16xf32>, vector<128x16xf32>, vector<128x16xf32>, vector<128x16xf32>, vector<128x16xf32>, vector<128x16xf32> -> vector<128x144xf32>
    %c0_18 = arith.constant 0 : index
    %c0_19 = arith.constant 0 : index
    %42 = vector.load %arg2[%c0_18, %c0_19] : memref<144x16xf32, #tpu.memory_space<vmem>>, vector<144x16xf32>
    %cst = arith.constant dense<0.000000e+00> : vector<128x16xf32>
    %43 = tpu.matmul %41, %42, %cst {dimension_numbers = #tpu.dot_dimension_numbers<[1], [0], [0], [1], [0, 0, 1, 1], [], []>} : vector<128x144xf32>, vector<144x16xf32>, vector<128x16xf32> -> vector<128x16xf32>
    %c0_20 = arith.constant 0 : index
    %c0_21 = arith.constant 0 : index
    %44 = vector.load %arg3[%c0_20, %c0_21] : memref<1x16xf32, #tpu.memory_space<vmem>>, vector<1x16xf32>
    %45 = vector.broadcast %44 : vector<1x16xf32> to vector<128x16xf32>
    %46 = arith.mulf %43, %45 : vector<128x16xf32>
    %c0_22 = arith.constant 0 : index
    %c0_23 = arith.constant 0 : index
    %47 = vector.load %arg4[%c0_22, %c0_23] : memref<1x16xf32, #tpu.memory_space<vmem>>, vector<1x16xf32>
    %48 = vector.broadcast %47 : vector<1x16xf32> to vector<128x16xf32>
    %49 = arith.addf %46, %48 : vector<128x16xf32>
    %cst_24 = arith.constant 0.000000e+00 : f32
    %50 = vector.broadcast %cst_24 : f32 to vector<128x16xf32>
    %51 = arith.maximumf %49, %50 : vector<128x16xf32>
    %52 = vector.extract_strided_slice %51 {offsets = [0, 0], sizes = [128, 4], strides = [1, 1]} : vector<128x16xf32> to vector<128x4xf32>
    %c9_i32_25 = arith.constant 9 : i32
    %53 = tpu.dynamic_rotate %52 by %c9_i32_25 dim 0 : vector<128x4xf32>, i32 -> vector<128x4xf32>
    %54 = vector.broadcast %2 : vector<128x1xf32> to vector<128x4xf32>
    %55 = arith.mulf %53, %54 : vector<128x4xf32>
    %c8_i32_26 = arith.constant 8 : i32
    %56 = tpu.dynamic_rotate %52 by %c8_i32_26 dim 0 : vector<128x4xf32>, i32 -> vector<128x4xf32>
    %57 = vector.broadcast %4 : vector<128x1xf32> to vector<128x4xf32>
    %58 = arith.mulf %56, %57 : vector<128x4xf32>
    %c7_i32_27 = arith.constant 7 : i32
    %59 = tpu.dynamic_rotate %52 by %c7_i32_27 dim 0 : vector<128x4xf32>, i32 -> vector<128x4xf32>
    %60 = vector.broadcast %6 : vector<128x1xf32> to vector<128x4xf32>
    %61 = arith.mulf %59, %60 : vector<128x4xf32>
    %c1_i32_28 = arith.constant 1 : i32
    %62 = tpu.dynamic_rotate %52 by %c1_i32_28 dim 0 : vector<128x4xf32>, i32 -> vector<128x4xf32>
    %63 = vector.broadcast %8 : vector<128x1xf32> to vector<128x4xf32>
    %64 = arith.mulf %62, %63 : vector<128x4xf32>
    %c127_i32_29 = arith.constant 127 : i32
    %65 = tpu.dynamic_rotate %52 by %c127_i32_29 dim 0 : vector<128x4xf32>, i32 -> vector<128x4xf32>
    %66 = vector.broadcast %10 : vector<128x1xf32> to vector<128x4xf32>
    %67 = arith.mulf %65, %66 : vector<128x4xf32>
    %c121_i32_30 = arith.constant 121 : i32
    %68 = tpu.dynamic_rotate %52 by %c121_i32_30 dim 0 : vector<128x4xf32>, i32 -> vector<128x4xf32>
    %69 = vector.broadcast %12 : vector<128x1xf32> to vector<128x4xf32>
    %70 = arith.mulf %68, %69 : vector<128x4xf32>
    %c120_i32_31 = arith.constant 120 : i32
    %71 = tpu.dynamic_rotate %52 by %c120_i32_31 dim 0 : vector<128x4xf32>, i32 -> vector<128x4xf32>
    %72 = vector.broadcast %14 : vector<128x1xf32> to vector<128x4xf32>
    %73 = arith.mulf %71, %72 : vector<128x4xf32>
    %c119_i32_32 = arith.constant 119 : i32
    %74 = tpu.dynamic_rotate %52 by %c119_i32_32 dim 0 : vector<128x4xf32>, i32 -> vector<128x4xf32>
    %75 = vector.broadcast %16 : vector<128x1xf32> to vector<128x4xf32>
    %76 = arith.mulf %74, %75 : vector<128x4xf32>
    %77 = tpu.concatenate %55, %58, %61, %64, %52, %67, %70, %73, %76 in 1 : vector<128x4xf32>, vector<128x4xf32>, vector<128x4xf32>, vector<128x4xf32>, vector<128x4xf32>, vector<128x4xf32>, vector<128x4xf32>, vector<128x4xf32>, vector<128x4xf32> -> vector<128x36xf32>
    %c0_33 = arith.constant 0 : index
    %c0_34 = arith.constant 0 : index
    %c0_35 = arith.constant 0 : index
    %78 = vector.load %arg5[%c0_33, %c0_34, %c0_35] : memref<3x36x4xf32, #tpu.memory_space<vmem>>, vector<1x36x4xf32>
    %79 = vector.shape_cast %78 : vector<1x36x4xf32> to vector<36x4xf32>
    %cst_36 = arith.constant dense<0.000000e+00> : vector<128x4xf32>
    %80 = tpu.matmul %77, %79, %cst_36 {dimension_numbers = #tpu.dot_dimension_numbers<[1], [0], [0], [1], [0, 0, 1, 1], [], []>} : vector<128x36xf32>, vector<36x4xf32>, vector<128x4xf32> -> vector<128x4xf32>
    %c0_37 = arith.constant 0 : index
    %c0_38 = arith.constant 0 : index
    %c0_39 = arith.constant 0 : index
    %81 = vector.load %arg6[%c0_37, %c0_38, %c0_39] : memref<3x1x4xf32, #tpu.memory_space<vmem>>, vector<1x1x4xf32>
    %82 = vector.shape_cast %81 : vector<1x1x4xf32> to vector<1x4xf32>
    %83 = vector.broadcast %82 : vector<1x4xf32> to vector<128x4xf32>
    %84 = arith.mulf %80, %83 : vector<128x4xf32>
    %c0_40 = arith.constant 0 : index
    %c0_41 = arith.constant 0 : index
    %c0_42 = arith.constant 0 : index
    %85 = vector.load %arg7[%c0_40, %c0_41, %c0_42] : memref<3x1x4xf32, #tpu.memory_space<vmem>>, vector<1x1x4xf32>
    %86 = vector.shape_cast %85 : vector<1x1x4xf32> to vector<1x4xf32>
    %87 = vector.broadcast %86 : vector<1x4xf32> to vector<128x4xf32>
    %88 = arith.addf %84, %87 : vector<128x4xf32>
    %cst_43 = arith.constant 0.000000e+00 : f32
    %89 = vector.broadcast %cst_43 : f32 to vector<128x4xf32>
    %90 = arith.maximumf %88, %89 : vector<128x4xf32>
    %91 = vector.extract_strided_slice %51 {offsets = [0, 4], sizes = [128, 4], strides = [1, 1]} : vector<128x16xf32> to vector<128x4xf32>
    %92 = arith.addf %90, %91 : vector<128x4xf32>
    %c9_i32_44 = arith.constant 9 : i32
    %93 = tpu.dynamic_rotate %92 by %c9_i32_44 dim 0 : vector<128x4xf32>, i32 -> vector<128x4xf32>
    %94 = vector.broadcast %2 : vector<128x1xf32> to vector<128x4xf32>
    %95 = arith.mulf %93, %94 : vector<128x4xf32>
    %c8_i32_45 = arith.constant 8 : i32
    %96 = tpu.dynamic_rotate %92 by %c8_i32_45 dim 0 : vector<128x4xf32>, i32 -> vector<128x4xf32>
    %97 = vector.broadcast %4 : vector<128x1xf32> to vector<128x4xf32>
    %98 = arith.mulf %96, %97 : vector<128x4xf32>
    %c7_i32_46 = arith.constant 7 : i32
    %99 = tpu.dynamic_rotate %92 by %c7_i32_46 dim 0 : vector<128x4xf32>, i32 -> vector<128x4xf32>
    %100 = vector.broadcast %6 : vector<128x1xf32> to vector<128x4xf32>
    %101 = arith.mulf %99, %100 : vector<128x4xf32>
    %c1_i32_47 = arith.constant 1 : i32
    %102 = tpu.dynamic_rotate %92 by %c1_i32_47 dim 0 : vector<128x4xf32>, i32 -> vector<128x4xf32>
    %103 = vector.broadcast %8 : vector<128x1xf32> to vector<128x4xf32>
    %104 = arith.mulf %102, %103 : vector<128x4xf32>
    %c127_i32_48 = arith.constant 127 : i32
    %105 = tpu.dynamic_rotate %92 by %c127_i32_48 dim 0 : vector<128x4xf32>, i32 -> vector<128x4xf32>
    %106 = vector.broadcast %10 : vector<128x1xf32> to vector<128x4xf32>
    %107 = arith.mulf %105, %106 : vector<128x4xf32>
    %c121_i32_49 = arith.constant 121 : i32
    %108 = tpu.dynamic_rotate %92 by %c121_i32_49 dim 0 : vector<128x4xf32>, i32 -> vector<128x4xf32>
    %109 = vector.broadcast %12 : vector<128x1xf32> to vector<128x4xf32>
    %110 = arith.mulf %108, %109 : vector<128x4xf32>
    %c120_i32_50 = arith.constant 120 : i32
    %111 = tpu.dynamic_rotate %92 by %c120_i32_50 dim 0 : vector<128x4xf32>, i32 -> vector<128x4xf32>
    %112 = vector.broadcast %14 : vector<128x1xf32> to vector<128x4xf32>
    %113 = arith.mulf %111, %112 : vector<128x4xf32>
    %c119_i32_51 = arith.constant 119 : i32
    %114 = tpu.dynamic_rotate %92 by %c119_i32_51 dim 0 : vector<128x4xf32>, i32 -> vector<128x4xf32>
    %115 = vector.broadcast %16 : vector<128x1xf32> to vector<128x4xf32>
    %116 = arith.mulf %114, %115 : vector<128x4xf32>
    %117 = tpu.concatenate %95, %98, %101, %104, %92, %107, %110, %113, %116 in 1 : vector<128x4xf32>, vector<128x4xf32>, vector<128x4xf32>, vector<128x4xf32>, vector<128x4xf32>, vector<128x4xf32>, vector<128x4xf32>, vector<128x4xf32>, vector<128x4xf32> -> vector<128x36xf32>
    %c1_52 = arith.constant 1 : index
    %c0_53 = arith.constant 0 : index
    %c0_54 = arith.constant 0 : index
    %118 = vector.load %arg5[%c1_52, %c0_53, %c0_54] : memref<3x36x4xf32, #tpu.memory_space<vmem>>, vector<1x36x4xf32>
    %119 = vector.shape_cast %118 : vector<1x36x4xf32> to vector<36x4xf32>
    %cst_55 = arith.constant dense<0.000000e+00> : vector<128x4xf32>
    %120 = tpu.matmul %117, %119, %cst_55 {dimension_numbers = #tpu.dot_dimension_numbers<[1], [0], [0], [1], [0, 0, 1, 1], [], []>} : vector<128x36xf32>, vector<36x4xf32>, vector<128x4xf32> -> vector<128x4xf32>
    %c1_56 = arith.constant 1 : index
    %c0_57 = arith.constant 0 : index
    %c0_58 = arith.constant 0 : index
    %121 = vector.load %arg6[%c1_56, %c0_57, %c0_58] : memref<3x1x4xf32, #tpu.memory_space<vmem>>, vector<1x1x4xf32>
    %122 = vector.shape_cast %121 : vector<1x1x4xf32> to vector<1x4xf32>
    %123 = vector.broadcast %122 : vector<1x4xf32> to vector<128x4xf32>
    %124 = arith.mulf %120, %123 : vector<128x4xf32>
    %c1_59 = arith.constant 1 : index
    %c0_60 = arith.constant 0 : index
    %c0_61 = arith.constant 0 : index
    %125 = vector.load %arg7[%c1_59, %c0_60, %c0_61] : memref<3x1x4xf32, #tpu.memory_space<vmem>>, vector<1x1x4xf32>
    %126 = vector.shape_cast %125 : vector<1x1x4xf32> to vector<1x4xf32>
    %127 = vector.broadcast %126 : vector<1x4xf32> to vector<128x4xf32>
    %128 = arith.addf %124, %127 : vector<128x4xf32>
    %cst_62 = arith.constant 0.000000e+00 : f32
    %129 = vector.broadcast %cst_62 : f32 to vector<128x4xf32>
    %130 = arith.maximumf %128, %129 : vector<128x4xf32>
    %131 = vector.extract_strided_slice %51 {offsets = [0, 8], sizes = [128, 4], strides = [1, 1]} : vector<128x16xf32> to vector<128x4xf32>
    %132 = arith.addf %130, %131 : vector<128x4xf32>
    %c9_i32_63 = arith.constant 9 : i32
    %133 = tpu.dynamic_rotate %132 by %c9_i32_63 dim 0 : vector<128x4xf32>, i32 -> vector<128x4xf32>
    %134 = vector.broadcast %2 : vector<128x1xf32> to vector<128x4xf32>
    %135 = arith.mulf %133, %134 : vector<128x4xf32>
    %c8_i32_64 = arith.constant 8 : i32
    %136 = tpu.dynamic_rotate %132 by %c8_i32_64 dim 0 : vector<128x4xf32>, i32 -> vector<128x4xf32>
    %137 = vector.broadcast %4 : vector<128x1xf32> to vector<128x4xf32>
    %138 = arith.mulf %136, %137 : vector<128x4xf32>
    %c7_i32_65 = arith.constant 7 : i32
    %139 = tpu.dynamic_rotate %132 by %c7_i32_65 dim 0 : vector<128x4xf32>, i32 -> vector<128x4xf32>
    %140 = vector.broadcast %6 : vector<128x1xf32> to vector<128x4xf32>
    %141 = arith.mulf %139, %140 : vector<128x4xf32>
    %c1_i32_66 = arith.constant 1 : i32
    %142 = tpu.dynamic_rotate %132 by %c1_i32_66 dim 0 : vector<128x4xf32>, i32 -> vector<128x4xf32>
    %143 = vector.broadcast %8 : vector<128x1xf32> to vector<128x4xf32>
    %144 = arith.mulf %142, %143 : vector<128x4xf32>
    %c127_i32_67 = arith.constant 127 : i32
    %145 = tpu.dynamic_rotate %132 by %c127_i32_67 dim 0 : vector<128x4xf32>, i32 -> vector<128x4xf32>
    %146 = vector.broadcast %10 : vector<128x1xf32> to vector<128x4xf32>
    %147 = arith.mulf %145, %146 : vector<128x4xf32>
    %c121_i32_68 = arith.constant 121 : i32
    %148 = tpu.dynamic_rotate %132 by %c121_i32_68 dim 0 : vector<128x4xf32>, i32 -> vector<128x4xf32>
    %149 = vector.broadcast %12 : vector<128x1xf32> to vector<128x4xf32>
    %150 = arith.mulf %148, %149 : vector<128x4xf32>
    %c120_i32_69 = arith.constant 120 : i32
    %151 = tpu.dynamic_rotate %132 by %c120_i32_69 dim 0 : vector<128x4xf32>, i32 -> vector<128x4xf32>
    %152 = vector.broadcast %14 : vector<128x1xf32> to vector<128x4xf32>
    %153 = arith.mulf %151, %152 : vector<128x4xf32>
    %c119_i32_70 = arith.constant 119 : i32
    %154 = tpu.dynamic_rotate %132 by %c119_i32_70 dim 0 : vector<128x4xf32>, i32 -> vector<128x4xf32>
    %155 = vector.broadcast %16 : vector<128x1xf32> to vector<128x4xf32>
    %156 = arith.mulf %154, %155 : vector<128x4xf32>
    %157 = tpu.concatenate %135, %138, %141, %144, %132, %147, %150, %153, %156 in 1 : vector<128x4xf32>, vector<128x4xf32>, vector<128x4xf32>, vector<128x4xf32>, vector<128x4xf32>, vector<128x4xf32>, vector<128x4xf32>, vector<128x4xf32>, vector<128x4xf32> -> vector<128x36xf32>
    %c2_71 = arith.constant 2 : index
    %c0_72 = arith.constant 0 : index
    %c0_73 = arith.constant 0 : index
    %158 = vector.load %arg5[%c2_71, %c0_72, %c0_73] : memref<3x36x4xf32, #tpu.memory_space<vmem>>, vector<1x36x4xf32>
    %159 = vector.shape_cast %158 : vector<1x36x4xf32> to vector<36x4xf32>
    %cst_74 = arith.constant dense<0.000000e+00> : vector<128x4xf32>
    %160 = tpu.matmul %157, %159, %cst_74 {dimension_numbers = #tpu.dot_dimension_numbers<[1], [0], [0], [1], [0, 0, 1, 1], [], []>} : vector<128x36xf32>, vector<36x4xf32>, vector<128x4xf32> -> vector<128x4xf32>
    %c2_75 = arith.constant 2 : index
    %c0_76 = arith.constant 0 : index
    %c0_77 = arith.constant 0 : index
    %161 = vector.load %arg6[%c2_75, %c0_76, %c0_77] : memref<3x1x4xf32, #tpu.memory_space<vmem>>, vector<1x1x4xf32>
    %162 = vector.shape_cast %161 : vector<1x1x4xf32> to vector<1x4xf32>
    %163 = vector.broadcast %162 : vector<1x4xf32> to vector<128x4xf32>
    %164 = arith.mulf %160, %163 : vector<128x4xf32>
    %c2_78 = arith.constant 2 : index
    %c0_79 = arith.constant 0 : index
    %c0_80 = arith.constant 0 : index
    %165 = vector.load %arg7[%c2_78, %c0_79, %c0_80] : memref<3x1x4xf32, #tpu.memory_space<vmem>>, vector<1x1x4xf32>
    %166 = vector.shape_cast %165 : vector<1x1x4xf32> to vector<1x4xf32>
    %167 = vector.broadcast %166 : vector<1x4xf32> to vector<128x4xf32>
    %168 = arith.addf %164, %167 : vector<128x4xf32>
    %cst_81 = arith.constant 0.000000e+00 : f32
    %169 = vector.broadcast %cst_81 : f32 to vector<128x4xf32>
    %170 = arith.maximumf %168, %169 : vector<128x4xf32>
    %171 = vector.extract_strided_slice %51 {offsets = [0, 12], sizes = [128, 4], strides = [1, 1]} : vector<128x16xf32> to vector<128x4xf32>
    %172 = tpu.concatenate %90, %130, %170, %171 in 1 : vector<128x4xf32>, vector<128x4xf32>, vector<128x4xf32>, vector<128x4xf32> -> vector<128x16xf32>
    %c0_82 = arith.constant 0 : index
    %c0_83 = arith.constant 0 : index
    %173 = vector.load %arg8[%c0_82, %c0_83] : memref<16x16xf32, #tpu.memory_space<vmem>>, vector<16x16xf32>
    %cst_84 = arith.constant dense<0.000000e+00> : vector<128x16xf32>
    %174 = tpu.matmul %0, %173, %cst_84 {dimension_numbers = #tpu.dot_dimension_numbers<[1], [0], [0], [1], [0, 0, 1, 1], [], []>} : vector<128x16xf32>, vector<16x16xf32>, vector<128x16xf32> -> vector<128x16xf32>
    %c0_85 = arith.constant 0 : index
    %c0_86 = arith.constant 0 : index
    %175 = vector.load %arg9[%c0_85, %c0_86] : memref<1x16xf32, #tpu.memory_space<vmem>>, vector<1x16xf32>
    %176 = vector.broadcast %175 : vector<1x16xf32> to vector<128x16xf32>
    %177 = arith.addf %174, %176 : vector<128x16xf32>
    %c0_87 = arith.constant 0 : index
    %c0_88 = arith.constant 0 : index
    %178 = vector.load %arg10[%c0_87, %c0_88] : memref<1x16xf32, #tpu.memory_space<vmem>>, vector<1x16xf32>
    %179 = vector.broadcast %178 : vector<1x16xf32> to vector<128x16xf32>
    %180 = arith.mulf %177, %179 : vector<128x16xf32>
    %c0_89 = arith.constant 0 : index
    %c0_90 = arith.constant 0 : index
    %181 = vector.load %arg11[%c0_89, %c0_90] : memref<1x16xf32, #tpu.memory_space<vmem>>, vector<1x16xf32>
    %182 = vector.broadcast %181 : vector<1x16xf32> to vector<128x16xf32>
    %183 = arith.addf %180, %182 : vector<128x16xf32>
    %cst_91 = arith.constant 0.000000e+00 : f32
    %184 = vector.broadcast %cst_91 : f32 to vector<128x16xf32>
    %185 = arith.maximumf %183, %184 : vector<128x16xf32>
    %186 = arith.addf %185, %0 : vector<128x16xf32>
    %187 = vector.extract_strided_slice %172 {offsets = [0, 0], sizes = [64, 16], strides = [1, 1]} : vector<128x16xf32> to vector<64x16xf32>
    %cst_92 = arith.constant dense<0.000000e+00> : vector<16xf32>
    %188 = vector.multi_reduction <add>, %187, %cst_92 [0] : vector<64x16xf32> to vector<16xf32>
    %189 = vector.shape_cast %188 : vector<16xf32> to vector<1x16xf32>
    %cst_93 = arith.constant 1.562500e-02 : f32
    %190 = vector.broadcast %cst_93 : f32 to vector<1x16xf32>
    %191 = arith.mulf %189, %190 : vector<1x16xf32>
    %c0_94 = arith.constant 0 : index
    %c0_95 = arith.constant 0 : index
    %192 = vector.load %arg12[%c0_94, %c0_95] : memref<16x1xf32, #tpu.memory_space<vmem>>, vector<16x1xf32>
    %cst_96 = arith.constant dense<0.000000e+00> : vector<1x1xf32>
    %193 = tpu.matmul %191, %192, %cst_96 {dimension_numbers = #tpu.dot_dimension_numbers<[1], [0], [0], [1], [0, 0, 1, 1], [], []>} : vector<1x16xf32>, vector<16x1xf32>, vector<1x1xf32> -> vector<1x1xf32>
    %cst_97 = arith.constant 0.000000e+00 : f32
    %194 = vector.broadcast %cst_97 : f32 to vector<1x1xf32>
    %195 = arith.maximumf %193, %194 : vector<1x1xf32>
    %c0_98 = arith.constant 0 : index
    %c0_99 = arith.constant 0 : index
    %196 = vector.load %arg13[%c0_98, %c0_99] : memref<1x16xf32, #tpu.memory_space<vmem>>, vector<1x16xf32>
    %cst_100 = arith.constant dense<0.000000e+00> : vector<1x16xf32>
    %197 = tpu.matmul %195, %196, %cst_100 {dimension_numbers = #tpu.dot_dimension_numbers<[1], [0], [0], [1], [0, 0, 1, 1], [], []>} : vector<1x1xf32>, vector<1x16xf32>, vector<1x16xf32> -> vector<1x16xf32>
    %198 = arith.negf %197 : vector<1x16xf32>
    %199 = math.exp %198 : vector<1x16xf32>
    %cst_101 = arith.constant 1.000000e+00 : f32
    %200 = vector.broadcast %cst_101 : f32 to vector<1x16xf32>
    %201 = arith.addf %200, %199 : vector<1x16xf32>
    %202 = arith.divf %200, %201 : vector<1x16xf32>
    %203 = vector.broadcast %202 : vector<1x16xf32> to vector<64x16xf32>
    %204 = arith.mulf %187, %203 : vector<64x16xf32>
    %205 = vector.extract_strided_slice %186 {offsets = [0, 0], sizes = [64, 16], strides = [1, 1]} : vector<128x16xf32> to vector<64x16xf32>
    %206 = arith.addf %204, %205 : vector<64x16xf32>
    %cst_102 = arith.constant 0.000000e+00 : f32
    %207 = vector.broadcast %cst_102 : f32 to vector<64x16xf32>
    %208 = arith.maximumf %206, %207 : vector<64x16xf32>
    %c0_103 = arith.constant 0 : index
    %c0_104 = arith.constant 0 : index
    %209 = vector.load %arg14[%c0_103, %c0_104] : memref<128x16xf32, #tpu.memory_space<vmem>>, vector<64x16xf32>
    tpu.vector_store %arg14[%c0_103, %c0_104], %208 {strides = array<i32>} : memref<128x16xf32, #tpu.memory_space<vmem>>, vector<64x16xf32>,
    %210 = vector.extract_strided_slice %172 {offsets = [64, 0], sizes = [64, 16], strides = [1, 1]} : vector<128x16xf32> to vector<64x16xf32>
    %cst_105 = arith.constant dense<0.000000e+00> : vector<16xf32>
    %211 = vector.multi_reduction <add>, %210, %cst_105 [0] : vector<64x16xf32> to vector<16xf32>
    %212 = vector.shape_cast %211 : vector<16xf32> to vector<1x16xf32>
    %cst_106 = arith.constant 1.562500e-02 : f32
    %213 = vector.broadcast %cst_106 : f32 to vector<1x16xf32>
    %214 = arith.mulf %212, %213 : vector<1x16xf32>
    %c0_107 = arith.constant 0 : index
    %c0_108 = arith.constant 0 : index
    %215 = vector.load %arg12[%c0_107, %c0_108] : memref<16x1xf32, #tpu.memory_space<vmem>>, vector<16x1xf32>
    %cst_109 = arith.constant dense<0.000000e+00> : vector<1x1xf32>
    %216 = tpu.matmul %214, %215, %cst_109 {dimension_numbers = #tpu.dot_dimension_numbers<[1], [0], [0], [1], [0, 0, 1, 1], [], []>} : vector<1x16xf32>, vector<16x1xf32>, vector<1x1xf32> -> vector<1x1xf32>
    %cst_110 = arith.constant 0.000000e+00 : f32
    %217 = vector.broadcast %cst_110 : f32 to vector<1x1xf32>
    %218 = arith.maximumf %216, %217 : vector<1x1xf32>
    %c0_111 = arith.constant 0 : index
    %c0_112 = arith.constant 0 : index
    %219 = vector.load %arg13[%c0_111, %c0_112] : memref<1x16xf32, #tpu.memory_space<vmem>>, vector<1x16xf32>
    %cst_113 = arith.constant dense<0.000000e+00> : vector<1x16xf32>
    %220 = tpu.matmul %218, %219, %cst_113 {dimension_numbers = #tpu.dot_dimension_numbers<[1], [0], [0], [1], [0, 0, 1, 1], [], []>} : vector<1x1xf32>, vector<1x16xf32>, vector<1x16xf32> -> vector<1x16xf32>
    %221 = arith.negf %220 : vector<1x16xf32>
    %222 = math.exp %221 : vector<1x16xf32>
    %cst_114 = arith.constant 1.000000e+00 : f32
    %223 = vector.broadcast %cst_114 : f32 to vector<1x16xf32>
    %224 = arith.addf %223, %222 : vector<1x16xf32>
    %225 = arith.divf %223, %224 : vector<1x16xf32>
    %226 = vector.broadcast %225 : vector<1x16xf32> to vector<64x16xf32>
    %227 = arith.mulf %210, %226 : vector<64x16xf32>
    %228 = vector.extract_strided_slice %186 {offsets = [64, 0], sizes = [64, 16], strides = [1, 1]} : vector<128x16xf32> to vector<64x16xf32>
    %229 = arith.addf %227, %228 : vector<64x16xf32>
    %cst_115 = arith.constant 0.000000e+00 : f32
    %230 = vector.broadcast %cst_115 : f32 to vector<64x16xf32>
    %231 = arith.maximumf %229, %230 : vector<64x16xf32>
    %c64 = arith.constant 64 : index
    %c0_116 = arith.constant 0 : index
    %232 = vector.load %arg14[%c64, %c0_116] : memref<128x16xf32, #tpu.memory_space<vmem>>, vector<64x16xf32>
    tpu.vector_store %arg14[%c64, %c0_116], %231 {strides = array<i32>} : memref<128x16xf32, #tpu.memory_space<vmem>>, vector<64x16xf32>,
    return
  }
}

</mosaic_0001>

<bundles_post_ra>
// kernel: tpu_custom_call.1
= control target key start
LH: loop header
LB: loop body
LE: loop exit
PB: predicated region body
PF: predicated region fallthrough
CT: control target
= control target key end

     0   :  { %v7029_v0 = vmov 0   ;;  %s7031_s19 = smov 16   ;;  %s7032_s24 = smov 32   ;;  %vm1482_vm2 = vcmask 130048   ;;  %vm1499_vm3 = vcmask 261120   ;;  %vm1516_vm4 = vcmask 392192   ;;  %s12503_s1 = inlined_call_operand.vmem [shape: f32[9,128,1], index: 1, kind: input, shape index: {}]   ;;  %s12504_s2 = inlined_call_operand.vmem [shape: f32[144,16], index: 2, kind: input, shape index: {}]   ;;  %s12505_s0 = inlined_call_operand.vmem [shape: f32[128,16], index: 0, kind: input, shape index: {}]   ;;  %s12506_s3 = inlined_call_operand.vmem [shape: f32[1,16], index: 3, kind: input, shape index: {}]   ;;  %s12507_s4 = inlined_call_operand.vmem [shape: f32[1,16], index: 4, kind: input, shape index: {}]   ;;  %s12508_s5 = inlined_call_operand.vmem [shape: f32[3,36,4], index: 5, kind: input, shape index: {}]   ;;  %s12509_s6 = inlined_call_operand.vmem [shape: f32[3,1,4], index: 6, kind: input, shape index: {}]   ;;  %s12510_s7 = inlined_call_operand.vmem [shape: f32[3,1,4], index: 7, kind: input, shape index: {}]   ;;  %s12511_s8 = inlined_call_operand.vmem [shape: f32[16,16], index: 8, kind: input, shape index: {}]   ;;  %s12512_s12 = inlined_call_operand.vmem [shape: f32[16,1], index: 12, kind: input, shape index: {}]   ;;  %s12513_s13 = inlined_call_operand.vmem [shape: f32[1,16], index: 13, kind: input, shape index: {}]   ;;  %s12514_s9 = inlined_call_operand.vmem [shape: f32[1,16], index: 9, kind: input, shape index: {}]   ;;  %s12515_s10 = inlined_call_operand.vmem [shape: f32[1,16], index: 10, kind: input, shape index: {}]   ;;  %s12516_s11 = inlined_call_operand.vmem [shape: f32[1,16], index: 11, kind: input, shape index: {}]   ;;  %s12517_s14 = inlined_call_operand.vmem [shape: f32[128,16], index: 14, kind: output, shape index: {}]  }
   0x1   :  { %6737 = vset.pattern.permute.xlu1 %v7029_v0  ;;  %6736 = vset.pattern.permute.xlu0 %v7029_v0  ;;  %v6213_v1 = vld [vmem:[%s12503_s1 + $0x180] sm:$0xff]  ;;  %v6182_v3 = vld [vmem:[%s12503_s1 + $0x88] sm:$0xff]  ;;  %v6183_v9 = vld [vmem:[%s12503_s1 + $0x90] sm:$0xff]  ;;  %s7033_s25 = smov 48   ;;  %s7034_s18 = smov 64   ;;  %vm1533_vm5 = vcmask 523264  }
   0x2   :  { %v6181_v2 = vld [vmem:[%s12503_s1 + $0x80] sm:$0xff]  ;;  %556 = vperm.xlu1 %6737, %v6213_v1   ;;  %v6198_v5 = vld [vmem:[%s12503_s1 + $0x108] sm:$0xff]  ;;  %v6199_v11 = vld [vmem:[%s12503_s1 + $0x110] sm:$0xff]  ;;  %s7035_s28 = smov 80   ;;  %s7036_s20 = smov 96   ;;  %vm1550_vm6 = vcmask 654336  }
   0x3   :  { %331 = vperm.xlu0 %6736, %v6181_v2   ;;  %v6197_v4 = vld [vmem:[%s12503_s1 + $0x100] sm:$0xff]  ;;  %v6214_v7 = vld [vmem:[%s12503_s1 + $0x188] sm:$0xff]  ;;  %v6215_v13 = vld [vmem:[%s12503_s1 + $0x190] sm:$0xff]  ;;  %s7037_s21 = smov 112   ;;  %vm1567_vm7 = vcmask 785408   ;;  %vm1584_vm8 = vcmask 916480  }
   0x4   :  { %v6229_v6 = vld [vmem:[%s12503_s1 + $0x280] sm:$0xff]  ;;  %v6230_v12 = vld [vmem:[%s12503_s1 + $0x288] sm:$0xff]  ;;  %v6184_v15 = vld [vmem:[%s12503_s1 + $0x98] sm:$0xff]  ;;  %s7040_s26 = smov 8   ;;  %s7041_s27 = smov 12   ;;  %vm2766_vm9 = vcmask 1043456  }
   0x5   :  { %v6245_v8 = vld [vmem:[%s12503_s1 + $0x300] sm:$0xff]  ;;  %v6246_v14 = vld [vmem:[%s12503_s1 + $0x308] sm:$0xff]  ;;  %v6200_v17 = vld [vmem:[%s12503_s1 + $0x118] sm:$0xff]  ;;  %s7042_s29 = smov 20   ;;  %s7043_s30 = smov 24   ;;  %vm2578_vm10 = vcmask 31744  }
   0x6   :  { %336 = vperm.xlu1 %6737, %v6182_v3   ;;  %v6261_v10 = vld [vmem:[%s12503_s1 + $0x380] sm:$0xff]  ;;  %v6262_v16 = vld [vmem:[%s12503_s1 + $0x388] sm:$0xff]  ;;  %v6231_v18 = vld [vmem:[%s12503_s1 + $0x290] sm:$0xff]  ;;  %vm2595_vm11 = vcmask 64512   ;;  %vm2612_vm12 = vcmask 97280   ;;  %vm2645_vm13 = vcmask 162816  }
   0x7   :  { %460 = vperm.xlu0 %6736, %v6197_v4   ;;  %v6216_v19 = vld [vmem:[%s12503_s1 + $0x198] sm:$0xff]  ;;  %v6247_v20 = vld [vmem:[%s12503_s1 + $0x310] sm:$0xff]  ;;  %v6185_v21 = vld [vmem:[%s12503_s1 + $0xa0] sm:$0xff]  ;;  %vm2662_vm14 = vcmask 195584   ;;  %vm2679_vm15 = vcmask 228352   ;;  %s7045_s16 = smov 120  }
   0x8   :  { %v6263_v22 = vld [vmem:[%s12503_s1 + $0x390] sm:$0xff]  ;;  %v6201_v23 = vld [vmem:[%s12503_s1 + $0x120] sm:$0xff]  ;;  %v6232_v24 = vld [vmem:[%s12503_s1 + $0x298] sm:$0xff] }
   0x9   :  { %v6217_v25 = vld [vmem:[%s12503_s1 + $0x1a0] sm:$0xff]  ;;  %v6248_v26 = vld [vmem:[%s12503_s1 + $0x318] sm:$0xff]  ;;  %v6186_v27 = vld [vmem:[%s12503_s1 + $0xa8] sm:$0xff] }
   0xa   :  { %465 = vperm.xlu1 %6737, %v6198_v5   ;;  %v6264_v28 = vld [vmem:[%s12503_s1 + $0x398] sm:$0xff]  ;;  %v6202_v29 = vld [vmem:[%s12503_s1 + $0x128] sm:$0xff]  ;;  %v6233_v30 = vld [vmem:[%s12503_s1 + $0x2a0] sm:$0xff] }
   0xb   :  { %652 = vperm.xlu0 %6736, %v6229_v6   ;;  %v6218_v31 = vld [vmem:[%s12503_s1 + $0x1a8] sm:$0xff]  ;;  %v6249_v32 = vld [vmem:[%s12503_s1 + $0x320] sm:$0xff]  ;;  %v6187_v33 = vld [vmem:[%s12503_s1 + $0xb0] sm:$0xff] }
   0xc   :  { %v6265_v34 = vld [vmem:[%s12503_s1 + $0x3a0] sm:$0xff]  ;;  %v6203_v35 = vld [vmem:[%s12503_s1 + $0x130] sm:$0xff]  ;;  %v6234_v36 = vld [vmem:[%s12503_s1 + $0x2a8] sm:$0xff] }
   0xd   :  { %v6219_v37 = vld [vmem:[%s12503_s1 + $0x1b0] sm:$0xff]  ;;  %v6250_v38 = vld [vmem:[%s12503_s1 + $0x328] sm:$0xff]  ;;  %v6188_v39 = vld [vmem:[%s12503_s1 + $0xb8] sm:$0xff] }
   0xe   :  { %561 = vperm.xlu1 %6737, %v6214_v7   ;;  %v6266_v40 = vld [vmem:[%s12503_s1 + $0x3a8] sm:$0xff]  ;;  %v6204_v41 = vld [vmem:[%s12503_s1 + $0x138] sm:$0xff]  ;;  %v6235_v42 = vld [vmem:[%s12503_s1 + $0x2b0] sm:$0xff] }
   0xf   :  { %748 = vperm.xlu0 %6736, %v6245_v8   ;;  %v6220_v43 = vld [vmem:[%s12503_s1 + $0x1b8] sm:$0xff]  ;;  %v6251_v44 = vld [vmem:[%s12503_s1 + $0x330] sm:$0xff]  ;;  %v6189_v45 = vld [vmem:[%s12503_s1 + $0xc0] sm:$0xff] }
  0x10   :  { %v6267_v46 = vld [vmem:[%s12503_s1 + $0x3b0] sm:$0xff]  ;;  %v6205_v47 = vld [vmem:[%s12503_s1 + $0x140] sm:$0xff]  ;;  %v6236_v48 = vld [vmem:[%s12503_s1 + $0x2b8] sm:$0xff] }
  0x11   :  { %v6221_v49 = vld [vmem:[%s12503_s1 + $0x1c0] sm:$0xff]  ;;  %v6252_v50 = vld [vmem:[%s12503_s1 + $0x338] sm:$0xff]  ;;  %v6190_v51 = vld [vmem:[%s12503_s1 + $0xc8] sm:$0xff] }
  0x12   :  { %341 = vperm.xlu1 %6737, %v6183_v9   ;;  %v6268_v52 = vld [vmem:[%s12503_s1 + $0x3b8] sm:$0xff]  ;;  %v6206_v53 = vld [vmem:[%s12503_s1 + $0x148] sm:$0xff]  ;;  %v6237_v54 = vld [vmem:[%s12503_s1 + $0x2c0] sm:$0xff] }
  0x13   :  { %844 = vperm.xlu0 %6736, %v6261_v10   ;;  %v6222_v55 = vld [vmem:[%s12503_s1 + $0x1c8] sm:$0xff]  ;;  %v6253_v56 = vld [vmem:[%s12503_s1 + $0x340] sm:$0xff]  ;;  %v6191_v57 = vld [vmem:[%s12503_s1 + $0xd0] sm:$0xff] }
  0x14   :  { %v6269_v58 = vld [vmem:[%s12503_s1 + $0x3c0] sm:$0xff]  ;;  %v6207_v59 = vld [vmem:[%s12503_s1 + $0x150] sm:$0xff]  ;;  %v6238_v60 = vld [vmem:[%s12503_s1 + $0x2c8] sm:$0xff] }
  0x15   :  { %v6223_v61 = vld [vmem:[%s12503_s1 + $0x1d0] sm:$0xff]  ;;  %v6254_v62 = vld [vmem:[%s12503_s1 + $0x348] sm:$0xff]  ;;  %v6192_v63 = vld [vmem:[%s12503_s1 + $0xd8] sm:$0xff] }
  0x16   :  { %470 = vperm.xlu1 %6737, %v6199_v11   ;;  %v6270_v0 = vld [vmem:[%s12503_s1 + $0x3c8] sm:$0xff]  ;;  %v6208_v1 = vld [vmem:[%s12503_s1 + $0x158] sm:$0xff]  ;;  %v6239_v2 = vld [vmem:[%s12503_s1 + $0x2d0] sm:$0xff] }
  0x17   :  { %657 = vperm.xlu0 %6736, %v6230_v12   ;;  %v6224_v5 = vld [vmem:[%s12503_s1 + $0x1d8] sm:$0xff]  ;;  %v6255_v6 = vld [vmem:[%s12503_s1 + $0x350] sm:$0xff]  ;;  %v6193_v9 = vld [vmem:[%s12503_s1 + $0xe0] sm:$0xff] }
  0x18   :  { %v6271_v10 = vld [vmem:[%s12503_s1 + $0x3d0] sm:$0xff] }
  0x1a   :  { %566 = vperm.xlu1 %6737, %v6215_v13   ;;  %v6209_v13 = vld [vmem:[%s12503_s1 + $0x160] sm:$0xff] }
  0x1b   :  { %753 = vperm.xlu0 %6736, %v6246_v14   ;;  %v6240_v14 = vld [vmem:[%s12503_s1 + $0x2d8] sm:$0xff] }
  0x1e   :  { %346 = vperm.xlu1 %6737, %v6184_v15  }
  0x1f   :  { %849 = vperm.xlu0 %6736, %v6262_v16  }
  0x22   :  { %475 = vperm.xlu1 %6737, %v6200_v17   ;;  %v6225_v17 = vld [vmem:[%s12503_s1 + $0x1e0] sm:$0xff] }
  0x23   :  { %662 = vperm.xlu0 %6736, %v6231_v18   ;;  %v6256_v18 = vld [vmem:[%s12503_s1 + $0x358] sm:$0xff] }
  0x26   :  { %571 = vperm.xlu1 %6737, %v6216_v19  }
  0x27   :  { %758 = vperm.xlu0 %6736, %v6247_v20  }
  0x2a   :  { %351 = vperm.xlu1 %6737, %v6185_v21   ;;  %v6194_v21 = vld [vmem:[%s12503_s1 + $0xe8] sm:$0xff] }
  0x2b   :  { %854 = vperm.xlu0 %6736, %v6263_v22   ;;  %v6272_v22 = vld [vmem:[%s12503_s1 + $0x3d8] sm:$0xff] }
  0x2e   :  { %480 = vperm.xlu1 %6737, %v6201_v23  }
  0x2f   :  { %667 = vperm.xlu0 %6736, %v6232_v24  }
  0x32   :  { %576 = vperm.xlu1 %6737, %v6217_v25   ;;  %v6210_v25 = vld [vmem:[%s12503_s1 + $0x168] sm:$0xff] }
  0x33   :  { %763 = vperm.xlu0 %6736, %v6248_v26   ;;  %v6241_v26 = vld [vmem:[%s12503_s1 + $0x2e0] sm:$0xff] }
  0x36   :  { %356 = vperm.xlu1 %6737, %v6186_v27  }
  0x37   :  { %859 = vperm.xlu0 %6736, %v6264_v28  }
  0x3a   :  { %485 = vperm.xlu1 %6737, %v6202_v29   ;;  %v6226_v29 = vld [vmem:[%s12503_s1 + $0x1e8] sm:$0xff] }
  0x3b   :  { %672 = vperm.xlu0 %6736, %v6233_v30   ;;  %v6257_v30 = vld [vmem:[%s12503_s1 + $0x360] sm:$0xff] }
  0x3e   :  { %581 = vperm.xlu1 %6737, %v6218_v31  }
  0x3f   :  { %768 = vperm.xlu0 %6736, %v6249_v32  }
  0x42   :  { %361 = vperm.xlu1 %6737, %v6187_v33   ;;  %v6195_v33 = vld [vmem:[%s12503_s1 + $0xf0] sm:$0xff] }
  0x43   :  { %864 = vperm.xlu0 %6736, %v6265_v34   ;;  %v6273_v34 = vld [vmem:[%s12503_s1 + $0x3e0] sm:$0xff] }
  0x46   :  { %490 = vperm.xlu1 %6737, %v6203_v35  }
  0x47   :  { %677 = vperm.xlu0 %6736, %v6234_v36  }
  0x4a   :  { %586 = vperm.xlu1 %6737, %v6219_v37   ;;  %v6211_v37 = vld [vmem:[%s12503_s1 + $0x170] sm:$0xff] }
  0x4b   :  { %773 = vperm.xlu0 %6736, %v6250_v38   ;;  %v6242_v38 = vld [vmem:[%s12503_s1 + $0x2e8] sm:$0xff] }
  0x4e   :  { %366 = vperm.xlu1 %6737, %v6188_v39  }
  0x4f   :  { %869 = vperm.xlu0 %6736, %v6266_v40  }
  0x52   :  { %495 = vperm.xlu1 %6737, %v6204_v41   ;;  %v6258_v41 = vld [vmem:[%s12503_s1 + $0x368] sm:$0xff] }
  0x53   :  { %682 = vperm.xlu0 %6736, %v6235_v42   ;;  %v63_v42 = vld [vmem:[%s12503_s1] sm:$0xff] }
  0x56   :  { %591 = vperm.xlu1 %6737, %v6220_v43  }
  0x57   :  { %778 = vperm.xlu0 %6736, %v6251_v44  }
  0x5a   :  { %371 = vperm.xlu1 %6737, %v6189_v45   ;;  %v6227_v45 = vld [vmem:[%s12503_s1 + $0x1f0] sm:$0xff] }
  0x5b   :  { %874 = vperm.xlu0 %6736, %v6267_v46   ;;  %v6274_v46 = vld [vmem:[%s12503_s1 + $0x3e8] sm:$0xff] }
  0x5e   :  { %500 = vperm.xlu1 %6737, %v6205_v47  }
  0x5f   :  { %687 = vperm.xlu0 %6736, %v6236_v48  }
  0x62   :  { %596 = vperm.xlu1 %6737, %v6221_v49   ;;  %v6196_v49 = vld [vmem:[%s12503_s1 + $0xf8] sm:$0xff] }
  0x63   :  { %783 = vperm.xlu0 %6736, %v6252_v50   ;;  %v6243_v50 = vld [vmem:[%s12503_s1 + $0x2f0] sm:$0xff] }
  0x66   :  { %376 = vperm.xlu1 %6737, %v6190_v51  }
  0x67   :  { %879 = vperm.xlu0 %6736, %v6268_v52  }
  0x6a   :  { %505 = vperm.xlu1 %6737, %v6206_v53   ;;  %v6212_v53 = vld [vmem:[%s12503_s1 + $0x178] sm:$0xff] }
  0x6b   :  { %692 = vperm.xlu0 %6736, %v6237_v54   ;;  %v6259_v54 = vld [vmem:[%s12503_s1 + $0x370] sm:$0xff] }
  0x6e   :  { %601 = vperm.xlu1 %6737, %v6222_v55  }
  0x6f   :  { %788 = vperm.xlu0 %6736, %v6253_v56  }
  0x72   :  { %381 = vperm.xlu1 %6737, %v6191_v57   ;;  %v64_v57 = vld [vmem:[%s12503_s1 + $0x8] sm:$0xff] }
  0x73   :  { %884 = vperm.xlu0 %6736, %v6269_v58   ;;  %v6228_v58 = vld [vmem:[%s12503_s1 + $0x1f8] sm:$0xff] }
  0x76   :  { %510 = vperm.xlu1 %6737, %v6207_v59   ;;  %v1601_v59 = vld [vmem:[%s12504_s2] sm:$0xff] }
  0x77   :  { %697 = vperm.xlu0 %6736, %v6238_v60   ;;  %v1602_v60 = vld [vmem:[%s12504_s2 + $0x8] sm:$0xff] }
  0x7a   :  { %606 = vperm.xlu1 %6737, %v6223_v61  }
  0x7b   :  { %793 = vperm.xlu0 %6736, %v6254_v62  }
  0x7e   :  { %386 = vperm.xlu1 %6737, %v6192_v63   ;;  %v6655_v63 = vpack.c.bf16 %v1602_v60, %v1601_v59 }
  0x7f   :  { %889 = vperm.xlu0 %6736, %v6270_v0   ;;  %v6275_v0 = vld [vmem:[%s12503_s1 + $0x3f0] sm:$0xff] }
  0x81   :  { %v7321_v3 = vpop.permute.xlu1 %556 }
  0x82   :  { %12941 = vst [vmem:[#allocation2_spill] sm:$0xff] %v7321_v3  ;;  %v7323_v4 = vpop.permute.xlu0 %331  ;;  %515 = vperm.xlu1 %6737, %v6208_v1   ;;  %v6244_v1 = vld [vmem:[%s12503_s1 + $0x2f8] sm:$0xff] }
  0x83   :  { %12942 = vst [vmem:[#allocation3_spill] sm:$0xff] %v7323_v4  ;;  %702 = vperm.xlu0 %6736, %v6239_v2   ;;  %v12522_v2 = vmov 0.0|0.0  }
  0x84   :  { %6654 = vmatprep.subr.bf16.mxu0 %v12522_v2 }
  0x85   :  { %v7331_v7 = vpop.permute.xlu1 %336  ;;  %6656 = vmatpush1.bf16.msra.mxu0 %v6655_v63 }
  0x86   :  { %12943 = vst [vmem:[#allocation4_spill] sm:$0xff] %v7331_v7  ;;  %v7333_v8 = vpop.permute.xlu0 %460  ;;  %611 = vperm.xlu1 %6737, %v6224_v5   ;;  %v214_v5 = vlaneseq  ;;  %6657 = vmatprep.subr.bf16.mxu0 %v12522_v2 }
  0x87   :  { %12944 = vst [vmem:[#allocation5_spill] sm:$0xff] %v7333_v8  ;;  %798 = vperm.xlu0 %6736, %v6255_v6   ;;  %v1603_v6 = vld [vmem:[%s12504_s2 + $0x10] sm:$0xff] }
  0x89   :  { %v7341_v11 = vpop.permute.xlu1 %465 }
  0x8a   :  { %12945 = vst [vmem:[#allocation6_spill] sm:$0xff] %v7341_v11  ;;  %v7343_v12 = vpop.permute.xlu0 %652  ;;  %391 = vperm.xlu1 %6737, %v6193_v9   ;;  %v1604_v9 = vld [vmem:[%s12504_s2 + $0x18] sm:$0xff] }
  0x8b   :  { %12946 = vst [vmem:[#allocation7_spill] sm:$0xff] %v7343_v12  ;;  %894 = vperm.xlu0 %6736, %v6271_v10  }
  0x8d   :  { %v7351_v15 = vpop.permute.xlu1 %561 }
  0x8e   :  { %12947 = vst [vmem:[#allocation8_spill] sm:$0xff] %v7351_v15  ;;  %v7353_v16 = vpop.permute.xlu0 %748  ;;  %520 = vperm.xlu1 %6737, %v6209_v13  }
  0x8f   :  { %12948 = vst [vmem:[#allocation9_spill] sm:$0xff] %v7353_v16  ;;  %707 = vperm.xlu0 %6736, %v6240_v14   ;;  %v6658_v14 = vpack.c.bf16 %v1604_v9, %v1603_v6  ;;  %v7565_v6 = vld [vmem:[%s12505_s0 + $0x10] sm:$0xff] }
  0x91   :  { %v7361_v19 = vpop.permute.xlu1 %341  ;;  %6659 = vmatpush1.bf16.msra.mxu0 %v6658_v14 }
  0x92   :  { %12949 = vst [vmem:[#allocation10_spill] sm:$0xff] %v7361_v19  ;;  %v7363_v20 = vpop.permute.xlu0 %844  ;;  %616 = vperm.xlu1 %6737, %v6225_v17   ;;  %v7492_v17 = vld [vmem:[%s12505_s0 + $0x8] sm:$0xff]  ;;  %6660 = vmatprep.subr.bf16.mxu0 %v12522_v2 }
  0x93   :  { %12950 = vst [vmem:[#allocation11_spill] sm:$0xff] %v7363_v20  ;;  %803 = vperm.xlu0 %6736, %v6256_v18   ;;  %v7497_v18 = vld [vmem:[%s12505_s0] sm:$0xff] }
  0x95   :  { %v7371_v23 = vpop.permute.xlu1 %470 }
  0x96   :  { %12951 = vst [vmem:[#allocation12_spill] sm:$0xff] %v7371_v23  ;;  %v7373_v24 = vpop.permute.xlu0 %657  ;;  %396 = vperm.xlu1 %6737, %v6194_v21   ;;  %v6277_v21 = vld [vmem:[%s12503_s1 + $0x400] sm:$0xff] }
  0x97   :  { %12952 = vst [vmem:[#allocation13_spill] sm:$0xff] %v7373_v24  ;;  %899 = vperm.xlu0 %6736, %v6272_v22   ;;  %v6260_v22 = vld [vmem:[%s12503_s1 + $0x378] sm:$0xff] }
  0x99   :  { %v7381_v27 = vpop.permute.xlu1 %566 }
  0x9a   :  { %12953 = vst [vmem:[#allocation14_spill] sm:$0xff] %v7381_v27  ;;  %v7383_v28 = vpop.permute.xlu0 %753  ;;  %525 = vperm.xlu1 %6737, %v6210_v25   ;;  %v7505_v25 = vshrl.u32 %v214_v5, 7 }
  0x9b   :  { %12954 = vst [vmem:[#allocation15_spill] sm:$0xff] %v7383_v28  ;;  %712 = vperm.xlu0 %6736, %v6241_v26   ;;  %v7510_v26 = vld [vmem:[%s12505_s0 + $0x78] sm:$0xff] }
  0x9c   :  { %12973 = vst [vmem:[#allocation34_spill] sm:$0xff] %v7505_v25  ;;  %vm216_vm0 = vcmp.lt.s32.totalorder %v7505_v25, 1  ;;  %vm441_vm1 = vcmp.lt.s32.totalorder %v7505_v25, 7  ;;  %v409_v5 = vmul.f32 %v7323_v4, %v7510_v26 }
  0x9d   :  { %v7391_v31 = vpop.permute.xlu1 %346 }
  0x9e   :  { %12955 = vst [vmem:[#allocation16_spill] sm:$0xff] %v7391_v31  ;;  %v7393_v32 = vpop.permute.xlu0 %849  ;;  %621 = vperm.xlu1 %6737, %v6226_v29   ;;  %v1605_v29 = vld [vmem:[%s12504_s2 + $0x20] sm:$0xff] }
  0x9f   :  { %12956 = vst [vmem:[#allocation17_spill] sm:$0xff] %v7393_v32  ;;  %808 = vperm.xlu0 %6736, %v6257_v30   ;;  %v1606_v30 = vld [vmem:[%s12504_s2 + $0x28] sm:$0xff] }
  0xa1   :  { %v7401_v35 = vpop.permute.xlu1 %475 }
  0xa2   :  { %12957 = vst [vmem:[#allocation18_spill] sm:$0xff] %v7401_v35  ;;  %v7403_v36 = vpop.permute.xlu0 %662  ;;  %401 = vperm.xlu1 %6737, %v6195_v33   ;;  %v426_v33 = vrot.slane %v7492_v17, 1 }
  0xa3   :  { %12958 = vst [vmem:[#allocation19_spill] sm:$0xff] %v7403_v36  ;;  %904 = vperm.xlu0 %6736, %v6273_v34   ;;  %v199_v34 = vrot.slane %v7492_v17, 7 }
  0xa5   :  { %v7411_v39 = vpop.permute.xlu1 %571 }
  0xa6   :  { %12959 = vst [vmem:[#allocation20_spill] sm:$0xff] %v7411_v39  ;;  %v7413_v40 = vpop.permute.xlu0 %758  ;;  %530 = vperm.xlu1 %6737, %v6211_v37  }
  0xa7   :  { %12960 = vst [vmem:[#allocation21_spill] sm:$0xff] %v7413_v40  ;;  %717 = vperm.xlu0 %6736, %v6242_v38  }
  0xa9   :  { %v7421_v43 = vpop.permute.xlu1 %351 }
  0xaa   :  { %12961 = vst [vmem:[#allocation22_spill] sm:$0xff] %v7421_v43  ;;  %v7423_v44 = vpop.permute.xlu0 %854  ;;  %235 = vperm.xlu1 %6737, %v63_v42   ;;  %v198_v42 = vrot.slane %v7497_v18, 7 }
  0xab   :  { %12962 = vst [vmem:[#allocation23_spill] sm:$0xff] %v7423_v44  ;;  %813 = vperm.xlu0 %6736, %v6258_v41   ;;  %v6661_v41 = vpack.c.bf16 %v1606_v30, %v1605_v29 }
  0xac   :  { %v7553_v60 = vsel %vm216_vm0, %v198_v42, %v199_v34 }
  0xad   :  { %v7431_v47 = vpop.permute.xlu1 %480  ;;  %6662 = vmatpush1.bf16.msra.mxu0 %v6661_v41  ;;  %v635_v29 = vmul.f32 %v7351_v15, %v7553_v60  ;;  %v1609_v41 = vld [vmem:[%s12504_s2 + $0x40] sm:$0xff] }
  0xae   :  { %12963 = vst [vmem:[#allocation24_spill] sm:$0xff] %v7431_v47  ;;  %v7433_v48 = vpop.permute.xlu0 %667  ;;  %909 = vperm.xlu1 %6737, %v6274_v46   ;;  %v425_v46 = vrot.slane %v7497_v18, 1  ;;  %6663 = vmatprep.subr.bf16.mxu0 %v12522_v2 }
  0xaf   :  { %12964 = vst [vmem:[#allocation25_spill] sm:$0xff] %v7433_v48  ;;  %626 = vperm.xlu0 %6736, %v6227_v45   ;;  %v12519_v45 = vrot.slane %v7510_v26, 7 }
  0xb0   :  { %v7547_v59 = vsel %vm441_vm1, %v425_v46, %v426_v33 }
  0xb1   :  { %v7441_v51 = vpop.permute.xlu1 %576  ;;  %12976 = vst [vmem:[#allocation37_spill] sm:$0xff] %v7547_v59  ;;  %v7571_v9 = vsel %vm216_vm0, %v12519_v45, %v198_v42  ;;  %v1610_v42 = vld [vmem:[%s12504_s2 + $0x48] sm:$0xff]  ;;  %v7654_v45 = vld [vmem:[%s12505_s0 + $0x18] sm:$0xff] }
  0xb2   :  { %12965 = vst [vmem:[#allocation26_spill] sm:$0xff] %v7441_v51  ;;  %v7443_v52 = vpop.permute.xlu0 %763  ;;  %722 = vperm.xlu1 %6737, %v6243_v50   ;;  %v65_v50 = vld [vmem:[%s12503_s1 + $0x10] sm:$0xff] }
  0xb3   :  { %12966 = vst [vmem:[#allocation27_spill] sm:$0xff] %v7443_v52  ;;  %406 = vperm.xlu0 %6736, %v6196_v49   ;;  %v12518_v49 = vrot.slane %v7510_v26, 1 }
  0xb5   :  { %v7451_v55 = vpop.permute.xlu1 %356  ;;  %v7577_v14 = vsel %vm441_vm1, %v12518_v49, %v425_v46  ;;  %v12521_v46 = vrot.slane %v7565_v6, 1  ;;  %v1611_v49 = vld [vmem:[%s12504_s2 + $0x50] sm:$0xff] }
  0xb6   :  { %12967 = vst [vmem:[#allocation28_spill] sm:$0xff] %v7451_v55  ;;  %v7453_v56 = vpop.permute.xlu0 %859  ;;  %818 = vperm.xlu1 %6737, %v6259_v54   ;;  %v410_v54 = vmul.f32 %v7331_v7, %v7497_v18 }
  0xb7   :  { %12968 = vst [vmem:[#allocation29_spill] sm:$0xff] %v7453_v56  ;;  %535 = vperm.xlu0 %6736, %v6212_v53   ;;  %v6276_v53 = vld [vmem:[%s12503_s1 + $0x3f8] sm:$0xff] }
  0xb8   :  { %v6738_v30 = vpack.i.bf16 %v410_v54, %v409_v5  ;;  %v634_v54 = vmul.f32 %v7321_v3, %v7571_v9 }
  0xb9   :  { %v7467_v61 = vpop.permute.xlu1 %485 }
  0xba   :  { %12969 = vst [vmem:[#allocation30_spill] sm:$0xff] %v7467_v61  ;;  %v7469_v62 = vpop.permute.xlu0 %672  ;;  %631 = vperm.xlu1 %6737, %v6228_v58   ;;  %v1608_v58 = vld [vmem:[%s12504_s2 + $0x38] sm:$0xff]  ;;  %v6748_v5 = vpack.i.bf16 %v635_v29, %v634_v54 }
  0xbb   :  { %12970 = vst [vmem:[#allocation31_spill] sm:$0xff] %v7469_v62  ;;  %240 = vperm.xlu0 %6736, %v64_v57   ;;  %v1607_v57 = vld [vmem:[%s12504_s2 + $0x30] sm:$0xff] }
  0xbd   :  { %v7484_v10 = vpop.permute.xlu1 %581 }
  0xbe   :  { %12971 = vst [vmem:[#allocation32_spill] sm:$0xff] %v7484_v10  ;;  %v7486_v13 = vpop.permute.xlu0 %768  ;;  %727 = vperm.xlu1 %6737, %v6244_v1   ;;  %v6664_v1 = vpack.c.bf16 %v1608_v58, %v1607_v57  ;;  %v6667_v57 = vpack.c.bf16 %v1610_v42, %v1609_v41  ;;  %v538_v58 = vmul.f32 %v7333_v8, %v7577_v14  ;;  %v1612_v41 = vld [vmem:[%s12504_s2 + $0x58] sm:$0xff]  ;;  %v12987_v8 = vmov 0.0|0.0  }
  0xbf   :  { %12972 = vst [vmem:[#allocation33_spill] sm:$0xff] %v7486_v13  ;;  %914 = vperm.xlu0 %6736, %v6275_v0   ;;  %v7613_v42 = vsel %vm441_vm1, %v426_v33, %v12521_v46  ;;  %v6670_v29 = vpack.c.bf16 %v1612_v41, %v1611_v49  ;;  %v66_v33 = vld [vmem:[%s12503_s1 + $0x18] sm:$0xff]  ;;  %v1613_v49 = vld [vmem:[%s12504_s2 + $0x60] sm:$0xff]  ;;  %v1615_v46 = vld [vmem:[%s12504_s2 + $0x70] sm:$0xff] }
  0xc0   :  { %6665 = vmatpush1.bf16.msra.mxu0 %v6664_v1  ;;  %v731_v54 = vmul.f32 %v7373_v24, %v7613_v42  ;;  %v540_v15 = vmul.f32 %v7371_v23, %v7613_v42 }
  0xc1   :  { %v7520_v37 = vpop.permute.xlu1 %361  ;;  %6666 = vmatprep.subr.bf16.mxu0 %v12522_v2 }
  0xc2   :  { %12974 = vst [vmem:[#allocation35_spill] sm:$0xff] %v7520_v37  ;;  %v7522_v38 = vpop.permute.xlu0 %864  ;;  %823 = vperm.xlu1 %6737, %v6260_v22   ;;  %v539_v22 = vmul.f32 %v7341_v11, %v7547_v59 }
  0xc3   :  { %12975 = vst [vmem:[#allocation36_spill] sm:$0xff] %v7522_v38  ;;  %940 = vperm.xlu0 %6736, %v6277_v21   ;;  %v6278_v21 = vld [vmem:[%s12503_s1 + $0x408] sm:$0xff] }
  0xc4   :  { %v6743_v1 = vpack.i.bf16 %v539_v22, %v538_v58  ;;  %6668 = vmatpush1.bf16.msra.mxu0 %v6667_v57  ;;  %v6753_v57 = vpack.i.bf16 %v7492_v17, %v7497_v18  ;;  %v1614_v58 = vld [vmem:[%s12504_s2 + $0x68] sm:$0xff] }
  0xc5   :  { %v7555_v63 = vpop.permute.xlu1 %490  ;;  %6669 = vmatprep.subr.bf16.mxu0 %v12522_v2  ;;  %v6673_v41 = vpack.c.bf16 %v1614_v58, %v1613_v49  ;;  %v923_v49 = vmul.f32 %v7393_v32, %v7565_v6 }
  0xc6   :  { %12977 = vst [vmem:[#allocation38_spill] sm:$0xff] %v7555_v63  ;;  %v7557_v0 = vpop.permute.xlu0 %677  ;;  %919 = vperm.xlu1 %6737, %v6276_v53  }
  0xc7   :  { %12978 = vst [vmem:[#allocation39_spill] sm:$0xff] %v7557_v0  ;;  %245 = vperm.xlu0 %6736, %v65_v50  }
  0xc8   :  { %6671 = vmatpush1.bf16.msra.mxu0 %v6670_v29  ;;  %v730_v29 = vmul.f32 %v7343_v12, %v7547_v59 }
  0xc9   :  { %v7593_v50 = vpop.permute.xlu1 %586  ;;  %6672 = vmatprep.subr.bf16.mxu0 %v12522_v2 }
  0xca   :  { %12979 = vst [vmem:[#allocation40_spill] sm:$0xff] %v7593_v50  ;;  %v7595_v53 = vpop.permute.xlu0 %773  ;;  %945 = vperm.xlu1 %6737, %v6278_v21   ;;  %v12520_v21 = vrot.slane %v7565_v6, 7  ;;  %v6758_v58 = vpack.i.bf16 %v731_v54, %v730_v29  ;;  %v826_v54 = vmul.f32 %v7353_v16, %v7553_v60  ;;  %v412_v29 = vmul.f32 %v7391_v31, %v7565_v6 }
  0xcb   :  { %12980 = vst [vmem:[#allocation41_spill] sm:$0xff] %v7595_v53  ;;  %6739 = vrot.lane.b32.xlu0 %v6738_v30, %s7031_s19  ;;  %v12988_v16 = vrot.slane %v7565_v6, 1 }
  0xcc   :  { %v7642_v18 = vsel %vm216_vm0, %v199_v34, %v12520_v21  ;;  %v6279_v34 = vld [vmem:[%s12503_s1 + $0x410] sm:$0xff]  ;;  %6674 = vmatpush1.bf16.msra.mxu0 %v6673_v41  ;;  %v922_v41 = vmul.f32 %v7363_v20, %v7492_v17 }
  0xcd   :  { %v7616_v30 = vpop.permute.xlu1 %366  ;;  %v827_v21 = vmul.f32 %v7383_v28, %v7642_v18  ;;  %6675 = vmatprep.subr.bf16.mxu0 %v12987_v8 }
  0xce   :  { %12981 = vst [vmem:[#allocation42_spill] sm:$0xff] %v7616_v30  ;;  %v7618_v22 = vpop.permute.xlu0 %869  ;;  %6749 = vrot.lane.b32.xlu1 %v6748_v5, %s7033_s25  ;;  %v6768_v12 = vpack.i.bf16 %v923_v49, %v922_v41  ;;  %v411_v49 = vmul.f32 %v7361_v19, %v7492_v17  ;;  %v12991_v17 = vrot.slane %v7565_v6, 7 }
  0xcf   :  { %12982 = vst [vmem:[#allocation43_spill] sm:$0xff] %v7618_v22  ;;  %6744 = vrot.lane.b32.xlu0 %v6743_v1, %s7032_s24  ;;  %v6763_v28 = vpack.i.bf16 %v827_v21, %v826_v54  ;;  %v7706_v54 = vld [vmem:[%s12505_s0 + $0x20] sm:$0xff] }
  0xd1   :  { %v7644_v1 = vpop.permute.xlu1 %495 }
  0xd2   :  { %12983 = vst [vmem:[#allocation44_spill] sm:$0xff] %v7644_v1  ;;  %v7646_v5 = vpop.permute.xlu0 %682  ;;  %6754 = vrot.lane.b32.xlu1 %v6753_v57, %s7034_s18  ;;  %v1616_v57 = vld [vmem:[%s12504_s2 + $0x78] sm:$0xff] }
  0xd3   :  { %12984 = vst [vmem:[#allocation45_spill] sm:$0xff] %v7646_v5  ;;  %250 = vperm.xlu0 %6736, %v66_v33   ;;  %v428_v33 = vrot.slane %v7654_v45, 1  ;;  %v6676_v4 = vpack.c.bf16 %v1616_v57, %v1615_v46  ;;  %v1617_v46 = vld [vmem:[%s12504_s2 + $0x80] sm:$0xff]  ;;  %v1618_v57 = vld [vmem:[%s12504_s2 + $0x88] sm:$0xff] }
  0xd5   :  { %v7671_v2 = vpop.permute.xlu1 %591  ;;  %6677 = vmatpush1.bf16.msra.mxu0 %v6676_v4  ;;  %v6679_v4 = vpack.c.bf16 %v1618_v57, %v1617_v46  ;;  %v6773_v46 = vpack.i.bf16 %v412_v29, %v411_v49  ;;  %v6280_v29 = vld [vmem:[%s12503_s1 + $0x418] sm:$0xff] }
  0xd6   :  { %12985 = vst [vmem:[#allocation46_spill] sm:$0xff] %v7671_v2  ;;  %v7673_v3 = vpop.permute.xlu0 %778  ;;  %950 = vperm.xlu1 %6737, %v6279_v34   ;;  %v201_v34 = vrot.slane %v7654_v45, 7  ;;  %6678 = vmatprep.subr.bf16.mxu0 %v12987_v8 }
  0xd7   :  { %12986 = vst [vmem:[#allocation47_spill] sm:$0xff] %v7673_v3  ;;  %6759 = vrot.lane.b32.xlu0 %v6758_v58, %s7035_s28  ;;  %v7693_v58 = vsel %vm441_vm1, %v12988_v16, %v428_v33  ;;  %v67_v16 = vld [vmem:[%s12503_s1 + $0x20] sm:$0xff] }
  0xd8   :  { %v541_v41 = vmul.f32 %v7401_v35, %v7693_v58  ;;  %v7719_v57 = vsel %vm216_vm0, %v12991_v17, %v201_v34  ;;  %v202_v35 = vrot.slane %v7706_v54, 7 }
  0xd9   :  { %v7696_v24 = vpop.permute.xlu1 %371  ;;  %6680 = vmatpush1.bf16.msra.mxu0 %v6679_v4  ;;  %v637_v4 = vmul.f32 %v7411_v39, %v7719_v57 }
  0xda   :  { %12989 = vst [vmem:[#allocation48_spill] sm:$0xff] %v7696_v24  ;;  %v7698_v21 = vpop.permute.xlu0 %874  ;;  %6769 = vrot.lane.b32.xlu1 %v6768_v12, %s7037_s21  ;;  %v6778_v49 = vpack.i.bf16 %v541_v41, %v540_v15  ;;  %v68_v15 = vld [vmem:[%s12503_s1 + $0x28] sm:$0xff] }
  0xdb   :  { %12990 = vst [vmem:[#allocation49_spill] sm:$0xff] %v7698_v21  ;;  %6764 = vrot.lane.b32.xlu0 %v6763_v28, %s7036_s20  ;;  %v429_v28 = vrot.slane %v7706_v54, 1 }
  0xdd   :  { %v7722_v8 = vpop.permute.xlu1 %500  ;;  %v7736_v17 = vsel %vm441_vm1, %v428_v33, %v429_v28 }
  0xde   :  { %12992 = vst [vmem:[#allocation50_spill] sm:$0xff] %v7722_v8  ;;  %v7724_v12 = vpop.permute.xlu0 %687  ;;  %6774 = vrot.lane.b32.xlu1 %v6773_v46, %s7031_s19  ;;  %v733_v33 = vmul.f32 %v7433_v48, %v7736_v17  ;;  %v7753_v46 = vsel %vm216_vm0, %v201_v34, %v202_v35 }
  0xdf   :  { %12993 = vst [vmem:[#allocation51_spill] sm:$0xff] %v7724_v12  ;;  %255 = vperm.xlu0 %6736, %v67_v16   ;;  %v636_v16 = vmul.f32 %v7381_v27, %v7642_v18  ;;  %12996 = vst [vmem:[#allocation54_spill] sm:$0xff] %v7753_v46  ;;  %v828_v27 = vmul.f32 %v7413_v40, %v7719_v57 }
  0xe1   :  { %v7739_v32 = vpop.permute.xlu1 %596  ;;  %v6783_v41 = vpack.i.bf16 %v637_v4, %v636_v16  ;;  %v829_v4 = vmul.f32 %v7443_v52, %v7753_v46 }
  0xe2   :  { %12994 = vst [vmem:[#allocation52_spill] sm:$0xff] %v7739_v32  ;;  %v7741_v23 = vpop.permute.xlu0 %783  ;;  %6779 = vrot.lane.b32.xlu1 %v6778_v49, %s7032_s24  ;;  %v6788_v49 = vpack.i.bf16 %v7654_v45, %v7565_v6  ;;  %v6281_v6 = vld [vmem:[%s12503_s1 + $0x420] sm:$0xff] }
  0xe3   :  { %12995 = vst [vmem:[#allocation53_spill] sm:$0xff] %v7741_v23  ;;  %955 = vperm.xlu0 %6736, %v6280_v29   ;;  %v732_v29 = vmul.f32 %v7403_v36, %v7693_v58  ;;  %v7775_v36 = vld [vmem:[%s12505_s0 + $0x28] sm:$0xff] }
  0xe5   :  { %v7755_v39 = vpop.permute.xlu1 %376  ;;  %v6793_v16 = vpack.i.bf16 %v733_v33, %v732_v29  ;;  %v6798_v33 = vpack.i.bf16 %v829_v4, %v828_v27  ;;  %v203_v29 = vrot.slane %v7775_v36, 7  ;;  %v414_v27 = vmul.f32 %v7451_v55, %v7706_v54  ;;  %v7815_v55 = vld [vmem:[%s12505_s0 + $0x30] sm:$0xff] }
  0xe6   :  { %12997 = vst [vmem:[#allocation55_spill] sm:$0xff] %v7755_v39  ;;  %v7757_v11 = vpop.permute.xlu0 %879  ;;  %260 = vperm.xlu1 %6737, %v68_v15   ;;  %v925_v15 = vmul.f32 %v7453_v56, %v7706_v54 }
  0xe7   :  { %12998 = vst [vmem:[#allocation56_spill] sm:$0xff] %v7757_v11  ;;  %6784 = vrot.lane.b32.xlu0 %v6783_v41, %s7033_s25  ;;  %v430_v41 = vrot.slane %v7775_v36, 1  ;;  %v7804_v31 = vsel %vm216_vm0, %v202_v35, %v203_v29  ;;  %v6282_v35 = vld [vmem:[%s12503_s1 + $0x428] sm:$0xff] }
  0xe8   :  { %13003 = vst [vmem:[#allocation61_spill] sm:$0xff] %v7804_v31 }
  0xe9   :  { %v7766_v48 = vpop.permute.xlu1 %505  ;;  %v7800_v56 = vsel %vm441_vm1, %v429_v28, %v430_v41 }
  0xea   :  { %12999 = vst [vmem:[#allocation57_spill] sm:$0xff] %v7766_v48  ;;  %v7768_v34 = vpop.permute.xlu0 %692  ;;  %6794 = vrot.lane.b32.xlu1 %v6793_v16, %s7035_s28  ;;  %v69_v16 = vld [vmem:[%s12503_s1 + $0x30] sm:$0xff]  ;;  %v543_v28 = vmul.f32 %v7467_v61, %v7800_v56 }
  0xeb   :  { %13000 = vst [vmem:[#allocation58_spill] sm:$0xff] %v7768_v34  ;;  %6789 = vrot.lane.b32.xlu0 %v6788_v49, %s7034_s18  ;;  %v924_v49 = vmul.f32 %v7423_v44, %v7654_v45 }
  0xed   :  { %v7786_v40 = vpop.permute.xlu1 %601  ;;  %v6803_v4 = vpack.i.bf16 %v925_v15, %v924_v49  ;;  %v639_v15 = vmul.f32 %v7484_v10, %v7804_v31 }
  0xee   :  { %13001 = vst [vmem:[#allocation59_spill] sm:$0xff] %v7786_v40  ;;  %v7788_v52 = vpop.permute.xlu0 %788  ;;  %6799 = vrot.lane.b32.xlu1 %v6798_v33, %s7036_s20  ;;  %v413_v33 = vmul.f32 %v7421_v43, %v7654_v45  ;;  %v431_v45 = vrot.slane %v7815_v55, 1 }
  0xef   :  { %13002 = vst [vmem:[#allocation60_spill] sm:$0xff] %v7788_v52  ;;  %960 = vperm.xlu0 %6736, %v6281_v6  }
  0xf0   :  { %v6808_v49 = vpack.i.bf16 %v414_v27, %v413_v33  ;;  %v7837_v27 = vsel %vm441_vm1, %v430_v41, %v431_v45  ;;  %v204_v33 = vrot.slane %v7815_v55, 7 }
  0xf1   :  { %v7806_v44 = vpop.permute.xlu1 %381  ;;  %v735_v41 = vmul.f32 %v7557_v0, %v7837_v27 }
  0xf2   :  { %13004 = vst [vmem:[#allocation62_spill] sm:$0xff] %v7806_v44  ;;  %v7808_v6 = vpop.permute.xlu0 %884  ;;  %265 = vperm.xlu1 %6737, %v69_v16   ;;  %v542_v16 = vmul.f32 %v7431_v47, %v7736_v17 }
  0xf3   :  { %13005 = vst [vmem:[#allocation63_spill] sm:$0xff] %v7808_v6  ;;  %6804 = vrot.lane.b32.xlu0 %v6803_v4, %s7037_s21  ;;  %v638_v4 = vmul.f32 %v7441_v51, %v7753_v46 }
  0xf4   :  { %v6813_v61 = vpack.i.bf16 %v543_v28, %v542_v16  ;;  %v7855_v28 = vsel %vm216_vm0, %v203_v29, %v204_v33 }
  0xf5   :  { %v7826_v43 = vpop.permute.xlu1 %510  ;;  %v6818_v19 = vpack.i.bf16 %v639_v15, %v638_v4  ;;  %13010 = vst [vmem:[#allocation68_spill] sm:$0xff] %v7855_v28  ;;  %v831_v29 = vmul.f32 %v7595_v53, %v7855_v28  ;;  %v927_v4 = vmul.f32 %v7618_v22, %v7815_v55  ;;  %v416_v53 = vmul.f32 %v7616_v30, %v7815_v55 }
  0xf6   :  { %13006 = vst [vmem:[#allocation64_spill] sm:$0xff] %v7826_v43  ;;  %v7828_v20 = vpop.permute.xlu0 %697  ;;  %965 = vperm.xlu1 %6737, %v6282_v35   ;;  %v70_v35 = vld [vmem:[%s12503_s1 + $0x38] sm:$0xff] }
  0xf7   :  { %13007 = vst [vmem:[#allocation65_spill] sm:$0xff] %v7828_v20  ;;  %6809 = vrot.lane.b32.xlu0 %v6808_v49, %s7031_s19  ;;  %v6823_v49 = vpack.i.bf16 %v7775_v36, %v7706_v54  ;;  %v6283_v54 = vld [vmem:[%s12503_s1 + $0x430] sm:$0xff] }
  0xf9   :  { %v7840_v10 = vpop.permute.xlu1 %606 }
  0xfa   :  { %13008 = vst [vmem:[#allocation66_spill] sm:$0xff] %v7840_v10  ;;  %v7842_v7 = vpop.permute.xlu0 %793  ;;  %6819 = vrot.lane.b32.xlu1 %v6818_v19, %s7033_s25  ;;  %v734_v19 = vmul.f32 %v7469_v62, %v7800_v56 }
  0xfb   :  { %13009 = vst [vmem:[#allocation67_spill] sm:$0xff] %v7842_v7  ;;  %6814 = vrot.lane.b32.xlu0 %v6813_v61, %s7032_s24  ;;  %v7866_v61 = vld [vmem:[%s12505_s0 + $0x38] sm:$0xff] }
  0xfc   :  { %v6828_v0 = vpack.i.bf16 %v735_v41, %v734_v19  ;;  %v432_v62 = vrot.slane %v7866_v61, 1  ;;  %v205_v59 = vrot.slane %v7866_v61, 7 }
  0xfd   :  { %v7857_v15 = vpop.permute.xlu1 %386 }
  0xfe   :  { %13011 = vst [vmem:[#allocation69_spill] sm:$0xff] %v7857_v15  ;;  %v7859_v16 = vpop.permute.xlu0 %889  ;;  %6824 = vrot.lane.b32.xlu1 %v6823_v49, %s7034_s18  ;;  %v830_v49 = vmul.f32 %v7486_v13, %v7804_v31  ;;  %v7890_v19 = vsel %vm441_vm1, %v431_v45, %v432_v62  ;;  %v71_v45 = vld [vmem:[%s12503_s1 + $0x40] sm:$0xff] }
  0xff   :  { %13012 = vst [vmem:[#allocation70_spill] sm:$0xff] %v7859_v16  ;;  %270 = vperm.xlu0 %6736, %v70_v35   ;;  %v926_v35 = vmul.f32 %v7522_v38, %v7775_v36  ;;  %13015 = vst [vmem:[#allocation73_spill] sm:$0xff] %v7890_v19  ;;  %v415_v38 = vmul.f32 %v7520_v37, %v7775_v36  ;;  %v7913_v36 = vsel %vm216_vm0, %v204_v33, %v205_v59 }
 0x100   :  { %v6833_v22 = vpack.i.bf16 %v831_v29, %v830_v49  ;;  %13018 = vst [vmem:[#allocation76_spill] sm:$0xff] %v7913_v36 }
 0x101   :  { %v7877_v51 = vpop.permute.xlu1 %515  ;;  %v6838_v41 = vpack.i.bf16 %v927_v4, %v926_v35  ;;  %v6843_v29 = vpack.i.bf16 %v416_v53, %v415_v38  ;;  %v6284_v38 = vld [vmem:[%s12503_s1 + $0x438] sm:$0xff]  ;;  %v641_v53 = vmul.f32 %v7671_v2, %v7913_v36 }
 0x102   :  { %13013 = vst [vmem:[#allocation71_spill] sm:$0xff] %v7877_v51  ;;  %v7879_v47 = vpop.permute.xlu0 %702  ;;  %970 = vperm.xlu1 %6737, %v6283_v54   ;;  %v545_v54 = vmul.f32 %v7644_v1, %v7890_v19 }
 0x103   :  { %13014 = vst [vmem:[#allocation72_spill] sm:$0xff] %v7879_v47  ;;  %6829 = vrot.lane.b32.xlu0 %v6828_v0, %s7035_s28  ;;  %v7902_v0 = vld [vmem:[%s12505_s0 + $0x40] sm:$0xff] }
 0x104   :  { %v433_v4 = vrot.slane %v7902_v0, 1  ;;  %v206_v1 = vrot.slane %v7902_v0, 7 }
 0x105   :  { %v7893_v46 = vpop.permute.xlu1 %611 }
 0x106   :  { %13016 = vst [vmem:[#allocation74_spill] sm:$0xff] %v7893_v46  ;;  %v7895_v13 = vpop.permute.xlu0 %798  ;;  %6839 = vrot.lane.b32.xlu1 %v6838_v41, %s7037_s21  ;;  %v7930_v41 = vsel %vm441_vm1, %v432_v62, %v433_v4 }
 0x107   :  { %13017 = vst [vmem:[#allocation75_spill] sm:$0xff] %v7895_v13  ;;  %6834 = vrot.lane.b32.xlu0 %v6833_v22, %s7036_s20  ;;  %v544_v22 = vmul.f32 %v7555_v63, %v7837_v27  ;;  %v737_v62 = vmul.f32 %v7724_v12, %v7930_v41 }
 0x109   :  { %v7916_v49 = vpop.permute.xlu1 %391  ;;  %v6848_v33 = vpack.i.bf16 %v545_v54, %v544_v22  ;;  %v72_v54 = vld [vmem:[%s12503_s1 + $0x48] sm:$0xff]  ;;  %v7947_v22 = vsel %vm216_vm0, %v205_v59, %v206_v1 }
 0x10a   :  { %13019 = vst [vmem:[#allocation77_spill] sm:$0xff] %v7916_v49  ;;  %v7918_v35 = vpop.permute.xlu0 %894  ;;  %6844 = vrot.lane.b32.xlu1 %v6843_v29, %s7031_s19  ;;  %13023 = vst [vmem:[#allocation81_spill] sm:$0xff] %v7947_v22 }
 0x10b   :  { %13020 = vst [vmem:[#allocation78_spill] sm:$0xff] %v7918_v35  ;;  %275 = vperm.xlu0 %6736, %v71_v45   ;;  %v640_v45 = vmul.f32 %v7593_v50, %v7855_v28  ;;  %v832_v50 = vmul.f32 %v7673_v3, %v7913_v36 }
 0x10d   :  { %v7933_v30 = vpop.permute.xlu1 %520  ;;  %v6853_v29 = vpack.i.bf16 %v641_v53, %v640_v45  ;;  %v833_v53 = vmul.f32 %v7741_v23, %v7947_v22 }
 0x10e   :  { %13021 = vst [vmem:[#allocation79_spill] sm:$0xff] %v7933_v30  ;;  %v7935_v63 = vpop.permute.xlu0 %707  ;;  %6849 = vrot.lane.b32.xlu1 %v6848_v33, %s7032_s24  ;;  %v6858_v33 = vpack.i.bf16 %v7866_v61, %v7815_v55  ;;  %v6285_v55 = vld [vmem:[%s12503_s1 + $0x440] sm:$0xff] }
 0x10f   :  { %13022 = vst [vmem:[#allocation80_spill] sm:$0xff] %v7935_v63  ;;  %975 = vperm.xlu0 %6736, %v6284_v38   ;;  %v736_v38 = vmul.f32 %v7646_v5, %v7890_v19  ;;  %v7969_v5 = vld [vmem:[%s12505_s0 + $0x48] sm:$0xff] }
 0x111   :  { %v7949_v2 = vpop.permute.xlu1 %616  ;;  %v6863_v45 = vpack.i.bf16 %v737_v62, %v736_v38  ;;  %v6868_v62 = vpack.i.bf16 %v833_v53, %v832_v50  ;;  %v207_v38 = vrot.slane %v7969_v5, 7  ;;  %v418_v50 = vmul.f32 %v7755_v39, %v7902_v0  ;;  %v8009_v39 = vld [vmem:[%s12505_s0 + $0x50] sm:$0xff] }
 0x112   :  { %13024 = vst [vmem:[#allocation82_spill] sm:$0xff] %v7949_v2  ;;  %v7951_v37 = vpop.permute.xlu0 %803  ;;  %280 = vperm.xlu1 %6737, %v72_v54   ;;  %v929_v54 = vmul.f32 %v7757_v11, %v7902_v0 }
 0x113   :  { %13025 = vst [vmem:[#allocation83_spill] sm:$0xff] %v7951_v37  ;;  %6854 = vrot.lane.b32.xlu0 %v6853_v29, %s7033_s25  ;;  %v434_v29 = vrot.slane %v7969_v5, 1  ;;  %v7998_v36 = vsel %vm216_vm0, %v206_v1, %v207_v38  ;;  %v6286_v1 = vld [vmem:[%s12503_s1 + $0x448] sm:$0xff] }
 0x114   :  { %13031 = vst [vmem:[#allocation89_spill] sm:$0xff] %v7998_v36 }
 0x115   :  { %v7960_v12 = vpop.permute.xlu1 %396  ;;  %v7994_v11 = vsel %vm441_vm1, %v433_v4, %v434_v29 }
 0x116   :  { %13026 = vst [vmem:[#allocation84_spill] sm:$0xff] %v7960_v12  ;;  %v7962_v59 = vpop.permute.xlu0 %899  ;;  %6864 = vrot.lane.b32.xlu1 %v6863_v45, %s7035_s28  ;;  %v73_v45 = vld [vmem:[%s12503_s1 + $0x50] sm:$0xff]  ;;  %13030 = vst [vmem:[#allocation88_spill] sm:$0xff] %v7994_v11  ;;  %v547_v4 = vmul.f32 %v7766_v48, %v7994_v11 }
 0x117   :  { %13027 = vst [vmem:[#allocation85_spill] sm:$0xff] %v7962_v59  ;;  %6859 = vrot.lane.b32.xlu0 %v6858_v33, %s7034_s18  ;;  %v928_v33 = vmul.f32 %v7698_v21, %v7866_v61 }
 0x119   :  { %v7980_v3 = vpop.permute.xlu1 %525  ;;  %v6873_v53 = vpack.i.bf16 %v929_v54, %v928_v33  ;;  %v643_v54 = vmul.f32 %v7786_v40, %v7998_v36 }
 0x11a   :  { %13028 = vst [vmem:[#allocation86_spill] sm:$0xff] %v7980_v3  ;;  %v7982_v23 = vpop.permute.xlu0 %712  ;;  %6869 = vrot.lane.b32.xlu1 %v6868_v62, %s7036_s20  ;;  %v417_v62 = vmul.f32 %v7696_v24, %v7866_v61  ;;  %v435_v61 = vrot.slane %v8009_v39, 1 }
 0x11b   :  { %13029 = vst [vmem:[#allocation87_spill] sm:$0xff] %v7982_v23  ;;  %980 = vperm.xlu0 %6736, %v6285_v55  }
 0x11c   :  { %v6878_v33 = vpack.i.bf16 %v418_v50, %v417_v62  ;;  %v8031_v50 = vsel %vm441_vm1, %v434_v29, %v435_v61  ;;  %v208_v62 = vrot.slane %v8009_v39, 7 }
 0x11d   :  { %v8000_v21 = vpop.permute.xlu1 %621  ;;  %v739_v29 = vmul.f32 %v7828_v20, %v8031_v50 }
 0x11e   :  { %13032 = vst [vmem:[#allocation90_spill] sm:$0xff] %v8000_v21  ;;  %v8002_v55 = vpop.permute.xlu0 %808  ;;  %285 = vperm.xlu1 %6737, %v73_v45   ;;  %v546_v45 = vmul.f32 %v7722_v8, %v7930_v41 }
 0x11f   :  { %13033 = vst [vmem:[#allocation91_spill] sm:$0xff] %v8002_v55  ;;  %6874 = vrot.lane.b32.xlu0 %v6873_v53, %s7037_s21  ;;  %v642_v53 = vmul.f32 %v7739_v32, %v7947_v22 }
 0x120   :  { %v6883_v48 = vpack.i.bf16 %v547_v4, %v546_v45  ;;  %v8049_v4 = vsel %vm216_vm0, %v207_v38, %v208_v62 }
 0x121   :  { %v8020_v24 = vpop.permute.xlu1 %401  ;;  %v6888_v31 = vpack.i.bf16 %v643_v54, %v642_v53  ;;  %13038 = vst [vmem:[#allocation96_spill] sm:$0xff] %v8049_v4  ;;  %v835_v38 = vmul.f32 %v7842_v7, %v8049_v4  ;;  %v931_v53 = vmul.f32 %v7859_v16, %v8009_v39  ;;  %v420_v7 = vmul.f32 %v7857_v15, %v8009_v39 }
 0x122   :  { %13034 = vst [vmem:[#allocation92_spill] sm:$0xff] %v8020_v24  ;;  %v8022_v28 = vpop.permute.xlu0 %904  ;;  %985 = vperm.xlu1 %6737, %v6286_v1   ;;  %v74_v1 = vld [vmem:[%s12503_s1 + $0x58] sm:$0xff] }
 0x123   :  { %13035 = vst [vmem:[#allocation93_spill] sm:$0xff] %v8022_v28  ;;  %6879 = vrot.lane.b32.xlu0 %v6878_v33, %s7031_s19  ;;  %v6893_v33 = vpack.i.bf16 %v7969_v5, %v7902_v0  ;;  %v6287_v0 = vld [vmem:[%s12503_s1 + $0x450] sm:$0xff] }
 0x125   :  { %v8034_v40 = vpop.permute.xlu1 %530 }
 0x126   :  { %13036 = vst [vmem:[#allocation94_spill] sm:$0xff] %v8034_v40  ;;  %v8036_v19 = vpop.permute.xlu0 %717  ;;  %6889 = vrot.lane.b32.xlu1 %v6888_v31, %s7033_s25  ;;  %v738_v31 = vmul.f32 %v7768_v34, %v7994_v11 }
 0x127   :  { %13037 = vst [vmem:[#allocation95_spill] sm:$0xff] %v8036_v19  ;;  %6884 = vrot.lane.b32.xlu0 %v6883_v48, %s7032_s24  ;;  %v8060_v48 = vld [vmem:[%s12505_s0 + $0x58] sm:$0xff] }
 0x128   :  { %v6898_v20 = vpack.i.bf16 %v739_v29, %v738_v31  ;;  %v436_v34 = vrot.slane %v8060_v48, 1  ;;  %v209_v22 = vrot.slane %v8060_v48, 7 }
 0x129   :  { %v8053_v45 = vpop.permute.xlu1 %235 }
 0x12a   :  { %v8051_v54 = vpop.permute.xlu0 %813  ;;  %13040 = vst [vmem:[#allocation98_spill] sm:$0xff] %v8053_v45  ;;  %6894 = vrot.lane.b32.xlu1 %v6893_v33, %s7034_s18  ;;  %v834_v33 = vmul.f32 %v7788_v52, %v7998_v36  ;;  %v8084_v31 = vsel %vm441_vm1, %v435_v61, %v436_v34  ;;  %v75_v61 = vld [vmem:[%s12503_s1 + $0x60] sm:$0xff] }
 0x12b   :  { %13039 = vst [vmem:[#allocation97_spill] sm:$0xff] %v8051_v54  ;;  %290 = vperm.xlu0 %6736, %v74_v1   ;;  %v930_v1 = vmul.f32 %v7808_v6, %v7969_v5  ;;  %13043 = vst [vmem:[#allocation101_spill] sm:$0xff] %v8084_v31  ;;  %v419_v6 = vmul.f32 %v7806_v44, %v7969_v5  ;;  %v8107_v5 = vsel %vm216_vm0, %v208_v62, %v209_v22 }
 0x12c   :  { %v6903_v16 = vpack.i.bf16 %v835_v38, %v834_v33  ;;  %13046 = vst [vmem:[#allocation104_spill] sm:$0xff] %v8107_v5 }
 0x12d   :  { %v8073_v8 = vpop.permute.xlu1 %909  ;;  %v6908_v29 = vpack.i.bf16 %v931_v53, %v930_v1  ;;  %v6913_v38 = vpack.i.bf16 %v420_v7, %v419_v6  ;;  %v6288_v7 = vld [vmem:[%s12503_s1 + $0x458] sm:$0xff]  ;;  %v645_v6 = vmul.f32 %v7893_v46, %v8107_v5 }
 0x12e   :  { %v8071_v32 = vpop.permute.xlu0 %626  ;;  %13042 = vst [vmem:[#allocation100_spill] sm:$0xff] %v8073_v8  ;;  %990 = vperm.xlu1 %6737, %v6287_v0   ;;  %v549_v0 = vmul.f32 %v7877_v51, %v8084_v31 }
 0x12f   :  { %13041 = vst [vmem:[#allocation99_spill] sm:$0xff] %v8071_v32  ;;  %6899 = vrot.lane.b32.xlu0 %v6898_v20, %s7035_s28  ;;  %v8096_v20 = vld [vmem:[%s12505_s0 + $0x60] sm:$0xff] }
 0x130   :  { %v437_v53 = vrot.slane %v8096_v20, 1  ;;  %v210_v51 = vrot.slane %v8096_v20, 7 }
 0x131   :  { %v8089_v52 = vpop.permute.xlu1 %722 }
 0x132   :  { %v8087_v11 = vpop.permute.xlu0 %406  ;;  %13045 = vst [vmem:[#allocation103_spill] sm:$0xff] %v8089_v52  ;;  %6909 = vrot.lane.b32.xlu1 %v6908_v29, %s7037_s21  ;;  %v8124_v29 = vsel %vm441_vm1, %v436_v34, %v437_v53 }
 0x133   :  { %13044 = vst [vmem:[#allocation102_spill] sm:$0xff] %v8087_v11  ;;  %6904 = vrot.lane.b32.xlu0 %v6903_v16, %s7036_s20  ;;  %v548_v16 = vmul.f32 %v7826_v43, %v8031_v50  ;;  %13049 = vst [vmem:[#allocation107_spill] sm:$0xff] %v8124_v29  ;;  %v741_v34 = vmul.f32 %v7935_v63, %v8124_v29 }
 0x135   :  { %v8112_v1 = vpop.permute.xlu1 %818  ;;  %v6918_v62 = vpack.i.bf16 %v549_v0, %v548_v16  ;;  %v76_v0 = vld [vmem:[%s12503_s1 + $0x68] sm:$0xff]  ;;  %v8141_v16 = vsel %vm216_vm0, %v209_v22, %v210_v51 }
 0x136   :  { %v8110_v33 = vpop.permute.xlu0 %535  ;;  %13048 = vst [vmem:[#allocation106_spill] sm:$0xff] %v8112_v1  ;;  %6914 = vrot.lane.b32.xlu1 %v6913_v38, %s7031_s19  ;;  %13052 = vst [vmem:[#allocation110_spill] sm:$0xff] %v8141_v16 }
 0x137   :  { %13047 = vst [vmem:[#allocation105_spill] sm:$0xff] %v8110_v33  ;;  %295 = vperm.xlu0 %6736, %v75_v61   ;;  %v644_v61 = vmul.f32 %v7840_v10, %v8049_v4  ;;  %v836_v10 = vmul.f32 %v7895_v13, %v8107_v5 }
 0x139   :  { %v8129_v43 = vpop.permute.xlu1 %631  ;;  %v6923_v38 = vpack.i.bf16 %v645_v6, %v644_v61  ;;  %v837_v6 = vmul.f32 %v7951_v37, %v8141_v16 }
 0x13a   :  { %v8127_v15 = vpop.permute.xlu0 %240  ;;  %13051 = vst [vmem:[#allocation109_spill] sm:$0xff] %v8129_v43  ;;  %6919 = vrot.lane.b32.xlu1 %v6918_v62, %s7032_s24  ;;  %v6928_v62 = vpack.i.bf16 %v8060_v48, %v8009_v39 }
 0x13b   :  { %13050 = vst [vmem:[#allocation108_spill] sm:$0xff] %v8127_v15  ;;  %995 = vperm.xlu0 %6736, %v6288_v7   ;;  %v740_v7 = vmul.f32 %v7879_v47, %v8084_v31 }
 0x13d   :  { %v8145_v44 = vpop.permute.xlu1 %727  ;;  %v6933_v61 = vpack.i.bf16 %v741_v34, %v740_v7  ;;  %v933_v34 = vmul.f32 %v7962_v59, %v8096_v20  ;;  %v6938_v7 = vpack.i.bf16 %v837_v6, %v836_v10  ;;  %v77_v59 = vld [vmem:[%s12503_s1 + $0x70] sm:$0xff]  ;;  %v422_v10 = vmul.f32 %v7960_v12, %v8096_v20 }
 0x13e   :  { %v8143_v46 = vpop.permute.xlu0 %914  ;;  %13054 = vst [vmem:[#allocation112_spill] sm:$0xff] %v8145_v44  ;;  %300 = vperm.xlu1 %6737, %v76_v0   ;;  %v6289_v0 = vld [vmem:[%s12503_s1 + $0x460] sm:$0xff] }
 0x13f   :  { %13053 = vst [vmem:[#allocation111_spill] sm:$0xff] %v8143_v46  ;;  %6924 = vrot.lane.b32.xlu0 %v6923_v38, %s7033_s25  ;;  %v8163_v38 = vld [vmem:[%s12505_s0 + $0x68] sm:$0xff] }
 0x140   :  { %v438_v37 = vrot.slane %v8163_v38, 1  ;;  %v211_v13 = vrot.slane %v8163_v38, 7 }
 0x141   :  { %v8156_v22 = vpop.permute.xlu1 %823 }
 0x142   :  { %v8154_v63 = vpop.permute.xlu0 %940  ;;  %13056 = vst [vmem:[#allocation114_spill] sm:$0xff] %v8156_v22  ;;  %6934 = vrot.lane.b32.xlu1 %v6933_v61, %s7035_s28  ;;  %v8195_v47 = vsel %vm216_vm0, %v210_v51, %v211_v13 }
 0x143   :  { %13055 = vst [vmem:[#allocation113_spill] sm:$0xff] %v8154_v63  ;;  %6929 = vrot.lane.b32.xlu0 %v6928_v62, %s7034_s18  ;;  %v1018_v39 = vmul.f32 %v8154_v63, %v7613_v42  ;;  %v932_v42 = vmul.f32 %v7918_v35, %v8060_v48  ;;  %13060 = vst [vmem:[#allocation118_spill] sm:$0xff] %v8195_v47  ;;  %v8204_v63 = vld [vmem:[%s12505_s0 + $0x70] sm:$0xff] }
 0x144   :  { %v12694_v12 = vrot.slane %v8204_v63, 1 }
 0x145   :  { %6293 = vmatprep.mubr.msk.f32.mxu0 %vm1482_vm2, %v1018_v39  ;;  %v8179_v61 = vpop.permute.xlu1 %919  ;;  %v6943_v6 = vpack.i.bf16 %v933_v34, %v932_v42  ;;  %v8191_v39 = vsel %vm441_vm1, %v437_v53, %v438_v37  ;;  %v6290_v53 = vld [vmem:[%s12503_s1 + $0x468] sm:$0xff]  ;;  %v647_v34 = vmul.f32 %v8000_v21, %v8195_v47 }
 0x146   :  { %v8177_v62 = vpop.permute.xlu0 %245  ;;  %13058 = vst [vmem:[#allocation116_spill] sm:$0xff] %v8179_v61  ;;  %6939 = vrot.lane.b32.xlu1 %v6938_v7, %s7036_s20  ;;  %13059 = vst [vmem:[#allocation117_spill] sm:$0xff] %v8191_v39  ;;  %v421_v7 = vmul.f32 %v7916_v49, %v8060_v48  ;;  %v551_v51 = vmul.f32 %v7980_v3, %v8191_v39  ;;  %v212_v48 = vrot.slane %v8204_v63, 7  ;;  %v13062_v3 = vrot.slane %v7510_v26, 7 }
 0x147   :  { %13057 = vst [vmem:[#allocation115_spill] sm:$0xff] %v8177_v62  ;;  %1000 = vperm.xlu0 %6736, %v6289_v0   ;;  %v8233_v4 = vsel %vm441_vm1, %v438_v37, %v12694_v12  ;;  %v314_v12 = vmul.f32 %v8127_v15, %v7571_v9  ;;  %v935_v15 = vmul.f32 %v8073_v8, %v8204_v63 }
 0x148   :  { %v6948_v42 = vpack.i.bf16 %v422_v10, %v421_v7  ;;  %v8227_v21 = vsel %vm216_vm0, %v212_v48, %v13062_v3  ;;  %v6963_v3 = vpack.i.bf16 %v8163_v38, %v8096_v20 }
 0x149   :  { %v8197_v35 = vpop.permute.xlu1 %945  ;;  %v313_v37 = vmul.f32 %v8053_v45, %v8227_v21 }
 0x14a   :  { %13061 = vst [vmem:[#allocation119_spill] sm:$0xff] %v8197_v35  ;;  %v6740_v0 = vpop.permute.xlu0 %6739  ;;  %305 = vperm.xlu1 %6737, %v77_v59   ;;  %v550_v59 = vmul.f32 %v7933_v30, %v8124_v29 }
 0x14b   :  { %6944 = vrot.lane.b32.xlu0 %v6943_v6, %s7037_s21  ;;  %v646_v6 = vmul.f32 %v7949_v2, %v8141_v16  ;;  %v6741_v30 = vunpack.i.l.bf16 %v6740_v0 }
 0x14c   :  { %v6953_v10 = vpack.i.bf16 %v551_v51, %v550_v59  ;;  %v78_v51 = vld [vmem:[%s12503_s1 + $0x78] sm:$0xff]  ;;  %v6742_v59 = vunpack.i.h.bf16 %v6740_v0 }
 0x14d   :  { %v8216_v5 = vpop.permute.xlu1 %6749  ;;  %v6958_v7 = vpack.i.bf16 %v647_v34, %v646_v6  ;;  %v743_v34 = vmul.f32 %v8036_v19, %v8233_v4  ;;  %v1483_v20 = vsel %vm1482_vm2, %v313_v37, %v6741_v30  ;;  %v838_v30 = vmul.f32 %v8002_v55, %v8195_v47  ;;  %v6291_v19 = vld [vmem:[%s12503_s1 + $0x470] sm:$0xff] }
 0x14e   :  { %v6745_v49 = vpop.permute.xlu0 %6744  ;;  %1005 = vperm.xlu1 %6737, %v6290_v53   ;;  %v8243_v53 = vsel %vm216_vm0, %v211_v13, %v212_v48  ;;  %v6751_v13 = vunpack.i.l.bf16 %v8216_v5 }
 0x14f   :  { %6949 = vrot.lane.b32.xlu0 %v6948_v42, %s7031_s19  ;;  %v6746_v42 = vunpack.i.l.bf16 %v6745_v49  ;;  %v6747_v6 = vunpack.i.h.bf16 %v6745_v49  ;;  %v839_v49 = vmul.f32 %v8051_v54, %v8243_v53 }
 0x151   :  { %v6755_v2 = vpop.permute.xlu1 %6754  ;;  %v1500_v45 = vsel %vm1499_vm3, %v1483_v20, %v6746_v42  ;;  %v1484_v42 = vsel %vm1482_vm2, %v314_v12, %v6742_v59  ;;  %v934_v20 = vmul.f32 %v8022_v28, %v8163_v38  ;;  %v424_v59 = vmul.f32 %v8087_v11, %v8204_v63 }
 0x152   :  { %v8235_v36 = vpop.permute.xlu0 %250  ;;  %6959 = vrot.lane.b32.xlu1 %v6958_v7, %s7033_s25  ;;  %v742_v7 = vmul.f32 %v7982_v23, %v8191_v39  ;;  %v6756_v0 = vunpack.i.l.bf16 %v6755_v2  ;;  %v1501_v55 = vsel %vm1499_vm3, %v1484_v42, %v6747_v6  ;;  %v1517_v54 = vsel %vm1516_vm4, %v1500_v45, %v6751_v13 }
 0x153   :  { %13063 = vst [vmem:[#allocation120_spill] sm:$0xff] %v8235_v36  ;;  %6954 = vrot.lane.b32.xlu0 %v6953_v10, %s7032_s24  ;;  %v6757_v23 = vunpack.i.h.bf16 %v6755_v2  ;;  %v6978_v2 = vpack.i.bf16 %v935_v15, %v934_v20  ;;  %v1019_v15 = vmul.f32 %v8197_v35, %v7693_v58 }
 0x154   :  { %v1534_v39 = vsel %vm1533_vm5, %v1517_v54, %v6756_v0  ;;  %v552_v0 = vmul.f32 %v8034_v40, %v8233_v4 }
 0x155   :  { %v8254_v10 = vpop.permute.xlu1 %950 }
 0x156   :  { %v6760_v48 = vpop.permute.xlu0 %6759  ;;  %13064 = vst [vmem:[#allocation121_spill] sm:$0xff] %v8254_v10  ;;  %6964 = vrot.lane.b32.xlu1 %v6963_v3, %s7034_s18  ;;  %v6968_v3 = vpack.i.bf16 %v743_v34, %v742_v7 }
 0x157   :  { %310 = vperm.xlu0 %6736, %v78_v51   ;;  %v6761_v37 = vunpack.i.l.bf16 %v6760_v48  ;;  %v6752_v51 = vunpack.i.h.bf16 %v8216_v5  ;;  %v6762_v29 = vunpack.i.h.bf16 %v6760_v48  ;;  %v6973_v5 = vpack.i.bf16 %v839_v49, %v838_v30 }
 0x159   :  { %v6770_v16 = vpop.permute.xlu1 %6769  ;;  %v1551_v34 = vsel %vm1550_vm6, %v1534_v39, %v6761_v37  ;;  %v1518_v45 = vsel %vm1516_vm4, %v1501_v55, %v6752_v51  ;;  %v648_v37 = vmul.f32 %v8071_v32, %v8243_v53  ;;  %v1020_v51 = vmul.f32 %v8254_v10, %v7736_v17 }
 0x15a   :  { %v6765_v47 = vpop.permute.xlu0 %6764  ;;  %v6771_v8 = vunpack.i.l.bf16 %v6770_v16  ;;  %1010 = vperm.xlu1 %6737, %v6291_v19   ;;  %v1535_v54 = vsel %vm1533_vm5, %v1518_v45, %v6757_v23  ;;  %v6772_v39 = vunpack.i.h.bf16 %v6770_v16  ;;  %v13066_v23 = vrot.slane %v7510_v26, 1  ;;  %v6292_v16 = vld [vmem:[%s12503_s1 + $0x478] sm:$0xff] }
 0x15b   :  { %v6766_v31 = vunpack.i.l.bf16 %v6765_v47  ;;  %6969 = vrot.lane.b32.xlu0 %v6968_v3, %s7035_s28  ;;  %v6767_v12 = vunpack.i.h.bf16 %v6765_v47  ;;  %v423_v47 = vmul.f32 %v8020_v24, %v8163_v38  ;;  %v1552_v55 = vsel %vm1550_vm6, %v1535_v54, %v6762_v29 }
 0x15c   :  { %v649_v29 = vmul.f32 %v8129_v43, %v8227_v21  ;;  %v315_v54 = vmul.f32 %v8177_v62, %v7553_v60 }
 0x15d   :  { %v1568_v6 = vsel %vm1567_vm7, %v1551_v34, %v6766_v31  ;;  %v8287_v48 = vpop.permute.xlu1 %6774  ;;  %v13067_v31 = vrot.slane %v8204_v63, 1  ;;  %v1569_v38 = vsel %vm1567_vm7, %v1552_v55, %v6767_v12  ;;  %v6983_v7 = vpack.i.bf16 %v424_v59, %v423_v47 }
 0x15e   :  { %v8285_v13 = vpop.permute.xlu0 %255  ;;  %v1585_v19 = vsel %vm1584_vm8, %v1568_v6, %v6771_v8  ;;  %6979 = vrot.lane.b32.xlu1 %v6978_v2, %s7037_s21  ;;  %v1586_v42 = vsel %vm1584_vm8, %v1569_v38, %v6772_v39  ;;  %v6993_v20 = vpack.i.bf16 %v649_v29, %v648_v37  ;;  %v6998_v34 = vpack.i.bf16 %v7510_v26, %v8204_v63 }
 0x15f   :  { %13065 = vst [vmem:[#allocation122_spill] sm:$0xff] %v8285_v13  ;;  %6974 = vrot.lane.b32.xlu0 %v6973_v5, %s7036_s20  ;;  %v8303_v8 = vsel %vm441_vm1, %v13067_v31, %v13066_v23  ;;  %1732 = vmatmul.mubr.f32.vlgmr.msra.gmra.mrb[0].mxu0 %v1585_v19  ;;  %v6776_v59 = vunpack.i.l.bf16 %v8287_v48  ;;  %v6777_v39 = vunpack.i.h.bf16 %v8287_v48  ;;  %v840_v63 = vmul.f32 %v8112_v1, %v8227_v21 }
 0x160   :  { %v553_v58 = vmul.f32 %v8110_v33, %v8303_v8  ;;  %6294 = vmatprep.mubr.msk.f32.mxu0 %vm1482_vm2, %v1019_v15  ;;  %v744_v17 = vmul.f32 %v8089_v52, %v8303_v8  ;;  %v7011_v15 = vld [vmem:[%s12505_s0 + $0x78] sm:$0xff]  ;;  %v316_v48 = vmul.f32 %v8235_v36, %v7642_v18  ;;  %v745_v37 = vmul.f32 %v8145_v44, %v7577_v14 }
 0x161   :  { %v6780_v49 = vpop.permute.xlu1 %6779  ;;  %v1485_v26 = vsel %vm1482_vm2, %v315_v54, %v6776_v59  ;;  %v936_v55 = vmul.f32 %v7011_v15, %v8143_v46  ;;  %v841_v18 = vmul.f32 %v8156_v22, %v7571_v9 }
 0x162   :  { %v8316_v30 = vpop.permute.xlu0 %955  ;;  %1015 = vperm.xlu1 %6737, %v6292_v16   ;;  %v6988_v3 = vpack.i.bf16 %v553_v58, %v552_v0  ;;  %v6781_v45 = vunpack.i.l.bf16 %v6780_v49  ;;  %v6782_v60 = vunpack.i.h.bf16 %v6780_v49  ;;  %v1486_v49 = vsel %vm1482_vm2, %v316_v48, %v6777_v39 }
 0x163   :  { %13068 = vst [vmem:[#allocation123_spill] sm:$0xff] %v8316_v30  ;;  %6984 = vrot.lane.b32.xlu0 %v6983_v7, %s7031_s19  ;;  %1737 = vmatmul.mubr.f32.gmra.mrb[2].mxu0 %v1586_v42 }
 0x164   :  { %6295 = vmatprep.mubr.msk.f32.mxu0 %vm1482_vm2, %v1020_v51  ;;  %v1502_v23 = vsel %vm1499_vm3, %v1485_v26, %v6781_v45  ;;  %v1503_v42 = vsel %vm1499_vm3, %v1486_v49, %v6782_v60 }
 0x165   :  { %v8325_v5 = vpop.permute.xlu1 %260 }
 0x166   :  { %v6785_v12 = vpop.permute.xlu0 %6784  ;;  %13069 = vst [vmem:[#allocation124_spill] sm:$0xff] %v8325_v5  ;;  %6994 = vrot.lane.b32.xlu1 %v6993_v20, %s7033_s25 }
 0x167   :  { %6989 = vrot.lane.b32.xlu0 %v6988_v3, %s7032_s24  ;;  %v6786_v19 = vunpack.i.l.bf16 %v6785_v12  ;;  %v6787_v38 = vunpack.i.h.bf16 %v6785_v12 }
 0x169   :  { %v6795_v6 = vpop.permute.xlu1 %6794  ;;  %v1519_v58 = vsel %vm1516_vm4, %v1502_v23, %v6786_v19  ;;  %v1520_v20 = vsel %vm1516_vm4, %v1503_v42, %v6787_v38  ;;  %v8373_v19 = vld [vmem:[%s12505_s0] sm:$0xff] }
 0x16a   :  { %v6790_v2 = vpop.permute.xlu0 %6789  ;;  %1334 = vrot.lane.b32.xlu1 %v744_v17, %s7035_s28  ;;  %v6796_v29 = vunpack.i.l.bf16 %v6795_v6  ;;  %v6797_v12 = vunpack.i.h.bf16 %v6795_v6  ;;  %v937_v6 = vmul.f32 %v8373_v19, %v8179_v61 }
 0x16b   :  { %6999 = vrot.lane.b32.xlu0 %v6998_v34, %s7034_s18  ;;  %v6791_v47 = vunpack.i.l.bf16 %v6790_v2  ;;  %v6792_v21 = vunpack.i.h.bf16 %v6790_v2 }
 0x16d   :  { %v6800_v16 = vpop.permute.xlu1 %6799  ;;  %v1536_v7 = vsel %vm1533_vm5, %v1519_v58, %v6791_v47  ;;  %v1537_v17 = vsel %vm1533_vm5, %v1520_v20, %v6792_v21  ;;  %v1021_v47 = vmul.f32 %v8316_v30, %v7800_v56 }
 0x16e   :  { %v8347_v31 = vpop.permute.xlu0 %960  ;;  %1462 = vrot.lane.b32.xlu1 %v936_v55, %s7037_s21  ;;  %v6801_v0 = vunpack.i.l.bf16 %v6800_v16  ;;  %v1553_v59 = vsel %vm1550_vm6, %v1536_v7, %v6796_v29  ;;  %v6802_v45 = vunpack.i.h.bf16 %v6800_v16  ;;  %v317_v29 = vmul.f32 %v8285_v13, %v7719_v57 }
 0x16f   :  { %13070 = vst [vmem:[#allocation125_spill] sm:$0xff] %v8347_v31  ;;  %1398 = vrot.lane.b32.xlu0 %v840_v63, %s7036_s20  ;;  %v1554_v63 = vsel %vm1550_vm6, %v1537_v17, %v6797_v12  ;;  %v1022_v60 = vmul.f32 %v8347_v31, %v7837_v27 }
 0x170   :  { %v1570_v9 = vsel %vm1567_vm7, %v1553_v59, %v6801_v0  ;;  %v1571_v15 = vsel %vm1567_vm7, %v1554_v63, %v6802_v45  ;;  %v13074_v0 = vld [vmem:[#allocation54_spill] sm:$0xff] }
 0x171   :  { %v8361_v3 = vpop.permute.xlu1 %265  ;;  %v318_v49 = vmul.f32 %v8325_v5, %v13074_v0 }
 0x172   :  { %v6805_v51 = vpop.permute.xlu0 %6804  ;;  %13071 = vst [vmem:[#allocation126_spill] sm:$0xff] %v8361_v3  ;;  %1400 = vrot.lane.b32.xlu1 %v841_v18, %s7036_s20 }
 0x173   :  { %v6806_v34 = vunpack.i.l.bf16 %v6805_v51  ;;  %1336 = vrot.lane.b32.xlu0 %v745_v37, %s7035_s28  ;;  %v6807_v2 = vunpack.i.h.bf16 %v6805_v51 }
 0x175   :  { %v1587_v54 = vsel %vm1584_vm8, %v1570_v9, %v6806_v34  ;;  %v8379_v26 = vpop.permute.xlu1 %965  ;;  %v1588_v55 = vsel %vm1584_vm8, %v1571_v15, %v6807_v2 }
 0x176   :  { %v6810_v39 = vpop.permute.xlu0 %6809  ;;  %13072 = vst [vmem:[#allocation127_spill] sm:$0xff] %v8379_v26  ;;  %1742 = vmatmul.mubr.f32.gmra.mrb[4].mxu0 %v1587_v54 }
 0x177   :  { %1464 = vrot.lane.b32.xlu0 %v937_v6, %s7037_s21  ;;  %6296 = vmatprep.mubr.msk.f32.mxu0 %vm1482_vm2, %v1021_v47  ;;  %v6811_v56 = vunpack.i.l.bf16 %v6810_v39  ;;  %v6812_v21 = vunpack.i.h.bf16 %v6810_v39  ;;  %s7044_s21 = smov 124  }
 0x179   :  { %v6820_v16 = vpop.permute.xlu1 %6819  ;;  %v1487_v27 = vsel %vm1482_vm2, %v317_v29, %v6811_v56  ;;  %v1488_v12 = vsel %vm1482_vm2, %v318_v49, %v6812_v21  ;;  %v13077_v29 = vld [vmem:[#allocation73_spill] sm:$0xff] }
 0x17a   :  { %v6815_v23 = vpop.permute.xlu0 %6814  ;;  %1747 = vmatmul.mubr.f32.gmra.mrb[6].mxu0 %v1588_v55  ;;  %v6821_v37 = vunpack.i.l.bf16 %v6820_v16  ;;  %v6822_v34 = vunpack.i.h.bf16 %v6820_v16  ;;  %v1023_v21 = vmul.f32 %v8379_v26, %v13077_v29 }
 0x17b   :  { %6297 = vmatprep.mubr.msk.f32.mxu0 %vm1482_vm2, %v1022_v60  ;;  %v6816_v58 = vunpack.i.l.bf16 %v6815_v23  ;;  %v6817_v7 = vunpack.i.h.bf16 %v6815_v23 }
 0x17d   :  { %v6825_v38 = vpop.permute.xlu1 %6824  ;;  %v1504_v51 = vsel %vm1499_vm3, %v1487_v27, %v6816_v58  ;;  %v1505_v57 = vsel %vm1499_vm3, %v1488_v12, %v6817_v7 }
 0x17e   :  { %v8389_v48 = vpop.permute.xlu0 %270  ;;  %v6826_v20 = vunpack.i.l.bf16 %v6825_v38  ;;  %v6827_v17 = vunpack.i.h.bf16 %v6825_v38  ;;  %v1521_v45 = vsel %vm1516_vm4, %v1504_v51, %v6821_v37  ;;  %v1522_v15 = vsel %vm1516_vm4, %v1505_v57, %v6822_v34 }
 0x17f   :  { %13073 = vst [vmem:[#allocation128_spill] sm:$0xff] %v8389_v48 }
 0x180   :  { %v1538_v6 = vsel %vm1533_vm5, %v1521_v45, %v6826_v20  ;;  %v1539_v60 = vsel %vm1533_vm5, %v1522_v15, %v6827_v17  ;;  %v13080_v17 = vld [vmem:[#allocation61_spill] sm:$0xff]  ;;  %v13082_v15 = vld [vmem:[#allocation68_spill] sm:$0xff] }
 0x181   :  { %v8396_v42 = vpop.permute.xlu1 %970  ;;  %v319_v45 = vmul.f32 %v8361_v3, %v13080_v17 }
 0x182   :  { %v6830_v18 = vpop.permute.xlu0 %6829  ;;  %13075 = vst [vmem:[#allocation54_spill] sm:$0xff] %v8396_v42 }
 0x183   :  { %v6831_v59 = vunpack.i.l.bf16 %v6830_v18  ;;  %v6832_v9 = vunpack.i.h.bf16 %v6830_v18  ;;  %v1024_v18 = vmul.f32 %v8396_v42, %v7930_v41 }
 0x185   :  { %v6840_v54 = vpop.permute.xlu1 %6839  ;;  %v1555_v55 = vsel %vm1550_vm6, %v1538_v6, %v6831_v59  ;;  %v1556_v7 = vsel %vm1550_vm6, %v1539_v60, %v6832_v9 }
 0x186   :  { %v6835_v2 = vpop.permute.xlu0 %6834  ;;  %v6841_v63 = vunpack.i.l.bf16 %v6840_v54  ;;  %v6842_v16 = vunpack.i.h.bf16 %v6840_v54 }
 0x187   :  { %v6837_v47 = vunpack.i.h.bf16 %v6835_v2  ;;  %v6836_v39 = vunpack.i.l.bf16 %v6835_v2 }
 0x189   :  { %v1572_v23 = vsel %vm1567_vm7, %v1555_v55, %v6836_v39  ;;  %v6845_v38 = vpop.permute.xlu1 %6844  ;;  %v1573_v0 = vsel %vm1567_vm7, %v1556_v7, %v6837_v47  ;;  %v320_v55 = vmul.f32 %v8389_v48, %v13082_v15 }
 0x18a   :  { %v8407_v56 = vpop.permute.xlu0 %275  ;;  %v1589_v58 = vsel %vm1584_vm8, %v1572_v23, %v6841_v63  ;;  %v1590_v37 = vsel %vm1584_vm8, %v1573_v0, %v6842_v16  ;;  %v6846_v12 = vunpack.i.l.bf16 %v6845_v38  ;;  %v6847_v54 = vunpack.i.h.bf16 %v6845_v38 }
 0x18b   :  { %13076 = vst [vmem:[#allocation129_spill] sm:$0xff] %v8407_v56  ;;  %1752 = vmatmul.mubr.f32.gmra.mrb[8].mxu0 %v1589_v58 }
 0x18c   :  { %6298 = vmatprep.mubr.msk.f32.mxu0 %vm1482_vm2, %v1023_v21  ;;  %v1489_v6 = vsel %vm1482_vm2, %v319_v45, %v6846_v12  ;;  %v1490_v38 = vsel %vm1482_vm2, %v320_v55, %v6847_v54 }
 0x18d   :  { %v6850_v27 = vpop.permute.xlu1 %6849 }
 0x18e   :  { %v8415_v49 = vpop.permute.xlu0 %975  ;;  %v6851_v34 = vunpack.i.l.bf16 %v6850_v27  ;;  %v6852_v47 = vunpack.i.h.bf16 %v6850_v27 }
 0x18f   :  { %13078 = vst [vmem:[#allocation73_spill] sm:$0xff] %v8415_v49  ;;  %1757 = vmatmul.mubr.f32.gmra.mrb[10].mxu0 %v1590_v37 }
 0x190   :  { %6299 = vmatprep.mubr.msk.f32.mxu0 %vm1482_vm2, %v1024_v18  ;;  %v1506_v41 = vsel %vm1499_vm3, %v1489_v6, %v6851_v34  ;;  %v1507_v7 = vsel %vm1499_vm3, %v1490_v38, %v6852_v47 }
 0x191   :  { %v8421_v20 = vpop.permute.xlu1 %280 }
 0x192   :  { %v6855_v51 = vpop.permute.xlu0 %6854  ;;  %13079 = vst [vmem:[#allocation130_spill] sm:$0xff] %v8421_v20 }
 0x193   :  { %v6856_v9 = vunpack.i.l.bf16 %v6855_v51  ;;  %v6857_v60 = vunpack.i.h.bf16 %v6855_v51 }
 0x195   :  { %v6865_v57 = vpop.permute.xlu1 %6864  ;;  %v1523_v23 = vsel %vm1516_vm4, %v1506_v41, %v6856_v9  ;;  %v1524_v37 = vsel %vm1516_vm4, %v1507_v7, %v6857_v60 }
 0x196   :  { %v6860_v59 = vpop.permute.xlu0 %6859  ;;  %v6866_v16 = vunpack.i.l.bf16 %v6865_v57  ;;  %v6867_v18 = vunpack.i.h.bf16 %v6865_v57 }
 0x197   :  { %v6861_v2 = vunpack.i.l.bf16 %v6860_v59  ;;  %v6862_v58 = vunpack.i.h.bf16 %v6860_v59 }
 0x199   :  { %v6870_v63 = vpop.permute.xlu1 %6869  ;;  %v1540_v29 = vsel %vm1533_vm5, %v1523_v23, %v6861_v2  ;;  %v1541_v34 = vsel %vm1533_vm5, %v1524_v37, %v6862_v58  ;;  %v13084_v2 = vld [vmem:[#allocation88_spill] sm:$0xff]  ;;  %v13088_v37 = vld [vmem:[#allocation81_spill] sm:$0xff] }
 0x19a   :  { %v8427_v39 = vpop.permute.xlu0 %980  ;;  %v6871_v21 = vunpack.i.l.bf16 %v6870_v63  ;;  %v1557_v51 = vsel %vm1550_vm6, %v1540_v29, %v6866_v16  ;;  %v6872_v17 = vunpack.i.h.bf16 %v6870_v63  ;;  %v1025_v54 = vmul.f32 %v8415_v49, %v13084_v2 }
 0x19b   :  { %13081 = vst [vmem:[#allocation61_spill] sm:$0xff] %v8427_v39  ;;  %v1558_v57 = vsel %vm1550_vm6, %v1541_v34, %v6867_v18  ;;  %v1026_v15 = vmul.f32 %v8427_v39, %v8031_v50  ;;  %v322_v18 = vmul.f32 %v8421_v20, %v13088_v37 }
 0x19c   :  { %v1574_v59 = vsel %vm1567_vm7, %v1557_v51, %v6871_v21  ;;  %v1575_v41 = vsel %vm1567_vm7, %v1558_v57, %v6872_v17  ;;  %v13087_v21 = vld [vmem:[#allocation76_spill] sm:$0xff] }
 0x19d   :  { %v8435_v27 = vpop.permute.xlu1 %285  ;;  %v321_v38 = vmul.f32 %v8407_v56, %v13087_v21 }
 0x19e   :  { %v6875_v0 = vpop.permute.xlu0 %6874  ;;  %13083 = vst [vmem:[#allocation68_spill] sm:$0xff] %v8435_v27 }
 0x19f   :  { %v6876_v12 = vunpack.i.l.bf16 %v6875_v0  ;;  %v6877_v45 = vunpack.i.h.bf16 %v6875_v0 }
 0x1a1   :  { %v1591_v9 = vsel %vm1584_vm8, %v1574_v59, %v6876_v12  ;;  %v8444_v47 = vpop.permute.xlu1 %985  ;;  %v1592_v63 = vsel %vm1584_vm8, %v1575_v41, %v6877_v45 }
 0x1a2   :  { %v6880_v6 = vpop.permute.xlu0 %6879  ;;  %13085 = vst [vmem:[#allocation88_spill] sm:$0xff] %v8444_v47  ;;  %1762 = vmatmul.mubr.f32.gmra.mrb[12].mxu0 %v1591_v9 }
 0x1a3   :  { %6300 = vmatprep.mubr.msk.f32.mxu0 %vm1482_vm2, %v1025_v54  ;;  %v6881_v23 = vunpack.i.l.bf16 %v6880_v6  ;;  %v6882_v7 = vunpack.i.h.bf16 %v6880_v6 }
 0x1a5   :  { %v6890_v60 = vpop.permute.xlu1 %6889  ;;  %v1491_v50 = vsel %vm1482_vm2, %v321_v38, %v6881_v23  ;;  %v1492_v45 = vsel %vm1482_vm2, %v322_v18, %v6882_v7 }
 0x1a6   :  { %v6885_v55 = vpop.permute.xlu0 %6884  ;;  %1767 = vmatmul.mubr.f32.gmra.mrb[14].mxu0 %v1592_v63  ;;  %v6891_v12 = vunpack.i.l.bf16 %v6890_v60  ;;  %v6892_v9 = vunpack.i.h.bf16 %v6890_v60 }
 0x1a7   :  { %6301 = vmatprep.mubr.msk.f32.mxu0 %vm1482_vm2, %v1026_v15  ;;  %v6886_v29 = vunpack.i.l.bf16 %v6885_v55  ;;  %v6887_v0 = vunpack.i.h.bf16 %v6885_v55 }
 0x1a9   :  { %v6895_v58 = vpop.permute.xlu1 %6894  ;;  %v1508_v17 = vsel %vm1499_vm3, %v1491_v50, %v6886_v29  ;;  %v1509_v54 = vsel %vm1499_vm3, %v1492_v45, %v6887_v0 }
 0x1aa   :  { %v8453_v16 = vpop.permute.xlu0 %290  ;;  %v6896_v59 = vunpack.i.l.bf16 %v6895_v58  ;;  %v6897_v6 = vunpack.i.h.bf16 %v6895_v58  ;;  %v1525_v57 = vsel %vm1516_vm4, %v1508_v17, %v6891_v12  ;;  %v1526_v29 = vsel %vm1516_vm4, %v1509_v54, %v6892_v9  ;;  %v13091_v12 = vld [vmem:[#allocation101_spill] sm:$0xff]  ;;  %v13093_v54 = vld [vmem:[#allocation107_spill] sm:$0xff] }
 0x1ab   :  { %13086 = vst [vmem:[#allocation131_spill] sm:$0xff] %v8453_v16 }
 0x1ac   :  { %v1542_v55 = vsel %vm1533_vm5, %v1525_v57, %v6896_v59  ;;  %v1543_v60 = vsel %vm1533_vm5, %v1526_v29, %v6897_v6 }
 0x1ad   :  { %v8460_v34 = vpop.permute.xlu1 %990 }
 0x1ae   :  { %v6900_v51 = vpop.permute.xlu0 %6899  ;;  %13089 = vst [vmem:[#allocation76_spill] sm:$0xff] %v8460_v34  ;;  %v1028_v6 = vmul.f32 %v8460_v34, %v13093_v54 }
 0x1af   :  { %v6901_v2 = vunpack.i.l.bf16 %v6900_v51  ;;  %v6902_v41 = vunpack.i.h.bf16 %v6900_v51  ;;  %v1027_v51 = vmul.f32 %v8444_v47, %v13091_v12 }
 0x1b1   :  { %v6910_v15 = vpop.permute.xlu1 %6909  ;;  %v1559_v37 = vsel %vm1550_vm6, %v1542_v55, %v6901_v2  ;;  %v1560_v17 = vsel %vm1550_vm6, %v1543_v60, %v6902_v41 }
 0x1b2   :  { %v6905_v63 = vpop.permute.xlu0 %6904  ;;  %v6911_v38 = vunpack.i.l.bf16 %v6910_v15  ;;  %v6912_v0 = vunpack.i.h.bf16 %v6910_v15 }
 0x1b3   :  { %v6907_v23 = vunpack.i.h.bf16 %v6905_v63  ;;  %v6906_v21 = vunpack.i.l.bf16 %v6905_v63 }
 0x1b5   :  { %v1576_v7 = vsel %vm1567_vm7, %v1559_v37, %v6906_v21  ;;  %v6915_v18 = vpop.permute.xlu1 %6914  ;;  %v1577_v59 = vsel %vm1567_vm7, %v1560_v17, %v6907_v23  ;;  %v13095_v21 = vld [vmem:[#allocation89_spill] sm:$0xff]  ;;  %v13097_v17 = vld [vmem:[#allocation96_spill] sm:$0xff] }
 0x1b6   :  { %v8471_v58 = vpop.permute.xlu0 %295  ;;  %v1593_v50 = vsel %vm1584_vm8, %v1576_v7, %v6911_v38  ;;  %v1594_v2 = vsel %vm1584_vm8, %v1577_v59, %v6912_v0  ;;  %v6916_v41 = vunpack.i.l.bf16 %v6915_v18  ;;  %v323_v38 = vmul.f32 %v8435_v27, %v13095_v21 }
 0x1b7   :  { %13090 = vst [vmem:[#allocation81_spill] sm:$0xff] %v8471_v58  ;;  %1772 = vmatmul.mubr.f32.gmra.mrb[16].mxu0 %v1593_v50  ;;  %v6917_v60 = vunpack.i.h.bf16 %v6915_v18  ;;  %v324_v59 = vmul.f32 %v8453_v16, %v13097_v17 }
 0x1b8   :  { %6302 = vmatprep.mubr.msk.f32.mxu0 %vm1482_vm2, %v1027_v51  ;;  %v1493_v7 = vsel %vm1482_vm2, %v323_v38, %v6916_v41 }
 0x1b9   :  { %v6920_v9 = vpop.permute.xlu1 %6919  ;;  %v1494_v18 = vsel %vm1482_vm2, %v324_v59, %v6917_v60  ;;  %v13099_v60 = vld [vmem:[#allocation117_spill] sm:$0xff] }
 0x1ba   :  { %v8479_v45 = vpop.permute.xlu0 %995  ;;  %v6921_v15 = vunpack.i.l.bf16 %v6920_v9  ;;  %v6922_v0 = vunpack.i.h.bf16 %v6920_v9 }
 0x1bb   :  { %13092 = vst [vmem:[#allocation101_spill] sm:$0xff] %v8479_v45  ;;  %1777 = vmatmul.mubr.f32.gmra.mrb[18].mxu0 %v1594_v2 }
 0x1bc   :  { %6303 = vmatprep.mubr.msk.f32.mxu0 %vm1482_vm2, %v1028_v6  ;;  %v1510_v50 = vsel %vm1499_vm3, %v1493_v7, %v6921_v15  ;;  %v1511_v9 = vsel %vm1499_vm3, %v1494_v18, %v6922_v0  ;;  %v1029_v0 = vmul.f32 %v8479_v45, %v13099_v60 }
 0x1bd   :  { %v8485_v63 = vpop.permute.xlu1 %300 }
 0x1be   :  { %v6925_v57 = vpop.permute.xlu0 %6924  ;;  %13094 = vst [vmem:[#allocation107_spill] sm:$0xff] %v8485_v63 }
 0x1bf   :  { %v6926_v29 = vunpack.i.l.bf16 %v6925_v57  ;;  %v6927_v2 = vunpack.i.h.bf16 %v6925_v57 }
 0x1c1   :  { %v6935_v23 = vpop.permute.xlu1 %6934  ;;  %v1527_v54 = vsel %vm1516_vm4, %v1510_v50, %v6926_v29  ;;  %v1528_v38 = vsel %vm1516_vm4, %v1511_v9, %v6927_v2 }
 0x1c2   :  { %v6930_v55 = vpop.permute.xlu0 %6929  ;;  %v6936_v6 = vunpack.i.l.bf16 %v6935_v23  ;;  %v6937_v7 = vunpack.i.h.bf16 %v6935_v23 }
 0x1c3   :  { %v6931_v37 = vunpack.i.l.bf16 %v6930_v55  ;;  %v6932_v20 = vunpack.i.h.bf16 %v6930_v55 }
 0x1c5   :  { %v6940_v51 = vpop.permute.xlu1 %6939  ;;  %v1544_v21 = vsel %vm1533_vm5, %v1527_v54, %v6931_v37  ;;  %v1545_v29 = vsel %vm1533_vm5, %v1528_v38, %v6932_v20 }
 0x1c6   :  { %v8491_v12 = vpop.permute.xlu0 %1000  ;;  %v6941_v27 = vunpack.i.l.bf16 %v6940_v51  ;;  %v1561_v57 = vsel %vm1550_vm6, %v1544_v21, %v6936_v6  ;;  %v6942_v50 = vunpack.i.h.bf16 %v6940_v51  ;;  %v1562_v23 = vsel %vm1550_vm6, %v1545_v29, %v6937_v7  ;;  %v13103_v29 = vld [vmem:[#allocation110_spill] sm:$0xff] }
 0x1c7   :  { %13096 = vst [vmem:[#allocation89_spill] sm:$0xff] %v8491_v12 }
 0x1c8   :  { %v1578_v55 = vsel %vm1567_vm7, %v1561_v57, %v6941_v27  ;;  %v1579_v2 = vsel %vm1567_vm7, %v1562_v23, %v6942_v50  ;;  %v1030_v27 = vmul.f32 %v8491_v12, %v8233_v4  ;;  %v326_v50 = vmul.f32 %v8485_v63, %v13103_v29 }
 0x1c9   :  { %v8499_v15 = vpop.permute.xlu1 %305 }
 0x1ca   :  { %v6945_v41 = vpop.permute.xlu0 %6944  ;;  %13098 = vst [vmem:[#allocation96_spill] sm:$0xff] %v8499_v15 }
 0x1cb   :  { %v6946_v56 = vunpack.i.l.bf16 %v6945_v41  ;;  %v6947_v37 = vunpack.i.h.bf16 %v6945_v41  ;;  %v13102_v41 = vld [vmem:[#allocation104_spill] sm:$0xff] }
 0x1cc   :  { %v325_v38 = vmul.f32 %v8471_v58, %v13102_v41 }
 0x1cd   :  { %v1595_v17 = vsel %vm1584_vm8, %v1578_v55, %v6946_v56  ;;  %v8508_v54 = vpop.permute.xlu1 %1005  ;;  %v1596_v20 = vsel %vm1584_vm8, %v1579_v2, %v6947_v37 }
 0x1ce   :  { %v6950_v59 = vpop.permute.xlu0 %6949  ;;  %13100 = vst [vmem:[#allocation117_spill] sm:$0xff] %v8508_v54  ;;  %1782 = vmatmul.mubr.f32.gmra.mrb[20].mxu0 %v1595_v17 }
 0x1cf   :  { %6304 = vmatprep.mubr.msk.f32.mxu0 %vm1482_vm2, %v1029_v0  ;;  %v6951_v6 = vunpack.i.l.bf16 %v6950_v59  ;;  %v6952_v7 = vunpack.i.h.bf16 %v6950_v59 }
 0x1d1   :  { %v6960_v56 = vpop.permute.xlu1 %6959  ;;  %v1495_v4 = vsel %vm1482_vm2, %v325_v38, %v6951_v6  ;;  %v1496_v23 = vsel %vm1482_vm2, %v326_v50, %v6952_v7 }
 0x1d2   :  { %v6955_v51 = vpop.permute.xlu0 %6954  ;;  %1787 = vmatmul.mubr.f32.gmra.mrb[22].mxu0 %v1596_v20  ;;  %v6961_v55 = vunpack.i.l.bf16 %v6960_v56  ;;  %v6962_v2 = vunpack.i.h.bf16 %v6960_v56 }
 0x1d3   :  { %6305 = vmatprep.mubr.msk.f32.mxu0 %vm1482_vm2, %v1030_v27  ;;  %v6956_v9 = vunpack.i.l.bf16 %v6955_v51  ;;  %v6957_v57 = vunpack.i.h.bf16 %v6955_v51 }
 0x1d5   :  { %v6965_v18 = vpop.permute.xlu1 %6964  ;;  %v1512_v60 = vsel %vm1499_vm3, %v1495_v4, %v6956_v9  ;;  %v1513_v27 = vsel %vm1499_vm3, %v1496_v23, %v6957_v57 }
 0x1d6   :  { %v8517_v21 = vpop.permute.xlu0 %310  ;;  %v6966_v0 = vunpack.i.l.bf16 %v6965_v18  ;;  %v6967_v59 = vunpack.i.h.bf16 %v6965_v18  ;;  %v1529_v51 = vsel %vm1516_vm4, %v1512_v60, %v6961_v55  ;;  %v1530_v9 = vsel %vm1516_vm4, %v1513_v27, %v6962_v2  ;;  %v13106_v2 = vld [vmem:[#allocation118_spill] sm:$0xff] }
 0x1d7   :  { %13101 = vst [vmem:[#allocation132_spill] sm:$0xff] %v8517_v21 }
 0x1d8   :  { %v1546_v6 = vsel %vm1533_vm5, %v1529_v51, %v6966_v0  ;;  %v1547_v56 = vsel %vm1533_vm5, %v1530_v9, %v6967_v59 }
 0x1d9   :  { %v8524_v17 = vpop.permute.xlu1 %1010 }
 0x1da   :  { %v6970_v37 = vpop.permute.xlu0 %6969  ;;  %13104 = vst [vmem:[#allocation104_spill] sm:$0xff] %v8524_v17 }
 0x1db   :  { %v6971_v20 = vunpack.i.l.bf16 %v6970_v37  ;;  %v6972_v41 = vunpack.i.h.bf16 %v6970_v37  ;;  %v1031_v37 = vmul.f32 %v8508_v54, %v8303_v8 }
 0x1dd   :  { %v6980_v63 = vpop.permute.xlu1 %6979  ;;  %v1563_v4 = vsel %vm1550_vm6, %v1546_v6, %v6971_v20  ;;  %v1564_v60 = vsel %vm1550_vm6, %v1547_v56, %v6972_v41 }
 0x1de   :  { %v6975_v29 = vpop.permute.xlu0 %6974  ;;  %v6981_v16 = vunpack.i.l.bf16 %v6980_v63  ;;  %v6982_v57 = vunpack.i.h.bf16 %v6980_v63 }
 0x1df   :  { %v6977_v38 = vunpack.i.h.bf16 %v6975_v29  ;;  %v6976_v58 = vunpack.i.l.bf16 %v6975_v29 }
 0x1e1   :  { %v1580_v7 = vsel %vm1567_vm7, %v1563_v4, %v6976_v58  ;;  %v8535_v50 = vpop.permute.xlu1 %1015  ;;  %v1581_v0 = vsel %vm1567_vm7, %v1564_v60, %v6977_v38  ;;  %v327_v58 = vmul.f32 %v8499_v15, %v13106_v2  ;;  %v328_v4 = vmul.f32 %v8517_v21, %v8243_v53  ;;  %v13107_v53 = vld [vmem:[#allocation37_spill] sm:$0xff]  ;;  %v13146_v21 = vld [vmem:[#allocation26_spill] sm:$0xff] }
 0x1e2   :  { %v6985_v18 = vpop.permute.xlu0 %6984  ;;  %13105 = vst [vmem:[#allocation110_spill] sm:$0xff] %v8535_v50  ;;  %v1597_v55 = vsel %vm1584_vm8, %v1580_v7, %v6981_v16  ;;  %v1598_v27 = vsel %vm1584_vm8, %v1581_v0, %v6982_v57  ;;  %v1032_v16 = vmul.f32 %v8524_v17, %v7577_v14 }
 0x1e3   :  { %1792 = vmatmul.mubr.f32.gmra.mrb[24].mxu0 %v1597_v55  ;;  %v6986_v23 = vunpack.i.l.bf16 %v6985_v18  ;;  %v6987_v41 = vunpack.i.h.bf16 %v6985_v18 }
 0x1e4   :  { %6306 = vmatprep.mubr.msk.f32.mxu0 %vm1482_vm2, %v1031_v37 }
 0x1e5   :  { %v6995_v20 = vpop.permute.xlu1 %6994  ;;  %v1497_v8 = vsel %vm1482_vm2, %v327_v58, %v6986_v23  ;;  %v1498_v14 = vsel %vm1482_vm2, %v328_v4, %v6987_v41 }
 0x1e6   :  { %v6990_v63 = vpop.permute.xlu0 %6989  ;;  %v6996_v51 = vunpack.i.l.bf16 %v6995_v20  ;;  %v6997_v57 = vunpack.i.h.bf16 %v6995_v20 }
 0x1e7   :  { %v6991_v59 = vunpack.i.l.bf16 %v6990_v63  ;;  %1797 = vmatmul.mubr.f32.gmra.mrb[26].mxu0 %v1598_v27  ;;  %v6992_v6 = vunpack.i.h.bf16 %v6990_v63  ;;  %v1033_v63 = vmul.f32 %v8535_v50, %v13107_v53 }
 0x1e8   :  { %6307 = vmatprep.mubr.msk.f32.mxu0 %vm1482_vm2, %v1032_v16 }
 0x1e9   :  { %v1514_v29 = vsel %vm1499_vm3, %v1497_v8, %v6991_v59  ;;  %v1335_v9 = vpop.permute.xlu1 %1334  ;;  %v1515_v37 = vsel %vm1499_vm3, %v1498_v14, %v6992_v6  ;;  %v8573_v6 = vld [vmem:[%s12506_s3] ss:$0 sm:$0xff]  ;;  %s7038_s3 = smov 4  }
 0x1ea   :  { %v7000_v38 = vpop.permute.xlu0 %6999  ;;  %v1531_v7 = vsel %vm1516_vm4, %v1514_v29, %v6996_v51  ;;  %v1532_v27 = vsel %vm1516_vm4, %v1515_v37, %v6997_v57  ;;  %vm2717_vm4 = vcmask 293888  }
 0x1eb   :  { %v7001_v56 = vunpack.i.l.bf16 %v7000_v38  ;;  %v7002_v60 = vunpack.i.h.bf16 %v7000_v38 }
 0x1ed   :  { %v1548_v55 = vsel %vm1533_vm5, %v1531_v7, %v7001_v56  ;;  %v1463_v23 = vpop.permute.xlu1 %1462  ;;  %v1549_v16 = vsel %vm1533_vm5, %v1532_v27, %v7002_v60  ;;  %v13109_v60 = vld [vmem:[#allocation4_spill] sm:$0xff] }
 0x1ee   :  { %v1565_v18 = vsel %vm1550_vm6, %v1548_v55, %v1335_v9  ;;  %v1399_v0 = vpop.permute.xlu0 %1398  ;;  %v8578_v9 = vld [vmem:[%s12507_s4] ss:$0 sm:$0xff]  ;;  %s7039_s4 = smov 28  }
 0x1ef   :  { %v1582_v2 = vsel %vm1567_vm7, %v1565_v18, %v1399_v0 }
 0x1f0   :  { %v1599_v58 = vsel %vm1584_vm8, %v1582_v2, %v1463_v23  ;;  %v13111_v23 = vld [vmem:[#allocation10_spill] sm:$0xff] }
 0x1f1   :  { %1802 = vmatmul.mubr.f32.gmra.mrb[28].mxu0 %v1599_v58  ;;  %v1401_v8 = vpop.permute.xlu1 %1400  ;;  %v13112_v58 = vld [vmem:[#allocation11_spill] sm:$0xff] }
 0x1f2   :  { %v1337_v20 = vpop.permute.xlu0 %1336  ;;  %6308 = vmatprep.mubr.msk.f32.mxu0 %vm1482_vm2, %v1033_v63 }
 0x1f3   :  { %v1566_v59 = vsel %vm1550_vm6, %v1549_v16, %v1337_v20 }
 0x1f4   :  { %v1583_v51 = vsel %vm1567_vm7, %v1566_v59, %v1401_v8 }
 0x1f6   :  { %v1465_v41 = vpop.permute.xlu0 %1464 }
 0x1f7   :  { %v1600_v29 = vsel %vm1584_vm8, %v1583_v51, %v1465_v41 }
 0x1f8   :  { %1807 = vmatmul.mubr.f32.gmra.mrb[30].mxu0 %v1600_v29 }
 0x1f9   :  { %6606 = vmatprep.mubr.msk.f32.mxu0 %vm1482_vm2, %v8373_v19 }
 0x232   :  { %v1733_v38 = vpop.f32.mrb[0].mxu0 }
 0x233   :  { %v1819_v4 = vmul.f32 %v8573_v6, %v1733_v38  ;;  %v1735_v56 = vpop.f32.mrb[1].mxu0 }
 0x234   :  { %v13114_v56 = vld [vmem:[#allocation16_spill] sm:$0xff] }
 0x235   :  { %v1842_v7 = vadd.f32 %v8578_v9, %v1819_v4 }
 0x236   :  { %v1738_v14 = vpop.f32.mrb[2].mxu0 }
 0x237   :  { %v8582_v57 = vmax.f32 %v1842_v7, 0.0  ;;  %v1820_v19 = vmul.f32 %v8573_v6, %v1738_v14  ;;  %v1740_v55 = vpop.f32.mrb[3].mxu0 }
 0x239   :  { %13108 = vst [vmem:[#allocation118_spill] sm:$0xff] %v8582_v57  ;;  %v1843_v37 = vadd.f32 %v8578_v9, %v1820_v19  ;;  %2274 = vrot.lane.b32.xlu1 %v8582_v57, %s7031_s19  ;;  %v1923_v18 = vmul.f32 %v8582_v57, %v13109_v60  ;;  %v12727_v51 = vrot.slane %v8582_v57, 1  ;;  %v12726_v19 = vrot.slane %v8582_v57, 7 }
 0x23b   :  { %v8590_v0 = vmax.f32 %v1843_v37, 0.0  ;;  %2084 = vrot.lane.b32.xlu0 %v1923_v18, %s7038_s3  ;;  %v13115_v37 = vld [vmem:[#allocation6_spill] sm:$0xff] }
 0x23d   :  { %13110 = vst [vmem:[#allocation37_spill] sm:$0xff] %v8590_v0  ;;  %2276 = vrot.lane.b32.xlu1 %v8590_v0, %s7031_s19  ;;  %v1924_v2 = vmul.f32 %v8590_v0, %v13111_v23  ;;  %v2034_v53 = vmul.f32 %v8590_v0, %v13112_v58  ;;  %v1939_v16 = vrot.slane %v8590_v0, 1  ;;  %v1875_v4 = vrot.slane %v8590_v0, 7 }
 0x23f   :  { %2086 = vrot.lane.b32.xlu0 %v1924_v2, %s7038_s3  ;;  %v8611_v38 = vsel %vm441_vm1, %v12727_v51, %v1939_v16  ;;  %v8628_v2 = vsel %vm216_vm0, %v12726_v19, %v1875_v4  ;;  %v13122_v51 = vld [vmem:[#allocation15_spill] sm:$0xff] }
 0x240   :  { %v1971_v18 = vmul.f32 %v8611_v38, %v13115_v37  ;;  %v13123_v37 = vld [vmem:[#allocation9_spill] sm:$0xff] }
 0x243   :  { %2466 = vrot.lane.b32.xlu0 %v2034_v53, %s7039_s4  ;;  %v13116_v53 = vld [vmem:[#allocation17_spill] sm:$0xff] }
 0x249   :  { %v1743_v63 = vpop.f32.mrb[4].mxu0 }
 0x24a   :  { %v1821_v27 = vmul.f32 %v8573_v6, %v1743_v63  ;;  %v1745_v20 = vpop.f32.mrb[5].mxu0 }
 0x24c   :  { %v1844_v59 = vadd.f32 %v8578_v9, %v1821_v27 }
 0x24d   :  { %v1748_v8 = vpop.f32.mrb[6].mxu0 }
 0x24e   :  { %v8605_v41 = vmax.f32 %v1844_v59, 0.0  ;;  %v1750_v29 = vpop.f32.mrb[7].mxu0  ;;  %v1822_v14 = vmul.f32 %v8573_v6, %v1748_v8  ;;  %v13117_v8 = vld [vmem:[#allocation8_spill] sm:$0xff] }
 0x24f   :  { %v1987_v29 = vmul.f32 %v8628_v2, %v13117_v8 }
 0x250   :  { %13113 = vst [vmem:[#allocation133_spill] sm:$0xff] %v8605_v41  ;;  %2278 = vrot.lane.b32.xlu0 %v8605_v41, %s7031_s19  ;;  %v1925_v7 = vmul.f32 %v8605_v41, %v13114_v56  ;;  %v1940_v55 = vrot.slane %v8605_v41, 1  ;;  %v2035_v63 = vmul.f32 %v8605_v41, %v13116_v53  ;;  %v1845_v27 = vadd.f32 %v8578_v9, %v1822_v14 }
 0x251   :  { %v1876_v59 = vrot.slane %v8605_v41, 7 }
 0x252   :  { %2088 = vrot.lane.b32.xlu1 %v1925_v7, %s7038_s3  ;;  %v1967_v20 = vsel %vm441_vm1, %v1939_v16, %v1940_v55  ;;  %v13118_v7 = vld [vmem:[#allocation13_spill] sm:$0xff]  ;;  %v8642_v19 = vmax.f32 %v1845_v27, 0.0  ;;  %v13121_v16 = vld [vmem:[#allocation7_spill] sm:$0xff] }
 0x253   :  { %v8646_v14 = vsel %vm216_vm0, %v1875_v4, %v1876_v59  ;;  %v2018_v4 = vmul.f32 %v8628_v2, %v13123_v37 }
 0x254   :  { %2148 = vrot.lane.b32.xlu0 %v1971_v18, %s7040_s26  ;;  %v2003_v18 = vmul.f32 %v1967_v20, %v13118_v7  ;;  %13119 = vst [vmem:[#allocation134_spill] sm:$0xff] %v8642_v19  ;;  %13120 = vst [vmem:[#allocation135_spill] sm:$0xff] %v8646_v14  ;;  %v2019_v8 = vmul.f32 %v8646_v14, %v13122_v51  ;;  %v1877_v51 = vrot.slane %v8642_v19, 7 }
 0x256   :  { %2468 = vrot.lane.b32.xlu1 %v2035_v63, %s7039_s4  ;;  %v2002_v63 = vmul.f32 %v8611_v38, %v13121_v16 }
 0x258   :  { %2212 = vrot.lane.b32.xlu0 %v1987_v29, %s7041_s27  ;;  %v1941_v29 = vrot.slane %v8642_v19, 1 }
 0x25a   :  { %2340 = vrot.lane.b32.xlu1 %v2003_v18, %s7042_s29  ;;  %v13124_v18 = vld [vmem:[#allocation22_spill] sm:$0xff] }
 0x25b   :  { %v1926_v16 = vmul.f32 %v8642_v19, %v13124_v18 }
 0x25c   :  { %2338 = vrot.lane.b32.xlu0 %v2002_v63, %s7042_s29  ;;  %v1966_v63 = vsel %vm441_vm1, %v1940_v55, %v1941_v29  ;;  %v13127_v55 = vld [vmem:[#allocation12_spill] sm:$0xff] }
 0x25d   :  { %v1972_v60 = vmul.f32 %v1967_v20, %v13127_v55  ;;  %v13132_v55 = vld [vmem:[#allocation113_spill] sm:$0xff] }
 0x25e   :  { %2404 = vrot.lane.b32.xlu1 %v2019_v8, %s7043_s30  ;;  %v1753_v27 = vpop.f32.mrb[8].mxu0 }
 0x25f   :  { %v1755_v7 = vpop.f32.mrb[9].mxu0  ;;  %v1823_v8 = vmul.f32 %v8573_v6, %v1753_v27  ;;  %v13129_v27 = vld [vmem:[#allocation14_spill] sm:$0xff] }
 0x260   :  { %2402 = vrot.lane.b32.xlu0 %v2018_v4, %s7043_s30  ;;  %v13125_v7 = vld [vmem:[#allocation18_spill] sm:$0xff]  ;;  %v8671_v4 = vsel %vm216_vm0, %v1876_v59, %v1877_v51  ;;  %v13131_v59 = vld [vmem:[#allocation19_spill] sm:$0xff] }
 0x261   :  { %v1973_v37 = vmul.f32 %v1966_v63, %v13125_v7  ;;  %13126 = vst [vmem:[#allocation136_spill] sm:$0xff] %v8671_v4  ;;  %v1846_v18 = vadd.f32 %v8578_v9, %v1823_v8  ;;  %v1988_v7 = vmul.f32 %v8646_v14, %v13129_v27  ;;  %v2050_v8 = vmul.f32 %v1967_v20, %v13132_v55  ;;  %v13135_v27 = vld [vmem:[#allocation29_spill] sm:$0xff] }
 0x262   :  { %2090 = vrot.lane.b32.xlu1 %v1926_v16, %s7038_s3  ;;  %v1758_v53 = vpop.f32.mrb[10].mxu0 }
 0x263   :  { %v1760_v56 = vpop.f32.mrb[11].mxu0  ;;  %v8682_v58 = vmax.f32 %v1846_v18, 0.0  ;;  %v13134_v18 = vld [vmem:[#allocation23_spill] sm:$0xff] }
 0x264   :  { %2280 = vrot.lane.b32.xlu0 %v8642_v19, %s7031_s19  ;;  %v13128_v56 = vld [vmem:[#allocation20_spill] sm:$0xff] }
 0x265   :  { %v1989_v16 = vmul.f32 %v8671_v4, %v13128_v56  ;;  %13130 = vst [vmem:[#allocation137_spill] sm:$0xff] %v8682_v58  ;;  %v1942_v23 = vrot.slane %v8682_v58, 1 }
 0x266   :  { %2152 = vrot.lane.b32.xlu1 %v1973_v37, %s7040_s26  ;;  %v2004_v37 = vmul.f32 %v1966_v63, %v13131_v59 }
 0x267   :  { %v1965_v55 = vsel %vm441_vm1, %v1941_v29, %v1942_v23 }
 0x268   :  { %2150 = vrot.lane.b32.xlu0 %v1972_v60, %s7040_s26  ;;  %v13133_v60 = vld [vmem:[#allocation28_spill] sm:$0xff] }
 0x269   :  { %v1927_v56 = vmul.f32 %v8682_v58, %v13133_v60 }
 0x26a   :  { %2216 = vrot.lane.b32.xlu1 %v1989_v16, %s7041_s27  ;;  %v1824_v16 = vmul.f32 %v8573_v6, %v1758_v53  ;;  %v1878_v53 = vrot.slane %v8682_v58, 7 }
 0x26c   :  { %2214 = vrot.lane.b32.xlu0 %v1988_v7, %s7041_s27  ;;  %v2036_v7 = vmul.f32 %v8642_v19, %v13134_v18  ;;  %v1847_v20 = vadd.f32 %v8578_v9, %v1824_v16  ;;  %v8711_v16 = vsel %vm216_vm0, %v1877_v51, %v1878_v53  ;;  %v13141_v51 = vld [vmem:[#allocation35_spill] sm:$0xff] }
 0x26d   :  { %13138 = vst [vmem:[#allocation139_spill] sm:$0xff] %v8711_v16 }
 0x26e   :  { %2342 = vrot.lane.b32.xlu1 %v2004_v37, %s7042_s29  ;;  %v2037_v37 = vmul.f32 %v8682_v58, %v13135_v27  ;;  %v2051_v27 = vmul.f32 %v1966_v63, %v8197_v35 }
 0x270   :  { %2530 = vrot.lane.b32.xlu0 %v2050_v8, %s7032_s24 }
 0x272   :  { %2092 = vrot.lane.b32.xlu1 %v1927_v56, %s7038_s3  ;;  %v13136_v56 = vld [vmem:[#allocation25_spill] sm:$0xff] }
 0x273   :  { %v2005_v18 = vmul.f32 %v1965_v55, %v13136_v56 }
 0x274   :  { %2470 = vrot.lane.b32.xlu0 %v2036_v7, %s7039_s4  ;;  %v8707_v7 = vmax.f32 %v1847_v20, 0.0  ;;  %v13140_v20 = vld [vmem:[#allocation21_spill] sm:$0xff] }
 0x275   :  { %v1763_v8 = vpop.f32.mrb[12].mxu0  ;;  %v2020_v56 = vmul.f32 %v8671_v4, %v13140_v20  ;;  %v13144_v20 = vld [vmem:[#allocation24_spill] sm:$0xff] }
 0x276   :  { %2472 = vrot.lane.b32.xlu1 %v2037_v37, %s7039_s4  ;;  %v1765_v60 = vpop.f32.mrb[13].mxu0  ;;  %13137 = vst [vmem:[#allocation138_spill] sm:$0xff] %v8707_v7  ;;  %v1943_v15 = vrot.slane %v8707_v7, 1 }
 0x277   :  { %v13139_v60 = vld [vmem:[#allocation27_spill] sm:$0xff] }
 0x278   :  { %2282 = vrot.lane.b32.xlu0 %v8682_v58, %s7031_s19  ;;  %v2021_v37 = vmul.f32 %v8711_v16, %v13139_v60  ;;  %v1964_v63 = vsel %vm441_vm1, %v1942_v23, %v1943_v15  ;;  %v1974_v60 = vmul.f32 %v1965_v55, %v13144_v20 }
 0x279   :  { %v1768_v59 = vpop.f32.mrb[14].mxu0 }
 0x27a   :  { %2344 = vrot.lane.b32.xlu1 %v2005_v18, %s7042_s29  ;;  %v1770_v29 = vpop.f32.mrb[15].mxu0  ;;  %v1928_v18 = vmul.f32 %v8707_v7, %v13141_v51 }
 0x27b   :  { %v1825_v29 = vmul.f32 %v8573_v6, %v1763_v8 }
 0x27c   :  { %2532 = vrot.lane.b32.xlu0 %v2051_v27, %s7032_s24  ;;  %v1879_v27 = vrot.slane %v8707_v7, 7 }
 0x27d   :  { %v1848_v23 = vadd.f32 %v8578_v9, %v1825_v29 }
 0x27e   :  { %2408 = vrot.lane.b32.xlu1 %v2021_v37, %s7043_s30  ;;  %v13142_v37 = vld [vmem:[#allocation30_spill] sm:$0xff] }
 0x27f   :  { %v1975_v35 = vmul.f32 %v1964_v63, %v13142_v37  ;;  %v1990_v37 = vmul.f32 %v8711_v16, %v13146_v21  ;;  %v1826_v21 = vmul.f32 %v8573_v6, %v1768_v59  ;;  %v13152_v59 = vld [vmem:[#allocation39_spill] sm:$0xff] }
 0x280   :  { %2406 = vrot.lane.b32.xlu0 %v2020_v56, %s7043_s30  ;;  %v8735_v56 = vsel %vm216_vm0, %v1878_v53, %v1879_v27  ;;  %v8746_v53 = vmax.f32 %v1848_v23, 0.0 }
 0x281   :  { %13143 = vst [vmem:[#allocation140_spill] sm:$0xff] %v8735_v56 }
 0x282   :  { %2094 = vrot.lane.b32.xlu1 %v1928_v18, %s7038_s3  ;;  %v13145_v18 = vld [vmem:[#allocation32_spill] sm:$0xff]  ;;  %13147 = vst [vmem:[#allocation141_spill] sm:$0xff] %v8746_v53 }
 0x283   :  { %v1991_v8 = vmul.f32 %v8735_v56, %v13145_v18 }
 0x284   :  { %2284 = vrot.lane.b32.xlu0 %v8707_v7, %s7031_s19 }
 0x286   :  { %2156 = vrot.lane.b32.xlu1 %v1975_v35, %s7040_s26  ;;  %v13148_v35 = vld [vmem:[#allocation31_spill] sm:$0xff] }
 0x287   :  { %v2006_v20 = vmul.f32 %v1964_v63, %v13148_v35  ;;  %v13160_v35 = vld [vmem:[#allocation38_spill] sm:$0xff] }
 0x288   :  { %2154 = vrot.lane.b32.xlu0 %v1974_v60, %s7040_s26  ;;  %v2052_v60 = vmul.f32 %v1965_v55, %v8254_v10  ;;  %v1880_v10 = vrot.slane %v8746_v53, 7 }
 0x28a   :  { %2220 = vrot.lane.b32.xlu1 %v1991_v8, %s7041_s27  ;;  %v1773_v51 = vpop.f32.mrb[16].mxu0  ;;  %v13149_v8 = vld [vmem:[#allocation42_spill] sm:$0xff] }
 0x28b   :  { %v1775_v48 = vpop.f32.mrb[17].mxu0  ;;  %v1929_v18 = vmul.f32 %v8746_v53, %v13149_v8 }
 0x28c   :  { %2218 = vrot.lane.b32.xlu0 %v1990_v37, %s7041_s27  ;;  %v1944_v48 = vrot.slane %v8746_v53, 1  ;;  %v13150_v37 = vld [vmem:[#allocation36_spill] sm:$0xff] }
 0x28d   :  { %v2038_v23 = vmul.f32 %v8707_v7, %v13150_v37 }
 0x28e   :  { %2346 = vrot.lane.b32.xlu1 %v2006_v20, %s7042_s29  ;;  %v1778_v29 = vpop.f32.mrb[18].mxu0  ;;  %v13151_v20 = vld [vmem:[#allocation43_spill] sm:$0xff] }
 0x28f   :  { %v1780_v3 = vpop.f32.mrb[19].mxu0  ;;  %v2039_v55 = vmul.f32 %v8746_v53, %v13151_v20 }
 0x290   :  { %2534 = vrot.lane.b32.xlu0 %v2052_v60, %s7032_s24  ;;  %v1849_v3 = vadd.f32 %v8578_v9, %v1826_v21  ;;  %v1963_v60 = vsel %vm441_vm1, %v1943_v15, %v1944_v48  ;;  %v2053_v21 = vmul.f32 %v1964_v63, %v8316_v30  ;;  %v13155_v15 = vld [vmem:[#allocation41_spill] sm:$0xff] }
 0x292   :  { %2096 = vrot.lane.b32.xlu1 %v1929_v18, %s7038_s3  ;;  %v2007_v18 = vmul.f32 %v1963_v60, %v13152_v59  ;;  %v8771_v8 = vmax.f32 %v1849_v3, 0.0  ;;  %v13156_v59 = vld [vmem:[#allocation33_spill] sm:$0xff] }
 0x293   :  { %v2022_v3 = vmul.f32 %v8735_v56, %v13156_v59  ;;  %v1976_v56 = vmul.f32 %v1963_v60, %v13160_v35 }
 0x294   :  { %2474 = vrot.lane.b32.xlu0 %v2038_v23, %s7039_s4  ;;  %13153 = vst [vmem:[#allocation142_spill] sm:$0xff] %v8771_v8  ;;  %v8775_v23 = vsel %vm216_vm0, %v1879_v27, %v1880_v10  ;;  %v1945_v20 = vrot.slane %v8771_v8, 1  ;;  %v13157_v27 = vld [vmem:[#allocation48_spill] sm:$0xff] }
 0x295   :  { %13154 = vst [vmem:[#allocation143_spill] sm:$0xff] %v8775_v23  ;;  %v1930_v37 = vmul.f32 %v8771_v8, %v13157_v27 }
 0x296   :  { %2476 = vrot.lane.b32.xlu1 %v2039_v55, %s7039_s4  ;;  %v2023_v55 = vmul.f32 %v8775_v23, %v13155_v15  ;;  %v1962_v63 = vsel %vm441_vm1, %v1944_v48, %v1945_v20  ;;  %v1827_v15 = vmul.f32 %v8573_v6, %v1773_v51  ;;  %v13161_v51 = vld [vmem:[#allocation46_spill] sm:$0xff] }
 0x298   :  { %2286 = vrot.lane.b32.xlu0 %v8746_v53, %s7031_s19 }
 0x29a   :  { %2348 = vrot.lane.b32.xlu1 %v2007_v18, %s7042_s29 }
 0x29c   :  { %2536 = vrot.lane.b32.xlu0 %v2053_v21, %s7032_s24  ;;  %v1881_v21 = vrot.slane %v8771_v8, 7 }
 0x29e   :  { %2412 = vrot.lane.b32.xlu1 %v2023_v55, %s7043_s30  ;;  %v13158_v55 = vld [vmem:[#allocation44_spill] sm:$0xff]  ;;  %v8801_v27 = vsel %vm216_vm0, %v1880_v10, %v1881_v21  ;;  %v13164_v10 = vld [vmem:[#allocation45_spill] sm:$0xff] }
 0x29f   :  { %v1977_v59 = vmul.f32 %v1962_v63, %v13158_v55  ;;  %13159 = vst [vmem:[#allocation144_spill] sm:$0xff] %v8801_v27  ;;  %v13162_v55 = vld [vmem:[#allocation40_spill] sm:$0xff] }
 0x2a0   :  { %2410 = vrot.lane.b32.xlu0 %v2022_v3, %s7043_s30  ;;  %v1992_v16 = vmul.f32 %v8775_v23, %v13162_v55  ;;  %v13172_v23 = vld [vmem:[#allocation53_spill] sm:$0xff] }
 0x2a1   :  { %v1783_v18 = vpop.f32.mrb[20].mxu0 }
 0x2a2   :  { %2098 = vrot.lane.b32.xlu1 %v1930_v37, %s7038_s3  ;;  %v1785_v30 = vpop.f32.mrb[21].mxu0  ;;  %v1993_v37 = vmul.f32 %v8801_v27, %v13161_v51 }
 0x2a3   :  { %v1850_v30 = vadd.f32 %v8578_v9, %v1827_v15  ;;  %v2054_v15 = vmul.f32 %v1963_v60, %v8347_v31 }
 0x2a4   :  { %2288 = vrot.lane.b32.xlu0 %v8771_v8, %s7031_s19 }
 0x2a5   :  { %v8797_v3 = vpop.f32.mrb[22].mxu0  ;;  %v8812_v5 = vmax.f32 %v1850_v30, 0.0 }
 0x2a6   :  { %2160 = vrot.lane.b32.xlu1 %v1977_v59, %s7040_s26  ;;  %v1790_v48 = vpop.f32.mrb[23].mxu0  ;;  %v2008_v59 = vmul.f32 %v1962_v63, %v13164_v10 }
 0x2a7   :  { %13163 = vst [vmem:[#allocation145_spill] sm:$0xff] %v8812_v5  ;;  %v1946_v35 = vrot.slane %v8812_v5, 1 }
 0x2a8   :  { %2158 = vrot.lane.b32.xlu0 %v1976_v56, %s7040_s26  ;;  %v13165_v56 = vld [vmem:[#allocation55_spill] sm:$0xff] }
 0x2a9   :  { %v1931_v48 = vmul.f32 %v8812_v5, %v13165_v56  ;;  %v1961_v31 = vsel %vm441_vm1, %v1945_v20, %v1946_v35 }
 0x2aa   :  { %2224 = vrot.lane.b32.xlu1 %v1993_v37, %s7041_s27  ;;  %v1828_v37 = vmul.f32 %v8573_v6, %v1778_v29  ;;  %v1882_v29 = vrot.slane %v8812_v5, 7 }
 0x2ab   :  { %v8849_v20 = vpop.permute.xlu1 %2274 }
 0x2ac   :  { %2222 = vrot.lane.b32.xlu0 %v1992_v16, %s7041_s27  ;;  %v13166_v16 = vld [vmem:[#allocation49_spill] sm:$0xff]  ;;  %13171 = vst [vmem:[#allocation148_spill] sm:$0xff] %v8849_v20 }
 0x2ad   :  { %v8823_v55 = vpop.permute.xlu0 %2084  ;;  %v2040_v30 = vmul.f32 %v8771_v8, %v13166_v16 }
 0x2ae   :  { %2350 = vrot.lane.b32.xlu1 %v2008_v59, %s7042_s29  ;;  %v13167_v59 = vld [vmem:[#allocation56_spill] sm:$0xff] }
 0x2af   :  { %v2041_v60 = vmul.f32 %v8812_v5, %v13167_v59 }
 0x2b0   :  { %2538 = vrot.lane.b32.xlu0 %v2054_v15, %s7032_s24  ;;  %v1851_v15 = vadd.f32 %v8578_v9, %v1828_v37  ;;  %v8847_v37 = vsel %vm216_vm0, %v1881_v21, %v1882_v29  ;;  %v13174_v21 = vld [vmem:[#allocation47_spill] sm:$0xff] }
 0x2b1   :  { %v8838_v10 = vpop.permute.xlu0 %2086  ;;  %13170 = vst [vmem:[#allocation147_spill] sm:$0xff] %v8847_v37  ;;  %v2024_v20 = vmul.f32 %v8801_v27, %v13174_v21 }
 0x2b2   :  { %2100 = vrot.lane.b32.xlu1 %v1931_v48, %s7038_s3  ;;  %v8843_v59 = vmax.f32 %v1851_v15, 0.0 }
 0x2b4   :  { %2478 = vrot.lane.b32.xlu0 %v2040_v30, %s7039_s4  ;;  %v13168_v30 = vld [vmem:[#allocation51_spill] sm:$0xff]  ;;  %13169 = vst [vmem:[#allocation146_spill] sm:$0xff] %v8843_v59  ;;  %v1947_v15 = vrot.slane %v8843_v59, 1 }
 0x2b5   :  { %v2009_v16 = vmul.f32 %v1961_v31, %v13168_v30  ;;  %v2025_v30 = vmul.f32 %v8847_v37, %v13172_v23  ;;  %v8859_v4 = vpop.permute.xlu0 %2466  ;;  %v1883_v23 = vrot.slane %v8843_v59, 7 }
 0x2b6   :  { %2480 = vrot.lane.b32.xlu1 %v2041_v60, %s7039_s4  ;;  %v8836_v56 = vpop.f32.mrb[24].mxu0  ;;  %13173 = vst [vmem:[#allocation149_spill] sm:$0xff] %v8859_v4 }
 0x2b7   :  { %v1795_v48 = vpop.f32.mrb[25].mxu0 }
 0x2b8   :  { %2290 = vrot.lane.b32.xlu0 %v8812_v5, %s7031_s19  ;;  %v2055_v48 = vmul.f32 %v1962_v63, %v8379_v26  ;;  %v13176_v63 = vld [vmem:[#allocation62_spill] sm:$0xff]  ;;  %v1960_v26 = vsel %vm441_vm1, %v1946_v35, %v1947_v15  ;;  %v8886_v35 = vsel %vm216_vm0, %v1882_v29, %v1883_v23  ;;  %v1830_v29 = vmul.f32 %v8573_v6, %v8797_v3 }
 0x2b9   :  { %13181 = vst [vmem:[#allocation153_spill] sm:$0xff] %v8886_v35 }
 0x2ba   :  { %2352 = vrot.lane.b32.xlu1 %v2009_v16, %s7042_s29  ;;  %v8852_v60 = vpop.f32.mrb[26].mxu0  ;;  %v8864_v16 = vpop.permute.xlu1 %2276 }
 0x2bb   :  { %v1800_v51 = vpop.f32.mrb[27].mxu0  ;;  %13175 = vst [vmem:[#allocation150_spill] sm:$0xff] %v8864_v16 }
 0x2bc   :  { %2540 = vrot.lane.b32.xlu0 %v2055_v48, %s7032_s24  ;;  %v1932_v51 = vmul.f32 %v8843_v59, %v13176_v63  ;;  %v1829_v48 = vmul.f32 %v8573_v6, %v1783_v18  ;;  %v13180_v63 = vld [vmem:[#allocation57_spill] sm:$0xff] }
 0x2bd   :  { %v1979_v13 = vmul.f32 %v1960_v26, %v13180_v63 }
 0x2be   :  { %2416 = vrot.lane.b32.xlu1 %v2025_v30, %s7043_s30  ;;  %v13178_v30 = vld [vmem:[#allocation50_spill] sm:$0xff]  ;;  %v1852_v18 = vadd.f32 %v8578_v9, %v1829_v48 }
 0x2bf   :  { %v1978_v21 = vmul.f32 %v1961_v31, %v13178_v30 }
 0x2c0   :  { %2414 = vrot.lane.b32.xlu0 %v2024_v20, %s7043_s30  ;;  %v8898_v48 = vmax.f32 %v1852_v18, 0.0  ;;  %v1853_v18 = vadd.f32 %v8578_v9, %v1830_v29 }
 0x2c2   :  { %v8873_v4 = vpop.permute.xlu0 %2278  ;;  %2102 = vrot.lane.b32.xlu1 %v1932_v51, %s7038_s3  ;;  %v13182_v51 = vld [vmem:[#allocation52_spill] sm:$0xff]  ;;  %13185 = vst [vmem:[#allocation155_spill] sm:$0xff] %v8898_v48  ;;  %v1884_v29 = vrot.slane %v8898_v48, 7 }
 0x2c3   :  { %13177 = vst [vmem:[#allocation151_spill] sm:$0xff] %v8873_v4  ;;  %v1994_v30 = vmul.f32 %v8847_v37, %v13182_v51  ;;  %v13187_v37 = vld [vmem:[#allocation58_spill] sm:$0xff] }
 0x2c4   :  { %v8877_v27 = vpop.permute.xlu1 %2088  ;;  %2162 = vrot.lane.b32.xlu0 %v1978_v21, %s7040_s26  ;;  %v8880_v20 = vpop.f32.mrb[28].mxu0  ;;  %v13184_v21 = vld [vmem:[#allocation59_spill] sm:$0xff] }
 0x2c5   :  { %13179 = vst [vmem:[#allocation152_spill] sm:$0xff] %v8877_v27  ;;  %v1805_v16 = vpop.f32.mrb[29].mxu0  ;;  %v1995_v63 = vmul.f32 %v8886_v35, %v13184_v21  ;;  %v1948_v21 = vrot.slane %v8898_v48, 1 }
 0x2c6   :  { %v8888_v4 = vpop.permute.xlu0 %2148  ;;  %2164 = vrot.lane.b32.xlu1 %v1979_v13, %s7040_s26  ;;  %v2056_v13 = vmul.f32 %v1961_v31, %v8396_v42  ;;  %v13190_v31 = vld [vmem:[#allocation69_spill] sm:$0xff] }
 0x2c8   :  { %v8893_v27 = vpop.permute.xlu1 %2468  ;;  %2226 = vrot.lane.b32.xlu0 %v1994_v30, %s7041_s27 }
 0x2c9   :  { %13183 = vst [vmem:[#allocation154_spill] sm:$0xff] %v8893_v27  ;;  %v2010_v27 = vmul.f32 %v1960_v26, %v13187_v37 }
 0x2ca   :  { %v8902_v16 = vpop.permute.xlu0 %2212  ;;  %2228 = vrot.lane.b32.xlu1 %v1995_v63, %s7041_s27  ;;  %v1933_v63 = vmul.f32 %v8898_v48, %v13190_v31 }
 0x2cb   :  { %v1808_v14 = vpop.f32.mrb[30].mxu0 }
 0x2cc   :  { %v8906_v51 = vpop.permute.xlu1 %2340  ;;  %2542 = vrot.lane.b32.xlu0 %v2056_v13, %s7032_s24  ;;  %v1810_v30 = vpop.f32.mrb[31].mxu0  ;;  %v8921_v13 = vmax.f32 %v1853_v18, 0.0  ;;  %v1834_v31 = vmul.f32 %v8573_v6, %v1808_v14 }
 0x2cd   :  { %13186 = vst [vmem:[#allocation156_spill] sm:$0xff] %v8906_v51  ;;  %v8925_v30 = vsel %vm441_vm1, %v1947_v15, %v1948_v21  ;;  %v8940_v15 = vsel %vm216_vm0, %v1883_v23, %v1884_v29 }
 0x2ce   :  { %v8912_v36 = vpop.permute.xlu0 %2338  ;;  %2354 = vrot.lane.b32.xlu1 %v2010_v27, %s7042_s29  ;;  %13191 = vst [vmem:[#allocation159_spill] sm:$0xff] %v8921_v13  ;;  %v2057_v27 = vmul.f32 %v1960_v26, %v8415_v49  ;;  %13195 = vst [vmem:[#allocation162_spill] sm:$0xff] %v8940_v15  ;;  %v13197_v26 = vld [vmem:[#allocation64_spill] sm:$0xff] }
 0x2cf   :  { %13188 = vst [vmem:[#allocation157_spill] sm:$0xff] %v8912_v36  ;;  %v13194_v36 = vld [vmem:[#allocation65_spill] sm:$0xff] }
 0x2d0   :  { %v8915_v3 = vpop.permute.xlu1 %2404  ;;  %2292 = vrot.lane.b32.xlu0 %v8843_v59, %s7031_s19  ;;  %v2011_v18 = vmul.f32 %v8925_v30, %v13194_v36  ;;  %v1857_v36 = vadd.f32 %v8578_v9, %v1834_v31  ;;  %v13202_v31 = vld [vmem:[#allocation71_spill] sm:$0xff] }
 0x2d1   :  { %13189 = vst [vmem:[#allocation158_spill] sm:$0xff] %v8915_v3  ;;  %v12763_v3 = vrot.slane %v8921_v13, 1 }
 0x2d2   :  { %v8928_v42 = vpop.permute.xlu0 %2402  ;;  %2104 = vrot.lane.b32.xlu1 %v1933_v63, %s7038_s3  ;;  %v1980_v63 = vmul.f32 %v8925_v30, %v13197_v26  ;;  %v13200_v26 = vld [vmem:[#allocation60_spill] sm:$0xff] }
 0x2d3   :  { %13192 = vst [vmem:[#allocation160_spill] sm:$0xff] %v8928_v42  ;;  %v8958_v23 = vsel %vm441_vm1, %v1948_v21, %v12763_v3 }
 0x2d4   :  { %v8932_v37 = vpop.permute.xlu1 %2090  ;;  %2544 = vrot.lane.b32.xlu0 %v2057_v27, %s7032_s24  ;;  %v13199_v27 = vld [vmem:[#allocation67_spill] sm:$0xff] }
 0x2d5   :  { %13193 = vst [vmem:[#allocation161_spill] sm:$0xff] %v8932_v37  ;;  %v2027_v14 = vmul.f32 %v8940_v15, %v13199_v27  ;;  %v1981_v27 = vmul.f32 %v8958_v23, %v13202_v31 }
 0x2d6   :  { %v8943_v42 = vpop.permute.xlu0 %2280  ;;  %2356 = vrot.lane.b32.xlu1 %v2011_v18, %s7042_s29  ;;  %v12765_v18 = vrot.slane %v8921_v13, 7 }
 0x2d7   :  { %13196 = vst [vmem:[#allocation163_spill] sm:$0xff] %v8943_v42 }
 0x2d8   :  { %v8948_v49 = vpop.permute.xlu1 %2152  ;;  %2166 = vrot.lane.b32.xlu0 %v1980_v63, %s7040_s26  ;;  %v2026_v63 = vmul.f32 %v8886_v35, %v13200_v26  ;;  %v8977_v21 = vsel %vm216_vm0, %v1884_v29, %v12765_v18  ;;  %v13207_v29 = vld [vmem:[#allocation74_spill] sm:$0xff] }
 0x2d9   :  { %13198 = vst [vmem:[#allocation164_spill] sm:$0xff] %v8948_v49  ;;  %v8971_v49 = vmax.f32 %v1857_v36, 0.0  ;;  %13204 = vst [vmem:[#allocation167_spill] sm:$0xff] %v8977_v21  ;;  %v2713_v36 = vld [vmem:[%s12508_s5 + $0x8] sm:$0xff]  ;;  %v1997_v18 = vmul.f32 %v8977_v21, %v13207_v29 }
 0x2da   :  { %v8961_v42 = vpop.permute.xlu0 %2150  ;;  %2420 = vrot.lane.b32.xlu1 %v2027_v14, %s7043_s30  ;;  %v13205_v14 = vld [vmem:[#allocation66_spill] sm:$0xff] }
 0x2db   :  { %13203 = vst [vmem:[#allocation166_spill] sm:$0xff] %v8971_v49  ;;  %v1996_v26 = vmul.f32 %v8940_v15, %v13205_v14  ;;  %v13209_v15 = vld [vmem:[#allocation63_spill] sm:$0xff] }
 0x2dc   :  { %v8966_v51 = vpop.permute.xlu1 %2216  ;;  %2418 = vrot.lane.b32.xlu0 %v2026_v63, %s7043_s30  ;;  %v2712_v63 = vld [vmem:[%s12508_s5] sm:$0xff] }
 0x2dd   :  { %13201 = vst [vmem:[#allocation165_spill] sm:$0xff] %v8966_v51  ;;  %v6681_v31 = vpack.c.bf16 %v2713_v36, %v2712_v63  ;;  %v2042_v51 = vmul.f32 %v8843_v59, %v13209_v15  ;;  %v2714_v63 = vld [vmem:[%s12508_s5 + $0x10] sm:$0xff]  ;;  %v1831_v36 = vmul.f32 %v8573_v6, %v8836_v56  ;;  %v2716_v56 = vld [vmem:[%s12508_s5 + $0x20] sm:$0xf] }
 0x2de   :  { %v8979_v3 = vpop.permute.xlu0 %2214  ;;  %2168 = vrot.lane.b32.xlu1 %v1981_v27, %s7040_s26 }
 0x2df   :  { %6682 = vmatprep.subr.bf16.mxu1 %v6681_v31 }
 0x2e0   :  { %v8990_v35 = vpop.permute.xlu1 %2342  ;;  %2230 = vrot.lane.b32.xlu0 %v1996_v26, %s7041_s27  ;;  %6684 = vmatpush3.bf16.msra.mxu1 %v6681_v31  ;;  %v2715_v26 = vld [vmem:[%s12508_s5 + $0x18] sm:$0xff]  ;;  %v13217_v31 = vrot.slane %v8582_v57, 7 }
 0x2e1   :  { %13206 = vst [vmem:[#allocation168_spill] sm:$0xff] %v8990_v35  ;;  %v6685_v27 = vpack.c.bf16 %v2715_v26, %v2714_v63  ;;  %v13213_v35 = vrot.slane %v8971_v49, 1  ;;  %v1854_v63 = vadd.f32 %v8578_v9, %v1831_v36  ;;  %v2058_v36 = vmul.f32 %v8925_v30, %v8427_v39  ;;  %v13225_v30 = vld [vmem:[#allocation70_spill] sm:$0xff] }
 0x2e2   :  { %v8996_v14 = vpop.permute.xlu0 %2530  ;;  %2232 = vrot.lane.b32.xlu1 %v1997_v18, %s7041_s27  ;;  %v13211_v18 = vld [vmem:[#allocation3_spill] sm:$0xff] }
 0x2e3   :  { %13208 = vst [vmem:[#allocation169_spill] sm:$0xff] %v8996_v14  ;;  %v1922_v15 = vmul.f32 %v8971_v49, %v13211_v18  ;;  %v13212_v14 = vrot.slane %v8582_v57, 1  ;;  %6686 = vmatprep.subr.bf16.mxu1 %v6685_v27  ;;  %v13218_v18 = vrot.slane %v8971_v49, 7 }
 0x2e4   :  { %v9009_v29 = vpop.permute.xlu1 %2092  ;;  %2482 = vrot.lane.b32.xlu0 %v2042_v51, %s7039_s4  ;;  %6688 = vmatpush3.bf16.msra.mxu1 %v6685_v27 }
 0x2e5   :  { %13210 = vst [vmem:[#allocation170_spill] sm:$0xff] %v9009_v29  ;;  %v9021_v59 = vsel %vm441_vm1, %v13213_v35, %v13212_v14  ;;  %6508 = vmatprep.subr.msk.mxu1 %vm2766_vm9, %v2716_v56  ;;  %v13216_v35 = vld [vmem:[#allocation5_spill] sm:$0xff] }
 0x2e6   :  { %v9026_v51 = vpop.permute.xlu0 %2470  ;;  %2082 = vrot.lane.b32.xlu1 %v1922_v15, %s7038_s3  ;;  %v1970_v14 = vmul.f32 %v9021_v59, %v13216_v35  ;;  %v9043_v15 = vsel %vm216_vm0, %v13218_v18, %v13217_v31 }
 0x2e7   :  { %13214 = vst [vmem:[#allocation171_spill] sm:$0xff] %v9026_v51  ;;  %v13222_v51 = vld [vmem:[#allocation2_spill] sm:$0xff] }
 0x2e8   :  { %v9031_v26 = vpop.permute.xlu1 %2472  ;;  %2294 = vrot.lane.b32.xlu0 %v8898_v48, %s7031_s19  ;;  %6509 = vmatpush3.msk.msra.mxu1 %vm2766_vm9, %v2716_v56  ;;  %v1986_v29 = vmul.f32 %v9043_v15, %v13222_v51  ;;  %v2043_v56 = vmul.f32 %v8898_v48, %v13225_v30  ;;  %v13227_v51 = vrot.slane %v8921_v13, 1  ;;  %v13229_v30 = vld [vmem:[#allocation77_spill] sm:$0xff] }
 0x2e9   :  { %13215 = vst [vmem:[#allocation172_spill] sm:$0xff] %v9031_v26  ;;  %v9051_v26 = vmax.f32 %v1854_v63, 0.0  ;;  %v1832_v63 = vmul.f32 %v8573_v6, %v8852_v60 }
 0x2ea   :  { %v9045_v27 = vpop.permute.xlu0 %2282  ;;  %2146 = vrot.lane.b32.xlu1 %v1970_v14, %s7040_s26 }
 0x2eb   :  { %13219 = vst [vmem:[#allocation173_spill] sm:$0xff] %v9045_v27  ;;  %13220 = vst [vmem:[#allocation174_spill] sm:$0xff] %v9051_v26  ;;  %v1950_v31 = vrot.slane %v9051_v26, 1  ;;  %v1855_v60 = vadd.f32 %v8578_v9, %v1832_v63  ;;  %v1886_v27 = vrot.slane %v9051_v26, 7  ;;  %v13236_v63 = vld [vmem:[#allocation75_spill] sm:$0xff] }
 0x2ec   :  { %v9053_v35 = vpop.permute.xlu1 %2344  ;;  %2546 = vrot.lane.b32.xlu0 %v2058_v36, %s7032_s24 }
 0x2ed   :  { %13221 = vst [vmem:[#allocation175_spill] sm:$0xff] %v9053_v35  ;;  %v1957_v39 = vsel %vm441_vm1, %v13227_v51, %v1950_v31  ;;  %v13233_v51 = vld [vmem:[#allocation72_spill] sm:$0xff] }
 0x2ee   :  { %v9058_v18 = vpop.permute.xlu0 %2532  ;;  %2210 = vrot.lane.b32.xlu1 %v1986_v29, %s7041_s27  ;;  %v2059_v29 = vmul.f32 %v8958_v23, %v8444_v47 }
 0x2ef   :  { %13223 = vst [vmem:[#allocation176_spill] sm:$0xff] %v9058_v18 }
 0x2f0   :  { %v9062_v14 = vpop.permute.xlu1 %2408  ;;  %2296 = vrot.lane.b32.xlu0 %v8921_v13, %s7031_s19 }
 0x2f1   :  { %13224 = vst [vmem:[#allocation177_spill] sm:$0xff] %v9062_v14  ;;  %v1934_v14 = vmul.f32 %v8921_v13, %v13229_v30 }
 0x2f2   :  { %v9070_v36 = vpop.permute.xlu0 %2406  ;;  %2484 = vrot.lane.b32.xlu1 %v2043_v56, %s7039_s4  ;;  %v13231_v56 = vld [vmem:[#allocation79_spill] sm:$0xff] }
 0x2f3   :  { %13226 = vst [vmem:[#allocation178_spill] sm:$0xff] %v9070_v36  ;;  %v1982_v47 = vmul.f32 %v1957_v39, %v13231_v56  ;;  %v13237_v56 = vrot.slane %v8921_v13, 7 }
 0x2f4   :  { %v9079_v18 = vpop.permute.xlu1 %2094  ;;  %2548 = vrot.lane.b32.xlu0 %v2059_v29, %s7032_s24  ;;  %v2012_v29 = vmul.f32 %v8958_v23, %v13233_v51 }
 0x2f5   :  { %13228 = vst [vmem:[#allocation179_spill] sm:$0xff] %v9079_v18  ;;  %v9095_v18 = vmax.f32 %v1855_v60, 0.0 }
 0x2f6   :  { %v9085_v35 = vpop.permute.xlu0 %2284  ;;  %2106 = vrot.lane.b32.xlu1 %v1934_v14, %s7038_s3  ;;  %v2028_v14 = vmul.f32 %v8977_v21, %v13236_v63 }
 0x2f7   :  { %13230 = vst [vmem:[#allocation180_spill] sm:$0xff] %v9085_v35  ;;  %13234 = vst [vmem:[#allocation182_spill] sm:$0xff] %v9095_v18  ;;  %v9106_v35 = vsel %vm216_vm0, %v13237_v56, %v1886_v27  ;;  %v1951_v60 = vrot.slane %v9095_v18, 1  ;;  %v13244_v56 = vld [vmem:[#allocation80_spill] sm:$0xff] }
 0x2f8   :  { %v9090_v36 = vpop.permute.xlu1 %2156  ;;  %2170 = vrot.lane.b32.xlu0 %v1982_v47, %s7040_s26  ;;  %13238 = vst [vmem:[#allocation184_spill] sm:$0xff] %v9106_v35  ;;  %v13240_v47 = vld [vmem:[#allocation84_spill] sm:$0xff] }
 0x2f9   :  { %13232 = vst [vmem:[#allocation181_spill] sm:$0xff] %v9090_v36  ;;  %v1935_v23 = vmul.f32 %v9051_v26, %v13240_v47  ;;  %v13245_v47 = vld [vmem:[#allocation78_spill] sm:$0xff] }
 0x2fa   :  { %v9097_v30 = vpop.permute.xlu0 %2154  ;;  %2358 = vrot.lane.b32.xlu1 %v2012_v29, %s7042_s29  ;;  %v13242_v29 = vld [vmem:[#allocation82_spill] sm:$0xff] }
 0x2fb   :  { %13235 = vst [vmem:[#allocation183_spill] sm:$0xff] %v9097_v30  ;;  %v1998_v63 = vmul.f32 %v9106_v35, %v13242_v29 }
 0x2fc   :  { %v9108_v36 = vpop.permute.xlu1 %2220  ;;  %2422 = vrot.lane.b32.xlu0 %v2028_v14, %s7043_s30  ;;  %v1956_v14 = vsel %vm441_vm1, %v1950_v31, %v1951_v60 }
 0x2fd   :  { %13239 = vst [vmem:[#allocation185_spill] sm:$0xff] %v9108_v36  ;;  %v2013_v36 = vmul.f32 %v1957_v39, %v13244_v56  ;;  %v1887_v56 = vrot.slane %v9095_v18, 7 }
 0x2fe   :  { %v9114_v51 = vpop.permute.xlu0 %2218  ;;  %2108 = vrot.lane.b32.xlu1 %v1935_v23, %s7038_s3  ;;  %v1833_v23 = vmul.f32 %v8573_v6, %v8880_v20  ;;  %v13249_v6 = vld [vmem:[#allocation83_spill] sm:$0xff] }
 0x2ff   :  { %13241 = vst [vmem:[#allocation186_spill] sm:$0xff] %v9114_v51  ;;  %v2044_v51 = vmul.f32 %v8921_v13, %v13245_v47  ;;  %v2029_v20 = vmul.f32 %v9106_v35, %v13249_v6 }
 0x300   :  { %v9119_v21 = vpop.permute.xlu1 %2346  ;;  %2234 = vrot.lane.b32.xlu0 %v1998_v63, %s7041_s27  ;;  %v13246_v63 = vld [vmem:[#allocation86_spill] sm:$0xff]  ;;  %v1856_v31 = vadd.f32 %v8578_v9, %v1833_v23 }
 0x301   :  { %13243 = vst [vmem:[#allocation187_spill] sm:$0xff] %v9119_v21  ;;  %v1983_v21 = vmul.f32 %v1956_v14, %v13246_v63  ;;  %v13252_v23 = vld [vmem:[#allocation90_spill] sm:$0xff] }
 0x302   :  { %v9125_v30 = vpop.permute.xlu0 %2534  ;;  %2360 = vrot.lane.b32.xlu1 %v2013_v36, %s7042_s29  ;;  %v9155_v47 = vmax.f32 %v1856_v31, 0.0 }
 0x304   :  { %v9132_v29 = vpop.permute.xlu1 %2096  ;;  %2486 = vrot.lane.b32.xlu0 %v2044_v51, %s7039_s4  ;;  %v9149_v51 = vsel %vm216_vm0, %v1886_v27, %v1887_v56  ;;  %13251 = vst [vmem:[#allocation191_spill] sm:$0xff] %v9155_v47  ;;  %v1952_v27 = vrot.slane %v9155_v47, 1 }
 0x305   :  { %13250 = vst [vmem:[#allocation190_spill] sm:$0xff] %v9149_v51 }
 0x306   :  { %v9137_v37 = vpop.permute.xlu0 %2474  ;;  %2172 = vrot.lane.b32.xlu1 %v1983_v21, %s7040_s26  ;;  %v2060_v21 = vmul.f32 %v1957_v39, %v8460_v34  ;;  %v13254_v39 = vld [vmem:[#allocation85_spill] sm:$0xff]  ;;  %v1955_v34 = vsel %vm441_vm1, %v1951_v60, %v1952_v27  ;;  %v13257_v60 = vld [vmem:[#allocation87_spill] sm:$0xff] }
 0x307   :  { %13247 = vst [vmem:[#allocation188_spill] sm:$0xff] %v9137_v37  ;;  %v2045_v31 = vmul.f32 %v9051_v26, %v13254_v39  ;;  %v1984_v39 = vmul.f32 %v1955_v34, %v8034_v40 }
 0x308   :  { %v9141_v36 = vpop.permute.xlu1 %2476  ;;  %2298 = vrot.lane.b32.xlu0 %v9051_v26, %s7031_s19 }
 0x309   :  { %13248 = vst [vmem:[#allocation189_spill] sm:$0xff] %v9141_v36  ;;  %v1999_v36 = vmul.f32 %v9149_v51, %v13252_v23  ;;  %v1936_v23 = vmul.f32 %v9095_v18, %v8020_v24 }
 0x30a   :  { %v9151_v63 = vpop.permute.xlu0 %2286  ;;  %2424 = vrot.lane.b32.xlu1 %v2029_v20, %s7043_s30 }
 0x30c   :  { %v9157_v9 = vpop.permute.xlu1 %2348  ;;  %2550 = vrot.lane.b32.xlu0 %v2060_v21, %s7032_s24  ;;  %v2061_v21 = vmul.f32 %v1956_v14, %v8479_v45  ;;  %v2014_v45 = vmul.f32 %v1956_v14, %v13257_v60  ;;  %v13261_v60 = vrot.slane %v8971_v49, 1 }
 0x30e   :  { %v9162_v6 = vpop.permute.xlu0 %2536  ;;  %2236 = vrot.lane.b32.xlu1 %v1999_v36, %s7041_s27 }
 0x310   :  { %v9166_v35 = vpop.permute.xlu1 %2412  ;;  %2300 = vrot.lane.b32.xlu0 %v9095_v18, %s7031_s19 }
 0x311   :  { %13253 = vst [vmem:[#allocation192_spill] sm:$0xff] %v9166_v35 }
 0x312   :  { %v9172_v20 = vpop.permute.xlu0 %2410  ;;  %2488 = vrot.lane.b32.xlu1 %v2045_v31, %s7039_s4  ;;  %v1888_v31 = vrot.slane %v9155_v47, 7 }
 0x314   :  { %v9178_v36 = vpop.permute.xlu1 %2098  ;;  %2552 = vrot.lane.b32.xlu0 %v2061_v21, %s7032_s24  ;;  %v13258_v21 = vld [vmem:[#allocation91_spill] sm:$0xff] }
 0x315   :  { %13255 = vst [vmem:[#allocation193_spill] sm:$0xff] %v9178_v36  ;;  %v2030_v24 = vmul.f32 %v9149_v51, %v13258_v21 }
 0x316   :  { %v9183_v37 = vpop.permute.xlu0 %2288  ;;  %2110 = vrot.lane.b32.xlu1 %v1936_v23, %s7038_s3  ;;  %v9199_v23 = vsel %vm216_vm0, %v1887_v56, %v1888_v31  ;;  %v13260_v56 = vld [vmem:[#allocation95_spill] sm:$0xff] }
 0x317   :  { %13256 = vst [vmem:[#allocation194_spill] sm:$0xff] %v9183_v37  ;;  %13259 = vst [vmem:[#allocation195_spill] sm:$0xff] %v9199_v23  ;;  %v2015_v21 = vmul.f32 %v1955_v34, %v13260_v56 }
 0x318   :  { %v9188_v35 = vpop.permute.xlu1 %2160  ;;  %2174 = vrot.lane.b32.xlu0 %v1984_v39, %s7040_s26  ;;  %v1937_v39 = vmul.f32 %v9155_v47, %v8087_v11 }
 0x31a   :  { %v9192_v36 = vpop.permute.xlu0 %2158  ;;  %2362 = vrot.lane.b32.xlu1 %v2014_v45, %s7042_s29  ;;  %v2000_v45 = vmul.f32 %v9199_v23, %v8071_v32 }
 0x31c   :  { %v9201_v40 = vpop.permute.xlu1 %2224  ;;  %2426 = vrot.lane.b32.xlu0 %v2030_v24, %s7043_s30  ;;  %v1954_v24 = vsel %vm441_vm1, %v1952_v27, %v13261_v60  ;;  %v13263_v27 = vld [vmem:[#allocation97_spill] sm:$0xff] }
 0x31d   :  { %v2031_v60 = vmul.f32 %v9199_v23, %v13263_v27  ;;  %v13291_v23 = vld [vmem:[#allocation148_spill] sm:$0xff] }
 0x31e   :  { %v9206_v37 = vpop.permute.xlu0 %2222  ;;  %2112 = vrot.lane.b32.xlu1 %v1937_v39, %s7038_s3  ;;  %v2046_v39 = vmul.f32 %v9095_v18, %v8022_v28 }
 0x320   :  { %v9211_v14 = vpop.permute.xlu1 %2350  ;;  %2238 = vrot.lane.b32.xlu0 %v2000_v45, %s7041_s27  ;;  %v1985_v45 = vmul.f32 %v1954_v24, %v8110_v33 }
 0x322   :  { %v9219_v51 = vpop.permute.xlu0 %2538  ;;  %2364 = vrot.lane.b32.xlu1 %v2015_v21, %s7042_s29  ;;  %v13264_v21 = vrot.slane %v8971_v49, 7 }
 0x324   :  { %v9224_v11 = vpop.permute.xlu1 %2100  ;;  %2490 = vrot.lane.b32.xlu0 %v2046_v39, %s7039_s4  ;;  %v9241_v28 = vsel %vm216_vm0, %v1888_v31, %v13264_v21  ;;  %v2016_v31 = vmul.f32 %v1954_v24, %v8089_v52 }
 0x326   :  { %v9228_v32 = vpop.permute.xlu0 %2478  ;;  %2176 = vrot.lane.b32.xlu1 %v1985_v45, %s7040_s26  ;;  %v2062_v45 = vmul.f32 %v1955_v34, %v8491_v12 }
 0x328   :  { %v9231_v56 = vpop.permute.xlu1 %2480  ;;  %2302 = vrot.lane.b32.xlu0 %v9155_v47, %s7031_s19 }
 0x329   :  { %13262 = vst [vmem:[#allocation196_spill] sm:$0xff] %v9231_v56  ;;  %v2001_v56 = vmul.f32 %v9241_v28, %v8129_v43 }
 0x32a   :  { %v9243_v39 = vpop.permute.xlu0 %2290  ;;  %2428 = vrot.lane.b32.xlu1 %v2031_v60, %s7043_s30  ;;  %v13265_v60 = vld [vmem:[#allocation100_spill] sm:$0xff] }
 0x32b   :  { %v2047_v34 = vmul.f32 %v9155_v47, %v13265_v60 }
 0x32c   :  { %v9247_v33 = vpop.permute.xlu1 %2352  ;;  %2554 = vrot.lane.b32.xlu0 %v2062_v45, %s7032_s24  ;;  %v2017_v45 = vmul.f32 %v9021_v59, %v8145_v44 }
 0x32e   :  { %v9252_v27 = vpop.permute.xlu0 %2540  ;;  %2240 = vrot.lane.b32.xlu1 %v2001_v56, %s7041_s27 }
 0x330   :  { %v9256_v21 = vpop.permute.xlu1 %2416  ;;  %2366 = vrot.lane.b32.xlu0 %v2016_v31, %s7042_s29  ;;  %v2033_v31 = vmul.f32 %v9043_v15, %v8156_v22  ;;  %v2032_v22 = vmul.f32 %v9241_v28, %v8112_v1  ;;  %v13278_v1 = vld [vmem:[#allocation165_spill] sm:$0xff] }
 0x332   :  { %v9261_v12 = vpop.permute.xlu0 %2414  ;;  %2492 = vrot.lane.b32.xlu1 %v2047_v34, %s7039_s4  ;;  %v2063_v34 = vmul.f32 %v1954_v24, %v8508_v54  ;;  %v2065_v24 = vmul.f32 %v8611_v38, %v8535_v50 }
 0x334   :  { %v9266_v43 = vpop.permute.xlu1 %2102  ;;  %2368 = vrot.lane.b32.xlu0 %v2017_v45, %s7042_s29  ;;  %v2049_v45 = vmul.f32 %v8582_v57, %v8179_v61 }
 0x336   :  { %v9269_v56 = vpop.permute.xlu0 %2162  ;;  %2304 = vrot.lane.b32.xlu1 %v8971_v49, %s7031_s19 }
 0x338   :  { %v9275_v52 = vpop.permute.xlu1 %2164  ;;  %2432 = vrot.lane.b32.xlu0 %v2033_v31, %s7043_s30 }
 0x33a   :  { %v9279_v60 = vpop.permute.xlu0 %2226  ;;  %2556 = vrot.lane.b32.xlu1 %v2063_v34, %s7032_s24  ;;  %v2048_v34 = vmul.f32 %v8971_v49, %v8143_v46  ;;  %v13285_v46 = vld [vmem:[#allocation186_spill] sm:$0xff] }
 0x33c   :  { %v9284_v44 = vpop.permute.xlu1 %2228  ;;  %2496 = vrot.lane.b32.xlu0 %v2049_v45, %s7039_s4 }
 0x33e   :  { %v9289_v25 = vpop.permute.xlu0 %2542  ;;  %2430 = vrot.lane.b32.xlu1 %v2032_v22, %s7043_s30  ;;  %v2064_v22 = vmul.f32 %v9021_v59, %v8524_v17 }
 0x340   :  { %v9294_v31 = vpop.permute.xlu1 %2354  ;;  %2560 = vrot.lane.b32.xlu0 %v2065_v24, %s7032_s24 }
 0x342   :  { %v9299_v54 = vpop.permute.xlu0 %2292  ;;  %2494 = vrot.lane.b32.xlu1 %v2048_v34, %s7039_s4 }
 0x344   :  { %v9302_v45 = vpop.permute.xlu1 %2104  ;;  %3007 = vrot.lane.b32.xlu0 %v8971_v49, %s7044_s21 }
 0x346   :  { %v9308_v38 = vpop.permute.xlu0 %2544  ;;  %2558 = vrot.lane.b32.xlu1 %v2064_v22, %s7032_s24  ;;  %v13266_v22 = vld [vmem:[#allocation108_spill] sm:$0xff] }
 0x347   :  { %v1907_v49 = vmul.f32 %v9043_v15, %v13266_v22 }
 0x348   :  { %v9311_v24 = vpop.permute.xlu1 %2356  ;;  %2981 = vrot.lane.b32.xlu0 %v8605_v41, %s7044_s21 }
 0x34a   :  { %v9315_v50 = vpop.permute.xlu0 %2166  ;;  %2977 = vrot.lane.b32.xlu1 %v8582_v57, %s7044_s21 }
 0x34c   :  { %v9319_v34 = vpop.permute.xlu1 %2420  ;;  %2985 = vrot.lane.b32.xlu0 %v8682_v58, %s7044_s21  ;;  %v2580_v58 = vsel %vm2578_vm10, %v1907_v49, %v8823_v55 }
 0x34d   :  { %v2597_v15 = vsel %vm2595_vm11, %v2580_v58, %v8888_v4  ;;  %v13267_v58 = vld [vmem:[#allocation120_spill] sm:$0xff]  ;;  %v13268_v4 = vld [vmem:[#allocation135_spill] sm:$0xff] }
 0x34e   :  { %v9323_v59 = vpop.permute.xlu0 %2418  ;;  %2979 = vrot.lane.b32.xlu1 %v8590_v0, %s7044_s21  ;;  %v2614_v49 = vsel %vm2612_vm12, %v2597_v15, %v8902_v16  ;;  %v13270_v0 = vld [vmem:[#allocation122_spill] sm:$0xff]  ;;  %v13271_v16 = vld [vmem:[#allocation136_spill] sm:$0xff] }
 0x34f   :  { %v1910_v15 = vmul.f32 %v13271_v16, %v13270_v0 }
 0x350   :  { %v9329_v17 = vpop.permute.xlu1 %2168  ;;  %2989 = vrot.lane.b32.xlu0 %v8746_v53, %s7044_s21  ;;  %v1908_v53 = vmul.f32 %v8628_v2, %v8177_v62  ;;  %v13269_v62 = vld [vmem:[#allocation150_spill] sm:$0xff] }
 0x352   :  { %v9333_v41 = vpop.permute.xlu0 %2230  ;;  %2983 = vrot.lane.b32.xlu1 %v8642_v19, %s7044_s21  ;;  %v2581_v55 = vsel %vm2578_vm10, %v1908_v53, %v8838_v10 }
 0x353   :  { %v2598_v2 = vsel %vm2595_vm11, %v2581_v55, %v8961_v42  ;;  %v13274_v55 = vld [vmem:[#allocation161_spill] sm:$0xff] }
 0x354   :  { %v9339_v57 = vpop.permute.xlu1 %2232  ;;  %2993 = vrot.lane.b32.xlu0 %v8812_v5, %s7044_s21  ;;  %v2615_v53 = vsel %vm2612_vm12, %v2598_v2, %v8979_v3  ;;  %v13276_v3 = vld [vmem:[#allocation146_spill] sm:$0xff]  ;;  %v13277_v2 = vld [vmem:[#allocation156_spill] sm:$0xff] }
 0x356   :  { %v9345_v22 = vpop.permute.xlu0 %2482  ;;  %2987 = vrot.lane.b32.xlu1 %v8707_v7, %s7044_s21  ;;  %v1909_v7 = vmul.f32 %v13268_v4, %v13267_v58  ;;  %v13273_v58 = vld [vmem:[#allocation98_spill] sm:$0xff] }
 0x357   :  { %v1906_v42 = vmul.f32 %v9241_v28, %v13273_v58 }
 0x358   :  { %v2083_v19 = vpop.permute.xlu1 %2082  ;;  %2997 = vrot.lane.b32.xlu0 %v8898_v48, %s7044_s21  ;;  %v2630_v48 = vsel %vm1482_vm2, %v2614_v49, %v13269_v62  ;;  %v2583_v62 = vsel %vm2578_vm10, %v1910_v15, %v13274_v55  ;;  %v13275_v49 = vld [vmem:[#allocation164_spill] sm:$0xff]  ;;  %v13281_v55 = vld [vmem:[#allocation139_spill] sm:$0xff] }
 0x359   :  { %v2579_v58 = vsel %vm2578_vm10, %v1906_v42, %v2083_v19  ;;  %v13280_v15 = vld [vmem:[#allocation124_spill] sm:$0xff]  ;;  %v13287_v42 = vld [vmem:[#allocation143_spill] sm:$0xff] }
 0x35a   :  { %v9357_v5 = vpop.permute.xlu0 %2294  ;;  %2991 = vrot.lane.b32.xlu1 %v8771_v8, %s7044_s21  ;;  %v13272_v8 = vld [vmem:[#allocation152_spill] sm:$0xff]  ;;  %v1911_v61 = vmul.f32 %v13281_v55, %v13280_v15  ;;  %v13288_v15 = vld [vmem:[#allocation158_spill] sm:$0xff] }
 0x35b   :  { %v2582_v4 = vsel %vm2578_vm10, %v1909_v7, %v13272_v8  ;;  %v13279_v8 = vld [vmem:[#allocation151_spill] sm:$0xff]  ;;  %v13286_v19 = vld [vmem:[#allocation128_spill] sm:$0xff] }
 0x35c   :  { %v2147_v10 = vpop.permute.xlu1 %2146  ;;  %3001 = vrot.lane.b32.xlu0 %v9051_v26, %s7044_s21  ;;  %v2599_v16 = vsel %vm2595_vm11, %v2582_v4, %v13275_v49  ;;  %v2647_v26 = vsel %vm2645_vm13, %v2630_v48, %v13277_v2  ;;  %v2631_v28 = vsel %vm1482_vm2, %v2615_v53, %v13279_v8  ;;  %v13282_v4 = vld [vmem:[#allocation183_spill] sm:$0xff]  ;;  %v13283_v2 = vld [vmem:[#allocation126_spill] sm:$0xff]  ;;  %v1913_v8 = vmul.f32 %v13287_v42, %v13286_v19  ;;  %v13296_v42 = vld [vmem:[#allocation173_spill] sm:$0xff] }
 0x35d   :  { %v2616_v7 = vsel %vm2612_vm12, %v2599_v16, %v13278_v1  ;;  %v2600_v49 = vsel %vm2595_vm11, %v2583_v62, %v13282_v4  ;;  %v13284_v1 = vld [vmem:[#allocation140_spill] sm:$0xff]  ;;  %v2664_v62 = vsel %vm2662_vm14, %v2647_v26, %v13288_v15  ;;  %v13294_v15 = vld [vmem:[#allocation157_spill] sm:$0xff] }
 0x35e   :  { %v9381_v0 = vpop.permute.xlu0 %2546  ;;  %2995 = vrot.lane.b32.xlu1 %v13276_v3, %s7044_s21  ;;  %v2596_v3 = vsel %vm2595_vm11, %v2579_v58, %v2147_v10  ;;  %v1912_v16 = vmul.f32 %v13284_v1, %v13283_v2  ;;  %v2617_v53 = vsel %vm2612_vm12, %v2600_v49, %v13285_v46  ;;  %v13289_v4 = vld [vmem:[#allocation168_spill] sm:$0xff]  ;;  %v13290_v10 = vld [vmem:[#allocation163_spill] sm:$0xff]  ;;  %v13292_v46 = vld [vmem:[#allocation170_spill] sm:$0xff] }
 0x35f   :  { %v2648_v58 = vsel %vm2645_vm13, %v2631_v28, %v13289_v4  ;;  %v13293_v49 = vld [vmem:[#allocation179_spill] sm:$0xff] }
 0x360   :  { %3005 = vrot.lane.b32.xlu0 %v9155_v47, %s7044_s21  ;;  %v2211_v48 = vpop.permute.xlu1 %2210  ;;  %v2632_v47 = vsel %vm1482_vm2, %v2616_v7, %v13290_v10  ;;  %v2585_v26 = vsel %vm2578_vm10, %v1912_v16, %v13293_v49  ;;  %v13297_v10 = vld [vmem:[#allocation160_spill] sm:$0xff]  ;;  %v13299_v49 = vld [vmem:[#allocation181_spill] sm:$0xff] }
 0x361   :  { %v2613_v55 = vsel %vm2612_vm12, %v2596_v3, %v2211_v48  ;;  %v2584_v3 = vsel %vm2578_vm10, %v1911_v61, %v13292_v46  ;;  %v13295_v48 = vld [vmem:[#allocation178_spill] sm:$0xff]  ;;  %v13298_v46 = vld [vmem:[#allocation175_spill] sm:$0xff] }
 0x362   :  { %v2629_v1 = vsel %vm1482_vm2, %v2613_v55, %v13291_v23  ;;  %v9414_v2 = vpop.permute.xlu0 %2296  ;;  %2999 = vrot.lane.b32.xlu1 %v8921_v13, %s7044_s21  ;;  %v2665_v7 = vsel %vm2662_vm14, %v2648_v58, %v13295_v48  ;;  %v2633_v23 = vsel %vm1482_vm2, %v2617_v53, %v13296_v42  ;;  %v2602_v55 = vsel %vm2595_vm11, %v2585_v26, %v9192_v36  ;;  %v13301_v48 = vld [vmem:[#allocation154_spill] sm:$0xff]  ;;  %v13302_v26 = vld [vmem:[#allocation177_spill] sm:$0xff] }
 0x363   :  { %v2646_v28 = vsel %vm2645_vm13, %v2629_v1, %v13294_v15  ;;  %v2649_v16 = vsel %vm2645_vm13, %v2632_v47, %v13298_v46  ;;  %v2601_v1 = vsel %vm2595_vm11, %v2584_v3, %v13299_v49  ;;  %v2619_v58 = vsel %vm2612_vm12, %v2602_v55, %v9206_v37  ;;  %v13300_v15 = vld [vmem:[#allocation149_spill] sm:$0xff]  ;;  %v13305_v3 = vld [vmem:[#allocation176_spill] sm:$0xff]  ;;  %v13307_v46 = vld [vmem:[#allocation171_spill] sm:$0xff] }
 0x364   :  { %v9430_v4 = vpop.permute.xlu1 %2484  ;;  %v2663_v61 = vsel %vm2662_vm14, %v2646_v28, %v13297_v10  ;;  %v2681_v36 = vsel %vm2679_vm15, %v2664_v62, %v13301_v48  ;;  %v2666_v42 = vsel %vm2662_vm14, %v2649_v16, %v13302_v26  ;;  %v13303_v13 = vld [vmem:[#allocation185_spill] sm:$0xff]  ;;  %v2682_v16 = vsel %vm2679_vm15, %v2665_v7, %v13307_v46  ;;  %v13309_v48 = vld [vmem:[#allocation172_spill] sm:$0xff] }
 0x365   :  { %v2680_v53 = vsel %vm2679_vm15, %v2663_v61, %v13300_v15  ;;  %v2618_v28 = vsel %vm2612_vm12, %v2601_v1, %v13303_v13  ;;  %v13304_v47 = vld [vmem:[#allocation169_spill] sm:$0xff]  ;;  %v2697_v55 = vsel %vm1499_vm3, %v2681_v36, %v13305_v3  ;;  %v13306_v61 = vld [vmem:[#allocation187_spill] sm:$0xff]  ;;  %v2698_v13 = vsel %vm1499_vm3, %v2682_v16, %v9125_v30  ;;  %v13311_v26 = vld [vmem:[#allocation144_spill] sm:$0xff] }
 0x366   :  { %v9448_v10 = vpop.permute.xlu0 %2548  ;;  %3003 = vrot.lane.b32.xlu1 %v9095_v18, %s7044_s21  ;;  %v2696_v37 = vsel %vm1499_vm3, %v2680_v53, %v13304_v47  ;;  %v2650_v62 = vsel %vm2645_vm13, %v2633_v23, %v13306_v61  ;;  %v2586_v49 = vsel %vm2578_vm10, %v1913_v8, %v9132_v29  ;;  %v2635_v15 = vsel %vm1482_vm2, %v2619_v58, %v9151_v63  ;;  %v13308_v23 = vld [vmem:[#allocation180_spill] sm:$0xff]  ;;  %v13310_v30 = vld [vmem:[#allocation129_spill] sm:$0xff]  ;;  %v13315_v61 = vld [vmem:[#allocation130_spill] sm:$0xff] }
 0x367   :  { %6510 = vmatprep.mubr.msk.f32.mxu1 %vm2717_vm4, %v2696_v37  ;;  %v2667_v1 = vsel %vm2662_vm14, %v2650_v62, %v9172_v20  ;;  %v2634_v7 = vsel %vm1482_vm2, %v2618_v28, %v13308_v23  ;;  %v2683_v36 = vsel %vm2679_vm15, %v2666_v42, %v13309_v48  ;;  %v1914_v47 = vmul.f32 %v13311_v26, %v13310_v30  ;;  %v13312_v42 = vld [vmem:[#allocation192_spill] sm:$0xff]  ;;  %v13313_v37 = vld [vmem:[#allocation193_spill] sm:$0xff]  ;;  %v13316_v62 = vld [vmem:[#allocation147_spill] sm:$0xff] }
 0x368   :  { %v9469_v53 = vpop.permute.xlu1 %2106  ;;  %6511 = vmatmul.mubr.msk.f32.vlgmr.msra.gmra.mrb[0].mxu1 %vm2717_vm4, %v2697_v55  ;;  %v2603_v29 = vsel %vm2595_vm11, %v2586_v49, %v9188_v35  ;;  %v2651_v63 = vsel %vm2645_vm13, %v2634_v7, %v9157_v9  ;;  %v2699_v20 = vsel %vm1499_vm3, %v2683_v36, %v9162_v6  ;;  %v2652_v35 = vsel %vm2645_vm13, %v2635_v15, %v9211_v14  ;;  %v13314_v55 = vld [vmem:[#allocation188_spill] sm:$0xff]  ;;  %v13317_v49 = vld [vmem:[#allocation194_spill] sm:$0xff]  ;;  %v13318_v15 = vld [vmem:[#allocation189_spill] sm:$0xff] }
 0x369   :  { %6513 = vmatprep.mubr.msk.f32.mxu1 %vm2717_vm4, %v2698_v13  ;;  %v2620_v8 = vsel %vm2612_vm12, %v2603_v29, %v9201_v40  ;;  %v2668_v28 = vsel %vm2662_vm14, %v2651_v63, %v13312_v42  ;;  %v2587_v3 = vsel %vm2578_vm10, %v1914_v47, %v13313_v37  ;;  %v2684_v9 = vsel %vm2679_vm15, %v2667_v1, %v13314_v55  ;;  %v13320_v63 = vld [vmem:[#allocation68_spill] sm:$0xff]  ;;  %v13322_v55 = vld [vmem:[#allocation131_spill] sm:$0xff] }
 0x36a   :  { %v9487_v58 = vpop.permute.xlu0 %2170  ;;  %v2700_v6 = vsel %vm1499_vm3, %v2684_v9, %v9219_v51  ;;  %v1915_v40 = vmul.f32 %v13316_v62, %v13315_v61  ;;  %v2669_v46 = vsel %vm2662_vm14, %v2652_v35, %v9261_v12  ;;  %v2604_v16 = vsel %vm2595_vm11, %v2587_v3, %v9269_v56  ;;  %v13323_v9 = vld [vmem:[#allocation162_spill] sm:$0xff] }
 0x36b   :  { %v2636_v14 = vsel %vm1482_vm2, %v2620_v8, %v13317_v49  ;;  %v2621_v1 = vsel %vm2612_vm12, %v2604_v16, %v9279_v60  ;;  %v2685_v56 = vsel %vm2679_vm15, %v2668_v28, %v13318_v15  ;;  %v2686_v36 = vsel %vm2679_vm15, %v2669_v46, %v9228_v32  ;;  %v13319_v32 = vld [vmem:[#allocation196_spill] sm:$0xff] }
 0x36c   :  { %v2359_v13 = vpop.permute.xlu1 %2358  ;;  %6514 = vmatmul.mubr.msk.f32.gmra.mrb[2].mxu1 %vm2717_vm4, %v2699_v20  ;;  %v2588_v51 = vsel %vm2578_vm10, %v1915_v40, %v9224_v11  ;;  %v2653_v12 = vsel %vm2645_vm13, %v2636_v14, %v9247_v33  ;;  %v2701_v7 = vsel %vm1499_vm3, %v2685_v56, %v9252_v27  ;;  %v2702_v33 = vsel %vm1499_vm3, %v2686_v36, %v9289_v25  ;;  %v13321_v20 = vld [vmem:[#allocation153_spill] sm:$0xff] }
 0x36d   :  { %6516 = vmatprep.mubr.msk.f32.mxu1 %vm2717_vm4, %v2700_v6  ;;  %v2670_v48 = vsel %vm2662_vm14, %v2653_v12, %v9256_v21  ;;  %v2605_v60 = vsel %vm2595_vm11, %v2588_v51, %v9275_v52  ;;  %v2637_v26 = vsel %vm1482_vm2, %v2621_v1, %v9243_v39  ;;  %v1916_v8 = vmul.f32 %v13321_v20, %v13320_v63 }
 0x36e   :  { %v2423_v23 = vpop.permute.xlu0 %2422  ;;  %v2622_v11 = vsel %vm2612_vm12, %v2605_v60, %v9284_v44  ;;  %v2654_v27 = vsel %vm2645_vm13, %v2637_v26, %v9294_v31  ;;  %v2687_v44 = vsel %vm2679_vm15, %v2670_v48, %v13319_v32  ;;  %v1917_v6 = vmul.f32 %v13323_v9, %v13322_v55  ;;  %v13324_v48 = vld [vmem:[#allocation81_spill] sm:$0xff] }
 0x36f   :  { %v2638_v52 = vsel %vm1482_vm2, %v2622_v11, %v9299_v54  ;;  %v2671_v39 = vsel %vm2662_vm14, %v2654_v27, %v9323_v59  ;;  %v2703_v29 = vsel %vm1499_vm3, %v2687_v44, %v9308_v38  ;;  %v2589_v38 = vsel %vm2578_vm10, %v1916_v8, %v9266_v43 }
 0x370   :  { %v9531_v47 = vpop.permute.xlu1 %2108  ;;  %6517 = vmatmul.mubr.msk.f32.gmra.mrb[4].mxu1 %vm2717_vm4, %v2701_v7  ;;  %v2655_v25 = vsel %vm2645_vm13, %v2638_v52, %v9311_v24  ;;  %v2688_v54 = vsel %vm2679_vm15, %v2671_v39, %v9345_v22  ;;  %v2606_v22 = vsel %vm2595_vm11, %v2589_v38, %v9315_v50 }
 0x371   :  { %6519 = vmatprep.mubr.msk.f32.mxu1 %vm2717_vm4, %v2702_v33  ;;  %v2672_v31 = vsel %vm2662_vm14, %v2655_v25, %v9319_v34  ;;  %v2704_v42 = vsel %vm1499_vm3, %v2688_v54, %v9381_v0  ;;  %v2623_v0 = vsel %vm2612_vm12, %v2606_v22, %v9333_v41  ;;  %v2590_v41 = vsel %vm2578_vm10, %v1917_v6, %v9302_v45 }
 0x372   :  { %v2235_v21 = vpop.permute.xlu0 %2234  ;;  %v2689_v24 = vsel %vm2679_vm15, %v2672_v31, %v9430_v4  ;;  %v2639_v4 = vsel %vm1482_vm2, %v2623_v0, %v9357_v5  ;;  %v2607_v5 = vsel %vm2595_vm11, %v2590_v41, %v9329_v17  ;;  %v13331_v41 = vld [vmem:[#allocation190_spill] sm:$0xff] }
 0x373   :  { %v2705_v28 = vsel %vm1499_vm3, %v2689_v24, %v9448_v10  ;;  %v2656_v3 = vsel %vm2645_vm13, %v2639_v4, %v2359_v13  ;;  %v2624_v16 = vsel %vm2612_vm12, %v2607_v5, %v9339_v57 }
 0x374   :  { %v2361_v59 = vpop.permute.xlu1 %2360  ;;  %6520 = vmatmul.mubr.msk.f32.gmra.mrb[6].mxu1 %vm2717_vm4, %v2703_v29  ;;  %v2673_v50 = vsel %vm2662_vm14, %v2656_v3, %v2423_v23  ;;  %v2640_v13 = vsel %vm1482_vm2, %v2624_v16, %v9414_v2  ;;  %v13325_v2 = vld [vmem:[#allocation167_spill] sm:$0xff] }
 0x375   :  { %6522 = vmatprep.mubr.msk.f32.mxu1 %vm2717_vm4, %v2704_v42  ;;  %v2657_v14 = vsel %vm2645_vm13, %v2640_v13, %v2361_v59  ;;  %v1918_v60 = vmul.f32 %v13325_v2, %v13324_v48  ;;  %v13327_v42 = vld [vmem:[#allocation184_spill] sm:$0xff] }
 0x376   :  { %v2487_v34 = vpop.permute.xlu0 %2486 }
 0x377   :  { %v2690_v10 = vsel %vm2679_vm15, %v2673_v50, %v2487_v34  ;;  %v2591_v11 = vsel %vm2578_vm10, %v1918_v60, %v9469_v53  ;;  %v13328_v50 = vld [vmem:[#allocation132_spill] sm:$0xff] }
 0x378   :  { %v2173_v37 = vpop.permute.xlu1 %2172  ;;  %6523 = vmatmul.mubr.msk.f32.gmra.mrb[8].mxu1 %vm2717_vm4, %v2705_v28  ;;  %v2608_v27 = vsel %vm2595_vm11, %v2591_v11, %v9487_v58  ;;  %v13326_v58 = vld [vmem:[#allocation107_spill] sm:$0xff] }
 0x379   :  { %v2625_v52 = vsel %vm2612_vm12, %v2608_v27, %v2235_v21  ;;  %v1919_v21 = vmul.f32 %v13327_v42, %v13326_v58  ;;  %v9640_v27 = vld [vmem:[%s12509_s6] ss:$0 sm:$0xff] }
 0x37a   :  { %v2299_v35 = vpop.permute.xlu0 %2298 }
 0x37b   :  { %v2641_v44 = vsel %vm1482_vm2, %v2625_v52, %v2299_v35  ;;  %v2592_v59 = vsel %vm2578_vm10, %v1919_v21, %v9531_v47 }
 0x37c   :  { %v2425_v43 = vpop.permute.xlu1 %2424  ;;  %v2609_v34 = vsel %vm2595_vm11, %v2592_v59, %v2173_v37  ;;  %v13330_v37 = vld [vmem:[#allocation96_spill] sm:$0xff] }
 0x37d   :  { %v2674_v1 = vsel %vm2662_vm14, %v2657_v14, %v2425_v43 }
 0x37e   :  { %v2551_v62 = vpop.permute.xlu0 %2550 }
 0x37f   :  { %v2706_v40 = vsel %vm1499_vm3, %v2690_v10, %v2551_v62  ;;  %v13329_v10 = vld [vmem:[#allocation195_spill] sm:$0xff] }
 0x380   :  { %v2237_v46 = vpop.permute.xlu1 %2236  ;;  %6525 = vmatprep.mubr.msk.f32.mxu1 %vm2717_vm4, %v2706_v40  ;;  %v1921_v47 = vmul.f32 %v13329_v10, %v13328_v50  ;;  %v1920_v40 = vmul.f32 %v13331_v41, %v13330_v37  ;;  %v13337_v41 = vld [vmem:[#allocation11_spill] sm:$0xff] }
 0x381   :  { %v2626_v22 = vsel %vm2612_vm12, %v2609_v34, %v2237_v46 }
 0x382   :  { %v2301_v49 = vpop.permute.xlu0 %2300 }
 0x383   :  { %v2642_v4 = vsel %vm1482_vm2, %v2626_v22, %v2301_v49 }
 0x384   :  { %v2489_v45 = vpop.permute.xlu1 %2488 }
 0x385   :  { %v2691_v51 = vsel %vm2679_vm15, %v2674_v1, %v2489_v45 }
 0x386   :  { %v2553_v12 = vpop.permute.xlu0 %2552 }
 0x387   :  { %v2707_v17 = vsel %vm1499_vm3, %v2691_v51, %v2553_v12 }
 0x388   :  { %v2111_v15 = vpop.permute.xlu1 %2110  ;;  %6526 = vmatmul.mubr.msk.f32.gmra.mrb[10].mxu1 %vm2717_vm4, %v2707_v17 }
 0x389   :  { %v2593_v46 = vsel %vm2578_vm10, %v1920_v40, %v2111_v15 }
 0x38a   :  { %v2175_v56 = vpop.permute.xlu0 %2174 }
 0x38b   :  { %v2610_v45 = vsel %vm2595_vm11, %v2593_v46, %v2175_v56 }
 0x38c   :  { %v2363_v23 = vpop.permute.xlu1 %2362 }
 0x38d   :  { %v2658_v25 = vsel %vm2645_vm13, %v2641_v44, %v2363_v23 }
 0x38e   :  { %v2427_v57 = vpop.permute.xlu0 %2426 }
 0x38f   :  { %v2675_v31 = vsel %vm2662_vm14, %v2658_v25, %v2427_v57 }
 0x390   :  { %v2113_v7 = vpop.permute.xlu1 %2112 }
 0x391   :  { %v2594_v5 = vsel %vm2578_vm10, %v1921_v47, %v2113_v7 }
 0x392   :  { %v2239_v36 = vpop.permute.xlu0 %2238 }
 0x393   :  { %v2627_v51 = vsel %vm2612_vm12, %v2610_v45, %v2239_v36 }
 0x394   :  { %v2365_v33 = vpop.permute.xlu1 %2364 }
 0x395   :  { %v2659_v3 = vsel %vm2645_vm13, %v2642_v4, %v2365_v33 }
 0x396   :  { %v2491_v26 = vpop.permute.xlu0 %2490 }
 0x397   :  { %v2692_v54 = vsel %vm2679_vm15, %v2675_v31, %v2491_v26 }
 0x398   :  { %v2177_v32 = vpop.permute.xlu1 %2176 }
 0x399   :  { %v2611_v16 = vsel %vm2595_vm11, %v2594_v5, %v2177_v32  ;;  %v9645_v32 = vld [vmem:[%s12510_s7] ss:$0 sm:$0xff] }
 0x39a   :  { %v2303_v39 = vpop.permute.xlu0 %2302 }
 0x39b   :  { %v2643_v17 = vsel %vm1482_vm2, %v2627_v51, %v2303_v39  ;;  %v13340_v51 = vld [vmem:[#allocation16_spill] sm:$0xff] }
 0x39c   :  { %v2429_v29 = vpop.permute.xlu1 %2428 }
 0x39d   :  { %v2676_v35 = vsel %vm2662_vm14, %v2659_v3, %v2429_v29  ;;  %v13336_v3 = vld [vmem:[#allocation10_spill] sm:$0xff] }
 0x39e   :  { %v2555_v20 = vpop.permute.xlu0 %2554 }
 0x39f   :  { %v2708_v53 = vsel %vm1499_vm3, %v2692_v54, %v2555_v20 }
 0x3a0   :  { %v2241_v8 = vpop.permute.xlu1 %2240  ;;  %6528 = vmatprep.mubr.msk.f32.mxu1 %vm2717_vm4, %v2708_v53 }
 0x3a1   :  { %v2628_v49 = vsel %vm2612_vm12, %v2611_v16, %v2241_v8  ;;  %v13338_v16 = vld [vmem:[#allocation22_spill] sm:$0xff] }
 0x3a2   :  { %v2367_v24 = vpop.permute.xlu0 %2366 }
 0x3a3   :  { %v2660_v57 = vsel %vm2645_vm13, %v2643_v17, %v2367_v24 }
 0x3a4   :  { %v2493_v38 = vpop.permute.xlu1 %2492 }
 0x3a5   :  { %v2693_v9 = vsel %vm2679_vm15, %v2676_v35, %v2493_v38 }
 0x3a6   :  { %v2369_v28 = vpop.permute.xlu0 %2368 }
 0x3a8   :  { %v2305_v0 = vpop.permute.xlu1 %2304 }
 0x3a9   :  { %v2644_v1 = vsel %vm1482_vm2, %v2628_v49, %v2305_v0 }
 0x3aa   :  { %v2433_v43 = vpop.permute.xlu0 %2432  ;;  %v2661_v23 = vsel %vm2645_vm13, %v2644_v1, %v2369_v28  ;;  %v13339_v1 = vld [vmem:[#allocation4_spill] sm:$0xff] }
 0x3ab   :  { %v2678_v2 = vsel %vm2662_vm14, %v2661_v23, %v2433_v43 }
 0x3ac   :  { %v2557_v6 = vpop.permute.xlu1 %2556 }
 0x3ad   :  { %v2709_v62 = vsel %vm1499_vm3, %v2693_v9, %v2557_v6 }
 0x3ae   :  { %6529 = vmatmul.mubr.msk.f32.gmra.mrb[12].mxu1 %vm2717_vm4, %v2709_v62  ;;  %v2497_v14 = vpop.permute.xlu0 %2496 }
 0x3af   :  { %v2695_v33 = vsel %vm2679_vm15, %v2678_v2, %v2497_v14 }
 0x3b0   :  { %v2431_v13 = vpop.permute.xlu1 %2430 }
 0x3b1   :  { %v2677_v15 = vsel %vm2662_vm14, %v2660_v57, %v2431_v13 }
 0x3b2   :  { %v2561_v7 = vpop.permute.xlu0 %2560 }
 0x3b3   :  { %v2711_v36 = vsel %vm1499_vm3, %v2695_v33, %v2561_v7 }
 0x3b4   :  { %v2495_v12 = vpop.permute.xlu1 %2494 }
 0x3b5   :  { %v2694_v60 = vsel %vm2679_vm15, %v2677_v15, %v2495_v12  ;;  %v13341_v15 = vld [vmem:[#allocation17_spill] sm:$0xff] }
 0x3b6   :  { %v9664_v34 = vpop.permute.xlu0 %3007 }
 0x3b8   :  { %v2559_v11 = vpop.permute.xlu1 %2558 }
 0x3b9   :  { %v2710_v56 = vsel %vm1499_vm3, %v2694_v60, %v2559_v11 }
 0x3ba   :  { %6531 = vmatprep.mubr.msk.f32.mxu1 %vm2717_vm4, %v2710_v56  ;;  %v2982_v5 = vpop.permute.xlu0 %2981 }
 0x3bb   :  { %6532 = vmatmul.mubr.msk.f32.gmra.mrb[14].mxu1 %vm2717_vm4, %v2711_v36 }
 0x3bc   :  { %v2978_v26 = vpop.permute.xlu1 %2977 }
 0x3c0   :  { %v2980_v31 = vpop.permute.xlu1 %2979 }
 0x3c4   :  { %v2984_v43 = vpop.permute.xlu1 %2983 }
 0x43b   :  { %v6512_v52 = vpop.f32.mrb[0].mxu1 }
 0x43c   :  { %v2923_v44 = vmul.f32 %v6512_v52, %v9640_v27  ;;  %v2836_v25 = vpop.f32.mrb[1].mxu1 }
 0x43d   :  { %v2922_v39 = vmul.f32 %v9640_v27, %v2836_v25 }
 0x43e   :  { %v9650_v29 = vadd.f32 %v9645_v32, %v2923_v44 }
 0x43f   :  { %v9653_v54 = vadd.f32 %v9645_v32, %v2922_v39  ;;  %v6515_v20 = vpop.f32.mrb[2].mxu1  ;;  %v13344_v39 = vld [vmem:[#allocation6_spill] sm:$0xff] }
 0x440   :  { %13332 = vst [vmem:[#allocation135_spill] sm:$0xff] %v9650_v29  ;;  %v12849_v53 = vmax.f32 %v9650_v29, 0.0  ;;  %v2925_v8 = vmul.f32 %v6515_v20, %v9640_v27  ;;  %v2846_v42 = vpop.f32.mrb[3].mxu1 }
 0x441   :  { %13333 = vst [vmem:[#allocation150_spill] sm:$0xff] %v9653_v54  ;;  %v2924_v21 = vmul.f32 %v9640_v27, %v2846_v42  ;;  %v12851_v59 = vmax.f32 %v9653_v54, 0.0  ;;  %v13345_v42 = vld [vmem:[#allocation18_spill] sm:$0xff] }
 0x442   :  { %v3026_v24 = vadd.f32 %v2980_v31, %v12849_v53  ;;  %v9662_v38 = vadd.f32 %v9645_v32, %v2925_v8 }
 0x443   :  { %v9667_v22 = vadd.f32 %v9645_v32, %v2924_v21  ;;  %v6518_v28 = vpop.f32.mrb[4].mxu1  ;;  %v9674_v9 = vadd.f32 %v2978_v26, %v12851_v59  ;;  %v13343_v26 = vld [vmem:[#allocation13_spill] sm:$0xff] }
 0x444   :  { %13334 = vst [vmem:[#allocation136_spill] sm:$0xff] %v9662_v38  ;;  %v12847_v0 = vmax.f32 %v9662_v38, 0.0  ;;  %3443 = vrot.lane.b32.xlu1 %v3026_v24, %s7031_s19  ;;  %v2856_v4 = vpop.f32.mrb[5].mxu1  ;;  %v3091_v35 = vmul.f32 %v3026_v24, %v13336_v3  ;;  %v3201_v40 = vmul.f32 %v3026_v24, %v13337_v41  ;;  %v3106_v23 = vrot.slane %v3026_v24, 1 }
 0x445   :  { %13335 = vst [vmem:[#allocation152_spill] sm:$0xff] %v9667_v22  ;;  %v12848_v10 = vmax.f32 %v9667_v22, 0.0  ;;  %v3090_v45 = vmul.f32 %v9674_v9, %v13339_v1  ;;  %v12854_v57 = vrot.slane %v9674_v9, 1  ;;  %v12852_v56 = vrot.slane %v9674_v9, 7  ;;  %v13361_v22 = vld [vmem:[#allocation30_spill] sm:$0xff] }
 0x446   :  { %v9678_v6 = vadd.f32 %v2984_v43, %v12847_v0  ;;  %3253 = vrot.lane.b32.xlu0 %v3091_v35, %s7038_s3  ;;  %v3042_v36 = vrot.slane %v3026_v24, 7  ;;  %v2927_v8 = vmul.f32 %v6518_v28, %v9640_v27  ;;  %v13354_v0 = vld [vmem:[#allocation23_spill] sm:$0xff] }
 0x447   :  { %v9682_v47 = vpop.f32.mrb[6].mxu1  ;;  %v3027_v46 = vadd.f32 %v2982_v5, %v12848_v10  ;;  %v9718_v33 = vsel %vm441_vm1, %v12854_v57, %v3106_v23  ;;  %v13346_v5 = vld [vmem:[#allocation8_spill] sm:$0xff]  ;;  %v2986_v10 = vpop.permute.xlu0 %2985  ;;  %v13359_v57 = vld [vmem:[#allocation25_spill] sm:$0xff] }
 0x448   :  { %3441 = vrot.lane.b32.xlu1 %v9674_v9, %s7031_s19  ;;  %v9686_v62 = vpop.f32.mrb[7].mxu1  ;;  %v3093_v13 = vmul.f32 %v9678_v6, %v13338_v16  ;;  %v3108_v11 = vrot.slane %v9678_v6, 1  ;;  %v3138_v31 = vmul.f32 %v9718_v33, %v13344_v39  ;;  %v9735_v20 = vsel %vm216_vm0, %v12852_v56, %v3042_v36  ;;  %v13409_v16 = vld [vmem:[#allocation65_spill] sm:$0xff] }
 0x449   :  { %v3092_v12 = vmul.f32 %v3027_v46, %v13340_v51  ;;  %v3107_v17 = vrot.slane %v3027_v46, 1  ;;  %v3202_v7 = vmul.f32 %v3027_v46, %v13341_v15  ;;  %v3043_v25 = vrot.slane %v3027_v46, 7 }
 0x44a   :  { %3633 = vrot.lane.b32.xlu0 %v3201_v40, %s7039_s4  ;;  %v3044_v43 = vrot.slane %v9678_v6, 7  ;;  %v3154_v28 = vmul.f32 %v9735_v20, %v13346_v5 }
 0x44b   :  { %v9694_v49 = vpop.f32.mrb[8].mxu1  ;;  %v9710_v60 = vsel %vm441_vm1, %v3106_v23, %v3107_v17  ;;  %v9726_v44 = vsel %vm441_vm1, %v3107_v17, %v3108_v11  ;;  %v9745_v35 = vsel %vm216_vm0, %v3042_v36, %v3043_v25  ;;  %v13349_v23 = vld [vmem:[#allocation7_spill] sm:$0xff] }
 0x44c   :  { %3257 = vrot.lane.b32.xlu1 %v3093_v13, %s7038_s3  ;;  %v9697_v14 = vpop.f32.mrb[9].mxu1  ;;  %v3170_v52 = vmul.f32 %v9710_v60, %v13343_v26  ;;  %v3140_v21 = vmul.f32 %v9726_v44, %v13345_v42  ;;  %v2926_v13 = vmul.f32 %v9640_v27, %v2856_v4  ;;  %v9762_v17 = vsel %vm216_vm0, %v3043_v25, %v3044_v43  ;;  %v13351_v4 = vld [vmem:[#allocation20_spill] sm:$0xff] }
 0x44e   :  { %3251 = vrot.lane.b32.xlu0 %v3090_v45, %s7038_s3  ;;  %v13348_v45 = vld [vmem:[#allocation15_spill] sm:$0xff] }
 0x450   :  { %3255 = vrot.lane.b32.xlu1 %v3092_v12, %s7038_s3  ;;  %v3186_v12 = vmul.f32 %v9745_v35, %v13348_v45 }
 0x452   :  { %3447 = vrot.lane.b32.xlu0 %v9678_v6, %s7031_s19 }
 0x454   :  { %3635 = vrot.lane.b32.xlu1 %v3202_v7, %s7039_s4  ;;  %v3169_v7 = vmul.f32 %v9718_v33, %v13349_v23 }
 0x456   :  { %3445 = vrot.lane.b32.xlu0 %v3027_v46, %s7031_s19  ;;  %v9754_v46 = vadd.f32 %v9645_v32, %v2927_v8  ;;  %v13352_v8 = vld [vmem:[#allocation9_spill] sm:$0xff] }
 0x457   :  { %v3185_v25 = vmul.f32 %v9735_v20, %v13352_v8 }
 0x458   :  { %3507 = vrot.lane.b32.xlu1 %v3170_v52, %s7042_s29  ;;  %13347 = vst [vmem:[#allocation161_spill] sm:$0xff] %v9754_v46  ;;  %v12850_v36 = vmax.f32 %v9754_v46, 0.0  ;;  %v9769_v52 = vadd.f32 %v9645_v32, %v2926_v13  ;;  %v13353_v13 = vld [vmem:[#allocation19_spill] sm:$0xff] }
 0x45a   :  { %3315 = vrot.lane.b32.xlu0 %v3138_v31, %s7040_s26  ;;  %13350 = vst [vmem:[#allocation164_spill] sm:$0xff] %v9769_v52  ;;  %v3156_v31 = vmul.f32 %v9762_v17, %v13351_v4 }
 0x45b   :  { %v9741_v24 = vpop.f32.mrb[10].mxu1 }
 0x45c   :  { %3319 = vrot.lane.b32.xlu1 %v3140_v21, %s7040_s26  ;;  %v9749_v40 = vpop.f32.mrb[11].mxu1  ;;  %v2988_v21 = vpop.permute.xlu1 %2987 }
 0x45e   :  { %3379 = vrot.lane.b32.xlu0 %v3154_v28, %s7041_s27  ;;  %v9779_v28 = vadd.f32 %v2988_v21, %v12850_v36  ;;  %v13355_v21 = vld [vmem:[#allocation35_spill] sm:$0xff] }
 0x460   :  { %3571 = vrot.lane.b32.xlu1 %v3186_v12, %s7043_s30  ;;  %v12853_v12 = vmax.f32 %v9769_v52, 0.0  ;;  %v3095_v36 = vmul.f32 %v9779_v28, %v13355_v21 }
 0x462   :  { %3505 = vrot.lane.b32.xlu0 %v3169_v7, %s7042_s29  ;;  %v3171_v7 = vmul.f32 %v9726_v44, %v13353_v13  ;;  %v3029_v53 = vadd.f32 %v2986_v10, %v12853_v12 }
 0x464   :  { %3383 = vrot.lane.b32.xlu1 %v3156_v31, %s7041_s27  ;;  %v3203_v31 = vmul.f32 %v9678_v6, %v13354_v0  ;;  %v13357_v6 = vld [vmem:[#allocation29_spill] sm:$0xff]  ;;  %v3045_v46 = vrot.slane %v3029_v53, 7 }
 0x465   :  { %v3204_v56 = vmul.f32 %v3029_v53, %v13357_v6 }
 0x466   :  { %3569 = vrot.lane.b32.xlu0 %v3185_v25, %s7043_s30  ;;  %v13356_v25 = vld [vmem:[#allocation28_spill] sm:$0xff]  ;;  %v9825_v29 = vsel %vm216_vm0, %v3044_v43, %v3045_v46 }
 0x467   :  { %v3094_v59 = vmul.f32 %v3029_v53, %v13356_v25 }
 0x468   :  { %3509 = vrot.lane.b32.xlu1 %v3171_v7, %s7042_s29  ;;  %v3109_v7 = vrot.slane %v3029_v53, 1 }
 0x46a   :  { %3637 = vrot.lane.b32.xlu0 %v3203_v31, %s7039_s4  ;;  %v9802_v10 = vsel %vm441_vm1, %v3108_v11, %v3109_v7  ;;  %v3110_v31 = vrot.slane %v9779_v28, 1  ;;  %v13360_v11 = vld [vmem:[#allocation14_spill] sm:$0xff] }
 0x46b   :  { %v3155_v38 = vmul.f32 %v9745_v35, %v13360_v11 }
 0x46c   :  { %3261 = vrot.lane.b32.xlu1 %v3095_v36, %s7038_s3  ;;  %v13358_v36 = vld [vmem:[#allocation12_spill] sm:$0xff]  ;;  %v9813_v52 = vsel %vm441_vm1, %v3109_v7, %v3110_v31  ;;  %v3046_v7 = vrot.slane %v9779_v28, 7 }
 0x46d   :  { %v3139_v12 = vmul.f32 %v9710_v60, %v13358_v36 }
 0x46e   :  { %3451 = vrot.lane.b32.xlu0 %v9779_v28, %s7031_s19  ;;  %v9841_v43 = vsel %vm216_vm0, %v3045_v46, %v3046_v7 }
 0x470   :  { %3259 = vrot.lane.b32.xlu1 %v3094_v59, %s7038_s3  ;;  %v3172_v59 = vmul.f32 %v9802_v10, %v13359_v57  ;;  %v2990_v57 = vpop.permute.xlu0 %2989 }
 0x472   :  { %3449 = vrot.lane.b32.xlu0 %v3029_v53, %s7031_s19  ;;  %v13362_v53 = vld [vmem:[#allocation113_spill] sm:$0xff] }
 0x474   :  { %3639 = vrot.lane.b32.xlu1 %v3204_v56, %s7039_s4  ;;  %v2929_v56 = vmul.f32 %v9682_v47, %v9640_v27  ;;  %v13364_v47 = vld [vmem:[#allocation27_spill] sm:$0xff] }
 0x475   :  { %v3188_v18 = vmul.f32 %v9825_v29, %v13364_v47  ;;  %v13367_v47 = vld [vmem:[#allocation32_spill] sm:$0xff] }
 0x476   :  { %3317 = vrot.lane.b32.xlu0 %v3139_v12, %s7040_s26  ;;  %v3142_v12 = vmul.f32 %v9813_v52, %v13361_v22  ;;  %v9832_v54 = vadd.f32 %v9645_v32, %v2929_v56  ;;  %v3158_v46 = vmul.f32 %v9841_v43, %v13367_v47  ;;  %v13370_v47 = vld [vmem:[#allocation36_spill] sm:$0xff] }
 0x478   :  { %3511 = vrot.lane.b32.xlu1 %v3172_v59, %s7042_s29  ;;  %v3217_v59 = vmul.f32 %v9710_v60, %v13362_v53  ;;  %13363 = vst [vmem:[#allocation156_spill] sm:$0xff] %v9832_v54  ;;  %v12863_v56 = vmax.f32 %v9832_v54, 0.0 }
 0x47a   :  { %3381 = vrot.lane.b32.xlu0 %v3155_v38, %s7041_s27  ;;  %v2928_v38 = vmul.f32 %v9640_v27, %v9686_v62 }
 0x47c   :  { %3323 = vrot.lane.b32.xlu1 %v3142_v12, %s7040_s26  ;;  %v13365_v12 = vld [vmem:[#allocation119_spill] sm:$0xff]  ;;  %v9850_v62 = vadd.f32 %v9645_v32, %v2928_v38 }
 0x47d   :  { %v3218_v60 = vmul.f32 %v9726_v44, %v13365_v12  ;;  %v2992_v44 = vpop.permute.xlu1 %2991 }
 0x47e   :  { %3697 = vrot.lane.b32.xlu0 %v3217_v59, %s7032_s24  ;;  %13366 = vst [vmem:[#allocation165_spill] sm:$0xff] %v9850_v62  ;;  %v9862_v12 = vadd.f32 %v2992_v44, %v12863_v56  ;;  %v12865_v38 = vmax.f32 %v9850_v62, 0.0  ;;  %v13371_v44 = vld [vmem:[#allocation48_spill] sm:$0xff] }
 0x47f   :  { %v13374_v62 = vld [vmem:[#allocation24_spill] sm:$0xff] }
 0x480   :  { %3575 = vrot.lane.b32.xlu1 %v3188_v18, %s7043_s30  ;;  %v13368_v18 = vld [vmem:[#allocation21_spill] sm:$0xff]  ;;  %v3097_v56 = vmul.f32 %v9862_v12, %v13371_v44  ;;  %v3141_v44 = vmul.f32 %v9802_v10, %v13374_v62  ;;  %v13377_v62 = vld [vmem:[#allocation44_spill] sm:$0xff] }
 0x481   :  { %v9846_v53 = vpop.f32.mrb[12].mxu1  ;;  %v3187_v22 = vmul.f32 %v9762_v17, %v13368_v18  ;;  %v3031_v18 = vadd.f32 %v2990_v57, %v12865_v38  ;;  %v13373_v57 = vld [vmem:[#allocation43_spill] sm:$0xff] }
 0x482   :  { %3699 = vrot.lane.b32.xlu0 %v3218_v60, %s7032_s24  ;;  %v9853_v59 = vpop.f32.mrb[13].mxu1  ;;  %v13369_v60 = vld [vmem:[#allocation31_spill] sm:$0xff] }
 0x483   :  { %v3173_v11 = vmul.f32 %v9813_v52, %v13369_v60 }
 0x484   :  { %3387 = vrot.lane.b32.xlu1 %v3158_v46, %s7041_s27  ;;  %v3205_v46 = vmul.f32 %v9779_v28, %v13370_v47  ;;  %v3111_v28 = vrot.slane %v3031_v18, 1 }
 0x486   :  { %3573 = vrot.lane.b32.xlu0 %v3187_v22, %s7043_s30  ;;  %v9889_v38 = vsel %vm441_vm1, %v3110_v31, %v3111_v28  ;;  %v13376_v31 = vld [vmem:[#allocation26_spill] sm:$0xff] }
 0x487   :  { %v3157_v36 = vmul.f32 %v9825_v29, %v13376_v31 }
 0x488   :  { %3513 = vrot.lane.b32.xlu1 %v3173_v11, %s7042_s29  ;;  %v13372_v11 = vld [vmem:[#allocation42_spill] sm:$0xff] }
 0x489   :  { %v3096_v54 = vmul.f32 %v3031_v18, %v13372_v11  ;;  %v13375_v11 = vld [vmem:[#allocation39_spill] sm:$0xff] }
 0x48a   :  { %3641 = vrot.lane.b32.xlu0 %v3205_v46, %s7039_s4  ;;  %v3206_v46 = vmul.f32 %v3031_v18, %v13373_v57  ;;  %v3047_v57 = vrot.slane %v3031_v18, 7 }
 0x48c   :  { %3265 = vrot.lane.b32.xlu1 %v3097_v56, %s7038_s3  ;;  %v3112_v56 = vrot.slane %v9862_v12, 1 }
 0x48e   :  { %3455 = vrot.lane.b32.xlu0 %v9862_v12, %s7031_s19  ;;  %v9879_v22 = vpop.f32.mrb[14].mxu1  ;;  %v9900_v47 = vsel %vm441_vm1, %v3111_v28, %v3112_v56  ;;  %v3048_v28 = vrot.slane %v9862_v12, 7 }
 0x48f   :  { %v9882_v60 = vpop.f32.mrb[15].mxu1 }
 0x490   :  { %3263 = vrot.lane.b32.xlu1 %v3096_v54, %s7038_s3  ;;  %v3174_v54 = vmul.f32 %v9889_v38, %v13375_v11  ;;  %v9912_v11 = vsel %vm216_vm0, %v3046_v7, %v3047_v57  ;;  %v9928_v7 = vsel %vm216_vm0, %v3047_v57, %v3048_v28  ;;  %v13384_v57 = vld [vmem:[#allocation33_spill] sm:$0xff] }
 0x492   :  { %3453 = vrot.lane.b32.xlu0 %v3031_v18, %s7031_s19  ;;  %v13378_v18 = vld [vmem:[#allocation121_spill] sm:$0xff] }
 0x494   :  { %3643 = vrot.lane.b32.xlu1 %v3206_v46, %s7039_s4  ;;  %v2931_v46 = vmul.f32 %v9694_v49, %v9640_v27  ;;  %v2930_v49 = vmul.f32 %v9640_v27, %v9697_v14  ;;  %v13383_v14 = vld [vmem:[#allocation46_spill] sm:$0xff] }
 0x496   :  { %3321 = vrot.lane.b32.xlu0 %v3141_v44, %s7040_s26  ;;  %v3144_v44 = vmul.f32 %v9900_v47, %v13377_v62  ;;  %v9919_v31 = vadd.f32 %v9645_v32, %v2931_v46  ;;  %v9935_v6 = vadd.f32 %v9645_v32, %v2930_v49  ;;  %v13385_v49 = vld [vmem:[#allocation45_spill] sm:$0xff] }
 0x498   :  { %3515 = vrot.lane.b32.xlu1 %v3174_v54, %s7042_s29  ;;  %v3219_v54 = vmul.f32 %v9802_v10, %v13378_v18  ;;  %13379 = vst [vmem:[#allocation151_spill] sm:$0xff] %v9919_v31  ;;  %v2994_v18 = vpop.permute.xlu0 %2993  ;;  %v12867_v46 = vmax.f32 %v9919_v31, 0.0  ;;  %13382 = vst [vmem:[#allocation139_spill] sm:$0xff] %v9935_v6 }
 0x49a   :  { %3385 = vrot.lane.b32.xlu0 %v3157_v36, %s7041_s27  ;;  %v13380_v36 = vld [vmem:[#allocation41_spill] sm:$0xff] }
 0x49b   :  { %v3190_v62 = vmul.f32 %v9912_v11, %v13380_v36  ;;  %v3189_v36 = vmul.f32 %v9841_v43, %v13384_v57 }
 0x49c   :  { %3327 = vrot.lane.b32.xlu1 %v3144_v44, %s7040_s26  ;;  %v13381_v44 = vld [vmem:[#allocation123_spill] sm:$0xff]  ;;  %v9951_v25 = vpop.permute.xlu0 %2997 }
 0x49d   :  { %v3220_v10 = vmul.f32 %v9813_v52, %v13381_v44  ;;  %v12869_v44 = vmax.f32 %v9935_v6, 0.0 }
 0x49e   :  { %3701 = vrot.lane.b32.xlu0 %v3219_v54, %s7032_s24  ;;  %v3160_v54 = vmul.f32 %v9928_v7, %v13383_v14 }
 0x49f   :  { %v3033_v57 = vadd.f32 %v2994_v18, %v12869_v44  ;;  %v13389_v18 = vld [vmem:[#allocation56_spill] sm:$0xff] }
 0x4a0   :  { %3579 = vrot.lane.b32.xlu1 %v3190_v62, %s7043_s30  ;;  %v2996_v62 = vpop.permute.xlu1 %2995 }
 0x4a1   :  { %v9945_v52 = vadd.f32 %v2996_v62, %v12867_v46  ;;  %v13387_v62 = vld [vmem:[#allocation62_spill] sm:$0xff]  ;;  %v3113_v21 = vrot.slane %v3033_v57, 1  ;;  %v3049_v0 = vrot.slane %v3033_v57, 7 }
 0x4a2   :  { %3703 = vrot.lane.b32.xlu0 %v3220_v10, %s7032_s24  ;;  %v3175_v10 = vmul.f32 %v9900_v47, %v13385_v49 }
 0x4a3   :  { %v3099_v46 = vmul.f32 %v9945_v52, %v13387_v62  ;;  %v9974_v44 = vsel %vm441_vm1, %v3112_v56, %v3113_v21  ;;  %v13390_v62 = vld [vmem:[#allocation38_spill] sm:$0xff] }
 0x4a4   :  { %3391 = vrot.lane.b32.xlu1 %v3160_v54, %s7041_s27  ;;  %v13386_v54 = vld [vmem:[#allocation49_spill] sm:$0xff]  ;;  %v3000_v31 = vpop.permute.xlu1 %2999 }
 0x4a5   :  { %v3207_v14 = vmul.f32 %v9862_v12, %v13386_v54  ;;  %v13391_v54 = vld [vmem:[#allocation51_spill] sm:$0xff] }
 0x4a6   :  { %3577 = vrot.lane.b32.xlu0 %v3189_v36, %s7043_s30  ;;  %v9962_v36 = vpop.permute.xlu0 %3001 }
 0x4a8   :  { %3517 = vrot.lane.b32.xlu1 %v3175_v10, %s7042_s29  ;;  %v13388_v10 = vld [vmem:[#allocation55_spill] sm:$0xff]  ;;  %v9968_v12 = vpop.permute.xlu1 %3003 }
 0x4a9   :  { %v3098_v49 = vmul.f32 %v3033_v57, %v13388_v10  ;;  %v3143_v10 = vmul.f32 %v9889_v38, %v13390_v62  ;;  %v2933_v62 = vmul.f32 %v9741_v24, %v9640_v27 }
 0x4aa   :  { %3645 = vrot.lane.b32.xlu0 %v3207_v14, %s7039_s4  ;;  %v3208_v14 = vmul.f32 %v3033_v57, %v13389_v18  ;;  %v9977_v6 = vpop.permute.xlu0 %3005  ;;  %v3176_v18 = vmul.f32 %v9974_v44, %v13391_v54 }
 0x4ab   :  { %v10014_v23 = vadd.f32 %v9645_v32, %v2933_v62 }
 0x4ac   :  { %3269 = vrot.lane.b32.xlu1 %v3099_v46, %s7038_s3  ;;  %v3114_v46 = vrot.slane %v9945_v52, 1 }
 0x4ad   :  { %13396 = vst [vmem:[#allocation140_spill] sm:$0xff] %v10014_v23 }
 0x4ae   :  { %3459 = vrot.lane.b32.xlu0 %v9945_v52, %s7031_s19  ;;  %v9989_v56 = vsel %vm441_vm1, %v3113_v21, %v3114_v46  ;;  %v10005_v21 = vsel %vm216_vm0, %v3048_v28, %v3049_v0  ;;  %v13397_v28 = vld [vmem:[#allocation53_spill] sm:$0xff] }
 0x4af   :  { %v3192_v45 = vmul.f32 %v10005_v21, %v13397_v28  ;;  %v13401_v28 = vld [vmem:[#allocation59_spill] sm:$0xff] }
 0x4b0   :  { %3267 = vrot.lane.b32.xlu1 %v3098_v49, %s7038_s3 }
 0x4b2   :  { %3457 = vrot.lane.b32.xlu0 %v3033_v57, %s7031_s19  ;;  %v3050_v57 = vrot.slane %v9945_v52, 7 }
 0x4b4   :  { %3647 = vrot.lane.b32.xlu1 %v3208_v14, %s7039_s4  ;;  %v13392_v14 = vld [vmem:[#allocation40_spill] sm:$0xff]  ;;  %v10025_v5 = vsel %vm216_vm0, %v3049_v0, %v3050_v57 }
 0x4b5   :  { %v3159_v8 = vmul.f32 %v9912_v11, %v13392_v14  ;;  %v13395_v14 = vld [vmem:[#allocation125_spill] sm:$0xff]  ;;  %13398 = vst [vmem:[#allocation186_spill] sm:$0xff] %v10025_v5  ;;  %v3162_v0 = vmul.f32 %v10025_v5, %v13401_v28 }
 0x4b6   :  { %v9982_v49 = vpop.permute.xlu1 %3443  ;;  %3325 = vrot.lane.b32.xlu0 %v3143_v10, %s7040_s26  ;;  %v13393_v10 = vld [vmem:[#allocation57_spill] sm:$0xff]  ;;  %v3221_v24 = vmul.f32 %v9889_v38, %v13395_v14  ;;  %v13399_v38 = vld [vmem:[#allocation127_spill] sm:$0xff] }
 0x4b7   :  { %v3146_v54 = vmul.f32 %v9989_v56, %v13393_v10  ;;  %v3222_v62 = vmul.f32 %v9900_v47, %v13399_v38 }
 0x4b8   :  { %v9991_v13 = vpop.permute.xlu0 %3253  ;;  %3519 = vrot.lane.b32.xlu1 %v3176_v18, %s7042_s29 }
 0x4ba   :  { %v9998_v4 = vpop.permute.xlu1 %3441  ;;  %3389 = vrot.lane.b32.xlu0 %v3159_v8, %s7041_s27  ;;  %v2932_v8 = vmul.f32 %v9640_v27, %v9749_v40  ;;  %v12871_v40 = vmax.f32 %v10014_v23, 0.0  ;;  %v13405_v23 = vld [vmem:[#allocation77_spill] sm:$0xff] }
 0x4bc   :  { %v10008_v18 = vpop.permute.xlu0 %3633  ;;  %3331 = vrot.lane.b32.xlu1 %v3146_v54, %s7040_s26  ;;  %v10034_v14 = vadd.f32 %v9645_v32, %v2932_v8  ;;  %v10048_v47 = vadd.f32 %v3000_v31, %v12871_v40 }
 0x4bd   :  { %13394 = vst [vmem:[#allocation183_spill] sm:$0xff] %v10008_v18 }
 0x4be   :  { %v10018_v10 = vpop.permute.xlu1 %3257  ;;  %3705 = vrot.lane.b32.xlu0 %v3221_v24, %s7032_s24  ;;  %13400 = vst [vmem:[#allocation143_spill] sm:$0xff] %v10034_v14  ;;  %v12874_v8 = vmax.f32 %v10034_v14, 0.0  ;;  %v13418_v58 = vrot.slane %v10048_v47, 7 }
 0x4c0   :  { %v10027_v54 = vpop.permute.xlu0 %3251  ;;  %3583 = vrot.lane.b32.xlu1 %v3192_v45, %s7043_s30  ;;  %v13402_v45 = vld [vmem:[#allocation47_spill] sm:$0xff]  ;;  %v3035_v31 = vadd.f32 %v9951_v25, %v12874_v8  ;;  %v13407_v8 = vld [vmem:[#allocation70_spill] sm:$0xff] }
 0x4c1   :  { %v3191_v39 = vmul.f32 %v9928_v7, %v13402_v45 }
 0x4c2   :  { %v10036_v24 = vpop.permute.xlu1 %3255  ;;  %3707 = vrot.lane.b32.xlu0 %v3222_v62, %s7032_s24  ;;  %v13403_v62 = vld [vmem:[#allocation58_spill] sm:$0xff]  ;;  %v3115_v14 = vrot.slane %v3035_v31, 1  ;;  %v3051_v41 = vrot.slane %v3035_v31, 7 }
 0x4c3   :  { %v3177_v28 = vmul.f32 %v9989_v56, %v13403_v62 }
 0x4c4   :  { %v10041_v42 = vpop.permute.xlu0 %3447  ;;  %3395 = vrot.lane.b32.xlu1 %v3162_v0, %s7041_s27  ;;  %v13404_v0 = vld [vmem:[#allocation63_spill] sm:$0xff] }
 0x4c5   :  { %v3209_v45 = vmul.f32 %v9945_v52, %v13404_v0  ;;  %v13406_v52 = vld [vmem:[#allocation69_spill] sm:$0xff]  ;;  %v12875_v0 = vrot.slane %v10048_v47, 1 }
 0x4c6   :  { %v10051_v38 = vpop.permute.xlu1 %3635  ;;  %3581 = vrot.lane.b32.xlu0 %v3191_v39, %s7043_s30  ;;  %v3101_v39 = vmul.f32 %v10048_v47, %v13405_v23  ;;  %v3210_v23 = vmul.f32 %v3035_v31, %v13407_v8 }
 0x4c8   :  { %v10056_v26 = vpop.permute.xlu0 %3445  ;;  %3521 = vrot.lane.b32.xlu1 %v3177_v28, %s7042_s29  ;;  %v3100_v28 = vmul.f32 %v3035_v31, %v13406_v52  ;;  %v13408_v52 = vld [vmem:[#allocation50_spill] sm:$0xff] }
 0x4c9   :  { %v3145_v1 = vmul.f32 %v9974_v44, %v13408_v52 }
 0x4ca   :  { %v10064_v40 = vpop.permute.xlu1 %3507  ;;  %3649 = vrot.lane.b32.xlu0 %v3209_v45, %s7039_s4 }
 0x4cc   :  { %v10069_v15 = vpop.permute.xlu0 %3315  ;;  %3273 = vrot.lane.b32.xlu1 %v3101_v39, %s7038_s3  ;;  %v10086_v39 = vsel %vm441_vm1, %v3114_v46, %v3115_v14  ;;  %v10103_v46 = vsel %vm441_vm1, %v3115_v14, %v12875_v0  ;;  %v10119_v14 = vsel %vm216_vm0, %v3050_v57, %v3051_v41  ;;  %v13415_v0 = vld [vmem:[#allocation54_spill] sm:$0xff]  ;;  %v13417_v57 = vld [vmem:[#allocation67_spill] sm:$0xff] }
 0x4cd   :  { %v3178_v8 = vmul.f32 %v10086_v39, %v13409_v16  ;;  %v13412_v16 = vld [vmem:[#allocation71_spill] sm:$0xff]  ;;  %13413 = vst [vmem:[#allocation168_spill] sm:$0xff] %v10119_v14 }
 0x4ce   :  { %v10072_v62 = vpop.permute.xlu1 %3319  ;;  %3463 = vrot.lane.b32.xlu0 %v10048_v47, %s7031_s19  ;;  %v3148_v50 = vmul.f32 %v10103_v46, %v13412_v16 }
 0x4d0   :  { %v10077_v25 = vpop.permute.xlu0 %3379  ;;  %3271 = vrot.lane.b32.xlu1 %v3100_v28, %s7038_s3 }
 0x4d2   :  { %v10080_v45 = vpop.permute.xlu1 %3571  ;;  %3461 = vrot.lane.b32.xlu0 %v3035_v31, %s7031_s19  ;;  %v3194_v31 = vmul.f32 %v10119_v14, %v13417_v57  ;;  %v13423_v57 = vld [vmem:[#allocation74_spill] sm:$0xff] }
 0x4d4   :  { %v10089_v51 = vpop.permute.xlu0 %3505  ;;  %3651 = vrot.lane.b32.xlu1 %v3210_v23, %s7039_s4  ;;  %v13411_v23 = vld [vmem:[#allocation52_spill] sm:$0xff] }
 0x4d5   :  { %v3161_v52 = vmul.f32 %v10005_v21, %v13411_v23 }
 0x4d6   :  { %v10094_v28 = vpop.permute.xlu1 %3383  ;;  %3329 = vrot.lane.b32.xlu0 %v3145_v1, %s7040_s26  ;;  %v2935_v1 = vmul.f32 %v9846_v53, %v9640_v27  ;;  %v3223_v53 = vmul.f32 %v9974_v44, %v13415_v0 }
 0x4d8   :  { %v10105_v3 = vpop.permute.xlu0 %3569  ;;  %3523 = vrot.lane.b32.xlu1 %v3178_v8, %s7042_s29  ;;  %v10128_v23 = vadd.f32 %v9645_v32, %v2935_v1  ;;  %v13421_v1 = vld [vmem:[#allocation73_spill] sm:$0xff] }
 0x4d9   :  { %13410 = vst [vmem:[#allocation158_spill] sm:$0xff] %v10105_v3  ;;  %v13438_v3 = vld [vmem:[#allocation66_spill] sm:$0xff] }
 0x4da   :  { %v10112_v37 = vpop.permute.xlu1 %3509  ;;  %3393 = vrot.lane.b32.xlu0 %v3161_v52, %s7041_s27  ;;  %13416 = vst [vmem:[#allocation148_spill] sm:$0xff] %v10128_v23  ;;  %v2934_v52 = vmul.f32 %v9640_v27, %v9853_v59  ;;  %v3224_v59 = vmul.f32 %v9989_v56, %v13421_v1  ;;  %v12877_v0 = vmax.f32 %v10128_v23, 0.0  ;;  %v13427_v23 = vld [vmem:[#allocation78_spill] sm:$0xff] }
 0x4dc   :  { %v10122_v8 = vpop.permute.xlu0 %3637  ;;  %3335 = vrot.lane.b32.xlu1 %v3148_v50, %s7040_s26  ;;  %v10141_v50 = vsel %vm216_vm0, %v3051_v41, %v13418_v58  ;;  %v10165_v56 = vadd.f32 %v9968_v12, %v12877_v0  ;;  %v3211_v12 = vmul.f32 %v10048_v47, %v13427_v23 }
 0x4dd   :  { %13414 = vst [vmem:[#allocation163_spill] sm:$0xff] %v10122_v8  ;;  %13419 = vst [vmem:[#allocation170_spill] sm:$0xff] %v10141_v50  ;;  %v3164_v58 = vmul.f32 %v10141_v50, %v13423_v57  ;;  %v13426_v57 = vld [vmem:[#allocation72_spill] sm:$0xff] }
 0x4de   :  { %v10132_v16 = vpop.permute.xlu1 %3261  ;;  %3709 = vrot.lane.b32.xlu0 %v3223_v53, %s7032_s24  ;;  %v10150_v53 = vadd.f32 %v9645_v32, %v2934_v52  ;;  %v12884_v18 = vrot.slane %v10165_v56, 1 }
 0x4e0   :  { %v10143_v44 = vpop.permute.xlu0 %3451  ;;  %3587 = vrot.lane.b32.xlu1 %v3194_v31, %s7043_s30  ;;  %13422 = vst [vmem:[#allocation157_spill] sm:$0xff] %v10150_v53  ;;  %v13424_v31 = vld [vmem:[#allocation60_spill] sm:$0xff]  ;;  %v12879_v52 = vmax.f32 %v10150_v53, 0.0 }
 0x4e1   :  { %13420 = vst [vmem:[#allocation179_spill] sm:$0xff] %v10143_v44  ;;  %v3193_v48 = vmul.f32 %v10025_v5, %v13424_v31 }
 0x4e2   :  { %v10152_v55 = vpop.permute.xlu1 %3259  ;;  %3711 = vrot.lane.b32.xlu0 %v3224_v59, %s7032_s24  ;;  %v2937_v59 = vmul.f32 %v9879_v22, %v9640_v27  ;;  %v3037_v0 = vadd.f32 %v9962_v36, %v12879_v52  ;;  %v13430_v36 = vld [vmem:[#allocation84_spill] sm:$0xff] }
 0x4e4   :  { %v10157_v41 = vpop.permute.xlu0 %3449  ;;  %3399 = vrot.lane.b32.xlu1 %v3164_v58, %s7041_s27  ;;  %v3179_v58 = vmul.f32 %v10103_v46, %v13426_v57  ;;  %v10184_v22 = vadd.f32 %v9645_v32, %v2937_v59  ;;  %v3102_v59 = vmul.f32 %v3037_v0, %v13430_v36  ;;  %v13435_v36 = vld [vmem:[#allocation64_spill] sm:$0xff] }
 0x4e6   :  { %v10170_v1 = vpop.permute.xlu1 %3639  ;;  %3585 = vrot.lane.b32.xlu0 %v3193_v48, %s7043_s30  ;;  %13428 = vst [vmem:[#allocation173_spill] sm:$0xff] %v10184_v22  ;;  %v13429_v48 = vld [vmem:[#allocation92_spill] sm:$0xff] }
 0x4e7   :  { %13425 = vst [vmem:[#allocation178_spill] sm:$0xff] %v10170_v1  ;;  %v3103_v57 = vmul.f32 %v10165_v56, %v13429_v48  ;;  %v3117_v1 = vrot.slane %v3037_v0, 1 }
 0x4e8   :  { %v10175_v63 = vpop.permute.xlu0 %3317  ;;  %3525 = vrot.lane.b32.xlu1 %v3179_v58, %s7042_s29  ;;  %v12881_v58 = vmax.f32 %v10184_v22, 0.0  ;;  %v13436_v22 = vld [vmem:[#allocation3_spill] sm:$0xff] }
 0x4ea   :  { %v10186_v31 = vpop.permute.xlu1 %3511  ;;  %3653 = vrot.lane.b32.xlu0 %v3211_v12, %s7039_s4  ;;  %v10206_v12 = vadd.f32 %v9664_v34, %v12881_v58  ;;  %v6331_v34 = vld [vmem:[%s12508_s5 + $0x30] sm:$0xff] }
 0x4ec   :  { %v10191_v5 = vpop.permute.xlu0 %3381  ;;  %3277 = vrot.lane.b32.xlu1 %v3103_v57, %s7038_s3  ;;  %v13433_v57 = vld [vmem:[#allocation85_spill] sm:$0xff] }
 0x4ed   :  { %v3212_v48 = vmul.f32 %v3037_v0, %v13433_v57  ;;  %v3089_v57 = vmul.f32 %v10206_v12, %v13436_v22  ;;  %v3053_v22 = vrot.slane %v3037_v0, 7 }
 0x4ee   :  { %v10195_v23 = vpop.permute.xlu1 %3323  ;;  %3467 = vrot.lane.b32.xlu0 %v10165_v56, %s7031_s19 }
 0x4f0   :  { %v10200_v52 = vpop.permute.xlu0 %3697  ;;  %3275 = vrot.lane.b32.xlu1 %v3102_v59, %s7038_s3  ;;  %v6330_v59 = vld [vmem:[%s12508_s5 + $0x28] sm:$0xff] }
 0x4f1   :  { %13431 = vst [vmem:[#allocation160_spill] sm:$0xff] %v10200_v52  ;;  %v3147_v52 = vmul.f32 %v10086_v39, %v13435_v36  ;;  %v6689_v44 = vpack.c.bf16 %v6331_v34, %v6330_v59  ;;  %v13440_v59 = vld [vmem:[#allocation80_spill] sm:$0xff] }
 0x4f2   :  { %v10208_v53 = vpop.permute.xlu1 %3575  ;;  %3465 = vrot.lane.b32.xlu0 %v3037_v0, %s7031_s19  ;;  %v6332_v0 = vld [vmem:[%s12508_s5 + $0x38] sm:$0xff] }
 0x4f3   :  { %13432 = vst [vmem:[#allocation175_spill] sm:$0xff] %v10208_v53  ;;  %v3163_v53 = vmul.f32 %v10119_v14, %v13438_v3  ;;  %6690 = vmatprep.subr.bf16.mxu1 %v6689_v44  ;;  %v13442_v3 = vld [vmem:[#allocation61_spill] sm:$0xff] }
 0x4f4   :  { %v10212_v8 = vpop.permute.xlu0 %3699  ;;  %3655 = vrot.lane.b32.xlu1 %v3212_v48, %s7039_s4  ;;  %v13437_v48 = vrot.slane %v10048_v47, 1  ;;  %6692 = vmatpush3.bf16.msra.mxu1 %v6689_v44  ;;  %v3225_v44 = vmul.f32 %v10086_v39, %v13442_v3  ;;  %v13445_v39 = vrot.slane %v10048_v47, 7  ;;  %v13450_v47 = vld [vmem:[#allocation83_spill] sm:$0xff] }
 0x4f5   :  { %13434 = vst [vmem:[#allocation181_spill] sm:$0xff] %v10212_v8 }
 0x4f6   :  { %v10223_v58 = vpop.permute.xlu1 %3387  ;;  %3333 = vrot.lane.b32.xlu0 %v3147_v52, %s7040_s26  ;;  %v10232_v36 = vsel %vm441_vm1, %v13437_v48, %v3117_v1  ;;  %v10249_v48 = vsel %vm441_vm1, %v3117_v1, %v12884_v18  ;;  %v6333_v1 = vld [vmem:[%s12508_s5 + $0x40] sm:$0xff]  ;;  %v13448_v18 = vld [vmem:[#allocation88_spill] sm:$0xff] }
 0x4f7   :  { %v3180_v34 = vmul.f32 %v10232_v36, %v13440_v59  ;;  %v13444_v59 = vld [vmem:[#allocation86_spill] sm:$0xff] }
 0x4f8   :  { %v10235_v8 = vpop.permute.xlu0 %3573  ;;  %3249 = vrot.lane.b32.xlu1 %v3089_v57, %s7038_s3 }
 0x4fa   :  { %v10240_v52 = vpop.permute.xlu1 %3513  ;;  %3397 = vrot.lane.b32.xlu0 %v3163_v53, %s7041_s27  ;;  %v2936_v53 = vmul.f32 %v9640_v27, %v9882_v60  ;;  %v10273_v27 = vsel %vm216_vm0, %v13445_v39, %v3053_v22  ;;  %v12885_v60 = vrot.slane %v10165_v56, 7 }
 0x4fb   :  { %13439 = vst [vmem:[#allocation149_spill] sm:$0xff] %v10240_v52  ;;  %v3150_v52 = vmul.f32 %v10249_v48, %v13444_v59  ;;  %13446 = vst [vmem:[#allocation185_spill] sm:$0xff] %v10273_v27  ;;  %v3226_v59 = vmul.f32 %v10103_v46, %v13448_v18  ;;  %v3196_v39 = vmul.f32 %v10273_v27, %v13450_v47 }
 0x4fc   :  { %v10251_v57 = vpop.permute.xlu0 %3641  ;;  %3527 = vrot.lane.b32.xlu1 %v3180_v34, %s7042_s29  ;;  %v6693_v34 = vpack.c.bf16 %v6333_v1, %v6332_v0  ;;  %v10282_v3 = vadd.f32 %v9645_v32, %v2936_v53  ;;  %v13453_v32 = vld [vmem:[#allocation75_spill] sm:$0xff]  ;;  %v13455_v1 = vld [vmem:[#allocation90_spill] sm:$0xff] }
 0x4fd   :  { %13441 = vst [vmem:[#allocation154_spill] sm:$0xff] %v10251_v57  ;;  %v3195_v46 = vmul.f32 %v10141_v50, %v13453_v32 }
 0x4fe   :  { %v10258_v14 = vpop.permute.xlu1 %3265  ;;  %3713 = vrot.lane.b32.xlu0 %v3225_v44, %s7032_s24  ;;  %6694 = vmatprep.subr.bf16.mxu1 %v6693_v34  ;;  %13449 = vst [vmem:[#allocation176_spill] sm:$0xff] %v10282_v3  ;;  %v12886_v53 = vmax.f32 %v10282_v3, 0.0  ;;  %v3120_v3 = vrot.slane %v10206_v12, 1 }
 0x4ff   :  { %13443 = vst [vmem:[#allocation177_spill] sm:$0xff] %v10258_v14  ;;  %6696 = vmatpush3.bf16.msra.mxu1 %v6693_v34 }
 0x500   :  { %v10276_v44 = vpop.permute.xlu0 %3455  ;;  %3339 = vrot.lane.b32.xlu1 %v3150_v52, %s7040_s26  ;;  %v10293_v52 = vsel %vm216_vm0, %v3053_v22, %v12885_v60  ;;  %v13456_v22 = vld [vmem:[#allocation93_spill] sm:$0xff] }
 0x501   :  { %13447 = vst [vmem:[#allocation169_spill] sm:$0xff] %v10276_v44  ;;  %13451 = vst [vmem:[#allocation187_spill] sm:$0xff] %v10293_v52  ;;  %v3166_v34 = vmul.f32 %v10293_v52, %v13455_v1  ;;  %v3213_v60 = vmul.f32 %v10165_v56, %v13456_v22  ;;  %v6334_v1 = vld [vmem:[%s12508_s5 + $0x48] sm:$0xf]  ;;  %v3056_v44 = vrot.slane %v10206_v12, 7 }
 0x502   :  { %v10284_v57 = vpop.permute.xlu1 %3263  ;;  %3715 = vrot.lane.b32.xlu0 %v3226_v59, %s7032_s24  ;;  %6542 = vmatprep.subr.msk.mxu1 %vm2766_vm9, %v6334_v1 }
 0x503   :  { %6543 = vmatpush3.msk.msra.mxu1 %vm2766_vm9, %v6334_v1  ;;  %v13463_v1 = vld [vmem:[#allocation100_spill] sm:$0xff] }
 0x504   :  { %v10295_v0 = vpop.permute.xlu0 %3453  ;;  %3591 = vrot.lane.b32.xlu1 %v3196_v39, %s7043_s30  ;;  %v10314_v39 = vadd.f32 %v9977_v6, %v12886_v53 }
 0x505   :  { %13452 = vst [vmem:[#allocation171_spill] sm:$0xff] %v10295_v0 }
 0x506   :  { %v10301_v59 = vpop.permute.xlu1 %3643  ;;  %3589 = vrot.lane.b32.xlu0 %v3195_v46, %s7043_s30  ;;  %v13458_v46 = vld [vmem:[#allocation87_spill] sm:$0xff] }
 0x507   :  { %13454 = vst [vmem:[#allocation180_spill] sm:$0xff] %v10301_v59  ;;  %v3181_v18 = vmul.f32 %v10249_v48, %v13458_v46  ;;  %v13461_v46 = vld [vmem:[#allocation79_spill] sm:$0xff]  ;;  %v3214_v59 = vmul.f32 %v10314_v39, %v13463_v1 }
 0x508   :  { %v10306_v47 = vpop.permute.xlu0 %3321  ;;  %3403 = vrot.lane.b32.xlu1 %v3166_v34, %s7041_s27 }
 0x50a   :  { %v10316_v32 = vpop.permute.xlu1 %3515  ;;  %3657 = vrot.lane.b32.xlu0 %v3213_v60, %s7039_s4  ;;  %v13459_v60 = vld [vmem:[#allocation102_spill] sm:$0xff] }
 0x50b   :  { %13457 = vst [vmem:[#allocation172_spill] sm:$0xff] %v10316_v32  ;;  %v3104_v53 = vmul.f32 %v10314_v39, %v13459_v60  ;;  %v13464_v60 = vrot.slane %v9674_v9, 1  ;;  %v13469_v32 = vrot.slane %v9674_v9, 7 }
 0x50c   :  { %v10324_v34 = vpop.permute.xlu0 %3385  ;;  %3529 = vrot.lane.b32.xlu1 %v3181_v18, %s7042_s29  ;;  %v3149_v18 = vmul.f32 %v10232_v36, %v13461_v46 }
 0x50d   :  { %v10351_v0 = vsel %vm441_vm1, %v3120_v3, %v13464_v60  ;;  %v10367_v60 = vsel %vm216_vm0, %v3056_v44, %v13469_v32  ;;  %v13475_v32 = vld [vmem:[#allocation101_spill] sm:$0xff] }
 0x50e   :  { %v10329_v6 = vpop.permute.xlu1 %3327  ;;  %3469 = vrot.lane.b32.xlu0 %v10314_v39, %s7031_s19 }
 0x510   :  { %v10336_v22 = vpop.permute.xlu0 %3701  ;;  %3279 = vrot.lane.b32.xlu1 %v3104_v53, %s7038_s3  ;;  %v13466_v53 = vld [vmem:[#allocation82_spill] sm:$0xff] }
 0x511   :  { %13460 = vst [vmem:[#allocation144_spill] sm:$0xff] %v10336_v22  ;;  %v3165_v46 = vmul.f32 %v10273_v27, %v13466_v53 }
 0x512   :  { %v10341_v50 = vpop.permute.xlu1 %3579  ;;  %3337 = vrot.lane.b32.xlu0 %v3149_v18, %s7040_s26  ;;  %v13468_v18 = vld [vmem:[#allocation5_spill] sm:$0xff] }
 0x513   :  { %13462 = vst [vmem:[#allocation192_spill] sm:$0xff] %v10341_v50  ;;  %v3137_v1 = vmul.f32 %v10351_v0, %v13468_v18 }
 0x514   :  { %v10353_v22 = vpop.permute.xlu0 %3703  ;;  %3659 = vrot.lane.b32.xlu1 %v3214_v59, %s7039_s4  ;;  %v13471_v59 = vld [vmem:[#allocation76_spill] sm:$0xff] }
 0x515   :  { %13465 = vst [vmem:[#allocation193_spill] sm:$0xff] %v10353_v22  ;;  %v3227_v53 = vmul.f32 %v10232_v36, %v13471_v59  ;;  %v3119_v36 = vrot.slane %v10314_v39, 1 }
 0x516   :  { %v10358_v50 = vpop.permute.xlu1 %3391  ;;  %3401 = vrot.lane.b32.xlu0 %v3165_v46, %s7041_s27  ;;  %v13473_v46 = vld [vmem:[#allocation2_spill] sm:$0xff] }
 0x517   :  { %13467 = vst [vmem:[#allocation188_spill] sm:$0xff] %v10358_v50  ;;  %v3153_v18 = vmul.f32 %v10367_v60, %v13473_v46  ;;  %v3228_v50 = vmul.f32 %v10249_v48, %v13475_v32  ;;  %v13480_v32 = vrot.slane %v10165_v56, 1 }
 0x518   :  { %v10369_v14 = vpop.permute.xlu0 %3577  ;;  %3313 = vrot.lane.b32.xlu1 %v3137_v1, %s7040_s26 }
 0x519   :  { %13470 = vst [vmem:[#allocation147_spill] sm:$0xff] %v10369_v14 }
 0x51a   :  { %v10374_v27 = vpop.permute.xlu1 %3517  ;;  %3717 = vrot.lane.b32.xlu0 %v3227_v53, %s7032_s24  ;;  %v13478_v53 = vld [vmem:[#allocation91_spill] sm:$0xff] }
 0x51b   :  { %13472 = vst [vmem:[#allocation194_spill] sm:$0xff] %v10374_v27  ;;  %v3197_v59 = vmul.f32 %v10293_v52, %v13478_v53 }
 0x51c   :  { %v10379_v22 = vpop.permute.xlu0 %3645  ;;  %3377 = vrot.lane.b32.xlu1 %v3153_v18, %s7041_s27  ;;  %v13479_v18 = vld [vmem:[#allocation111_spill] sm:$0xff] }
 0x51d   :  { %13474 = vst [vmem:[#allocation189_spill] sm:$0xff] %v10379_v22  ;;  %v3215_v48 = vmul.f32 %v10206_v12, %v13479_v18  ;;  %v3055_v18 = vrot.slane %v10314_v39, 7 }
 0x51e   :  { %v10384_v14 = vpop.permute.xlu1 %3269  ;;  %3719 = vrot.lane.b32.xlu0 %v3228_v50, %s7032_s24  ;;  %v3122_v50 = vsel %vm441_vm1, %v13480_v32, %v3119_v36  ;;  %v13485_v32 = vld [vmem:[#allocation112_spill] sm:$0xff] }
 0x51f   :  { %13476 = vst [vmem:[#allocation196_spill] sm:$0xff] %v10384_v14 }
 0x520   :  { %v10388_v1 = vpop.permute.xlu0 %3459  ;;  %3471 = vrot.lane.b32.xlu1 %v10206_v12, %s7031_s19  ;;  %v3121_v12 = vsel %vm441_vm1, %v3119_v36, %v3120_v3 }
 0x521   :  { %13477 = vst [vmem:[#allocation153_spill] sm:$0xff] %v10388_v1  ;;  %v13482_v1 = vld [vmem:[#allocation116_spill] sm:$0xff] }
 0x522   :  { %v10394_v46 = vpop.permute.xlu1 %3267  ;;  %3593 = vrot.lane.b32.xlu0 %v3197_v59, %s7043_s30  ;;  %v3216_v27 = vmul.f32 %v9674_v9, %v13482_v1  ;;  %v13484_v59 = vld [vmem:[#allocation95_spill] sm:$0xff]  ;;  %v13487_v9 = vld [vmem:[#allocation105_spill] sm:$0xff]  ;;  %v13492_v1 = vld [vmem:[#allocation94_spill] sm:$0xff] }
 0x523   :  { %v3182_v52 = vmul.f32 %v3122_v50, %v13484_v59  ;;  %v13488_v59 = vrot.slane %v10165_v56, 7  ;;  %v10442_v56 = vsel %vm216_vm0, %v3055_v18, %v3056_v44 }
 0x524   :  { %v10403_v22 = vpop.permute.xlu0 %3457  ;;  %3661 = vrot.lane.b32.xlu1 %v3215_v48, %s7039_s4  ;;  %v3184_v48 = vmul.f32 %v10351_v0, %v13485_v32 }
 0x525   :  { %13481 = vst [vmem:[#allocation162_spill] sm:$0xff] %v10403_v22  ;;  %v10428_v3 = vsel %vm216_vm0, %v13488_v59, %v3055_v18 }
 0x526   :  { %v10408_v53 = vpop.permute.xlu1 %3647  ;;  %3663 = vrot.lane.b32.xlu0 %v3216_v27, %s7039_s4  ;;  %v3152_v27 = vmul.f32 %v3121_v12, %v13487_v9  ;;  %13489 = vst [vmem:[#allocation195_spill] sm:$0xff] %v10428_v3 }
 0x527   :  { %13483 = vst [vmem:[#allocation167_spill] sm:$0xff] %v10408_v53 }
 0x528   :  { %v10415_v14 = vpop.permute.xlu0 %3325  ;;  %3531 = vrot.lane.b32.xlu1 %v3182_v52, %s7042_s29  ;;  %v13490_v52 = vld [vmem:[#allocation114_spill] sm:$0xff] }
 0x529   :  { %v3200_v36 = vmul.f32 %v10367_v60, %v13490_v52  ;;  %v13494_v52 = vld [vmem:[#allocation109_spill] sm:$0xff] }
 0x52a   :  { %v10420_v22 = vpop.permute.xlu1 %3519  ;;  %3535 = vrot.lane.b32.xlu0 %v3184_v48, %s7042_s29  ;;  %v13491_v48 = vld [vmem:[#allocation97_spill] sm:$0xff] }
 0x52b   :  { %13486 = vst [vmem:[#allocation184_spill] sm:$0xff] %v10420_v22  ;;  %v3198_v9 = vmul.f32 %v10428_v3, %v13491_v48  ;;  %v13496_v48 = vld [vmem:[#allocation99_spill] sm:$0xff] }
 0x52c   :  { %v10430_v39 = vpop.permute.xlu0 %3389  ;;  %3343 = vrot.lane.b32.xlu1 %v3152_v27, %s7040_s26  ;;  %v3151_v27 = vmul.f32 %v3122_v50, %v13492_v1  ;;  %v3167_v44 = vmul.f32 %v10428_v3, %v13496_v48 }
 0x52e   :  { %v10435_v32 = vpop.permute.xlu1 %3331  ;;  %3599 = vrot.lane.b32.xlu0 %v3200_v36, %s7043_s30  ;;  %v3168_v36 = vmul.f32 %v10442_v56, %v13494_v52 }
 0x530   :  { %v10444_v59 = vpop.permute.xlu0 %3705  ;;  %3595 = vrot.lane.b32.xlu1 %v3198_v9, %s7043_s30  ;;  %v13497_v9 = vld [vmem:[#allocation117_spill] sm:$0xff] }
 0x531   :  { %v3230_v1 = vmul.f32 %v3121_v12, %v13497_v9 }
 0x532   :  { %v10448_v53 = vpop.permute.xlu1 %3583  ;;  %3341 = vrot.lane.b32.xlu0 %v3151_v27, %s7040_s26  ;;  %v13498_v27 = vld [vmem:[#allocation89_spill] sm:$0xff] }
 0x533   :  { %13493 = vst [vmem:[#allocation190_spill] sm:$0xff] %v10448_v53  ;;  %v3229_v53 = vmul.f32 %v3122_v50, %v13498_v27 }
 0x534   :  { %v10453_v22 = vpop.permute.xlu0 %3707  ;;  %3407 = vrot.lane.b32.xlu1 %v3168_v36, %s7041_s27  ;;  %v13500_v36 = vld [vmem:[#allocation106_spill] sm:$0xff] }
 0x535   :  { %13495 = vst [vmem:[#allocation197_spill] sm:$0xff] %v10453_v22  ;;  %v3199_v22 = vmul.f32 %v10442_v56, %v13500_v36 }
 0x536   :  { %v10458_v18 = vpop.permute.xlu1 %3395  ;;  %3405 = vrot.lane.b32.xlu0 %v3167_v44, %s7041_s27  ;;  %v13502_v44 = vld [vmem:[#allocation103_spill] sm:$0xff] }
 0x537   :  { %v3183_v3 = vmul.f32 %v3121_v12, %v13502_v44  ;;  %v13509_v12 = vld [vmem:[#allocation118_spill] sm:$0xff] }
 0x538   :  { %v10462_v2 = vpop.permute.xlu0 %3581  ;;  %3723 = vrot.lane.b32.xlu1 %v3230_v1, %s7032_s24  ;;  %v13504_v1 = vld [vmem:[#allocation104_spill] sm:$0xff]  ;;  %v13515_v44 = vld [vmem:[#allocation134_spill] sm:$0xff] }
 0x539   :  { %v3231_v50 = vmul.f32 %v10351_v0, %v13504_v1  ;;  %v13511_v0 = vld [vmem:[#allocation166_spill] sm:$0xff] }
 0x53a   :  { %v10466_v52 = vpop.permute.xlu1 %3521  ;;  %3721 = vrot.lane.b32.xlu0 %v3229_v53, %s7032_s24  ;;  %v13506_v53 = vld [vmem:[#allocation110_spill] sm:$0xff] }
 0x53b   :  { %13499 = vst [vmem:[#allocation198_spill] sm:$0xff] %v10466_v52  ;;  %v3232_v36 = vmul.f32 %v9718_v33, %v13506_v53 }
 0x53c   :  { %v10471_v48 = vpop.permute.xlu0 %3649  ;;  %3597 = vrot.lane.b32.xlu1 %v3199_v22, %s7043_s30 }
 0x53d   :  { %13501 = vst [vmem:[#allocation199_spill] sm:$0xff] %v10471_v48  ;;  %v13521_v48 = vld [vmem:[#allocation141_spill] sm:$0xff] }
 0x53e   :  { %v10475_v9 = vpop.permute.xlu1 %3273  ;;  %3533 = vrot.lane.b32.xlu0 %v3183_v3, %s7042_s29 }
 0x53f   :  { %13503 = vst [vmem:[#allocation200_spill] sm:$0xff] %v10475_v9  ;;  %v13523_v9 = vld [vmem:[#allocation142_spill] sm:$0xff] }
 0x540   :  { %v10480_v27 = vpop.permute.xlu0 %3463  ;;  %3725 = vrot.lane.b32.xlu1 %v3231_v50, %s7032_s24  ;;  %v13512_v50 = vld [vmem:[#allocation37_spill] sm:$0xff] }
 0x541   :  { %13505 = vst [vmem:[#allocation201_spill] sm:$0xff] %v10480_v27  ;;  %v13519_v27 = vld [vmem:[#allocation138_spill] sm:$0xff] }
 0x542   :  { %v10485_v52 = vpop.permute.xlu1 %3271  ;;  %3727 = vrot.lane.b32.xlu0 %v3232_v36, %s7032_s24  ;;  %v13514_v36 = vld [vmem:[#allocation133_spill] sm:$0xff] }
 0x543   :  { %13507 = vst [vmem:[#allocation202_spill] sm:$0xff] %v10485_v52 }
 0x544   :  { %v10488_v22 = vpop.permute.xlu0 %3461  ;;  %4139 = vrot.lane.b32.xlu1 %v13509_v12, %s7045_s16 }
 0x545   :  { %13508 = vst [vmem:[#allocation203_spill] sm:$0xff] %v10488_v22 }
 0x546   :  { %v10492_v3 = vpop.permute.xlu1 %3651  ;;  %4169 = vrot.lane.b32.xlu0 %v13511_v0, %s7045_s16 }
 0x547   :  { %13510 = vst [vmem:[#allocation204_spill] sm:$0xff] %v10492_v3  ;;  %v13517_v3 = vld [vmem:[#allocation137_spill] sm:$0xff] }
 0x548   :  { %v10496_v1 = vpop.permute.xlu0 %3329  ;;  %4141 = vrot.lane.b32.xlu1 %v13512_v50, %s7045_s16 }
 0x54a   :  { %v10500_v33 = vpop.permute.xlu1 %3523  ;;  %4143 = vrot.lane.b32.xlu0 %v13514_v36, %s7045_s16 }
 0x54b   :  { %13513 = vst [vmem:[#allocation205_spill] sm:$0xff] %v10500_v33  ;;  %v13527_v33 = vld [vmem:[#allocation146_spill] sm:$0xff] }
 0x54c   :  { %v10504_v53 = vpop.permute.xlu0 %3393  ;;  %4145 = vrot.lane.b32.xlu1 %v13515_v44, %s7045_s16 }
 0x54e   :  { %v10508_v12 = vpop.permute.xlu1 %3335  ;;  %4147 = vrot.lane.b32.xlu0 %v13517_v3, %s7045_s16 }
 0x54f   :  { %13516 = vst [vmem:[#allocation206_spill] sm:$0xff] %v10508_v12  ;;  %v13525_v12 = vld [vmem:[#allocation145_spill] sm:$0xff] }
 0x550   :  { %v10512_v0 = vpop.permute.xlu0 %3709  ;;  %4149 = vrot.lane.b32.xlu1 %v13519_v27, %s7045_s16 }
 0x551   :  { %13518 = vst [vmem:[#allocation207_spill] sm:$0xff] %v10512_v0 }
 0x552   :  { %v10516_v50 = vpop.permute.xlu1 %3587  ;;  %4151 = vrot.lane.b32.xlu0 %v13521_v48, %s7045_s16 }
 0x553   :  { %13520 = vst [vmem:[#allocation208_spill] sm:$0xff] %v10516_v50  ;;  %v13529_v50 = vld [vmem:[#allocation191_spill] sm:$0xff] }
 0x554   :  { %v10520_v36 = vpop.permute.xlu0 %3711  ;;  %4153 = vrot.lane.b32.xlu1 %v13523_v9, %s7045_s16 }
 0x555   :  { %13522 = vst [vmem:[#allocation209_spill] sm:$0xff] %v10520_v36 }
 0x556   :  { %v10524_v44 = vpop.permute.xlu1 %3399  ;;  %4155 = vrot.lane.b32.xlu0 %v13525_v12, %s7045_s16 }
 0x557   :  { %13524 = vst [vmem:[#allocation210_spill] sm:$0xff] %v10524_v44 }
 0x558   :  { %v10528_v3 = vpop.permute.xlu0 %3585  ;;  %4157 = vrot.lane.b32.xlu1 %v13527_v33, %s7045_s16 }
 0x559   :  { %13526 = vst [vmem:[#allocation211_spill] sm:$0xff] %v10528_v3 }
 0x55a   :  { %v10532_v27 = vpop.permute.xlu1 %3525  ;;  %4167 = vrot.lane.b32.xlu0 %v13529_v50, %s7045_s16 }
 0x55b   :  { %13528 = vst [vmem:[#allocation212_spill] sm:$0xff] %v10532_v27 }
 0x55c   :  { %v10536_v48 = vpop.permute.xlu0 %3653 }
 0x55d   :  { %13530 = vst [vmem:[#allocation213_spill] sm:$0xff] %v10536_v48 }
 0x55e   :  { %v10538_v36 = vpop.permute.xlu1 %3277 }
 0x55f   :  { %13531 = vst [vmem:[#allocation214_spill] sm:$0xff] %v10538_v36 }
 0x560   :  { %v10540_v9 = vpop.permute.xlu0 %3467 }
 0x561   :  { %13532 = vst [vmem:[#allocation215_spill] sm:$0xff] %v10540_v9 }
 0x562   :  { %v10542_v44 = vpop.permute.xlu1 %3275 }
 0x563   :  { %13533 = vst [vmem:[#allocation216_spill] sm:$0xff] %v10542_v44 }
 0x564   :  { %v10544_v22 = vpop.permute.xlu0 %3465 }
 0x565   :  { %13534 = vst [vmem:[#allocation217_spill] sm:$0xff] %v10544_v22 }
 0x566   :  { %v10546_v12 = vpop.permute.xlu1 %3655 }
 0x567   :  { %13535 = vst [vmem:[#allocation218_spill] sm:$0xff] %v10546_v12 }
 0x568   :  { %v10548_v3 = vpop.permute.xlu0 %3333 }
 0x569   :  { %13536 = vst [vmem:[#allocation219_spill] sm:$0xff] %v10548_v3  ;;  %v13546_v3 = vld [vmem:[#allocation108_spill] sm:$0xff] }
 0x56a   :  { %v3250_v33 = vpop.permute.xlu1 %3249 }
 0x56c   :  { %v10550_v0 = vpop.permute.xlu0 %3397 }
 0x56d   :  { %13537 = vst [vmem:[#allocation220_spill] sm:$0xff] %v10550_v0  ;;  %v3074_v0 = vmul.f32 %v10367_v60, %v13546_v3  ;;  %v13548_v60 = vld [vmem:[#allocation115_spill] sm:$0xff] }
 0x56e   :  { %v10552_v27 = vpop.permute.xlu1 %3527  ;;  %v3075_v3 = vmul.f32 %v9735_v20, %v13548_v60 }
 0x56f   :  { %13538 = vst [vmem:[#allocation221_spill] sm:$0xff] %v10552_v27 }
 0x570   :  { %v10554_v50 = vpop.permute.xlu0 %3713 }
 0x572   :  { %v10556_v48 = vpop.permute.xlu1 %3339 }
 0x573   :  { %13539 = vst [vmem:[#allocation222_spill] sm:$0xff] %v10556_v48  ;;  %v3746_v48 = vsel %vm2578_vm10, %v3074_v0, %v10027_v54 }
 0x574   :  { %v10558_v36 = vpop.permute.xlu0 %3715 }
 0x575   :  { %13540 = vst [vmem:[#allocation223_spill] sm:$0xff] %v10558_v36  ;;  %v3762_v36 = vsel %vm2595_vm11, %v3746_v48, %v10069_v15  ;;  %v3747_v15 = vsel %vm2578_vm10, %v3075_v3, %v9991_v13  ;;  %v13550_v48 = vld [vmem:[#allocation122_spill] sm:$0xff]  ;;  %v13553_v3 = vld [vmem:[#allocation124_spill] sm:$0xff] }
 0x576   :  { %v10560_v9 = vpop.permute.xlu1 %3591  ;;  %v3763_v20 = vsel %vm2595_vm11, %v3747_v15, %v10175_v63 }
 0x577   :  { %13541 = vst [vmem:[#allocation224_spill] sm:$0xff] %v10560_v9  ;;  %v3779_v13 = vsel %vm2612_vm12, %v3763_v20, %v10191_v5  ;;  %v3081_v5 = vmul.f32 %v9928_v7, %v13310_v30 }
 0x578   :  { %v10562_v44 = vpop.permute.xlu0 %3589 }
 0x579   :  { %13542 = vst [vmem:[#allocation225_spill] sm:$0xff] %v10562_v44 }
 0x57a   :  { %v10564_v22 = vpop.permute.xlu1 %3403 }
 0x57b   :  { %13543 = vst [vmem:[#allocation226_spill] sm:$0xff] %v10564_v22  ;;  %v3778_v22 = vsel %vm2612_vm12, %v3762_v36, %v10077_v25  ;;  %v3077_v36 = vmul.f32 %v9762_v17, %v13550_v48 }
 0x57c   :  { %v10566_v12 = vpop.permute.xlu0 %3657 }
 0x57d   :  { %13544 = vst [vmem:[#allocation227_spill] sm:$0xff] %v10566_v12  ;;  %v3794_v12 = vsel %vm1482_vm2, %v3778_v22, %v9982_v49  ;;  %v3749_v17 = vsel %vm2578_vm10, %v3077_v36, %v10018_v10 }
 0x57e   :  { %v10568_v52 = vpop.permute.xlu1 %3529  ;;  %v3810_v25 = vsel %vm2645_vm13, %v3794_v12, %v10064_v40  ;;  %v13552_v40 = vld [vmem:[#allocation98_spill] sm:$0xff]  ;;  %v3765_v10 = vsel %vm2595_vm11, %v3749_v17, %v10306_v47 }
 0x57f   :  { %13545 = vst [vmem:[#allocation228_spill] sm:$0xff] %v10568_v52  ;;  %v3073_v12 = vmul.f32 %v10442_v56, %v13552_v40 }
 0x580   :  { %v10572_v27 = vpop.permute.xlu0 %3469 }
 0x581   :  { %13547 = vst [vmem:[#allocation229_spill] sm:$0xff] %v10572_v27  ;;  %v13549_v27 = vld [vmem:[#allocation120_spill] sm:$0xff]  ;;  %v3745_v56 = vsel %vm2578_vm10, %v3073_v12, %v3250_v33  ;;  %v13558_v12 = vld [vmem:[#allocation179_spill] sm:$0xff] }
 0x582   :  { %v10578_v9 = vpop.permute.xlu1 %3279  ;;  %v3076_v54 = vmul.f32 %v9745_v35, %v13549_v27  ;;  %v13551_v27 = vld [vmem:[#allocation126_spill] sm:$0xff] }
 0x583   :  { %v3079_v60 = vmul.f32 %v9841_v43, %v13551_v27  ;;  %v3080_v43 = vmul.f32 %v9912_v11, %v13286_v19 }
 0x584   :  { %v10582_v44 = vpop.permute.xlu0 %3337  ;;  %v3748_v49 = vsel %vm2578_vm10, %v3076_v54, %v10036_v24  ;;  %v3826_v24 = vsel %vm2662_vm14, %v3810_v25, %v10080_v45  ;;  %v3795_v45 = vsel %vm1482_vm2, %v3779_v13, %v10056_v26  ;;  %v13557_v13 = vld [vmem:[#allocation183_spill] sm:$0xff] }
 0x585   :  { %v3764_v35 = vsel %vm2595_vm11, %v3748_v49, %v10072_v62  ;;  %v3078_v62 = vmul.f32 %v9825_v29, %v13553_v3  ;;  %v3082_v29 = vmul.f32 %v10005_v21, %v13315_v61  ;;  %v3842_v33 = vsel %vm2679_vm15, %v3826_v24, %v10051_v38  ;;  %v13559_v24 = vld [vmem:[#allocation149_spill] sm:$0xff] }
 0x586   :  { %v10586_v52 = vpop.permute.xlu1 %3659  ;;  %v3780_v63 = vsel %vm2612_vm12, %v3764_v35, %v10094_v28  ;;  %v3781_v28 = vsel %vm2612_vm12, %v3765_v10, %v10324_v34  ;;  %v3751_v34 = vsel %vm2578_vm10, %v3079_v60, %v10132_v16  ;;  %v3811_v38 = vsel %vm2645_vm13, %v3795_v45, %v10112_v37  ;;  %v13554_v60 = vld [vmem:[#allocation175_spill] sm:$0xff]  ;;  %v13560_v10 = vld [vmem:[#allocation160_spill] sm:$0xff] }
 0x587   :  { %v3750_v11 = vsel %vm2578_vm10, %v3078_v62, %v10152_v55  ;;  %v3796_v47 = vsel %vm1482_vm2, %v3780_v63, %v10041_v42  ;;  %v3797_v16 = vsel %vm1482_vm2, %v3781_v28, %v10157_v41  ;;  %v3767_v49 = vsel %vm2595_vm11, %v3751_v34, %v10415_v14  ;;  %v13563_v28 = vld [vmem:[#allocation188_spill] sm:$0xff]  ;;  %v13567_v34 = vld [vmem:[#allocation171_spill] sm:$0xff] }
 0x588   :  { %v10592_v0 = vpop.permute.xlu0 %3401  ;;  %v3812_v21 = vsel %vm2645_vm13, %v3796_v47, %v10186_v31  ;;  %v3766_v25 = vsel %vm2595_vm11, %v3750_v11, %v10195_v23  ;;  %v3783_v35 = vsel %vm2612_vm12, %v3767_v49, %v10430_v39  ;;  %v3813_v63 = vsel %vm2645_vm13, %v3797_v16, %v13559_v24  ;;  %v13565_v11 = vld [vmem:[#allocation172_spill] sm:$0xff]  ;;  %v13577_v24 = vld [vmem:[#allocation162_spill] sm:$0xff] }
 0x589   :  { %v3782_v42 = vsel %vm2612_vm12, %v3766_v25, %v10223_v58  ;;  %v3828_v23 = vsel %vm2662_vm14, %v3812_v21, %v13554_v60  ;;  %v13555_v58 = vld [vmem:[#allocation158_spill] sm:$0xff] }
 0x58a   :  { %v3314_v22 = vpop.permute.xlu1 %3313  ;;  %v3798_v14 = vsel %vm1482_vm2, %v3782_v42, %v13558_v12  ;;  %v13571_v60 = vld [vmem:[#allocation186_spill] sm:$0xff] }
 0x58b   :  { %v3761_v15 = vsel %vm2595_vm11, %v3745_v56, %v3314_v22  ;;  %v13556_v22 = vld [vmem:[#allocation181_spill] sm:$0xff]  ;;  %v13562_v56 = vld [vmem:[#allocation163_spill] sm:$0xff]  ;;  %v3814_v47 = vsel %vm2645_vm13, %v3798_v14, %v13565_v11  ;;  %v13576_v14 = vld [vmem:[#allocation194_spill] sm:$0xff] }
 0x58c   :  { %v10620_v54 = vpop.permute.xlu0 %3717  ;;  %v3858_v41 = vsel %vm1499_vm3, %v3842_v33, %v13556_v22  ;;  %v13566_v33 = vld [vmem:[#allocation144_spill] sm:$0xff]  ;;  %v13573_v22 = vld [vmem:[#allocation169_spill] sm:$0xff]  ;;  %v13585_v11 = vld [vmem:[#allocation131_spill] sm:$0xff] }
 0x58e   :  { %v3378_v7 = vpop.permute.xlu1 %3377 }
 0x58f   :  { %v3777_v26 = vsel %vm2612_vm12, %v3761_v15, %v3378_v7  ;;  %v13564_v7 = vld [vmem:[#allocation147_spill] sm:$0xff] }
 0x590   :  { %v3793_v55 = vsel %vm1482_vm2, %v3777_v26, %v9998_v4  ;;  %v10651_v36 = vpop.permute.xlu0 %3719  ;;  %v3827_v4 = vsel %vm2662_vm14, %v3811_v38, %v10235_v8  ;;  %v13569_v38 = vld [vmem:[#allocation178_spill] sm:$0xff] }
 0x591   :  { %v3809_v31 = vsel %vm2645_vm13, %v3793_v55, %v10089_v51  ;;  %v3752_v51 = vsel %vm2578_vm10, %v3080_v43, %v10284_v57  ;;  %v13561_v43 = vld [vmem:[#allocation177_spill] sm:$0xff]  ;;  %v3843_v45 = vsel %vm2679_vm15, %v3827_v4, %v13562_v56  ;;  %v13568_v55 = vld [vmem:[#allocation192_spill] sm:$0xff]  ;;  %v3844_v16 = vsel %vm2679_vm15, %v3828_v23, %v13569_v38 }
 0x592   :  { %v10667_v20 = vpop.permute.xlu1 %3471  ;;  %v3825_v37 = vsel %vm2662_vm14, %v3809_v31, %v13555_v58  ;;  %v3768_v17 = vsel %vm2595_vm11, %v3752_v51, %v10329_v6  ;;  %v3753_v39 = vsel %vm2578_vm10, %v3081_v5, %v13561_v43  ;;  %v3829_v6 = vsel %vm2662_vm14, %v3813_v63, %v13564_v7  ;;  %v13570_v31 = vld [vmem:[#allocation68_spill] sm:$0xff]  ;;  %v13572_v58 = vld [vmem:[#allocation193_spill] sm:$0xff]  ;;  %v13574_v51 = vld [vmem:[#allocation154_spill] sm:$0xff] }
 0x593   :  { %v3841_v8 = vsel %vm2679_vm15, %v3825_v37, %v13557_v13  ;;  %v3784_v15 = vsel %vm2612_vm12, %v3768_v17, %v13563_v28  ;;  %v3859_v26 = vsel %vm1499_vm3, %v3843_v45, %v13566_v33  ;;  %v3799_v5 = vsel %vm1482_vm2, %v3783_v35, %v13567_v34  ;;  %v13575_v13 = vld [vmem:[#allocation196_spill] sm:$0xff]  ;;  %v13584_v7 = vld [vmem:[#allocation170_spill] sm:$0xff]  ;;  %v13587_v34 = vld [vmem:[#allocation197_spill] sm:$0xff] }
 0x594   :  { %v10685_v62 = vpop.permute.xlu0 %3593  ;;  %v3857_v57 = vsel %vm1499_vm3, %v3841_v8, %v13560_v10  ;;  %v3769_v21 = vsel %vm2595_vm11, %v3753_v39, %v10496_v1  ;;  %v3830_v42 = vsel %vm2662_vm14, %v3814_v47, %v13568_v55  ;;  %v3083_v4 = vmul.f32 %v13571_v60, %v13570_v31  ;;  %v13578_v10 = vld [vmem:[#allocation219_spill] sm:$0xff]  ;;  %v13580_v39 = vld [vmem:[#allocation220_spill] sm:$0xff]  ;;  %v13589_v38 = vld [vmem:[#allocation189_spill] sm:$0xff] }
 0x595   :  { %6544 = vmatprep.mubr.msk.f32.mxu1 %vm2717_vm4, %v3857_v57  ;;  %v3785_v49 = vsel %vm2612_vm12, %v3769_v21, %v10504_v53  ;;  %v3860_v1 = vsel %vm1499_vm3, %v3844_v16, %v13572_v58  ;;  %v3754_v37 = vsel %vm2578_vm10, %v3082_v29, %v10394_v46  ;;  %v3845_v23 = vsel %vm2679_vm15, %v3829_v6, %v13574_v51  ;;  %v13582_v45 = vld [vmem:[#allocation180_spill] sm:$0xff]  ;;  %v13588_v21 = vld [vmem:[#allocation153_spill] sm:$0xff]  ;;  %v13590_v60 = vld [vmem:[#allocation198_spill] sm:$0xff] }
 0x596   :  { %v10706_v25 = vpop.permute.xlu1 %3661  ;;  %6545 = vmatmul.mubr.msk.f32.vlgmr.msra.gmra.mrb[16].mxu1 %vm2717_vm4, %v3858_v41  ;;  %v3800_v41 = vsel %vm1482_vm2, %v3784_v15, %v13573_v22  ;;  %v3755_v8 = vsel %vm2578_vm10, %v3083_v4, %v13575_v13  ;;  %v3770_v53 = vsel %vm2595_vm11, %v3754_v37, %v10435_v32  ;;  %v3861_v12 = vsel %vm1499_vm3, %v3845_v23, %v10444_v59  ;;  %v13579_v32 = vld [vmem:[#allocation184_spill] sm:$0xff]  ;;  %v13583_v15 = vld [vmem:[#allocation81_spill] sm:$0xff]  ;;  %v13591_v4 = vld [vmem:[#allocation202_spill] sm:$0xff] }
 0x597   :  { %6547 = vmatprep.mubr.msk.f32.mxu1 %vm2717_vm4, %v3859_v26  ;;  %v3815_v46 = vsel %vm2645_vm13, %v3799_v5, %v13576_v14  ;;  %v3786_v29 = vsel %vm2612_vm12, %v3770_v53, %v10458_v18  ;;  %v3801_v63 = vsel %vm1482_vm2, %v3785_v49, %v13577_v24  ;;  %v3771_v57 = vsel %vm2595_vm11, %v3755_v8, %v13578_v10  ;;  %v13581_v18 = vld [vmem:[#allocation190_spill] sm:$0xff]  ;;  %v13586_v47 = vld [vmem:[#allocation168_spill] sm:$0xff]  ;;  %v13592_v58 = vld [vmem:[#allocation207_spill] sm:$0xff] }
 0x598   :  { %v10726_v35 = vpop.permute.xlu0 %3663  ;;  %v3831_v17 = vsel %vm2662_vm14, %v3815_v46, %v10462_v2  ;;  %v3816_v59 = vsel %vm2645_vm13, %v3800_v41, %v13579_v32  ;;  %v3787_v56 = vsel %vm2612_vm12, %v3771_v57, %v13580_v39  ;;  %v3846_v28 = vsel %vm2679_vm15, %v3830_v42, %v13582_v45  ;;  %v13593_v37 = vld [vmem:[#allocation211_spill] sm:$0xff]  ;;  %v13595_v13 = vld [vmem:[#allocation205_spill] sm:$0xff]  ;;  %v13596_v53 = vld [vmem:[#allocation206_spill] sm:$0xff] }
 0x599   :  { %v3832_v2 = vsel %vm2662_vm14, %v3816_v59, %v13581_v18  ;;  %v3085_v6 = vmul.f32 %v13584_v7, %v13583_v15  ;;  %v3084_v33 = vmul.f32 %v13586_v47, %v13585_v11  ;;  %v3862_v5 = vsel %vm1499_vm3, %v3846_v28, %v13587_v34  ;;  %v13594_v41 = vld [vmem:[#allocation203_spill] sm:$0xff]  ;;  %v13598_v46 = vld [vmem:[#allocation185_spill] sm:$0xff]  ;;  %v13602_v59 = vld [vmem:[#allocation210_spill] sm:$0xff] }
 0x59a   :  { %v10744_v43 = vpop.permute.xlu1 %3531  ;;  %6548 = vmatmul.mubr.msk.f32.gmra.mrb[18].mxu1 %vm2717_vm4, %v3860_v1  ;;  %v3802_v55 = vsel %vm1482_vm2, %v3786_v29, %v13588_v21  ;;  %v3847_v16 = vsel %vm2679_vm15, %v3831_v17, %v13589_v38  ;;  %v3817_v42 = vsel %vm2645_vm13, %v3801_v63, %v13590_v60  ;;  %v3803_v51 = vsel %vm1482_vm2, %v3787_v56, %v13594_v41  ;;  %v13597_v14 = vld [vmem:[#allocation107_spill] sm:$0xff]  ;;  %v13599_v17 = vld [vmem:[#allocation200_spill] sm:$0xff]  ;;  %v13603_v18 = vld [vmem:[#allocation209_spill] sm:$0xff] }
 0x59b   :  { %6550 = vmatprep.mubr.msk.f32.mxu1 %vm2717_vm4, %v3861_v12  ;;  %v3756_v49 = vsel %vm2578_vm10, %v3084_v33, %v13591_v4  ;;  %v3863_v1 = vsel %vm1499_vm3, %v3847_v16, %v13592_v58  ;;  %v3833_v22 = vsel %vm2662_vm14, %v3817_v42, %v13593_v37  ;;  %v3818_v8 = vsel %vm2645_vm13, %v3802_v55, %v13595_v13  ;;  %v13600_v63 = vld [vmem:[#allocation208_spill] sm:$0xff]  ;;  %v13601_v57 = vld [vmem:[#allocation167_spill] sm:$0xff]  ;;  %v13608_v60 = vld [vmem:[#allocation201_spill] sm:$0xff] }
 0x59c   :  { %v10760_v26 = vpop.permute.xlu0 %3535  ;;  %v3772_v12 = vsel %vm2595_vm11, %v3756_v49, %v13596_v53  ;;  %v3086_v29 = vmul.f32 %v13598_v46, %v13597_v14  ;;  %v3757_v24 = vsel %vm2578_vm10, %v3085_v6, %v13599_v17  ;;  %v3834_v10 = vsel %vm2662_vm14, %v3818_v8, %v13600_v63  ;;  %v13604_v28 = vld [vmem:[#allocation199_spill] sm:$0xff]  ;;  %v13605_v47 = vld [vmem:[#allocation212_spill] sm:$0xff]  ;;  %v13611_v58 = vld [vmem:[#allocation222_spill] sm:$0xff] }
 0x59d   :  { %v3848_v32 = vsel %vm2679_vm15, %v3832_v2, %v13601_v57  ;;  %v3788_v39 = vsel %vm2612_vm12, %v3772_v12, %v13602_v59  ;;  %v3849_v7 = vsel %vm2679_vm15, %v3833_v22, %v13604_v28  ;;  %v3819_v33 = vsel %vm2645_vm13, %v3803_v51, %v13605_v47  ;;  %v13606_v2 = vld [vmem:[#allocation225_spill] sm:$0xff]  ;;  %v13607_v38 = vld [vmem:[#allocation216_spill] sm:$0xff]  ;;  %v13614_v41 = vld [vmem:[#allocation195_spill] sm:$0xff] }
 0x59e   :  { %v3344_v23 = vpop.permute.xlu1 %3343  ;;  %6551 = vmatmul.mubr.msk.f32.gmra.mrb[20].mxu1 %vm2717_vm4, %v3862_v5  ;;  %v3864_v45 = vsel %vm1499_vm3, %v3848_v32, %v13603_v18  ;;  %v3773_v6 = vsel %vm2595_vm11, %v3757_v24, %v10582_v44  ;;  %v3865_v34 = vsel %vm1499_vm3, %v3849_v7, %v10554_v50  ;;  %v3835_v5 = vsel %vm2662_vm14, %v3819_v33, %v13606_v2  ;;  %v13609_v4 = vld [vmem:[#allocation204_spill] sm:$0xff]  ;;  %v13610_v50 = vld [vmem:[#allocation221_spill] sm:$0xff]  ;;  %v13616_v12 = vld [vmem:[#allocation226_spill] sm:$0xff] }
 0x59f   :  { %6553 = vmatprep.mubr.msk.f32.mxu1 %vm2717_vm4, %v3863_v1  ;;  %v3789_v21 = vsel %vm2612_vm12, %v3773_v6, %v10592_v0  ;;  %v3758_v16 = vsel %vm2578_vm10, %v3086_v29, %v13607_v38  ;;  %v3804_v42 = vsel %vm1482_vm2, %v3788_v39, %v13608_v60  ;;  %v3850_v44 = vsel %vm2679_vm15, %v3834_v10, %v13609_v4  ;;  %v13612_v1 = vld [vmem:[#allocation223_spill] sm:$0xff]  ;;  %v13613_v22 = vld [vmem:[#allocation132_spill] sm:$0xff]  ;;  %v13617_v29 = vld [vmem:[#allocation217_spill] sm:$0xff] }
 0x5a0   :  { %v3600_v56 = vpop.permute.xlu0 %3599  ;;  %v3820_v49 = vsel %vm2645_vm13, %v3804_v42, %v13610_v50  ;;  %v3774_v0 = vsel %vm2595_vm11, %v3758_v16, %v13611_v58  ;;  %v3866_v37 = vsel %vm1499_vm3, %v3850_v44, %v13612_v1  ;;  %v3088_v51 = vmul.f32 %v13614_v41, %v13613_v22  ;;  %v13615_v8 = vld [vmem:[#allocation224_spill] sm:$0xff]  ;;  %v13618_v24 = vld [vmem:[#allocation213_spill] sm:$0xff]  ;;  %v13619_v39 = vld [vmem:[#allocation218_spill] sm:$0xff] }
 0x5a1   :  { %v3836_v53 = vsel %vm2662_vm14, %v3820_v49, %v13615_v8  ;;  %v3790_v46 = vsel %vm2612_vm12, %v3774_v0, %v13616_v12  ;;  %v3805_v17 = vsel %vm1482_vm2, %v3789_v21, %v13617_v29  ;;  %v3851_v63 = vsel %vm2679_vm15, %v3835_v5, %v13618_v24  ;;  %v13621_v7 = vld [vmem:[#allocation215_spill] sm:$0xff]  ;;  %v13624_v16 = vld [vmem:[#allocation214_spill] sm:$0xff] }
 0x5a2   :  { %v3596_v55 = vpop.permute.xlu1 %3595  ;;  %6554 = vmatmul.mubr.msk.f32.gmra.mrb[22].mxu1 %vm2717_vm4, %v3864_v45  ;;  %v3760_v10 = vsel %vm2578_vm10, %v3088_v51, %v10578_v9  ;;  %v3867_v57 = vsel %vm1499_vm3, %v3851_v63, %v10620_v54  ;;  %v3852_v18 = vsel %vm2679_vm15, %v3836_v53, %v13619_v39  ;;  %v13620_v45 = vld [vmem:[#allocation228_spill] sm:$0xff]  ;;  %v3806_v47 = vsel %vm1482_vm2, %v3790_v46, %v13621_v7  ;;  %v13623_v6 = vld [vmem:[#allocation187_spill] sm:$0xff] }
 0x5a3   :  { %6556 = vmatprep.mubr.msk.f32.mxu1 %vm2717_vm4, %v3865_v34  ;;  %v3776_v59 = vsel %vm2595_vm11, %v3760_v10, %v3344_v23  ;;  %v3821_v28 = vsel %vm2645_vm13, %v3805_v17, %v13620_v45  ;;  %v13622_v54 = vld [vmem:[#allocation96_spill] sm:$0xff]  ;;  %v3868_v23 = vsel %vm1499_vm3, %v3852_v18, %v10651_v36  ;;  %v3822_v5 = vsel %vm2645_vm13, %v3806_v47, %v10744_v43  ;;  %v13625_v36 = vld [vmem:[#allocation227_spill] sm:$0xff] }
 0x5a4   :  { %v3342_v13 = vpop.permute.xlu0 %3341  ;;  %v3087_v34 = vmul.f32 %v13623_v6, %v13622_v54  ;;  %v3837_v2 = vsel %vm2662_vm14, %v3821_v28, %v10685_v62  ;;  %v3838_v21 = vsel %vm2662_vm14, %v3822_v5, %v3596_v55  ;;  %v13631_v5 = vld [vmem:[#allocation10_spill] sm:$0xff] }
 0x5a5   :  { %v3853_v44 = vsel %vm2679_vm15, %v3837_v2, %v13625_v36  ;;  %v3854_v43 = vsel %vm2679_vm15, %v3838_v21, %v10586_v52 }
 0x5a6   :  { %v3408_v32 = vpop.permute.xlu1 %3407  ;;  %6557 = vmatmul.mubr.msk.f32.gmra.mrb[24].mxu1 %vm2717_vm4, %v3866_v37  ;;  %v3759_v60 = vsel %vm2578_vm10, %v3087_v34, %v13624_v16 }
 0x5a7   :  { %6559 = vmatprep.mubr.msk.f32.mxu1 %vm2717_vm4, %v3867_v57  ;;  %v3792_v9 = vsel %vm2612_vm12, %v3776_v59, %v3408_v32  ;;  %v3775_v4 = vsel %vm2595_vm11, %v3759_v60, %v3342_v13 }
 0x5a8   :  { %v3406_v33 = vpop.permute.xlu0 %3405  ;;  %v3808_v42 = vsel %vm1482_vm2, %v3792_v9, %v10667_v20  ;;  %v13626_v20 = vld [vmem:[#allocation229_spill] sm:$0xff] }
 0x5a9   :  { %v3791_v50 = vsel %vm2612_vm12, %v3775_v4, %v3406_v33  ;;  %v3824_v49 = vsel %vm2645_vm13, %v3808_v42, %v10760_v26 }
 0x5aa   :  { %v3724_v38 = vpop.permute.xlu1 %3723  ;;  %6560 = vmatmul.mubr.msk.f32.gmra.mrb[26].mxu1 %vm2717_vm4, %v3868_v23  ;;  %v3807_v1 = vsel %vm1482_vm2, %v3791_v50, %v13626_v20  ;;  %v3840_v52 = vsel %vm2662_vm14, %v3824_v49, %v3600_v56  ;;  %v10888_v56 = vld [vmem:[%s12509_s6 + $0x1] ss:$0 sm:$0xff] }
 0x5ab   :  { %v3870_v58 = vsel %vm1499_vm3, %v3854_v43, %v3724_v38  ;;  %v3856_v12 = vsel %vm2679_vm15, %v3840_v52, %v10726_v35 }
 0x5ac   :  { %v3722_v62 = vpop.permute.xlu0 %3721 }
 0x5ad   :  { %v3869_v55 = vsel %vm1499_vm3, %v3853_v44, %v3722_v62  ;;  %v13633_v62 = vld [vmem:[#allocation11_spill] sm:$0xff] }
 0x5ae   :  { %v3598_v0 = vpop.permute.xlu1 %3597  ;;  %6562 = vmatprep.mubr.msk.f32.mxu1 %vm2717_vm4, %v3869_v55 }
 0x5af   :  { %6563 = vmatmul.mubr.msk.f32.gmra.mrb[28].mxu1 %vm2717_vm4, %v3870_v58 }
 0x5b0   :  { %v3534_v37 = vpop.permute.xlu0 %3533 }
 0x5b1   :  { %v3823_v41 = vsel %vm2645_vm13, %v3807_v1, %v3534_v37 }
 0x5b2   :  { %v3839_v51 = vsel %vm2662_vm14, %v3823_v41, %v3598_v0  ;;  %v3726_v13 = vpop.permute.xlu1 %3725  ;;  %v13635_v0 = vld [vmem:[#allocation22_spill] sm:$0xff] }
 0x5b3   :  { %v3855_v26 = vsel %vm2679_vm15, %v3839_v51, %v10706_v25  ;;  %v10893_v25 = vld [vmem:[%s12510_s7 + $0x1] ss:$0 sm:$0xff]  ;;  %v13637_v51 = vld [vmem:[#allocation4_spill] sm:$0xff] }
 0x5b4   :  { %v3871_v8 = vsel %vm1499_vm3, %v3855_v26, %v3726_v13  ;;  %v3728_v53 = vpop.permute.xlu0 %3727 }
 0x5b5   :  { %v3872_v46 = vsel %vm1499_vm3, %v3856_v12, %v3728_v53  ;;  %6565 = vmatprep.mubr.msk.f32.mxu1 %vm2717_vm4, %v3871_v8  ;;  %v13639_v53 = vld [vmem:[#allocation16_spill] sm:$0xff] }
 0x5b6   :  { %6566 = vmatmul.mubr.msk.f32.gmra.mrb[30].mxu1 %vm2717_vm4, %v3872_v46  ;;  %v4140_v29 = vpop.permute.xlu1 %4139 }
 0x5b8   :  { %v10914_v33 = vpop.permute.xlu0 %4169 }
 0x5ba   :  { %v4142_v57 = vpop.permute.xlu1 %4141 }
 0x5bc   :  { %v4144_v43 = vpop.permute.xlu0 %4143 }
 0x5be   :  { %v4146_v38 = vpop.permute.xlu1 %4145 }
 0x669   :  { %v6546_v17 = vpop.f32.mrb[16].mxu1 }
 0x66a   :  { %v4084_v35 = vmul.f32 %v6546_v17, %v10888_v56  ;;  %v3996_v24 = vpop.f32.mrb[17].mxu1 }
 0x66b   :  { %v4083_v63 = vmul.f32 %v10888_v56, %v3996_v24 }
 0x66c   :  { %v10898_v10 = vadd.f32 %v10893_v25, %v4084_v35 }
 0x66d   :  { %v10901_v32 = vadd.f32 %v10893_v25, %v4083_v63  ;;  %v6549_v59 = vpop.f32.mrb[18].mxu1 }
 0x66e   :  { %13627 = vst [vmem:[#allocation122_spill] sm:$0xff] %v10898_v10  ;;  %v12902_v39 = vmax.f32 %v10898_v10, 0.0  ;;  %v4086_v18 = vmul.f32 %v6549_v59, %v10888_v56  ;;  %v4006_v45 = vpop.f32.mrb[19].mxu1 }
 0x66f   :  { %13628 = vst [vmem:[#allocation126_spill] sm:$0xff] %v10901_v32  ;;  %v4085_v28 = vmul.f32 %v10888_v56, %v4006_v45  ;;  %v12903_v47 = vmax.f32 %v10901_v32, 0.0  ;;  %v13642_v45 = vld [vmem:[#allocation17_spill] sm:$0xff] }
 0x670   :  { %v10908_v7 = vadd.f32 %v4142_v57, %v12902_v39  ;;  %v10912_v9 = vadd.f32 %v10893_v25, %v4086_v18 }
 0x671   :  { %v10917_v6 = vadd.f32 %v10893_v25, %v4085_v28  ;;  %v10919_v34 = vpop.f32.mrb[20].mxu1  ;;  %v10930_v16 = vadd.f32 %v4140_v29, %v12903_v47 }
 0x672   :  { %13629 = vst [vmem:[#allocation98_spill] sm:$0xff] %v10912_v9  ;;  %v12899_v23 = vmax.f32 %v10912_v9, 0.0  ;;  %4605 = vrot.lane.b32.xlu1 %v10908_v7, %s7031_s19  ;;  %v10924_v2 = vpop.f32.mrb[21].mxu1  ;;  %v4253_v21 = vmul.f32 %v10908_v7, %v13631_v5  ;;  %v4363_v50 = vmul.f32 %v10908_v7, %v13633_v62  ;;  %v4268_v57 = vrot.slane %v10908_v7, 1 }
 0x673   :  { %13630 = vst [vmem:[#allocation124_spill] sm:$0xff] %v10917_v6  ;;  %13632 = vst [vmem:[#allocation175_spill] sm:$0xff] %v10930_v16  ;;  %v12900_v42 = vmax.f32 %v10917_v6, 0.0  ;;  %v4252_v13 = vmul.f32 %v10930_v16, %v13637_v51  ;;  %v4267_v59 = vrot.slane %v10930_v16, 1 }
 0x674   :  { %v10934_v60 = vadd.f32 %v4146_v38, %v12899_v23  ;;  %4415 = vrot.lane.b32.xlu0 %v4253_v21, %s7038_s3  ;;  %v13644_v21 = vld [vmem:[#allocation34_spill] sm:$0xff] }
 0x675   :  { %v6555_v4 = vpop.f32.mrb[22].mxu1  ;;  %v10946_v49 = vadd.f32 %v4144_v43, %v12900_v42  ;;  %v4203_v43 = vrot.slane %v10930_v16, 7 }
 0x676   :  { %v4090_v36 = vmul.f32 %v6555_v4, %v10888_v56  ;;  %4603 = vrot.lane.b32.xlu1 %v10930_v16, %s7031_s19  ;;  %v4026_v44 = vpop.f32.mrb[23].mxu1  ;;  %v4255_v20 = vmul.f32 %v10934_v60, %v13635_v0  ;;  %v4270_v4 = vrot.slane %v10934_v60, 1 }
 0x677   :  { %v4089_v55 = vmul.f32 %v10888_v56, %v4026_v44  ;;  %v4254_v12 = vmul.f32 %v10946_v49, %v13639_v53  ;;  %v4269_v17 = vrot.slane %v10946_v49, 1  ;;  %v4364_v28 = vmul.f32 %v10946_v49, %v13642_v45  ;;  %v13651_v45 = vld [vmem:[#allocation8_spill] sm:$0xff] }
 0x678   :  { %v10949_v58 = vadd.f32 %v10893_v25, %v4090_v36  ;;  %4795 = vrot.lane.b32.xlu0 %v4363_v50, %s7039_s4  ;;  %v10998_v50 = vsel %vm441_vm1, %v4267_v59, %v4268_v57  ;;  %v4205_v51 = vrot.slane %v10946_v49, 7 }
 0x679   :  { %v10955_v1 = vadd.f32 %v10893_v25, %v4089_v55  ;;  %v6558_v37 = vpop.f32.mrb[24].mxu1  ;;  %v10989_v38 = vsel %vm441_vm1, %v4268_v57, %v4269_v17  ;;  %13645 = vst [vmem:[#allocation177_spill] sm:$0xff] %v10998_v50  ;;  %v4204_v55 = vrot.slane %v10908_v7, 7 }
 0x67a   :  { %13634 = vst [vmem:[#allocation158_spill] sm:$0xff] %v10949_v58  ;;  %v4092_v41 = vmul.f32 %v6558_v37, %v10888_v56  ;;  %4419 = vrot.lane.b32.xlu1 %v4255_v20, %s7038_s3  ;;  %v4036_v52 = vpop.f32.mrb[25].mxu1  ;;  %v13646_v20 = vld [vmem:[#allocation13_spill] sm:$0xff] }
 0x67b   :  { %13636 = vst [vmem:[#allocation181_spill] sm:$0xff] %v10955_v1  ;;  %v4091_v26 = vmul.f32 %v10888_v56, %v4036_v52  ;;  %v4332_v37 = vmul.f32 %v10989_v38, %v13646_v20  ;;  %v11014_v52 = vsel %vm441_vm1, %v4269_v17, %v4270_v4  ;;  %v11027_v53 = vsel %vm216_vm0, %v4203_v43, %v4204_v55 }
 0x67c   :  { %v10963_v8 = vadd.f32 %v10893_v25, %v4092_v41  ;;  %4413 = vrot.lane.b32.xlu0 %v4252_v13, %s7038_s3  ;;  %v13649_v13 = vld [vmem:[#allocation6_spill] sm:$0xff] }
 0x67d   :  { %v10969_v46 = vadd.f32 %v10893_v25, %v4091_v26  ;;  %v6561_v29 = vpop.f32.mrb[26].mxu1  ;;  %v4300_v26 = vmul.f32 %v10998_v50, %v13649_v13  ;;  %v13656_v13 = vld [vmem:[#allocation7_spill] sm:$0xff] }
 0x67e   :  { %13638 = vst [vmem:[#allocation183_spill] sm:$0xff] %v10963_v8  ;;  %v4094_v35 = vmul.f32 %v6561_v29, %v10888_v56  ;;  %4417 = vrot.lane.b32.xlu1 %v4254_v12, %s7038_s3  ;;  %v4046_v24 = vpop.f32.mrb[27].mxu1  ;;  %v4088_v12 = vmul.f32 %v10919_v34, %v10888_v56  ;;  %v4316_v34 = vmul.f32 %v11027_v53, %v13651_v45 }
 0x67f   :  { %13640 = vst [vmem:[#allocation179_spill] sm:$0xff] %v10969_v46  ;;  %v4093_v63 = vmul.f32 %v10888_v56, %v4046_v24  ;;  %v4206_v24 = vrot.slane %v10934_v60, 7 }
 0x680   :  { %v10978_v18 = vadd.f32 %v10893_v25, %v4094_v35  ;;  %4609 = vrot.lane.b32.xlu0 %v10934_v60, %s7031_s19  ;;  %v11036_v35 = vsel %vm216_vm0, %v4204_v55, %v4205_v51  ;;  %v13654_v55 = vld [vmem:[#allocation15_spill] sm:$0xff] }
 0x681   :  { %v10985_v5 = vadd.f32 %v10893_v25, %v4093_v63 }
 0x682   :  { %13641 = vst [vmem:[#allocation149_spill] sm:$0xff] %v10978_v18  ;;  %4797 = vrot.lane.b32.xlu1 %v4364_v28, %s7039_s4  ;;  %v6564_v36 = vpop.f32.mrb[28].mxu1 }
 0x683   :  { %13643 = vst [vmem:[#allocation160_spill] sm:$0xff] %v10985_v5  ;;  %v4096_v44 = vmul.f32 %v6564_v36, %v10888_v56  ;;  %v4056_v62 = vpop.f32.mrb[29].mxu1  ;;  %v11045_v36 = vadd.f32 %v10893_v25, %v4088_v12  ;;  %v13658_v12 = vld [vmem:[#allocation20_spill] sm:$0xff] }
 0x684   :  { %v4095_v0 = vmul.f32 %v10888_v56, %v4056_v62  ;;  %4607 = vrot.lane.b32.xlu0 %v10946_v49, %s7031_s19  ;;  %v13650_v49 = vld [vmem:[#allocation18_spill] sm:$0xff] }
 0x685   :  { %v11008_v41 = vadd.f32 %v10893_v25, %v4096_v44  ;;  %v4302_v29 = vmul.f32 %v11014_v52, %v13650_v49  ;;  %13652 = vst [vmem:[#allocation147_spill] sm:$0xff] %v11045_v36  ;;  %v4087_v44 = vmul.f32 %v10888_v56, %v10924_v2  ;;  %v12895_v2 = vmax.f32 %v11045_v36, 0.0 }
 0x686   :  { %v11018_v7 = vadd.f32 %v10893_v25, %v4095_v0  ;;  %4669 = vrot.lane.b32.xlu1 %v4332_v37, %s7042_s29  ;;  %v4348_v0 = vmul.f32 %v11036_v35, %v13654_v55  ;;  %v11060_v37 = vsel %vm216_vm0, %v4205_v51, %v4206_v24 }
 0x687   :  { %13647 = vst [vmem:[#allocation163_spill] sm:$0xff] %v11008_v41  ;;  %v4318_v49 = vmul.f32 %v11060_v37, %v13658_v12 }
 0x688   :  { %13648 = vst [vmem:[#allocation188_spill] sm:$0xff] %v11018_v7  ;;  %4477 = vrot.lane.b32.xlu0 %v4300_v26, %s7040_s26  ;;  %v11067_v26 = vadd.f32 %v10893_v25, %v4087_v44  ;;  %v4148_v44 = vpop.permute.xlu0 %4147 }
 0x689   :  { %v6567_v17 = vpop.f32.mrb[30].mxu1 }
 0x68a   :  { %v4098_v63 = vmul.f32 %v6567_v17, %v10888_v56  ;;  %4481 = vrot.lane.b32.xlu1 %v4302_v29, %s7040_s26  ;;  %v4066_v57 = vpop.f32.mrb[31].mxu1  ;;  %13657 = vst [vmem:[#allocation171_spill] sm:$0xff] %v11067_v26  ;;  %v13659_v29 = vld [vmem:[#allocation9_spill] sm:$0xff]  ;;  %v4150_v17 = vpop.permute.xlu1 %4149 }
 0x68b   :  { %v4097_v28 = vmul.f32 %v10888_v56, %v4066_v57  ;;  %v4331_v56 = vmul.f32 %v10998_v50, %v13656_v13  ;;  %v4347_v51 = vmul.f32 %v11027_v53, %v13659_v29  ;;  %v12896_v57 = vmax.f32 %v11067_v26, 0.0  ;;  %v13664_v29 = vld [vmem:[#allocation29_spill] sm:$0xff] }
 0x68c   :  { %v11050_v62 = vadd.f32 %v10893_v25, %v4098_v63  ;;  %4541 = vrot.lane.b32.xlu0 %v4316_v34, %s7041_s27  ;;  %v11077_v63 = vadd.f32 %v4150_v17, %v12895_v2  ;;  %v13661_v34 = vld [vmem:[#allocation23_spill] sm:$0xff] }
 0x68d   :  { %v11056_v20 = vadd.f32 %v10893_v25, %v4097_v28  ;;  %v13660_v25 = vld [vmem:[#allocation19_spill] sm:$0xff]  ;;  %v4365_v28 = vmul.f32 %v10934_v60, %v13661_v34  ;;  %v4191_v55 = vadd.f32 %v4148_v44, %v12896_v57 }
 0x68e   :  { %13653 = vst [vmem:[#allocation172_spill] sm:$0xff] %v11050_v62  ;;  %4733 = vrot.lane.b32.xlu1 %v4348_v0, %s7043_s30  ;;  %v4333_v45 = vmul.f32 %v11014_v52, %v13660_v25  ;;  %v13662_v0 = vld [vmem:[#allocation35_spill] sm:$0xff]  ;;  %v4272_v25 = vrot.slane %v11077_v63, 1  ;;  %v12897_v2 = vmax.f32 %v11050_v62, 0.0 }
 0x68f   :  { %13655 = vst [vmem:[#allocation144_spill] sm:$0xff] %v11056_v20  ;;  %v4257_v13 = vmul.f32 %v11077_v63, %v13662_v0  ;;  %v4207_v60 = vrot.slane %v4191_v55, 7  ;;  %v12938_v7 = vmax.f32 %v11056_v20, 0.0 }
 0x690   :  { %4667 = vrot.lane.b32.xlu0 %v4331_v56, %s7042_s29  ;;  %v13663_v56 = vld [vmem:[#allocation28_spill] sm:$0xff] }
 0x691   :  { %v4256_v12 = vmul.f32 %v4191_v55, %v13663_v56  ;;  %v13668_v56 = vld [vmem:[#allocation30_spill] sm:$0xff] }
 0x692   :  { %4545 = vrot.lane.b32.xlu1 %v4318_v49, %s7041_s27  ;;  %v4271_v49 = vrot.slane %v4191_v55, 1 }
 0x694   :  { %4731 = vrot.lane.b32.xlu0 %v4347_v51, %s7043_s30  ;;  %v4366_v51 = vmul.f32 %v4191_v55, %v13664_v29  ;;  %v11102_v17 = vsel %vm441_vm1, %v4270_v4, %v4271_v49  ;;  %v11113_v0 = vsel %vm441_vm1, %v4271_v49, %v4272_v25  ;;  %v13667_v4 = vld [vmem:[#allocation14_spill] sm:$0xff]  ;;  %v11123_v29 = vsel %vm216_vm0, %v4206_v24, %v4207_v60  ;;  %v13669_v49 = vld [vmem:[#allocation113_spill] sm:$0xff]  ;;  %v13671_v24 = vld [vmem:[#allocation119_spill] sm:$0xff] }
 0x696   :  { %4671 = vrot.lane.b32.xlu1 %v4333_v45, %s7042_s29  ;;  %v13665_v45 = vld [vmem:[#allocation12_spill] sm:$0xff] }
 0x697   :  { %v4301_v34 = vmul.f32 %v10989_v38, %v13665_v45  ;;  %v13670_v45 = vld [vmem:[#allocation27_spill] sm:$0xff] }
 0x698   :  { %4799 = vrot.lane.b32.xlu0 %v4365_v28, %s7039_s4  ;;  %v13666_v28 = vld [vmem:[#allocation25_spill] sm:$0xff] }
 0x699   :  { %v4334_v44 = vmul.f32 %v11102_v17, %v13666_v28 }
 0x69a   :  { %4423 = vrot.lane.b32.xlu1 %v4257_v13, %s7038_s3  ;;  %v4317_v13 = vmul.f32 %v11036_v35, %v13667_v4  ;;  %v12894_v4 = vmax.f32 %v10955_v1, 0.0 }
 0x69c   :  { %4613 = vrot.lane.b32.xlu0 %v11077_v63, %s7031_s19 }
 0x69e   :  { %4421 = vrot.lane.b32.xlu1 %v4256_v12, %s7038_s3  ;;  %v4304_v12 = vmul.f32 %v11113_v0, %v13668_v56  ;;  %v13673_v56 = vld [vmem:[#allocation21_spill] sm:$0xff] }
 0x6a0   :  { %4611 = vrot.lane.b32.xlu0 %v4191_v55, %s7031_s19  ;;  %v4379_v55 = vmul.f32 %v10989_v38, %v13669_v49  ;;  %v4152_v49 = vpop.permute.xlu0 %4151 }
 0x6a2   :  { %4801 = vrot.lane.b32.xlu1 %v4366_v51, %s7039_s4  ;;  %v4208_v51 = vrot.slane %v11077_v63, 7 }
 0x6a4   :  { %4479 = vrot.lane.b32.xlu0 %v4301_v34, %s7040_s26  ;;  %v4350_v34 = vmul.f32 %v11123_v29, %v13670_v45  ;;  %v11134_v28 = vsel %vm216_vm0, %v4207_v60, %v4208_v51  ;;  %v4193_v60 = vadd.f32 %v4152_v49, %v12894_v4  ;;  %v12893_v45 = vmax.f32 %v10949_v58, 0.0  ;;  %v6356_v49 = vld [vmem:[%s12508_s5 + $0x50] sm:$0xff]  ;;  %v13680_v4 = vld [vmem:[#allocation26_spill] sm:$0xff] }
 0x6a6   :  { %4673 = vrot.lane.b32.xlu1 %v4334_v44, %s7042_s29  ;;  %v4380_v44 = vmul.f32 %v11014_v52, %v13671_v24 }
 0x6a8   :  { %4543 = vrot.lane.b32.xlu0 %v4317_v13, %s7041_s27  ;;  %v13672_v13 = vld [vmem:[#allocation32_spill] sm:$0xff] }
 0x6a9   :  { %v4320_v38 = vmul.f32 %v11134_v28, %v13672_v13  ;;  %v13676_v13 = vld [vmem:[#allocation42_spill] sm:$0xff] }
 0x6aa   :  { %4485 = vrot.lane.b32.xlu1 %v4304_v12, %s7040_s26  ;;  %v4349_v12 = vmul.f32 %v11060_v37, %v13673_v56 }
 0x6ac   :  { %4859 = vrot.lane.b32.xlu0 %v4379_v55, %s7032_s24  ;;  %v13674_v55 = vld [vmem:[#allocation31_spill] sm:$0xff] }
 0x6ad   :  { %v4335_v52 = vmul.f32 %v11113_v0, %v13674_v55  ;;  %v6357_v55 = vld [vmem:[%s12508_s5 + $0x58] sm:$0xff] }
 0x6ae   :  { %4737 = vrot.lane.b32.xlu1 %v4350_v34, %s7043_s30  ;;  %v13675_v34 = vld [vmem:[#allocation36_spill] sm:$0xff] }
 0x6af   :  { %v4367_v24 = vmul.f32 %v11077_v63, %v13675_v34  ;;  %v6697_v63 = vpack.c.bf16 %v6357_v55, %v6356_v49 }
 0x6b0   :  { %4861 = vrot.lane.b32.xlu0 %v4380_v44, %s7032_s24  ;;  %v4154_v44 = vpop.permute.xlu1 %4153 }
 0x6b1   :  { %v11159_v56 = vadd.f32 %v4154_v44, %v12893_v45  ;;  %6698 = vmatprep.subr.bf16.mxu1 %v6697_v63 }
 0x6b2   :  { %4549 = vrot.lane.b32.xlu1 %v4320_v38, %s7041_s27  ;;  %v4258_v38 = vmul.f32 %v4193_v60, %v13676_v13  ;;  %6700 = vmatpush3.bf16.msra.mxu1 %v6697_v63  ;;  %v13678_v13 = vld [vmem:[#allocation24_spill] sm:$0xff] }
 0x6b3   :  { %v4274_v44 = vrot.slane %v11159_v56, 1  ;;  %v4303_v45 = vmul.f32 %v11102_v17, %v13678_v13  ;;  %v13681_v63 = vld [vmem:[#allocation44_spill] sm:$0xff]  ;;  %v4210_v13 = vrot.slane %v11159_v56, 7 }
 0x6b4   :  { %4735 = vrot.lane.b32.xlu0 %v4349_v12, %s7043_s30  ;;  %v4273_v12 = vrot.slane %v4193_v60, 1 }
 0x6b6   :  { %4675 = vrot.lane.b32.xlu1 %v4335_v52, %s7042_s29  ;;  %v13677_v52 = vld [vmem:[#allocation43_spill] sm:$0xff]  ;;  %v4291_v55 = vsel %vm441_vm1, %v4273_v12, %v4274_v44 }
 0x6b7   :  { %v4368_v34 = vmul.f32 %v4193_v60, %v13677_v52  ;;  %v4209_v52 = vrot.slane %v4193_v60, 7 }
 0x6b8   :  { %4803 = vrot.lane.b32.xlu0 %v4367_v24, %s7039_s4  ;;  %v4292_v24 = vsel %vm441_vm1, %v4272_v25, %v4273_v12  ;;  %v4319_v25 = vmul.f32 %v11123_v29, %v13680_v4  ;;  %v6359_v4 = vld [vmem:[%s12508_s5 + $0x68] sm:$0xff]  ;;  %v13683_v12 = vld [vmem:[#allocation121_spill] sm:$0xff] }
 0x6b9   :  { %v11210_v57 = vsel %vm216_vm0, %v4209_v52, %v4210_v13 }
 0x6ba   :  { %4425 = vrot.lane.b32.xlu1 %v4258_v38, %s7038_s3  ;;  %v13679_v38 = vld [vmem:[#allocation39_spill] sm:$0xff]  ;;  %13685 = vst [vmem:[#allocation178_spill] sm:$0xff] %v11210_v57 }
 0x6bb   :  { %v4336_v49 = vmul.f32 %v4292_v24, %v13679_v38  ;;  %v4381_v38 = vmul.f32 %v11102_v17, %v13683_v12  ;;  %v13686_v17 = vld [vmem:[#allocation123_spill] sm:$0xff] }
 0x6bc   :  { %4615 = vrot.lane.b32.xlu0 %v4193_v60, %s7031_s19  ;;  %v6358_v60 = vld [vmem:[%s12508_s5 + $0x60] sm:$0xff] }
 0x6be   :  { %4805 = vrot.lane.b32.xlu1 %v4368_v34, %s7039_s4  ;;  %v4306_v34 = vmul.f32 %v4291_v55, %v13681_v63  ;;  %v11206_v63 = vadd.f32 %v10914_v33, %v12897_v2  ;;  %v13688_v33 = vld [vmem:[#allocation33_spill] sm:$0xff] }
 0x6c0   :  { %4483 = vrot.lane.b32.xlu0 %v4303_v45, %s7040_s26  ;;  %v11188_v45 = vsel %vm216_vm0, %v4208_v51, %v4209_v52  ;;  %v13684_v51 = vld [vmem:[#allocation41_spill] sm:$0xff]  ;;  %v12904_v12 = vrot.slane %v11206_v63, 1  ;;  %v6360_v52 = vld [vmem:[%s12508_s5 + $0x70] sm:$0xf] }
 0x6c1   :  { %13682 = vst [vmem:[#allocation192_spill] sm:$0xff] %v11188_v45 }
 0x6c2   :  { %4677 = vrot.lane.b32.xlu1 %v4336_v49, %s7042_s29  ;;  %v6701_v49 = vpack.c.bf16 %v6359_v4, %v6358_v60  ;;  %v13687_v60 = vld [vmem:[#allocation46_spill] sm:$0xff] }
 0x6c3   :  { %v4322_v4 = vmul.f32 %v11210_v57, %v13687_v60  ;;  %v12898_v60 = vmax.f32 %v10969_v46, 0.0 }
 0x6c4   :  { %4547 = vrot.lane.b32.xlu0 %v4319_v25, %s7041_s27  ;;  %v4352_v25 = vmul.f32 %v11188_v45, %v13684_v51  ;;  %6702 = vmatprep.subr.bf16.mxu1 %v6701_v49  ;;  %v11235_v51 = vsel %vm441_vm1, %v12904_v12, %v4267_v59 }
 0x6c5   :  { %6704 = vmatpush3.bf16.msra.mxu1 %v6701_v49  ;;  %v13689_v49 = vld [vmem:[#allocation3_spill] sm:$0xff]  ;;  %13690 = vst [vmem:[#allocation186_spill] sm:$0xff] %v11235_v51 }
 0x6c6   :  { %4489 = vrot.lane.b32.xlu1 %v4306_v34, %s7040_s26  ;;  %v4382_v34 = vmul.f32 %v11113_v0, %v13686_v17  ;;  %v4251_v0 = vmul.f32 %v11206_v63, %v13689_v49  ;;  %6576 = vmatprep.subr.msk.mxu1 %vm2766_vm9, %v6360_v52  ;;  %v13691_v17 = vld [vmem:[#allocation38_spill] sm:$0xff] }
 0x6c8   :  { %4863 = vrot.lane.b32.xlu0 %v4381_v38, %s7032_s24  ;;  %v4351_v38 = vmul.f32 %v11134_v28, %v13688_v33 }
 0x6c9   :  { %6577 = vmatpush3.msk.msra.mxu1 %vm2766_vm9, %v6360_v52  ;;  %v13694_v52 = vld [vmem:[#allocation40_spill] sm:$0xff] }
 0x6ca   :  { %4741 = vrot.lane.b32.xlu1 %v4352_v25, %s7043_s30  ;;  %v12905_v25 = vrot.slane %v11206_v63, 7  ;;  %v4321_v49 = vmul.f32 %v11188_v45, %v13694_v52 }
 0x6cc   :  { %4865 = vrot.lane.b32.xlu0 %v4382_v34, %s7032_s24  ;;  %v4305_v34 = vmul.f32 %v4292_v24, %v13691_v17  ;;  %v11251_v59 = vsel %vm216_vm0, %v12905_v25, %v4203_v43  ;;  %v13695_v17 = vld [vmem:[#allocation2_spill] sm:$0xff] }
 0x6cd   :  { %13693 = vst [vmem:[#allocation193_spill] sm:$0xff] %v11251_v59 }
 0x6ce   :  { %4553 = vrot.lane.b32.xlu1 %v4322_v4, %s7041_s27  ;;  %v13692_v4 = vld [vmem:[#allocation5_spill] sm:$0xff] }
 0x6cf   :  { %v4299_v33 = vmul.f32 %v11235_v51, %v13692_v4  ;;  %v13696_v4 = vld [vmem:[#allocation125_spill] sm:$0xff] }
 0x6d0   :  { %4739 = vrot.lane.b32.xlu0 %v4351_v38, %s7043_s30  ;;  %v4156_v38 = vpop.permute.xlu0 %4155  ;;  %v4383_v43 = vmul.f32 %v4292_v24, %v13696_v4  ;;  %v13698_v24 = vld [vmem:[#allocation127_spill] sm:$0xff] }
 0x6d2   :  { %4411 = vrot.lane.b32.xlu1 %v4251_v0, %s7038_s3  ;;  %v11258_v0 = vadd.f32 %v4156_v38, %v12898_v60  ;;  %v12901_v38 = vmax.f32 %v10963_v8, 0.0  ;;  %v4158_v60 = vpop.permute.xlu1 %4157  ;;  %v13711_v8 = vld [vmem:[#allocation182_spill] sm:$0xff] }
 0x6d4   :  { %4487 = vrot.lane.b32.xlu0 %v4305_v34, %s7040_s26  ;;  %v4315_v34 = vmul.f32 %v11251_v59, %v13695_v17  ;;  %v4275_v2 = vrot.slane %v11258_v0, 1  ;;  %v4211_v17 = vrot.slane %v11258_v0, 7  ;;  %v11276_v4 = vpop.permute.xlu0 %4167 }
 0x6d5   :  { %v11430_v18 = vadd.f32 %v11276_v4, %v12938_v7 }
 0x6d6   :  { %4475 = vrot.lane.b32.xlu1 %v4299_v33, %s7040_s26  ;;  %v13697_v33 = vld [vmem:[#allocation45_spill] sm:$0xff] }
 0x6d7   :  { %v4337_v52 = vmul.f32 %v4291_v55, %v13697_v33  ;;  %v11282_v33 = vadd.f32 %v4158_v60, %v12901_v38 }
 0x6d8   :  { %4551 = vrot.lane.b32.xlu0 %v4321_v49, %s7041_s27  ;;  %v4290_v49 = vsel %vm441_vm1, %v4274_v44, %v4275_v2  ;;  %v11286_v44 = vsel %vm216_vm0, %v4210_v13, %v4211_v17  ;;  %v13704_v13 = vld [vmem:[#allocation49_spill] sm:$0xff] }
 0x6d9   :  { %13700 = vst [vmem:[#allocation169_spill] sm:$0xff] %v11282_v33  ;;  %13701 = vst [vmem:[#allocation154_spill] sm:$0xff] %v11286_v44  ;;  %v12907_v60 = vrot.slane %v11282_v33, 1  ;;  %v4369_v39 = vmul.f32 %v11159_v56, %v13704_v13  ;;  %v13707_v13 = vld [vmem:[#allocation73_spill] sm:$0xff]  ;;  %v12913_v54 = vrot.slane %v11282_v33, 7 }
 0x6da   :  { %4539 = vrot.lane.b32.xlu1 %v4315_v34, %s7041_s27  ;;  %v4384_v34 = vmul.f32 %v4291_v55, %v13698_v24 }
 0x6dc   :  { %4867 = vrot.lane.b32.xlu0 %v4383_v43, %s7032_s24  ;;  %v13699_v43 = vld [vmem:[#allocation51_spill] sm:$0xff] }
 0x6dd   :  { %v4338_v23 = vmul.f32 %v4290_v49, %v13699_v43 }
 0x6de   :  { %4617 = vrot.lane.b32.xlu1 %v11159_v56, %s7031_s19 }
 0x6e0   :  { %4679 = vrot.lane.b32.xlu0 %v4337_v52, %s7042_s29  ;;  %v13702_v52 = vld [vmem:[#allocation47_spill] sm:$0xff] }
 0x6e1   :  { %v4353_v55 = vmul.f32 %v11210_v57, %v13702_v52  ;;  %v13705_v52 = vld [vmem:[#allocation56_spill] sm:$0xff] }
 0x6e2   :  { %4869 = vrot.lane.b32.xlu1 %v4384_v34, %s7032_s24  ;;  %v13703_v34 = vld [vmem:[#allocation53_spill] sm:$0xff]  ;;  %v4370_v47 = vmul.f32 %v11258_v0, %v13705_v52 }
 0x6e3   :  { %v4354_v43 = vmul.f32 %v11286_v44, %v13703_v34 }
 0x6e4   :  { %v11288_v42 = vpop.permute.xlu1 %4605  ;;  %4681 = vrot.lane.b32.xlu0 %v4338_v23, %s7042_s29 }
 0x6e6   :  { %v11293_v24 = vpop.permute.xlu0 %4415  ;;  %4743 = vrot.lane.b32.xlu1 %v4353_v55, %s7043_s30  ;;  %v4289_v55 = vsel %vm441_vm1, %v4275_v2, %v12907_v60  ;;  %v13708_v2 = vld [vmem:[#allocation155_spill] sm:$0xff] }
 0x6e8   :  { %v11299_v38 = vpop.permute.xlu1 %4603  ;;  %4745 = vrot.lane.b32.xlu0 %v4354_v43, %s7043_s30  ;;  %v13706_v43 = vld [vmem:[#allocation54_spill] sm:$0xff] }
 0x6e9   :  { %v4385_v12 = vmul.f32 %v4290_v49, %v13706_v43 }
 0x6ea   :  { %v11304_v23 = vpop.permute.xlu0 %4795  ;;  %4807 = vrot.lane.b32.xlu1 %v4369_v39, %s7039_s4  ;;  %v4386_v39 = vmul.f32 %v4289_v55, %v13707_v13 }
 0x6ec   :  { %v11313_v34 = vpop.permute.xlu1 %4419  ;;  %4809 = vrot.lane.b32.xlu0 %v4370_v47, %s7039_s4  ;;  %v13709_v47 = vld [vmem:[#allocation159_spill] sm:$0xff] }
 0x6ee   :  { %v11317_v25 = vpop.permute.xlu0 %4413  ;;  %4871 = vrot.lane.b32.xlu1 %v4385_v12, %s7032_s24  ;;  %v13710_v12 = vld [vmem:[#allocation174_spill] sm:$0xff] }
 0x6f0   :  { %v11321_v62 = vpop.permute.xlu1 %4417  ;;  %4873 = vrot.lane.b32.xlu0 %v4386_v39, %s7032_s24  ;;  %v13712_v39 = vld [vmem:[#allocation48_spill] sm:$0xff] }
 0x6f1   :  { %v4259_v46 = vmul.f32 %v11159_v56, %v13712_v39  ;;  %v13717_v39 = vld [vmem:[#allocation52_spill] sm:$0xff] }
 0x6f2   :  { %v11324_v52 = vpop.permute.xlu0 %4609  ;;  %4159 = vrot.lane.b32.xlu1 %v13708_v2, %s7045_s16  ;;  %v13713_v2 = vld [vmem:[#allocation55_spill] sm:$0xff] }
 0x6f4   :  { %v11328_v60 = vpop.permute.xlu1 %4797  ;;  %4161 = vrot.lane.b32.xlu0 %v13709_v47, %s7045_s16  ;;  %v4260_v47 = vmul.f32 %v11258_v0, %v13713_v2 }
 0x6f6   :  { %v11332_v43 = vpop.permute.xlu0 %4607  ;;  %4163 = vrot.lane.b32.xlu1 %v13710_v12, %s7045_s16  ;;  %v13714_v12 = vld [vmem:[#allocation50_spill] sm:$0xff] }
 0x6f7   :  { %v4307_v22 = vmul.f32 %v4290_v49, %v13714_v12  ;;  %v13719_v12 = vld [vmem:[#allocation62_spill] sm:$0xff] }
 0x6f8   :  { %v11336_v13 = vpop.permute.xlu1 %4669  ;;  %4165 = vrot.lane.b32.xlu0 %v13711_v8, %s7045_s16  ;;  %v13715_v8 = vld [vmem:[#allocation57_spill] sm:$0xff] }
 0x6f9   :  { %v4308_v56 = vmul.f32 %v4289_v55, %v13715_v8 }
 0x6fa   :  { %v11342_v58 = vpop.permute.xlu0 %4477  ;;  %4427 = vrot.lane.b32.xlu1 %v4259_v46, %s7038_s3  ;;  %v11358_v46 = vsel %vm216_vm0, %v4211_v17, %v12913_v54 }
 0x6fb   :  { %13716 = vst [vmem:[#allocation196_spill] sm:$0xff] %v11358_v46 }
 0x6fc   :  { %v11348_v1 = vpop.permute.xlu1 %4481  ;;  %4429 = vrot.lane.b32.xlu0 %v4260_v47, %s7038_s3  ;;  %v4323_v47 = vmul.f32 %v11286_v44, %v13717_v39 }
 0x6fe   :  { %v4542_v14 = vpop.permute.xlu0 %4541  ;;  %4491 = vrot.lane.b32.xlu1 %v4307_v22, %s7040_s26  ;;  %v13718_v22 = vld [vmem:[#allocation59_spill] sm:$0xff] }
 0x6ff   :  { %v4324_v8 = vmul.f32 %v11358_v46, %v13718_v22  ;;  %v13720_v22 = vld [vmem:[#allocation58_spill] sm:$0xff] }
 0x700   :  { %v11360_v2 = vpop.permute.xlu1 %4733  ;;  %4493 = vrot.lane.b32.xlu0 %v4308_v56, %s7040_s26  ;;  %v4261_v56 = vmul.f32 %v11282_v33, %v13719_v12  ;;  %v4339_v54 = vmul.f32 %v4289_v55, %v13720_v22 }
 0x702   :  { %v11365_v36 = vpop.permute.xlu0 %4667  ;;  %4555 = vrot.lane.b32.xlu1 %v4323_v47, %s7041_s27 }
 0x704   :  { %v11370_v49 = vpop.permute.xlu1 %4545  ;;  %4557 = vrot.lane.b32.xlu0 %v4324_v8, %s7041_s27 }
 0x706   :  { %v11373_v17 = vpop.permute.xlu0 %4731  ;;  %4619 = vrot.lane.b32.xlu1 %v11258_v0, %s7031_s19 }
 0x708   :  { %v11379_v39 = vpop.permute.xlu1 %4671  ;;  %4431 = vrot.lane.b32.xlu0 %v4261_v56, %s7038_s3 }
 0x70a   :  { %v11382_v47 = vpop.permute.xlu0 %4799  ;;  %4621 = vrot.lane.b32.xlu1 %v11282_v33, %s7031_s19 }
 0x70c   :  { %v11387_v8 = vpop.permute.xlu1 %4423  ;;  %4683 = vrot.lane.b32.xlu0 %v4339_v54, %s7042_s29 }
 0x70d   :  { %13721 = vst [vmem:[#allocation194_spill] sm:$0xff] %v11387_v8 }
 0x70e   :  { %v11390_v11 = vpop.permute.xlu0 %4613 }
 0x710   :  { %v11392_v0 = vpop.permute.xlu1 %4421 }
 0x712   :  { %v11394_v12 = vpop.permute.xlu0 %4611 }
 0x714   :  { %v11396_v31 = vpop.permute.xlu1 %4801 }
 0x716   :  { %v4480_v56 = vpop.permute.xlu0 %4479 }
 0x718   :  { %v11398_v15 = vpop.permute.xlu1 %4673 }
 0x71a   :  { %v4544_v44 = vpop.permute.xlu0 %4543 }
 0x71c   :  { %v11400_v61 = vpop.permute.xlu1 %4485 }
 0x71e   :  { %v11402_v57 = vpop.permute.xlu0 %4859 }
 0x720   :  { %v11404_v55 = vpop.permute.xlu1 %4737 }
 0x722   :  { %v11406_v22 = vpop.permute.xlu0 %4861 }
 0x724   :  { %v11408_v54 = vpop.permute.xlu1 %4549 }
 0x726   :  { %v4736_v30 = vpop.permute.xlu0 %4735 }
 0x728   :  { %v11410_v26 = vpop.permute.xlu1 %4675 }
 0x72a   :  { %v11412_v9 = vpop.permute.xlu0 %4803 }
 0x72b   :  { %13722 = vst [vmem:[#allocation162_spill] sm:$0xff] %v11412_v9  ;;  %v13729_v9 = vld [vmem:[#allocation115_spill] sm:$0xff] }
 0x72c   :  { %v11414_v6 = vpop.permute.xlu1 %4425  ;;  %v4237_v20 = vmul.f32 %v11027_v53, %v13729_v9  ;;  %v4239_v9 = vmul.f32 %v11060_v37, %v13550_v48 }
 0x72d   :  { %13723 = vst [vmem:[#allocation219_spill] sm:$0xff] %v11414_v6  ;;  %v13728_v6 = vld [vmem:[#allocation108_spill] sm:$0xff] }
 0x72e   :  { %v11416_v10 = vpop.permute.xlu0 %4615 }
 0x72f   :  { %13724 = vst [vmem:[#allocation184_spill] sm:$0xff] %v11416_v10 }
 0x730   :  { %v11418_v32 = vpop.permute.xlu1 %4805 }
 0x731   :  { %13725 = vst [vmem:[#allocation220_spill] sm:$0xff] %v11418_v32  ;;  %v4236_v32 = vmul.f32 %v11251_v59, %v13728_v6 }
 0x732   :  { %v4484_v50 = vpop.permute.xlu0 %4483 }
 0x733   :  { %v4908_v19 = vsel %vm2578_vm10, %v4236_v32, %v11317_v25  ;;  %v4909_v32 = vsel %vm2578_vm10, %v4237_v20, %v11293_v24  ;;  %v4911_v20 = vsel %vm2578_vm10, %v4239_v9, %v11313_v34 }
 0x734   :  { %v11420_v51 = vpop.permute.xlu1 %4677  ;;  %v4924_v4 = vsel %vm2595_vm11, %v4908_v19, %v11342_v58  ;;  %v4925_v19 = vsel %vm2595_vm11, %v4909_v32, %v4480_v56 }
 0x735   :  { %v4940_v7 = vsel %vm2612_vm12, %v4924_v4, %v4542_v14  ;;  %v13731_v14 = vld [vmem:[#allocation120_spill] sm:$0xff] }
 0x736   :  { %v4548_v16 = vpop.permute.xlu0 %4547  ;;  %v4238_v53 = vmul.f32 %v11036_v35, %v13731_v14  ;;  %v4956_v25 = vsel %vm1482_vm2, %v4940_v7, %v11288_v42  ;;  %v4927_v7 = vsel %vm2595_vm11, %v4911_v20, %v4484_v50  ;;  %v13733_v14 = vld [vmem:[#allocation194_spill] sm:$0xff] }
 0x737   :  { %v4972_v35 = vsel %vm2645_vm13, %v4956_v25, %v11336_v13  ;;  %v4943_v34 = vsel %vm2612_vm12, %v4927_v7, %v4548_v16  ;;  %v4240_v13 = vmul.f32 %v11123_v29, %v13553_v3 }
 0x738   :  { %v11422_v41 = vpop.permute.xlu1 %4489  ;;  %v4910_v48 = vsel %vm2578_vm10, %v4238_v53, %v11321_v62  ;;  %v4988_v56 = vsel %vm2662_vm14, %v4972_v35, %v11360_v2  ;;  %v4959_v3 = vsel %vm1482_vm2, %v4943_v34, %v11394_v12 }
 0x739   :  { %13726 = vst [vmem:[#allocation190_spill] sm:$0xff] %v11422_v41  ;;  %v12940_v41 = vrot.slane %v11430_v18, 7  ;;  %v4926_v24 = vsel %vm2595_vm11, %v4910_v48, %v11348_v1  ;;  %v4912_v32 = vsel %vm2578_vm10, %v4240_v13, %v11392_v0 }
 0x73a   :  { %v4864_v46 = vpop.permute.xlu0 %4863 }
 0x73c   :  { %v11425_v33 = vpop.permute.xlu1 %4741 }
 0x73e   :  { %v11432_v5 = vpop.permute.xlu0 %4865 }
 0x740   :  { %v11434_v10 = vpop.permute.xlu1 %4553 }
 0x741   :  { %13727 = vst [vmem:[#allocation180_spill] sm:$0xff] %v11434_v10  ;;  %v13730_v10 = vrot.slane %v11206_v63, 7 }
 0x742   :  { %v4740_v45 = vpop.permute.xlu0 %4739 }
 0x743   :  { %v11452_v6 = vsel %vm216_vm0, %v12940_v41, %v13730_v10  ;;  %v4941_v10 = vsel %vm2612_vm12, %v4925_v19, %v4544_v44 }
 0x744   :  { %v4412_v8 = vpop.permute.xlu1 %4411  ;;  %v4235_v4 = vmul.f32 %v11452_v6, %v13552_v40  ;;  %v4957_v42 = vsel %vm1482_vm2, %v4941_v10, %v11332_v43  ;;  %v13736_v10 = vld [vmem:[#allocation220_spill] sm:$0xff] }
 0x745   :  { %v4973_v1 = vsel %vm2645_vm13, %v4957_v42, %v11379_v39  ;;  %v4928_v39 = vsel %vm2595_vm11, %v4912_v32, %v11400_v61 }
 0x746   :  { %v11454_v59 = vpop.permute.xlu0 %4487  ;;  %v4907_v37 = vsel %vm2578_vm10, %v4235_v4, %v4412_v8  ;;  %v4942_v8 = vsel %vm2612_vm12, %v4926_v24, %v11370_v49  ;;  %v4989_v49 = vsel %vm2662_vm14, %v4973_v1, %v4736_v30  ;;  %v5004_v30 = vsel %vm2679_vm15, %v4988_v56, %v11328_v60 }
 0x747   :  { %v4958_v2 = vsel %vm1482_vm2, %v4942_v8, %v11324_v52  ;;  %v4944_v12 = vsel %vm2612_vm12, %v4928_v39, %v11408_v54  ;;  %v5020_v61 = vsel %vm1499_vm3, %v5004_v30, %v11406_v22  ;;  %v13742_v39 = vld [vmem:[#allocation149_spill] sm:$0xff] }
 0x748   :  { %v4476_v58 = vpop.permute.xlu1 %4475  ;;  %v4974_v0 = vsel %vm2645_vm13, %v4958_v2, %v11398_v15  ;;  %v4975_v15 = vsel %vm2645_vm13, %v4959_v3, %v11410_v26  ;;  %v13740_v24 = vld [vmem:[#allocation180_spill] sm:$0xff] }
 0x749   :  { %v4923_v44 = vsel %vm2595_vm11, %v4907_v37, %v4476_v58  ;;  %v4990_v52 = vsel %vm2662_vm14, %v4974_v0, %v11404_v55  ;;  %v4991_v54 = vsel %vm2662_vm14, %v4975_v15, %v4740_v45  ;;  %v13732_v58 = vld [vmem:[#allocation162_spill] sm:$0xff]  ;;  %v13737_v37 = vld [vmem:[#allocation219_spill] sm:$0xff]  ;;  %v13741_v3 = vld [vmem:[#allocation160_spill] sm:$0xff] }
 0x74a   :  { %v4552_v41 = vpop.permute.xlu0 %4551  ;;  %v5006_v55 = vsel %vm2679_vm15, %v4990_v52, %v11396_v31 }
 0x74b   :  { %v5022_v22 = vsel %vm1499_vm3, %v5006_v55, %v11432_v5 }
 0x74c   :  { %v4540_v40 = vpop.permute.xlu1 %4539 }
 0x74d   :  { %v4939_v62 = vsel %vm2612_vm12, %v4923_v44, %v4540_v40  ;;  %v13739_v44 = vld [vmem:[#allocation184_spill] sm:$0xff] }
 0x74e   :  { %v4955_v43 = vsel %vm1482_vm2, %v4939_v62, %v11299_v38  ;;  %v4868_v50 = vpop.permute.xlu0 %4867 }
 0x74f   :  { %v4971_v16 = vsel %vm2645_vm13, %v4955_v43, %v11365_v36 }
 0x750   :  { %v4618_v29 = vpop.permute.xlu1 %4617  ;;  %v4987_v38 = vsel %vm2662_vm14, %v4971_v16, %v11373_v17 }
 0x751   :  { %v5003_v36 = vsel %vm2679_vm15, %v4987_v38, %v11304_v23  ;;  %v5005_v23 = vsel %vm2679_vm15, %v4989_v49, %v11382_v47  ;;  %v4241_v47 = vmul.f32 %v11134_v28, %v13551_v27  ;;  %v4133_v38 = vmax.f32 %v13741_v3, 0.0  ;;  %v12036_v3 = vld [vmem:[%s12505_s0 + $0x40] sm:$0xff] }
 0x752   :  { %v4680_v9 = vpop.permute.xlu0 %4679  ;;  %v5019_v17 = vsel %vm1499_vm3, %v5003_v36, %v11402_v57  ;;  %v5021_v60 = vsel %vm1499_vm3, %v5005_v23, %v4864_v46  ;;  %v4960_v57 = vsel %vm1482_vm2, %v4944_v12, %v11390_v11  ;;  %v5007_v11 = vsel %vm2679_vm15, %v4991_v54, %v13732_v58  ;;  %v13746_v54 = vld [vmem:[#allocation64_spill] sm:$0xff]  ;;  %v13750_v58 = vld [vmem:[#allocation71_spill] sm:$0xff] }
 0x753   :  { %6578 = vmatprep.mubr.msk.f32.mxu1 %vm2717_vm4, %v5019_v17  ;;  %v4976_v26 = vsel %vm2645_vm13, %v4960_v57, %v11420_v51  ;;  %v4913_v53 = vsel %vm2578_vm10, %v4241_v47, %v13733_v14  ;;  %v5023_v27 = vsel %vm1499_vm3, %v5007_v11, %v4868_v50  ;;  %v13734_v51 = vld [vmem:[#allocation128_spill] sm:$0xff]  ;;  %v4134_v36 = vmax.f32 %v13742_v39, 0.0  ;;  %v13747_v57 = vld [vmem:[#allocation65_spill] sm:$0xff]  ;;  %v5763_v39 = vld [vmem:[%s12512_s12] sm:$0xff] }
 0x754   :  { %v4870_v19 = vpop.permute.xlu1 %4869  ;;  %6579 = vmatmul.mubr.msk.f32.vlgmr.msra.gmra.mrb[32].mxu1 %vm2717_vm4, %v5020_v61  ;;  %v4992_v45 = vsel %vm2662_vm14, %v4976_v26, %v11425_v33  ;;  %v4929_v31 = vsel %vm2595_vm11, %v4913_v53, %v11454_v59  ;;  %v13735_v33 = vld [vmem:[#allocation192_spill] sm:$0xff]  ;;  %v13738_v59 = vld [vmem:[#allocation190_spill] sm:$0xff]  ;;  %v13744_v61 = vld [vmem:[#allocation169_spill] sm:$0xff] }
 0x755   :  { %6581 = vmatprep.mubr.msk.f32.mxu1 %vm2717_vm4, %v5021_v60  ;;  %v4242_v25 = vmul.f32 %v13735_v33, %v13734_v51  ;;  %v4945_v5 = vsel %vm2612_vm12, %v4929_v31, %v4552_v41  ;;  %v5008_v4 = vsel %vm2679_vm15, %v4992_v45, %v13736_v10  ;;  %v13745_v23 = vrot.slane %v13744_v61, 1  ;;  %v13749_v45 = vld [vmem:[#allocation196_spill] sm:$0xff]  ;;  %v13753_v51 = vld [vmem:[#allocation67_spill] sm:$0xff] }
 0x756   :  { %v4682_v46 = vpop.permute.xlu0 %4681  ;;  %v5024_v48 = vsel %vm1499_vm3, %v5008_v4, %v4870_v19  ;;  %v4961_v40 = vsel %vm1482_vm2, %v4945_v5, %v13739_v44  ;;  %v13751_v14 = vrot.slane %v13744_v61, 7  ;;  %v13754_v5 = vld [vmem:[#allocation63_spill] sm:$0xff]  ;;  %v13755_v4 = vld [vmem:[#allocation74_spill] sm:$0xff] }
 0x757   :  { %v4914_v35 = vsel %vm2578_vm10, %v4242_v25, %v13737_v37  ;;  %v4977_v34 = vsel %vm2645_vm13, %v4961_v40, %v4680_v9  ;;  %v13743_v9 = vld [vmem:[#allocation69_spill] sm:$0xff]  ;;  %v4371_v10 = vmul.f32 %v13744_v61, %v13754_v5  ;;  %v13774_v5 = vld [vmem:[#allocation92_spill] sm:$0xff] }
 0x758   :  { %v4744_v28 = vpop.permute.xlu1 %4743  ;;  %6582 = vmatmul.mubr.msk.f32.gmra.mrb[34].mxu1 %vm2717_vm4, %v5022_v22  ;;  %v4930_v7 = vsel %vm2595_vm11, %v4914_v35, %v13738_v59 }
 0x759   :  { %6584 = vmatprep.mubr.msk.f32.mxu1 %vm2717_vm4, %v5023_v27  ;;  %v4946_v41 = vsel %vm2612_vm12, %v4930_v7, %v13740_v24  ;;  %v4993_v13 = vsel %vm2662_vm14, %v4977_v34, %v4744_v28  ;;  %v13752_v28 = vld [vmem:[#allocation66_spill] sm:$0xff]  ;;  %v13758_v7 = vld [vmem:[#allocation61_spill] sm:$0xff] }
 0x75a   :  { %v4746_v20 = vpop.permute.xlu0 %4745  ;;  %v4962_v8 = vsel %vm1482_vm2, %v4946_v41, %v4618_v29  ;;  %v13759_v24 = vld [vmem:[#allocation77_spill] sm:$0xff] }
 0x75b   :  { %v4978_v43 = vsel %vm2645_vm13, %v4962_v8, %v4682_v46  ;;  %v13748_v46 = vld [vmem:[#allocation60_spill] sm:$0xff] }
 0x75c   :  { %v4808_v42 = vpop.permute.xlu1 %4807  ;;  %6585 = vmatmul.mubr.msk.f32.gmra.mrb[36].mxu1 %vm2717_vm4, %v5024_v48  ;;  %v4994_v1 = vsel %vm2662_vm14, %v4978_v43, %v4746_v20  ;;  %v4355_v22 = vmul.f32 %v13749_v45, %v13748_v46  ;;  %v13756_v48 = vld [vmem:[#allocation70_spill] sm:$0xff]  ;;  %v13761_v43 = vld [vmem:[#allocation72_spill] sm:$0xff] }
 0x75d   :  { %v5009_v50 = vsel %vm2679_vm15, %v4993_v13, %v4808_v42  ;;  %v13757_v42 = vld [vmem:[#allocation188_spill] sm:$0xff] }
 0x75e   :  { %v4810_v62 = vpop.permute.xlu0 %4809  ;;  %v4135_v59 = vmax.f32 %v13757_v42, 0.0  ;;  %v7047_v42 = vmov 0.0  }
 0x75f   :  { %v5010_v32 = vsel %vm2679_vm15, %v4994_v1, %v4810_v62  ;;  %v13760_v62 = vld [vmem:[#allocation163_spill] sm:$0xff]  ;;  %v13762_v1 = vld [vmem:[#allocation88_spill] sm:$0xff] }
 0x760   :  { %v4872_v56 = vpop.permute.xlu1 %4871  ;;  %v4136_v8 = vmax.f32 %v13760_v62, 0.0 }
 0x761   :  { %v5025_v16 = vsel %vm1499_vm3, %v5009_v50, %v4872_v56 }
 0x762   :  { %v4874_v49 = vpop.permute.xlu0 %4873  ;;  %6587 = vmatprep.mubr.msk.f32.mxu1 %vm2717_vm4, %v5025_v16 }
 0x763   :  { %v5026_v29 = vsel %vm1499_vm3, %v5010_v32, %v4874_v49  ;;  %v13763_v32 = vld [vmem:[#allocation84_spill] sm:$0xff] }
 0x764   :  { %v4160_v2 = vpop.permute.xlu1 %4159  ;;  %6588 = vmatmul.mubr.msk.f32.gmra.mrb[38].mxu1 %vm2717_vm4, %v5026_v29 }
 0x765   :  { %v4197_v0 = vadd.f32 %v4160_v2, %v4133_v38 }
 0x766   :  { %v4162_v30 = vpop.permute.xlu0 %4161 }
 0x767   :  { %v11582_v12 = vadd.f32 %v4162_v30, %v4134_v36  ;;  %v4262_v17 = vmul.f32 %v4197_v0, %v13743_v9  ;;  %v4277_v52 = vrot.slane %v4197_v0, 1  ;;  %v4213_v26 = vrot.slane %v4197_v0, 7 }
 0x768   :  { %v4372_v37 = vmul.f32 %v4197_v0, %v13756_v48  ;;  %v4164_v35 = vpop.permute.xlu1 %4163 }
 0x769   :  { %4433 = vrot.lane.b32.xlu1 %v4262_v17, %s7038_s3  ;;  %v4288_v15 = vsel %vm441_vm1, %v13745_v23, %v4277_v52  ;;  %v4278_v60 = vrot.slane %v11582_v12, 1  ;;  %v11604_v53 = vsel %vm216_vm0, %v13751_v14, %v4213_v26  ;;  %v4214_v27 = vrot.slane %v11582_v12, 7  ;;  %v13765_v17 = vld [vmem:[#allocation80_spill] sm:$0xff]  ;;  %v13766_v23 = vld [vmem:[#allocation75_spill] sm:$0xff]  ;;  %v13771_v14 = vld [vmem:[#allocation90_spill] sm:$0xff] }
 0x76a   :  { %v4309_v19 = vmul.f32 %v4288_v15, %v13746_v54  ;;  %v4340_v47 = vmul.f32 %v4288_v15, %v13747_v57  ;;  %v4325_v31 = vmul.f32 %v11604_v53, %v13752_v28  ;;  %v4356_v33 = vmul.f32 %v11604_v53, %v13753_v51  ;;  %v4166_v34 = vpop.permute.xlu0 %4165  ;;  %v13772_v28 = vld [vmem:[#allocation85_spill] sm:$0xff]  ;;  %v13773_v51 = vld [vmem:[#allocation76_spill] sm:$0xff] }
 0x76b   :  { %v4287_v55 = vsel %vm441_vm1, %v4277_v52, %v4278_v60  ;;  %v11616_v25 = vsel %vm216_vm0, %v4213_v26, %v4214_v27  ;;  %v4387_v44 = vmul.f32 %v4288_v15, %v13758_v7  ;;  %v4199_v40 = vadd.f32 %v4164_v35, %v4135_v59  ;;  %v13778_v7 = vld [vmem:[#allocation91_spill] sm:$0xff] }
 0x76c   :  { %4495 = vrot.lane.b32.xlu0 %v4309_v19, %s7040_s26  ;;  %v4310_v11 = vmul.f32 %v4287_v55, %v13750_v58  ;;  %v4326_v20 = vmul.f32 %v11616_v25, %v13755_v4  ;;  %v4263_v41 = vmul.f32 %v11582_v12, %v13759_v24  ;;  %v4341_v50 = vmul.f32 %v4287_v55, %v13761_v43  ;;  %v13770_v58 = vld [vmem:[#allocation78_spill] sm:$0xff]  ;;  %v13781_v43 = vld [vmem:[#allocation111_spill] sm:$0xff] }
 0x76d   :  { %4685 = vrot.lane.b32.xlu1 %v4340_v47, %s7042_s29  ;;  %v4279_v13 = vrot.slane %v4199_v40, 1  ;;  %v11640_v56 = vadd.f32 %v4166_v34, %v4136_v8  ;;  %v4388_v16 = vmul.f32 %v4287_v55, %v13762_v1  ;;  %v4264_v49 = vmul.f32 %v4199_v40, %v13763_v32  ;;  %v13768_v47 = vld [vmem:[#allocation82_spill] sm:$0xff]  ;;  %v13769_v55 = vld [vmem:[#allocation83_spill] sm:$0xff] }
 0x76e   :  { %v4215_v9 = vrot.slane %v4199_v40, 7  ;;  %v4357_v15 = vmul.f32 %v11616_v25, %v13766_v23  ;;  %v13789_v23 = vrot.slane %v11430_v18, 7 }
 0x76f   :  { %v4286_v29 = vsel %vm441_vm1, %v4278_v60, %v4279_v13  ;;  %v4280_v2 = vrot.slane %v11640_v56, 1  ;;  %v13767_v60 = vld [vmem:[#allocation86_spill] sm:$0xff]  ;;  %v4216_v57 = vrot.slane %v11640_v56, 7 }
 0x770   :  { %4747 = vrot.lane.b32.xlu0 %v4355_v22, %s7043_s30  ;;  %v4342_v52 = vmul.f32 %v4286_v29, %v13765_v17  ;;  %v11663_v19 = vsel %vm216_vm0, %v4214_v27, %v4215_v9  ;;  %v13787_v17 = vld [vmem:[#allocation186_spill] sm:$0xff] }
 0x771   :  { %4497 = vrot.lane.b32.xlu1 %v4310_v11, %s7040_s26  ;;  %v4285_v61 = vsel %vm441_vm1, %v4279_v13, %v4280_v2  ;;  %v4327_v26 = vmul.f32 %v11663_v19, %v13768_v47  ;;  %v4358_v46 = vmul.f32 %v11663_v19, %v13769_v55  ;;  %v11675_v22 = vsel %vm216_vm0, %v4215_v9, %v4216_v57  ;;  %v13786_v9 = vld [vmem:[#allocation112_spill] sm:$0xff]  ;;  %v4428_v47 = vpop.permute.xlu1 %4427 }
 0x772   :  { %v4312_v54 = vmul.f32 %v4285_v61, %v13767_v60  ;;  %v4373_v11 = vmul.f32 %v11582_v12, %v13770_v58  ;;  %v4328_v27 = vmul.f32 %v11675_v22, %v13771_v14  ;;  %v4281_v13 = vrot.slane %v11430_v18, 1  ;;  %v13791_v60 = vld [vmem:[#allocation193_spill] sm:$0xff]  ;;  %v13793_v58 = vld [vmem:[#allocation94_spill] sm:$0xff] }
 0x774   :  { %4559 = vrot.lane.b32.xlu0 %v4325_v31, %s7041_s27  ;;  %v4374_v31 = vmul.f32 %v4199_v40, %v13772_v28  ;;  %v4284_v1 = vsel %vm441_vm1, %v4280_v2, %v4281_v13  ;;  %v13788_v2 = vld [vmem:[#allocation105_spill] sm:$0xff] }
 0x775   :  { %4749 = vrot.lane.b32.xlu1 %v4356_v33, %s7043_s30  ;;  %v4389_v33 = vmul.f32 %v4286_v29, %v13773_v51  ;;  %v4492_v14 = vpop.permute.xlu1 %4491 }
 0x778   :  { %4811 = vrot.lane.b32.xlu0 %v4371_v10, %s7039_s4  ;;  %v4265_v10 = vmul.f32 %v11640_v56, %v13774_v5  ;;  %v13797_v5 = vld [vmem:[#allocation89_spill] sm:$0xff] }
 0x779   :  { %4561 = vrot.lane.b32.xlu1 %v4326_v20, %s7041_s27  ;;  %v13776_v20 = vld [vmem:[#allocation101_spill] sm:$0xff] }
 0x77a   :  { %v4390_v48 = vmul.f32 %v4285_v61, %v13776_v20 }
 0x77c   :  { %4623 = vrot.lane.b32.xlu0 %v4197_v0, %s7031_s19  ;;  %v13764_v0 = vld [vmem:[#allocation79_spill] sm:$0xff] }
 0x77d   :  { %4813 = vrot.lane.b32.xlu1 %v4372_v37, %s7039_s4  ;;  %v4311_v30 = vmul.f32 %v4286_v29, %v13764_v0  ;;  %v13777_v37 = vld [vmem:[#allocation102_spill] sm:$0xff]  ;;  %v13785_v0 = vrot.slane %v11206_v63, 1 }
 0x77e   :  { %v4266_v35 = vmul.f32 %v11430_v18, %v13777_v37  ;;  %v13799_v37 = vld [vmem:[#allocation103_spill] sm:$0xff] }
 0x780   :  { %4875 = vrot.lane.b32.xlu0 %v4387_v44, %s7032_s24  ;;  %v4359_v44 = vmul.f32 %v11675_v22, %v13778_v7  ;;  %v13800_v7 = vld [vmem:[#allocation104_spill] sm:$0xff] }
 0x781   :  { %4435 = vrot.lane.b32.xlu1 %v4263_v41, %s7038_s3  ;;  %v13780_v41 = vld [vmem:[#allocation93_spill] sm:$0xff] }
 0x782   :  { %v4375_v34 = vmul.f32 %v11640_v56, %v13780_v41  ;;  %v13802_v41 = vld [vmem:[#allocation177_spill] sm:$0xff] }
 0x784   :  { %4625 = vrot.lane.b32.xlu0 %v11582_v12, %s7031_s19  ;;  %v13775_v12 = vld [vmem:[#allocation87_spill] sm:$0xff] }
 0x785   :  { %4687 = vrot.lane.b32.xlu1 %v4341_v50, %s7042_s29  ;;  %v4343_v4 = vmul.f32 %v4285_v61, %v13775_v12  ;;  %v4377_v50 = vmul.f32 %v11206_v63, %v13781_v43  ;;  %v4556_v12 = vpop.permute.xlu1 %4555 }
 0x788   :  { %4877 = vrot.lane.b32.xlu0 %v4388_v16, %s7032_s24  ;;  %v13782_v16 = vld [vmem:[#allocation116_spill] sm:$0xff] }
 0x789   :  { %4437 = vrot.lane.b32.xlu1 %v4264_v49, %s7038_s3  ;;  %v13784_v49 = vld [vmem:[#allocation95_spill] sm:$0xff] }
 0x78a   :  { %v4344_v29 = vmul.f32 %v4284_v1, %v13784_v49 }
 0x78c   :  { %4499 = vrot.lane.b32.xlu0 %v4311_v30, %s7040_s26  ;;  %v4283_v30 = vsel %vm441_vm1, %v4281_v13, %v13785_v0  ;;  %v13809_v0 = vld [vmem:[#allocation98_spill] sm:$0xff]  ;;  %vm5844_vm1 = vcmask 1040384  }
 0x78d   :  { %4689 = vrot.lane.b32.xlu1 %v4342_v52, %s7042_s29  ;;  %v4346_v52 = vmul.f32 %v13787_v17, %v13786_v9  ;;  %v4314_v61 = vmul.f32 %v4283_v30, %v13788_v2 }
 0x790   :  { %4751 = vrot.lane.b32.xlu0 %v4357_v15, %s7043_s30  ;;  %v11737_v15 = vsel %vm216_vm0, %v4216_v57, %v13789_v23  ;;  %vm7046_vm0 = vmmov 0  }
 0x791   :  { %4501 = vrot.lane.b32.xlu1 %v4312_v54, %s7040_s26 }
 0x794   :  { %4563 = vrot.lane.b32.xlu0 %v4327_v26, %s7041_s27  ;;  %v13792_v26 = vld [vmem:[#allocation97_spill] sm:$0xff] }
 0x795   :  { %4753 = vrot.lane.b32.xlu1 %v4358_v46, %s7043_s30  ;;  %v4360_v55 = vmul.f32 %v11737_v15, %v13792_v26  ;;  %v4430_v46 = vpop.permute.xlu0 %4429  ;;  %v13814_v26 = vld [vmem:[#allocation178_spill] sm:$0xff] }
 0x798   :  { %4815 = vrot.lane.b32.xlu0 %v4373_v11, %s7039_s4  ;;  %v13794_v11 = vld [vmem:[#allocation109_spill] sm:$0xff] }
 0x799   :  { %4565 = vrot.lane.b32.xlu1 %v4328_v27, %s7041_s27  ;;  %v4330_v57 = vmul.f32 %v11452_v6, %v13794_v11  ;;  %v13795_v27 = vld [vmem:[#allocation99_spill] sm:$0xff] }
 0x79a   :  { %v4329_v28 = vmul.f32 %v11737_v15, %v13795_v27 }
 0x79c   :  { %4627 = vrot.lane.b32.xlu0 %v4199_v40, %s7031_s19  ;;  %v13779_v40 = vld [vmem:[#allocation100_spill] sm:$0xff] }
 0x79d   :  { %4817 = vrot.lane.b32.xlu1 %v4374_v31, %s7039_s4  ;;  %v4376_v24 = vmul.f32 %v11430_v18, %v13779_v40  ;;  %v13796_v31 = vld [vmem:[#allocation117_spill] sm:$0xff]  ;;  %v4620_v40 = vpop.permute.xlu1 %4619 }
 0x79e   :  { %v4392_v51 = vmul.f32 %v4283_v30, %v13796_v31 }
 0x7a0   :  { %4879 = vrot.lane.b32.xlu0 %v4389_v33, %s7032_s24  ;;  %v4494_v33 = vpop.permute.xlu0 %4493 }
 0x7a1   :  { %4439 = vrot.lane.b32.xlu1 %v4265_v10, %s7038_s3  ;;  %v4391_v10 = vmul.f32 %v4284_v1, %v13797_v5 }
 0x7a4   :  { %4629 = vrot.lane.b32.xlu0 %v11640_v56, %s7031_s19  ;;  %v13783_v56 = vld [vmem:[#allocation175_spill] sm:$0xff] }
 0x7a5   :  { %4691 = vrot.lane.b32.xlu1 %v4343_v4, %s7042_s29  ;;  %v4378_v32 = vmul.f32 %v13783_v56, %v13782_v16  ;;  %v13798_v4 = vld [vmem:[#allocation106_spill] sm:$0xff]  ;;  %v13807_v56 = vld [vmem:[#allocation124_spill] sm:$0xff] }
 0x7a6   :  { %v4361_v20 = vmul.f32 %v11452_v6, %v13798_v4  ;;  %v13803_v6 = vld [vmem:[#allocation126_spill] sm:$0xff] }
 0x7a7   :  { %v13804_v43 = vmax.f32 %v13803_v6, 0.0  ;;  %v13815_v4 = vld [vmem:[#allocation130_spill] sm:$0xff] }
 0x7a8   :  { %4881 = vrot.lane.b32.xlu0 %v4390_v48, %s7032_s24  ;;  %v4558_v48 = vpop.permute.xlu0 %4557 }
 0x7a9   :  { %4441 = vrot.lane.b32.xlu1 %v4266_v35, %s7038_s3  ;;  %v4345_v35 = vmul.f32 %v4283_v30, %v13799_v37  ;;  %v13810_v30 = vmax.f32 %v13809_v0, 0.0 }
 0x7ac   :  { %4755 = vrot.lane.b32.xlu0 %v4359_v44, %s7043_s30  ;;  %v4393_v44 = vmul.f32 %v13787_v17, %v13800_v7  ;;  %v4432_v13 = vpop.permute.xlu0 %4431 }
 0x7ad   :  { %4821 = vrot.lane.b32.xlu1 %v4376_v24, %s7039_s4  ;;  %v13801_v24 = vld [vmem:[#allocation110_spill] sm:$0xff] }
 0x7b0   :  { %4819 = vrot.lane.b32.xlu0 %v4375_v34, %s7039_s4  ;;  %v4394_v34 = vmul.f32 %v13802_v41, %v13801_v24  ;;  %v4684_v49 = vpop.permute.xlu0 %4683 }
 0x7b1   :  { %4633 = vrot.lane.b32.xlu1 %v11206_v63, %s7031_s19  ;;  %v13790_v63 = vld [vmem:[#allocation114_spill] sm:$0xff] }
 0x7b2   :  { %v4362_v54 = vmul.f32 %v13791_v60, %v13790_v63 }
 0x7b4   :  { %4631 = vrot.lane.b32.xlu0 %v11430_v18, %s7031_s19  ;;  %v4313_v18 = vmul.f32 %v4284_v1, %v13793_v58  ;;  %v13805_v1 = vld [vmem:[#allocation122_spill] sm:$0xff] }
 0x7b5   :  { %4823 = vrot.lane.b32.xlu1 %v4377_v50, %s7039_s4  ;;  %v4622_v50 = vpop.permute.xlu1 %4621  ;;  %v13806_v16 = vmax.f32 %v13805_v1, 0.0 }
 0x7b8   :  { %4825 = vrot.lane.b32.xlu0 %v4378_v32, %s7039_s4  ;;  %v13808_v32 = vmax.f32 %v13807_v56, 0.0 }
 0x7b9   :  { %4693 = vrot.lane.b32.xlu1 %v4344_v29, %s7042_s29 }
 0x7bc   :  { %4697 = vrot.lane.b32.xlu0 %v4346_v52, %s7042_s29  ;;  %v13811_v52 = vld [vmem:[#allocation171_spill] sm:$0xff] }
 0x7bd   :  { %4505 = vrot.lane.b32.xlu1 %v4314_v61, %s7040_s26  ;;  %v13812_v2 = vmax.f32 %v13811_v52, 0.0  ;;  %v13818_v52 = vld [vmem:[#allocation68_spill] sm:$0xff] }
 0x7c0   :  { %4761 = vrot.lane.b32.xlu0 %v4362_v54, %s7043_s30  ;;  %v13813_v54 = vld [vmem:[#allocation129_spill] sm:$0xff] }
 0x7c1   :  { %4757 = vrot.lane.b32.xlu1 %v4360_v55, %s7043_s30  ;;  %v4243_v55 = vmul.f32 %v13814_v26, %v13813_v54 }
 0x7c3   :  { %v4915_v11 = vsel %vm2578_vm10, %v4243_v55, %v4428_v47 }
 0x7c4   :  { %4503 = vrot.lane.b32.xlu0 %v4313_v18, %s7040_s26 }
 0x7c5   :  { %4569 = vrot.lane.b32.xlu1 %v4330_v57, %s7041_s27  ;;  %v4931_v57 = vsel %vm2595_vm11, %v4915_v11, %v4492_v14 }
 0x7c6   :  { %v4947_v27 = vsel %vm2612_vm12, %v4931_v57, %v4556_v12 }
 0x7c7   :  { %v4963_v31 = vsel %vm1482_vm2, %v4947_v27, %v4620_v40 }
 0x7c8   :  { %4567 = vrot.lane.b32.xlu0 %v4329_v28, %s7041_s27  ;;  %v4979_v5 = vsel %vm2645_vm13, %v4963_v31, %v4684_v49 }
 0x7c9   :  { %4885 = vrot.lane.b32.xlu1 %v4392_v51, %s7032_s24 }
 0x7cc   :  { %4883 = vrot.lane.b32.xlu0 %v4391_v10, %s7032_s24 }
 0x7cd   :  { %4759 = vrot.lane.b32.xlu1 %v4361_v20, %s7043_s30  ;;  %v13816_v20 = vld [vmem:[#allocation154_spill] sm:$0xff] }
 0x7ce   :  { %v4244_v37 = vmul.f32 %v13816_v20, %v13815_v4 }
 0x7d0   :  { %4695 = vrot.lane.b32.xlu0 %v4345_v35, %s7042_s29  ;;  %v4916_v24 = vsel %vm2578_vm10, %v4244_v37, %v4430_v46 }
 0x7d1   :  { %4887 = vrot.lane.b32.xlu1 %v4393_v44, %s7032_s24  ;;  %v13817_v44 = vld [vmem:[#allocation81_spill] sm:$0xff]  ;;  %v4932_v41 = vsel %vm2595_vm11, %v4916_v24, %v4494_v33 }
 0x7d2   :  { %v4247_v47 = vmul.f32 %v11616_v25, %v13817_v44 }
 0x7d4   :  { %4889 = vrot.lane.b32.xlu0 %v4394_v34, %s7032_s24  ;;  %v4948_v34 = vsel %vm2612_vm12, %v4932_v41, %v4558_v48  ;;  %v11865_v41 = vld [vmem:[%s12509_s6 + $0x2] ss:$0 sm:$0xff] }
 0x7d5   :  { %5317 = vrot.lane.b32.xlu1 %v13804_v43, %s7038_s3  ;;  %v4964_v43 = vsel %vm1482_vm2, %v4948_v34, %v4622_v50 }
 0x7d8   :  { %5319 = vrot.lane.b32.xlu0 %v13806_v16, %s7038_s3 }
 0x7d9   :  { %5321 = vrot.lane.b32.xlu1 %v13808_v32, %s7038_s3 }
 0x7db   :  { %v11778_v29 = vpop.permute.xlu1 %4433 }
 0x7dd   :  { %5323 = vrot.lane.b32.xlu1 %v13810_v30, %s7038_s3 }
 0x7de   :  { %v4496_v9 = vpop.permute.xlu0 %4495 }
 0x7df   :  { %v4686_v17 = vpop.permute.xlu1 %4685 }
 0x7e0   :  { %v4980_v25 = vsel %vm2645_vm13, %v4964_v43, %v4686_v17 }
 0x7e1   :  { %5325 = vrot.lane.b32.xlu1 %v13812_v2, %s7038_s3  ;;  %v4245_v2 = vmul.f32 %v13749_v45, %v13818_v52 }
 0x7e2   :  { %v4748_v61 = vpop.permute.xlu0 %4747 }
 0x7e3   :  { %v4498_v23 = vpop.permute.xlu1 %4497  ;;  %v4995_v10 = vsel %vm2662_vm14, %v4979_v5, %v4748_v61  ;;  %v4917_v54 = vsel %vm2578_vm10, %v4245_v2, %v4432_v13 }
 0x7e4   :  { %v4933_v26 = vsel %vm2595_vm11, %v4917_v54, %v4496_v9 }
 0x7e6   :  { %v4560_v63 = vpop.permute.xlu0 %4559 }
 0x7e7   :  { %v4750_v60 = vpop.permute.xlu1 %4749  ;;  %v4949_v55 = vsel %vm2612_vm12, %v4933_v26, %v4560_v63 }
 0x7e8   :  { %v4996_v16 = vsel %vm2662_vm14, %v4980_v25, %v4750_v60 }
 0x7ea   :  { %v4812_v58 = vpop.permute.xlu0 %4811 }
 0x7eb   :  { %v4562_v18 = vpop.permute.xlu1 %4561  ;;  %v5011_v35 = vsel %vm2679_vm15, %v4995_v10, %v4812_v58 }
 0x7ee   :  { %v4624_v28 = vpop.permute.xlu0 %4623 }
 0x7ef   :  { %v4814_v51 = vpop.permute.xlu1 %4813  ;;  %v4965_v11 = vsel %vm1482_vm2, %v4949_v55, %v4624_v28 }
 0x7f0   :  { %v5012_v56 = vsel %vm2679_vm15, %v4996_v16, %v4814_v51  ;;  %v13819_v51 = vld [vmem:[#allocation131_spill] sm:$0xff] }
 0x7f1   :  { %v4246_v45 = vmul.f32 %v11604_v53, %v13819_v51 }
 0x7f2   :  { %v4876_v7 = vpop.permute.xlu0 %4875 }
 0x7f3   :  { %v5027_v14 = vsel %vm1499_vm3, %v5011_v35, %v4876_v7  ;;  %v4436_v12 = vpop.permute.xlu1 %4435  ;;  %v4918_v63 = vsel %vm2578_vm10, %v4246_v45, %v11778_v29 }
 0x7f4   :  { %v11802_v40 = vsel %vm2578_vm10, %v4247_v47, %v4436_v12  ;;  %6590 = vmatprep.mubr.msk.f32.mxu1 %vm2717_vm4, %v5027_v14  ;;  %v4934_v28 = vsel %vm2595_vm11, %v4918_v63, %v4498_v23 }
 0x7f5   :  { %v4950_v4 = vsel %vm2612_vm12, %v4934_v28, %v4562_v18 }
 0x7f6   :  { %v4626_v6 = vpop.permute.xlu0 %4625 }
 0x7f7   :  { %v4688_v1 = vpop.permute.xlu1 %4687  ;;  %v4966_v53 = vsel %vm1482_vm2, %v4950_v4, %v4626_v6 }
 0x7f8   :  { %v4981_v27 = vsel %vm2645_vm13, %v4965_v11, %v4688_v1  ;;  %v11874_v1 = vld [vmem:[%s12510_s7 + $0x2] ss:$0 sm:$0xff] }
 0x7fa   :  { %v4878_v46 = vpop.permute.xlu0 %4877 }
 0x7fb   :  { %v5028_v32 = vsel %vm1499_vm3, %v5012_v56, %v4878_v46  ;;  %v11812_v49 = vpop.permute.xlu1 %4437 }
 0x7fc   :  { %6591 = vmatmul.mubr.msk.f32.gmra.mrb[40].mxu1 %vm2717_vm4, %v5028_v32 }
 0x7fe   :  { %v11815_v33 = vpop.permute.xlu0 %4499 }
 0x7ff   :  { %v4690_v48 = vpop.permute.xlu1 %4689 }
 0x800   :  { %v4982_v35 = vsel %vm2645_vm13, %v4966_v53, %v4690_v48  ;;  %v13820_v53 = vld [vmem:[#allocation147_spill] sm:$0xff] }
 0x802   :  { %v4752_v0 = vpop.permute.xlu0 %4751 }
 0x803   :  { %v11817_v30 = vpop.permute.xlu1 %4501  ;;  %v4997_v31 = vsel %vm2662_vm14, %v4981_v27, %v4752_v0 }
 0x806   :  { %v11819_v50 = vpop.permute.xlu0 %4563 }
 0x807   :  { %v4754_v17 = vpop.permute.xlu1 %4753 }
 0x808   :  { %v4998_v7 = vsel %vm2662_vm14, %v4982_v35, %v4754_v17  ;;  %v13821_v35 = vmax.f32 %v13820_v53, 0.0 }
 0x80a   :  { %v4816_v61 = vpop.permute.xlu0 %4815 }
 0x80b   :  { %v11823_v60 = vpop.permute.xlu1 %4565  ;;  %v5013_v5 = vsel %vm2679_vm15, %v4997_v31, %v4816_v61 }
 0x80e   :  { %v11828_v58 = vpop.permute.xlu0 %4627 }
 0x80f   :  { %v4818_v57 = vpop.permute.xlu1 %4817 }
 0x810   :  { %v5014_v44 = vsel %vm2679_vm15, %v4998_v7, %v4818_v57 }
 0x812   :  { %v4880_v10 = vpop.permute.xlu0 %4879 }
 0x813   :  { %v5029_v13 = vsel %vm1499_vm3, %v5013_v5, %v4880_v10  ;;  %v11837_v9 = vpop.permute.xlu1 %4439  ;;  %v5477_v10 = vld [vmem:[%s12511_s8] sm:$0xff] }
 0x814   :  { %6593 = vmatprep.mubr.msk.f32.mxu1 %vm2717_vm4, %v5029_v13  ;;  %v5478_v13 = vld [vmem:[%s12511_s8 + $0x8] sm:$0xff] }
 0x815   :  { %v6705_v63 = vpack.c.bf16 %v5478_v13, %v5477_v10 }
 0x816   :  { %v11844_v20 = vpop.permute.xlu0 %4629 }
 0x817   :  { %v11847_v37 = vpop.permute.xlu1 %4691  ;;  %6715 = vmatprep.subr.bf16.mxu1 %v6705_v63  ;;  %6706 = vmatprep.subr.bf16.mxu0 %v6705_v63 }
 0x818   :  { %6716 = vmatpush3.bf16.msra.mxu1 %v6705_v63  ;;  %6708 = vmatpush3.bf16.msra.mxu0 %v6705_v63 }
 0x81a   :  { %v4882_v47 = vpop.permute.xlu0 %4881 }
 0x81b   :  { %v5030_v29 = vsel %vm1499_vm3, %v5014_v44, %v4882_v47  ;;  %v4442_v14 = vpop.permute.xlu1 %4441 }
 0x81c   :  { %6594 = vmatmul.mubr.msk.f32.gmra.mrb[42].mxu1 %vm2717_vm4, %v5030_v29  ;;  %v13822_v29 = vld [vmem:[#allocation107_spill] sm:$0xff] }
 0x81e   :  { %v11854_v23 = vpop.permute.xlu0 %4755 }
 0x81f   :  { %v11856_v18 = vpop.permute.xlu1 %4821 }
 0x822   :  { %v11858_v12 = vpop.permute.xlu0 %4819 }
 0x823   :  { %v11860_v24 = vpop.permute.xlu1 %4633 }
 0x826   :  { %v11867_v34 = vpop.permute.xlu0 %4631 }
 0x827   :  { %v11869_v6 = vpop.permute.xlu1 %4823  ;;  %v6580_v43 = vpop.f32.mrb[32].mxu1 }
 0x828   :  { %v5246_v25 = vmul.f32 %v6580_v43, %v11865_v41  ;;  %v5158_v16 = vpop.f32.mrb[33].mxu1  ;;  %v4248_v43 = vmul.f32 %v11663_v19, %v13822_v29 }
 0x829   :  { %v5245_v56 = vmul.f32 %v11865_v41, %v5158_v16  ;;  %v13824_v16 = vld [vmem:[#allocation132_spill] sm:$0xff] }
 0x82a   :  { %v5270_v46 = vadd.f32 %v11874_v1, %v5246_v25  ;;  %v11879_v32 = vpop.permute.xlu0 %4825  ;;  %v13823_v25 = vmov 0.0|0.0  }
 0x82b   :  { %v5269_v48 = vadd.f32 %v11874_v1, %v5245_v56  ;;  %v11882_v0 = vpop.permute.xlu1 %4693  ;;  %v6583_v17 = vpop.f32.mrb[34].mxu1  ;;  %6709 = vmatprep.subr.bf16.mxu1 %v13823_v25  ;;  %v4250_v56 = vmul.f32 %v11737_v15, %v13824_v16 }
 0x82c   :  { %v5286_v52 = vmax.f32 %v5270_v46, 0.0  ;;  %v5248_v2 = vmul.f32 %v6583_v17, %v11865_v41  ;;  %v5168_v61 = vpop.f32.mrb[35].mxu1  ;;  %v4935_v17 = vsel %vm2595_vm11, %v11802_v40, %v11815_v33 }
 0x82d   :  { %v5285_v54 = vmax.f32 %v5269_v48, 0.0  ;;  %v5247_v26 = vmul.f32 %v11865_v41, %v5168_v61  ;;  %v4920_v48 = vsel %vm2578_vm10, %v4248_v43, %v11812_v49  ;;  %v4922_v15 = vsel %vm2578_vm10, %v4250_v56, %v4442_v14  ;;  %v11928_v49 = vld [vmem:[%s12505_s0 + $0x8] sm:$0xff] }
 0x82e   :  { %v5272_v55 = vadd.f32 %v11874_v1, %v5248_v2  ;;  %v11887_v11 = vpop.permute.xlu0 %4697  ;;  %5383 = vrot.lane.b32.xlu0 %v5286_v52, %s7040_s26  ;;  %v13825_v2 = vld [vmem:[#allocation181_spill] sm:$0xff]  ;;  %6607 = vmatmul.mubr.msk.f32.vlgmr.msra.gmra.mrb[32].mxu0 %vm1482_vm2, %v11928_v49  ;;  %v4951_v40 = vsel %vm2612_vm12, %v4935_v17, %v11819_v50 }
 0x82f   :  { %v4506_v57 = vpop.permute.xlu1 %4505  ;;  %5381 = vrot.lane.b32.xlu1 %v5285_v54, %s7040_s26  ;;  %v6586_v27 = vpop.f32.mrb[36].mxu1  ;;  %v5271_v51 = vadd.f32 %v11874_v1, %v5247_v26  ;;  %v13826_v19 = vmax.f32 %v13825_v2, 0.0  ;;  %v4936_v54 = vsel %vm2595_vm11, %v4920_v48, %v11817_v30  ;;  %v13830_v48 = vld [vmem:[#allocation179_spill] sm:$0xff] }
 0x830   :  { %v5288_v31 = vmax.f32 %v5272_v55, 0.0  ;;  %v5250_v45 = vmul.f32 %v6586_v27, %v11865_v41  ;;  %v5178_v5 = vpop.f32.mrb[37].mxu1  ;;  %v4952_v33 = vsel %vm2612_vm12, %v4936_v54, %v11823_v60  ;;  %v4938_v30 = vsel %vm2595_vm11, %v4922_v15, %v4506_v57  ;;  %v13827_v57 = vld [vmem:[#allocation96_spill] sm:$0xff] }
 0x831   :  { %v5287_v7 = vmax.f32 %v5271_v51, 0.0  ;;  %v5249_v47 = vmul.f32 %v11865_v41, %v5178_v5  ;;  %v4967_v51 = vsel %vm1482_vm2, %v4951_v40, %v11828_v58  ;;  %v4968_v50 = vsel %vm1482_vm2, %v4952_v33, %v11844_v20  ;;  %v13828_v58 = vld [vmem:[#allocation158_spill] sm:$0xff] }
 0x832   :  { %v11899_v28 = vpop.permute.xlu0 %4761  ;;  %5387 = vrot.lane.b32.xlu0 %v5288_v31, %s7040_s26  ;;  %v5274_v44 = vadd.f32 %v11874_v1, %v5250_v45  ;;  %v11941_v31 = vld [vmem:[%s12505_s0 + $0x10] sm:$0xff]  ;;  %v4249_v5 = vmul.f32 %v11675_v22, %v13827_v57  ;;  %v4983_v10 = vsel %vm2645_vm13, %v4967_v51, %v11847_v37  ;;  %v4984_v13 = vsel %vm2645_vm13, %v4968_v50, %v11882_v0  ;;  %v11966_v22 = vld [vmem:[%s12505_s0 + $0x18] sm:$0xff]  ;;  %v13832_v51 = vld [vmem:[#allocation183_spill] sm:$0xff] }
 0x833   :  { %v4758_v4 = vpop.permute.xlu1 %4757  ;;  %5327 = vrot.lane.b32.xlu1 %v13821_v35, %s7038_s3  ;;  %v5273_v55 = vadd.f32 %v11874_v1, %v5249_v47  ;;  %6609 = vmatprep.mubr.msk.f32.mxu0 %vm1482_vm2, %v11941_v31  ;;  %v13829_v53 = vmax.f32 %v13828_v58, 0.0  ;;  %v4999_v0 = vsel %vm2662_vm14, %v4983_v10, %v11854_v23  ;;  %v11979_v47 = vld [vmem:[%s12505_s0 + $0x20] sm:$0xff]  ;;  %v13831_v17 = vmax.f32 %v13830_v48, 0.0  ;;  %v12095_v57 = vld [vmem:[%s12505_s0 + $0x58] sm:$0xff] }
 0x834   :  { %v5290_v26 = vmax.f32 %v5274_v44, 0.0  ;;  %v5000_v35 = vsel %vm2662_vm14, %v4984_v13, %v4758_v4  ;;  %6610 = vmatmul.mubr.msk.f32.gmra.mrb[34].mxu0 %vm1482_vm2, %v11966_v22  ;;  %v4921_v37 = vsel %vm2578_vm10, %v4249_v5, %v11837_v9  ;;  %v5015_v29 = vsel %vm2679_vm15, %v4999_v0, %v11858_v12  ;;  %v12113_v5 = vld [vmem:[%s12505_s0 + $0x68] sm:$0xff] }
 0x835   :  { %v5289_v20 = vmax.f32 %v5273_v55, 0.0  ;;  %6612 = vmatprep.mubr.msk.f32.mxu0 %vm1482_vm2, %v11979_v47  ;;  %v13833_v50 = vmax.f32 %v13832_v51, 0.0  ;;  %v13836_v0 = vld [vmem:[#allocation135_spill] sm:$0xff]  ;;  %v13846_v51 = vld [vmem:[#allocation161_spill] sm:$0xff] }
 0x836   :  { %v4504_v46 = vpop.permute.xlu0 %4503  ;;  %5385 = vrot.lane.b32.xlu0 %v5287_v7, %s7040_s26 }
 0x837   :  { %v4570_v52 = vpop.permute.xlu1 %4569  ;;  %5329 = vrot.lane.b32.xlu1 %v13826_v19, %s7038_s3  ;;  %v6589_v61 = vpop.f32.mrb[38].mxu1  ;;  %v4937_v43 = vsel %vm2595_vm11, %v4921_v37, %v4504_v46 }
 0x838   :  { %v5188_v27 = vpop.f32.mrb[39].mxu1  ;;  %v4954_v60 = vsel %vm2612_vm12, %v4938_v30, %v4570_v52  ;;  %v5252_v7 = vmul.f32 %v6589_v61, %v11865_v41 }
 0x839   :  { %v5251_v14 = vmul.f32 %v11865_v41, %v5188_v27  ;;  %v4970_v4 = vsel %vm1482_vm2, %v4954_v60, %v11860_v24  ;;  %v5016_v24 = vsel %vm2679_vm15, %v5000_v35, %v11856_v18  ;;  %v12002_v18 = vld [vmem:[%s12505_s0 + $0x28] sm:$0xff]  ;;  %v12027_v27 = vld [vmem:[%s12505_s0 + $0x38] sm:$0xff] }
 0x83a   :  { %v4568_v45 = vpop.permute.xlu0 %4567  ;;  %5391 = vrot.lane.b32.xlu0 %v5290_v26, %s7040_s26  ;;  %v4986_v12 = vsel %vm2645_vm13, %v4970_v4, %v11887_v11  ;;  %v5276_v46 = vadd.f32 %v11874_v1, %v5252_v7  ;;  %6613 = vmatmul.mubr.msk.f32.gmra.mrb[36].mxu0 %vm1482_vm2, %v12002_v18  ;;  %v12010_v11 = vld [vmem:[%s12505_s0 + $0x30] sm:$0xff]  ;;  %v13834_v7 = vld [vmem:[#allocation150_spill] sm:$0xff]  ;;  %v13837_v4 = vmax.f32 %v13836_v0, 0.0 }
 0x83b   :  { %v4886_v63 = vpop.permute.xlu1 %4885  ;;  %5331 = vrot.lane.b32.xlu1 %v13829_v53, %s7038_s3  ;;  %v5275_v44 = vadd.f32 %v11874_v1, %v5251_v14  ;;  %v4953_v23 = vsel %vm2612_vm12, %v4937_v43, %v4568_v45  ;;  %6615 = vmatprep.mubr.msk.f32.mxu0 %vm1482_vm2, %v12010_v11  ;;  %v5002_v15 = vsel %vm2662_vm14, %v4986_v12, %v11899_v28  ;;  %v12073_v14 = vld [vmem:[%s12505_s0 + $0x50] sm:$0xff]  ;;  %v12088_v45 = vld [vmem:[%s12505_s0 + $0x78] sm:$0xff] }
 0x83c   :  { %v5032_v2 = vsel %vm1499_vm3, %v5016_v24, %v4886_v63  ;;  %v4969_v19 = vsel %vm1482_vm2, %v4953_v23, %v11867_v34  ;;  %v5292_v26 = vmax.f32 %v5276_v46, 0.0  ;;  %v5018_v33 = vsel %vm2679_vm15, %v5002_v15, %v11879_v32  ;;  %v12060_v32 = vld [vmem:[%s12505_s0 + $0x70] sm:$0xff]  ;;  %v13838_v24 = vld [vmem:[#allocation37_spill] sm:$0xff] }
 0x83d   :  { %v5291_v52 = vmax.f32 %v5275_v44, 0.0  ;;  %v13835_v44 = vmax.f32 %v13834_v7, 0.0  ;;  %v13842_v15 = vld [vmem:[#allocation136_spill] sm:$0xff] }
 0x83e   :  { %v4884_v9 = vpop.permute.xlu0 %4883  ;;  %5389 = vrot.lane.b32.xlu0 %v5289_v20, %s7040_s26  ;;  %6616 = vmatmul.mubr.msk.f32.gmra.mrb[38].mxu0 %vm1482_vm2, %v12027_v27 }
 0x83f   :  { %v5031_v16 = vsel %vm1499_vm3, %v5015_v29, %v4884_v9  ;;  %v4760_v56 = vpop.permute.xlu1 %4759  ;;  %5333 = vrot.lane.b32.xlu1 %v13831_v17, %s7038_s3  ;;  %6618 = vmatprep.mubr.msk.f32.mxu0 %vm1482_vm2, %v12036_v3  ;;  %v13840_v17 = vld [vmem:[#allocation152_spill] sm:$0xff] }
 0x840   :  { %6596 = vmatprep.mubr.msk.f32.mxu1 %vm2717_vm4, %v5031_v16  ;;  %v13841_v12 = vmax.f32 %v13840_v17, 0.0 }
 0x841   :  { %6597 = vmatmul.mubr.msk.f32.gmra.mrb[44].mxu1 %vm2717_vm4, %v5032_v2 }
 0x842   :  { %v4696_v61 = vpop.permute.xlu0 %4695  ;;  %5393 = vrot.lane.b32.xlu0 %v5291_v52, %s7040_s26 }
 0x843   :  { %v4985_v54 = vsel %vm2645_vm13, %v4969_v19, %v4696_v61  ;;  %5337 = vrot.lane.b32.xlu1 %v4133_v38, %s7038_s3  ;;  %v4888_v40 = vpop.permute.xlu1 %4887 }
 0x844   :  { %v5001_v55 = vsel %vm2662_vm14, %v4985_v54, %v4760_v56  ;;  %v13839_v56 = vld [vmem:[#allocation118_spill] sm:$0xff] }
 0x845   :  { %v5017_v34 = vsel %vm2679_vm15, %v5001_v55, %v11869_v6  ;;  %v12053_v6 = vld [vmem:[%s12505_s0 + $0x48] sm:$0xff] }
 0x846   :  { %v5033_v38 = vsel %vm1499_vm3, %v5017_v34, %v4888_v40  ;;  %v4890_v28 = vpop.permute.xlu0 %4889  ;;  %5395 = vrot.lane.b32.xlu0 %v5292_v26, %s7040_s26  ;;  %6619 = vmatmul.mubr.msk.f32.gmra.mrb[40].mxu0 %vm1482_vm2, %v12053_v6  ;;  %v13843_v26 = vmax.f32 %v13842_v15, 0.0  ;;  %v13844_v34 = vld [vmem:[#allocation133_spill] sm:$0xff] }
 0x847   :  { %v5034_v30 = vsel %vm1499_vm3, %v5018_v33, %v4890_v28  ;;  %6599 = vmatprep.mubr.msk.f32.mxu1 %vm2717_vm4, %v5033_v38  ;;  %5339 = vrot.lane.b32.xlu1 %v4134_v36, %s7038_s3  ;;  %v5764_v36 = vld [vmem:[%s12512_s12 + $0x8] sm:$0xff]  ;;  %v5318_v10 = vpop.permute.xlu1 %5317  ;;  %vm5840_vm3 = vcmask 7168  }
 0x848   :  { %6600 = vmatmul.mubr.msk.f32.gmra.mrb[46].mxu1 %vm2717_vm4, %v5034_v30  ;;  %6621 = vmatprep.mubr.msk.f32.mxu0 %vm1482_vm2, %v12073_v14  ;;  %v12080_v60 = vpack.c.bf16 %v5764_v36, %v5763_v39  ;;  %v5429_v37 = vsel %vm2578_vm10, %v13835_v44, %v5318_v10  ;;  %v13845_v39 = vld [vmem:[#allocation134_spill] sm:$0xff] }
 0x849   :  { %6627 = vmatprep.mubr.msk.f32.mxu1 %vm1482_vm2, %v12060_v32 }
 0x84a   :  { %5335 = vrot.lane.b32.xlu0 %v13833_v50, %s7038_s3  ;;  %6622 = vmatmul.mubr.msk.f32.gmra.mrb[42].mxu0 %vm1482_vm2, %v12095_v57  ;;  %v5320_v58 = vpop.permute.xlu0 %5319  ;;  %v13847_v50 = vmax.f32 %v13846_v51, 0.0 }
 0x84b   :  { %5341 = vrot.lane.b32.xlu1 %v4135_v59, %s7038_s3  ;;  %v12106_v59 = vld [vmem:[%s12505_s0 + $0x60] sm:$0xff]  ;;  %v5322_v13 = vpop.permute.xlu1 %5321  ;;  %v5430_v29 = vsel %vm2578_vm10, %v13837_v4, %v5320_v58 }
 0x84c   :  { %6628 = vmatmul.mubr.msk.f32.vlgmr.msra.gmra.mrb[48].mxu1 %vm1482_vm2, %v12088_v45  ;;  %6624 = vmatprep.mubr.msk.f32.mxu0 %vm1482_vm2, %v12106_v59  ;;  %v5431_v46 = vsel %vm2578_vm10, %v13841_v12, %v5322_v13  ;;  %v13850_v4 = vld [vmem:[#allocation138_spill] sm:$0xff] }
 0x84d   :  { %6711 = vmatpush3.bf16.msra.mxu1 %v12080_v60  ;;  %6634 = vmatprep.mubr.msk.f32.mxu1 %vm7046_vm0, %v7047_v42 }
 0x84e   :  { %6637 = vmatprep.subr.mxu1 %v7047_v42  ;;  %6625 = vmatmul.mubr.msk.f32.gmra.mrb[44].mxu0 %vm1482_vm2, %v12113_v5 }
 0x84f   :  { %v5324_v63 = vpop.permute.xlu1 %5323 }
 0x850   :  { %v5432_v55 = vsel %vm2578_vm10, %v13843_v26, %v5324_v63 }
 0x853   :  { %v5326_v53 = vpop.permute.xlu1 %5325 }
 0x8a0   :  { %v5384_v20 = vpop.permute.xlu0 %5383 }
 0x8a1   :  { %v5382_v35 = vpop.permute.xlu1 %5381  ;;  %v5446_v43 = vsel %vm2595_vm11, %v5430_v29, %v5384_v20  ;;  %v13848_v20 = vld [vmem:[#allocation164_spill] sm:$0xff] }
 0x8a2   :  { %v5445_v9 = vsel %vm2595_vm11, %v5429_v37, %v5382_v35  ;;  %v12127_v16 = vsel %vm2612_vm12, %v5446_v43, %v13838_v24  ;;  %v13849_v35 = vmax.f32 %v13848_v20, 0.0 }
 0x8a3   :  { %v12131_v48 = vsel %vm2612_vm12, %v5445_v9, %v13839_v56  ;;  %v5742_v2 = vsel %vm1482_vm2, %v12127_v16, 0.0  ;;  %v13851_v9 = vld [vmem:[#allocation137_spill] sm:$0xff] }
 0x8a4   :  { %v5388_v23 = vpop.permute.xlu0 %5387  ;;  %v5741_v19 = vsel %vm1482_vm2, %v12131_v48, 0.0  ;;  %v5433_v7 = vsel %vm2578_vm10, %v13849_v35, %v5326_v53  ;;  %v13852_v56 = vld [vmem:[#allocation165_spill] sm:$0xff] }
 0x8a5   :  { %v5328_v61 = vpop.permute.xlu1 %5327  ;;  %v5448_v38 = vsel %vm2595_vm11, %v5432_v55, %v5388_v23  ;;  %v5743_v33 = vadd.f32 %v5742_v2, %v5741_v19  ;;  %v13853_v53 = vmax.f32 %v13852_v56, 0.0  ;;  %v13855_v55 = vld [vmem:[#allocation156_spill] sm:$0xff] }
 0x8a6   :  { %v12153_v36 = vsel %vm2612_vm12, %v5448_v38, %v13845_v39  ;;  %v5434_v10 = vsel %vm2578_vm10, %v13847_v50, %v5328_v61  ;;  %v13857_v39 = vld [vmem:[#allocation142_spill] sm:$0xff] }
 0x8a7   :  { %v5746_v37 = vsel %vm1482_vm2, %v12153_v36, 0.0 }
 0x8a8   :  { %v5386_v52 = vpop.permute.xlu0 %5385 }
 0x8a9   :  { %v5447_v54 = vsel %vm2595_vm11, %v5431_v46, %v5386_v52  ;;  %v5330_v63 = vpop.permute.xlu1 %5329 }
 0x8aa   :  { %v12146_v40 = vsel %vm2612_vm12, %v5447_v54, %v13844_v34  ;;  %v5435_v17 = vsel %vm2578_vm10, %v13853_v53, %v5330_v63  ;;  %v13854_v54 = vld [vmem:[#allocation141_spill] sm:$0xff]  ;;  %v13856_v34 = vmax.f32 %v13855_v55, 0.0 }
 0x8ab   :  { %v5744_v28 = vsel %vm1482_vm2, %v12146_v40, 0.0 }
 0x8ac   :  { %v5392_v30 = vpop.permute.xlu0 %5391  ;;  %v5745_v13 = vadd.f32 %v5744_v28, %v5743_v33 }
 0x8ad   :  { %v5450_v58 = vsel %vm2595_vm11, %v5434_v10, %v5392_v30  ;;  %v5332_v2 = vpop.permute.xlu1 %5331 }
 0x8ae   :  { %v12167_v29 = vsel %vm2612_vm12, %v5450_v58, %v13850_v4  ;;  %v5747_v43 = vadd.f32 %v5746_v37, %v5745_v13  ;;  %v5436_v38 = vsel %vm2578_vm10, %v13856_v34, %v5332_v2 }
 0x8af   :  { %v5750_v52 = vsel %vm1482_vm2, %v12167_v29, 0.0 }
 0x8b0   :  { %v5390_v44 = vpop.permute.xlu0 %5389 }
 0x8b1   :  { %v5449_v0 = vsel %vm2595_vm11, %v5433_v7, %v5390_v44 }
 0x8b2   :  { %v12171_v23 = vsel %vm2612_vm12, %v5449_v0, %v13851_v9 }
 0x8b3   :  { %v5748_v24 = vsel %vm1482_vm2, %v12171_v23, 0.0 }
 0x8b4   :  { %v5749_v12 = vadd.f32 %v5748_v24, %v5747_v43  ;;  %v5394_v46 = vpop.permute.xlu0 %5393 }
 0x8b5   :  { %v5451_v19 = vsel %vm2595_vm11, %v5435_v17, %v5394_v46  ;;  %v13858_v17 = vld [vmem:[#allocation144_spill] sm:$0xff] }
 0x8b6   :  { %v5751_v61 = vadd.f32 %v5750_v52, %v5749_v12  ;;  %v12183_v15 = vsel %vm2612_vm12, %v5451_v19, %v13854_v54  ;;  %v13859_v12 = vmax.f32 %v13858_v17, 0.0  ;;  %v13860_v46 = vld [vmem:[#allocation172_spill] sm:$0xff] }
 0x8b7   :  { %v5752_v26 = vsel %vm1482_vm2, %v12183_v15, 0.0  ;;  %v13861_v52 = vmax.f32 %v13860_v46, 0.0  ;;  %v13862_v46 = vld [vmem:[#allocation139_spill] sm:$0xff] }
 0x8b8   :  { %v5396_v28 = vpop.permute.xlu0 %5395  ;;  %v5753_v30 = vadd.f32 %v5752_v26, %v5751_v61 }
 0x8b9   :  { %v5452_v33 = vsel %vm2595_vm11, %v5436_v38, %v5396_v28 }
 0x8ba   :  { %v12193_v51 = vsel %vm2612_vm12, %v5452_v33, %v13857_v39 }
 0x8bb   :  { %v5754_v50 = vsel %vm1482_vm2, %v12193_v51, 0.0 }
 0x8bc   :  { %v5755_v10 = vadd.f32 %v5754_v50, %v5753_v30 }
 0x8be   :  { %v5756_v13 = vrot.slane %v5755_v10, 4 }
 0x8c0   :  { %v5757_v63 = vadd.f32 %v5756_v13, %v5755_v10 }
 0x8c2   :  { %v5758_v58 = vrot.slane %v5757_v63, 2 }
 0x8c4   :  { %v5759_v20 = vadd.f32 %v5758_v58, %v5757_v63 }
 0x8c6   :  { %v5760_v35 = vrot.slane %v5759_v20, 1 }
 0x8c8   :  { %v5761_v7 = vadd.f32 %v5760_v35, %v5759_v20 }
 0x8ca   :  { %v5762_v44 = vmul.f32 0.015625, %v5761_v7 }
 0x8cc   :  { %6635 = vmatmul.mubr.msk.f32.vlgmr.msra.gmra.mrb[50].mxu1 %vm1482_vm2, %v5762_v44 }
 0x8cd   :  { %6639 = vmatprep.mubr.msk.f32.mxu1 %vm7046_vm0, %v7047_v42 }
 0x8cf   :  { %v6592_v37 = vpop.f32.mrb[40].mxu1 }
 0x8d0   :  { %v5254_v0 = vmul.f32 %v6592_v37, %v11865_v41  ;;  %v5198_v4 = vpop.f32.mrb[41].mxu1 }
 0x8d1   :  { %v5253_v43 = vmul.f32 %v11865_v41, %v5198_v4 }
 0x8d2   :  { %v5278_v9 = vadd.f32 %v11874_v1, %v5254_v0 }
 0x8d3   :  { %v5277_v24 = vadd.f32 %v11874_v1, %v5253_v43 }
 0x8d4   :  { %v5294_v56 = vmax.f32 %v5278_v9, 0.0  ;;  %v5336_v9 = vpop.permute.xlu0 %5335 }
 0x8d5   :  { %v5293_v53 = vmax.f32 %v5277_v24, 0.0 }
 0x8d6   :  { %5399 = vrot.lane.b32.xlu0 %v5294_v56, %s7040_s26 }
 0x8d7   :  { %5397 = vrot.lane.b32.xlu1 %v5293_v53, %s7040_s26 }
 0x8db   :  { %5343 = vrot.lane.b32.xlu1 %v4136_v8, %s7038_s3 }
 0x8df   :  { %5345 = vrot.lane.b32.xlu1 %v13859_v12, %s7038_s3 }
 0x8e3   :  { %5347 = vrot.lane.b32.xlu1 %v13861_v52, %s7038_s3  ;;  %v13863_v52 = vmax.f32 %v13862_v46, 0.0 }
 0x8ef   :  { %v6595_v2 = vpop.f32.mrb[42].mxu1 }
 0x8f0   :  { %v5256_v19 = vmul.f32 %v6595_v2, %v11865_v41  ;;  %v5208_v61 = vpop.f32.mrb[43].mxu1 }
 0x8f1   :  { %v5255_v54 = vmul.f32 %v11865_v41, %v5208_v61 }
 0x8f2   :  { %v5280_v26 = vadd.f32 %v11874_v1, %v5256_v19  ;;  %v13864_v19 = vld [vmem:[#allocation151_spill] sm:$0xff] }
 0x8f3   :  { %v5279_v62 = vadd.f32 %v11874_v1, %v5255_v54  ;;  %v13865_v61 = vmax.f32 %v13864_v19, 0.0 }
 0x8f4   :  { %v5296_v55 = vmax.f32 %v5280_v26, 0.0 }
 0x8f5   :  { %v5295_v8 = vmax.f32 %v5279_v62, 0.0  ;;  %v5438_v54 = vsel %vm2578_vm10, %v13865_v61, %v5336_v9  ;;  %v13866_v62 = vld [vmem:[#allocation143_spill] sm:$0xff] }
 0x8f6   :  { %5403 = vrot.lane.b32.xlu0 %v5296_v55, %s7040_s26 }
 0x8fa   :  { %5401 = vrot.lane.b32.xlu0 %v5295_v8, %s7040_s26  ;;  %v13867_v8 = vmax.f32 %v13866_v62, 0.0 }
 0x914   :  { %v6598_v34 = vpop.f32.mrb[44].mxu1 }
 0x915   :  { %v5258_v38 = vmul.f32 %v6598_v34, %v11865_v41  ;;  %v5218_v28 = vpop.f32.mrb[45].mxu1 }
 0x916   :  { %v5257_v33 = vmul.f32 %v11865_v41, %v5218_v28  ;;  %v13868_v28 = vld [vmem:[#allocation146_spill] sm:$0xff] }
 0x917   :  { %v5282_v30 = vadd.f32 %v11874_v1, %v5258_v38 }
 0x918   :  { %v5281_v50 = vadd.f32 %v11874_v1, %v5257_v33 }
 0x919   :  { %v5298_v39 = vmax.f32 %v5282_v30, 0.0  ;;  %v13869_v30 = vld [vmem:[#allocation145_spill] sm:$0xff] }
 0x91a   :  { %v5297_v63 = vmax.f32 %v5281_v50, 0.0  ;;  %v13870_v50 = vld [vmem:[#allocation155_spill] sm:$0xff] }
 0x91b   :  { %5407 = vrot.lane.b32.xlu0 %v5298_v39, %s7040_s26  ;;  %v6601_v10 = vpop.f32.mrb[46].mxu1 }
 0x91c   :  { %v5228_v13 = vpop.f32.mrb[47].mxu1  ;;  %v5260_v58 = vmul.f32 %v6601_v10, %v11865_v41 }
 0x91d   :  { %v5259_v20 = vmul.f32 %v11865_v41, %v5228_v13  ;;  %v5839_v41 = vld [vmem:[%s12513_s13] sm:$0x1] }
 0x91e   :  { %v5284_v7 = vadd.f32 %v11874_v1, %v5260_v58  ;;  %6638 = vmatpush3.msk.msra.mxu1 %vm5844_vm1, %v5839_v41 }
 0x91f   :  { %v5283_v35 = vadd.f32 %v11874_v1, %v5259_v20  ;;  %5405 = vrot.lane.b32.xlu0 %v5297_v63, %s7040_s26  ;;  %v12233_v0 = vpop.f32.mrb[48].mxu1  ;;  %6712 = vmatprep.subr.bf16.mxu1 %v13823_v25  ;;  %v5334_v1 = vpop.permute.xlu1 %5333  ;;  %v13871_v20 = vld [vmem:[#allocation140_spill] sm:$0xff] }
 0x920   :  { %v5300_v37 = vmax.f32 %v5284_v7, 0.0  ;;  %v12235_v4 = vpop.f32.mrb[49].mxu1  ;;  %v5437_v2 = vsel %vm2578_vm10, %v13863_v52, %v5334_v1 }
 0x921   :  { %v5299_v44 = vmax.f32 %v5283_v35, 0.0  ;;  %v13872_v35 = vmax.f32 %v13871_v20, 0.0 }
 0x923   :  { %5409 = vrot.lane.b32.xlu0 %v5299_v44, %s7040_s26  ;;  %v5338_v43 = vpop.permute.xlu1 %5337 }
 0x924   :  { %v5439_v34 = vsel %vm2578_vm10, %v13867_v8, %v5338_v43  ;;  %v13873_v43 = vld [vmem:[#allocation148_spill] sm:$0xff] }
 0x925   :  { %v13874_v9 = vmax.f32 %v13873_v43, 0.0 }
 0x927   :  { %5411 = vrot.lane.b32.xlu0 %v5300_v37, %s7040_s26  ;;  %v5340_v24 = vpop.permute.xlu1 %5339 }
 0x928   :  { %v5440_v7 = vsel %vm2578_vm10, %v13872_v35, %v5340_v24  ;;  %v13876_v24 = vld [vmem:[#allocation157_spill] sm:$0xff] }
 0x929   :  { %v13877_v61 = vmax.f32 %v13876_v24, 0.0 }
 0x92b   :  { %v5342_v53 = vpop.permute.xlu1 %5341 }
 0x948   :  { %v5400_v56 = vpop.permute.xlu0 %5399 }
 0x949   :  { %v5398_v12 = vpop.permute.xlu1 %5397  ;;  %v5454_v55 = vsel %vm2595_vm11, %v5438_v54, %v5400_v56 }
 0x94a   :  { %v5453_v25 = vsel %vm2595_vm11, %v5437_v2, %v5398_v12  ;;  %v12256_v33 = vsel %vm2612_vm12, %v5454_v55, %v13868_v28  ;;  %v13875_v12 = vld [vmem:[#allocation159_spill] sm:$0xff] }
 0x94b   :  { %v12260_v39 = vsel %vm2612_vm12, %v5453_v25, %v13869_v30  ;;  %v5961_v13 = vsel %vm1482_vm2, %v12256_v33, 0.0  ;;  %v13878_v25 = vld [vmem:[#allocation182_spill] sm:$0xff]  ;;  %v13880_v30 = vld [vmem:[#allocation176_spill] sm:$0xff] }
 0x94c   :  { %v5960_v63 = vsel %vm1482_vm2, %v12260_v39, 0.0 }
 0x94d   :  { %v5344_v58 = vpop.permute.xlu1 %5343  ;;  %v5962_v41 = vadd.f32 %v5961_v13, %v5960_v63 }
 0x94e   :  { %v5442_v56 = vsel %vm2578_vm10, %v13874_v9, %v5344_v58 }
 0x951   :  { %v5346_v2 = vpop.permute.xlu1 %5345 }
 0x955   :  { %v5348_v58 = vpop.permute.xlu1 %5347 }
 0x968   :  { %v5404_v17 = vpop.permute.xlu0 %5403 }
 0x969   :  { %v5456_v44 = vsel %vm2595_vm11, %v5440_v7, %v5404_v17  ;;  %v5441_v17 = vsel %vm2578_vm10, %v13877_v61, %v5342_v53  ;;  %v13881_v53 = vmax.f32 %v13880_v30, 0.0 }
 0x96a   :  { %v12281_v46 = vsel %vm2612_vm12, %v5456_v44, %v13875_v12  ;;  %v13882_v44 = vld [vmem:[#allocation191_spill] sm:$0xff] }
 0x96c   :  { %v5402_v26 = vpop.permute.xlu0 %5401 }
 0x96d   :  { %v5455_v38 = vsel %vm2595_vm11, %v5439_v34, %v5402_v26  ;;  %v5965_v26 = vsel %vm1482_vm2, %v12281_v46, 0.0  ;;  %v13879_v34 = vld [vmem:[#allocation174_spill] sm:$0xff] }
 0x96e   :  { %v12264_v10 = vsel %vm2612_vm12, %v5455_v38, %v13870_v50  ;;  %v5443_v50 = vsel %vm2578_vm10, %v13881_v53, %v5346_v2  ;;  %v13885_v2 = vld [vmem:[#allocation166_spill] sm:$0xff] }
 0x96f   :  { %v5963_v37 = vsel %vm1482_vm2, %v12264_v10, 0.0 }
 0x970   :  { %v5964_v52 = vadd.f32 %v5963_v37, %v5962_v41 }
 0x972   :  { %v5966_v8 = vadd.f32 %v5965_v26, %v5964_v52 }
 0x98d   :  { %v5408_v1 = vpop.permute.xlu0 %5407 }
 0x98e   :  { %v5458_v19 = vsel %vm2595_vm11, %v5442_v56, %v5408_v1  ;;  %v13883_v1 = vld [vmem:[#allocation173_spill] sm:$0xff] }
 0x98f   :  { %v12292_v62 = vsel %vm2612_vm12, %v5458_v19, %v13878_v25  ;;  %v13884_v43 = vmax.f32 %v13883_v1, 0.0 }
 0x990   :  { %v5969_v20 = vsel %vm1482_vm2, %v12292_v62, 0.0 }
 0x991   :  { %v5406_v54 = vpop.permute.xlu0 %5405  ;;  %v5444_v9 = vsel %vm2578_vm10, %v13884_v43, %v5348_v58 }
 0x992   :  { %v5457_v55 = vsel %vm2595_vm11, %v5441_v17, %v5406_v54 }
 0x993   :  { %v12296_v38 = vsel %vm2612_vm12, %v5457_v55, %v13879_v34 }
 0x994   :  { %v5967_v28 = vsel %vm1482_vm2, %v12296_v38, 0.0 }
 0x995   :  { %v5968_v13 = vadd.f32 %v5967_v28, %v5966_v8  ;;  %v5410_v63 = vpop.permute.xlu0 %5409 }
 0x996   :  { %v5459_v35 = vsel %vm2595_vm11, %v5443_v50, %v5410_v63  ;;  %v6058_v50 = vld [vmem:[%s12513_s13] sm:$0x1] }
 0x997   :  { %v5970_v7 = vadd.f32 %v5969_v20, %v5968_v13  ;;  %v12308_v37 = vsel %vm2612_vm12, %v5459_v35, %v13882_v44  ;;  %v6608_v13 = vpop.f32.mrb[32].mxu0 }
 0x998   :  { %v5971_v41 = vsel %vm1482_vm2, %v12308_v37, 0.0 }
 0x999   :  { %v5412_v56 = vpop.permute.xlu0 %5411  ;;  %v5972_v52 = vadd.f32 %v5971_v41, %v5970_v7 }
 0x99a   :  { %v5460_v12 = vsel %vm2595_vm11, %v5444_v9, %v5412_v56 }
 0x99b   :  { %v12318_v19 = vsel %vm2612_vm12, %v5460_v12, %v13885_v2 }
 0x99c   :  { %v5973_v24 = vsel %vm1482_vm2, %v12318_v19, 0.0 }
 0x99d   :  { %v5974_v61 = vadd.f32 %v5973_v24, %v5972_v52 }
 0x99f   :  { %v5975_v17 = vrot.slane %v5974_v61, 4  ;;  %v5834_v54 = vpop.f32.mrb[50].mxu1 }
 0x9a0   :  { %v5838_v26 = vmax.f32 %v5834_v54, 0.0  ;;  %v6636_v55 = vpop.f32.mrb[51].mxu1 }
 0x9a1   :  { %v5976_v25 = vadd.f32 %v5975_v17, %v5974_v61 }
 0x9a2   :  { %6640 = vmatmul.mubr.msk.f32.vlgmr.msra.gmra.mrb[52].mxu1 %vm5840_vm3, %v5838_v26 }
 0x9a3   :  { %v5977_v8 = vrot.slane %v5976_v25, 2  ;;  %6714 = vmatpush3.bf16.msra.mxu1 %v12080_v60  ;;  %6646 = vmatprep.mubr.msk.f32.mxu1 %vm7046_vm0, %v7047_v42  ;;  %v5584_v60 = vpop.f32.mrb[33].mxu0 }
 0x9a4   :  { %6649 = vmatprep.subr.mxu1 %v7047_v42  ;;  %v6611_v63 = vpop.f32.mrb[34].mxu0 }
 0x9a5   :  { %v5978_v34 = vadd.f32 %v5977_v8, %v5976_v25  ;;  %v5594_v58 = vpop.f32.mrb[35].mxu0  ;;  %v12350_v8 = vld [vmem:[%s12515_s10] ss:$0 sm:$0xff] }
 0x9a6   :  { %v6614_v20 = vpop.f32.mrb[36].mxu0 }
 0x9a7   :  { %v5979_v28 = vrot.slane %v5978_v34, 1  ;;  %v5604_v35 = vpop.f32.mrb[37].mxu0 }
 0x9a8   :  { %v6617_v7 = vpop.f32.mrb[38].mxu0 }
 0x9a9   :  { %v5980_v30 = vadd.f32 %v5979_v28, %v5978_v34  ;;  %v5614_v44 = vpop.f32.mrb[39].mxu0 }
 0x9ab   :  { %v5981_v53 = vmul.f32 0.015625, %v5980_v30 }
 0x9ad   :  { %6647 = vmatmul.mubr.msk.f32.vlgmr.msra.gmra.mrb[54].mxu1 %vm1482_vm2, %v5981_v53 }
 0x9ae   :  { %6651 = vmatprep.mubr.msk.f32.mxu1 %vm7046_vm0, %v7047_v42  ;;  %6650 = vmatpush3.msk.msra.mxu1 %vm5844_vm1, %v6058_v50  ;;  %v12337_v42 = vld [vmem:[%s12514_s9] ss:$0 sm:$0xff] }
 0x9af   :  { %v5590_v9 = vadd.f32 %v6608_v13, %v12337_v42  ;;  %v5585_v12 = vadd.f32 %v12337_v42, %v5584_v60  ;;  %v5600_v52 = vadd.f32 %v6611_v63, %v12337_v42  ;;  %v5595_v2 = vadd.f32 %v12337_v42, %v5594_v58 }
 0x9b0   :  { %v5610_v24 = vadd.f32 %v6614_v20, %v12337_v42  ;;  %v5605_v54 = vadd.f32 %v12337_v42, %v5604_v35  ;;  %v5620_v26 = vadd.f32 %v6617_v7, %v12337_v42  ;;  %v5615_v55 = vadd.f32 %v12337_v42, %v5614_v44  ;;  %v12364_v20 = vld [vmem:[%s12516_s11] ss:$0 sm:$0xff] }
 0x9b1   :  { %v5671_v28 = vmul.f32 %v12350_v8, %v5590_v9  ;;  %v5670_v30 = vmul.f32 %v12350_v8, %v5585_v12  ;;  %v5673_v53 = vmul.f32 %v12350_v8, %v5600_v52  ;;  %v5672_v50 = vmul.f32 %v12350_v8, %v5595_v2 }
 0x9b2   :  { %v5675_v13 = vmul.f32 %v12350_v8, %v5610_v24  ;;  %v5674_v60 = vmul.f32 %v12350_v8, %v5605_v54  ;;  %v5677_v63 = vmul.f32 %v12350_v8, %v5620_v26  ;;  %v5676_v58 = vmul.f32 %v12350_v8, %v5615_v55 }
 0x9b3   :  { %v5694_v35 = vadd.f32 %v12364_v20, %v5671_v28  ;;  %v5693_v7 = vadd.f32 %v12364_v20, %v5670_v30  ;;  %v5696_v44 = vadd.f32 %v12364_v20, %v5673_v53  ;;  %v5926_v52 = vsub.s32 0, %v13644_v21  ;;  %v7028_v30 = vld [vmem:[%s12505_s0] sm:$0xff] }
 0x9b4   :  { %v5700_v9 = vadd.f32 %v12364_v20, %v5677_v63 }
 0x9b5   :  { %v5710_v12 = vmax.f32 %v5694_v35, 0.0  ;;  %v5709_v2 = vmax.f32 %v5693_v7, 0.0  ;;  %v5712_v24 = vmax.f32 %v5696_v44, 0.0 }
 0x9b6   :  { %v5716_v26 = vmax.f32 %v5700_v9, 0.0 }
 0x9b7   :  { %v5725_v53 = vadd.f32 %v7028_v30, %v5709_v2  ;;  %v5660_v30 = vadd.f32 %v12233_v0, %v12337_v42 }
 0xa75   :  { %v5914_v41 = vpop.f32.mrb[52].mxu1 }
 0xa76   :  { %v6404_v1 = vmul.f32 -1.442695, %v5914_v41  ;;  %v6641_v43 = vpop.f32.mrb[53].mxu1  ;;  %v5695_v41 = vadd.f32 %v12364_v20, %v5672_v50  ;;  %v5728_v50 = vadd.f32 %v11966_v22, %v5712_v24 }
 0xa77   :  { %v5697_v43 = vadd.f32 %v12364_v20, %v5674_v60 }
 0xa78   :  { %7003 = vpow2.f32 %v6404_v1  ;;  %v5698_v1 = vadd.f32 %v12364_v20, %v5675_v13 }
 0xa79   :  { %v5713_v54 = vmax.f32 %v5697_v43, 0.0 }
 0xa7b   :  { %v5729_v63 = vadd.f32 %v11979_v47, %v5713_v54 }
 0xa80   :  { %v6053_v56 = vpop.f32.mrb[54].mxu1 }
 0xa81   :  { %v6057_v61 = vmax.f32 %v6053_v56, 0.0  ;;  %v6648_v17 = vpop.f32.mrb[55].mxu1  ;;  %v5699_v56 = vadd.f32 %v12364_v20, %v5676_v58  ;;  %v5732_v58 = vadd.f32 %v12027_v27, %v5716_v26 }
 0xa82   :  { %v7004_v25 = vpop.eup %7003  ;;  %v5714_v17 = vmax.f32 %v5698_v1, 0.0 }
 0xa83   :  { %v5921_v34 = vadd.f32 1.0, %v7004_v25  ;;  %6652 = vmatmul.mubr.msk.f32.vlgmr.msra.gmra.mrb[56].mxu1 %vm5840_vm3, %v6057_v61  ;;  %v5711_v61 = vmax.f32 %v5695_v41, 0.0  ;;  %v5715_v55 = vmax.f32 %v5699_v56, 0.0 }
 0xa84   :  { %v5730_v60 = vadd.f32 %v12002_v18, %v5714_v17 }
 0xa85   :  { %7005 = vrcp.f32 %v5921_v34  ;;  %v5726_v34 = vadd.f32 %v11928_v49, %v5710_v12  ;;  %v5727_v13 = vadd.f32 %v11941_v31, %v5711_v61  ;;  %v5731_v49 = vadd.f32 %v12010_v11, %v5715_v55 }
 0xa8f   :  { %v7006_v25 = vpop.eup %7005 }
 0xa90   :  { %v5927_v28 = vrot.slane %v7006_v25, %v5926_v52 }
 0xa92   :  { %v5929_v35 = vmul.f32 %v5927_v28, %v12127_v16  ;;  %v5928_v7 = vmul.f32 %v5927_v28, %v12131_v48  ;;  %v5931_v44 = vmul.f32 %v5927_v28, %v12153_v36  ;;  %v5930_v41 = vmul.f32 %v5927_v28, %v12146_v40 }
 0xa93   :  { %v5933_v22 = vmul.f32 %v5927_v28, %v12167_v29  ;;  %v5932_v31 = vmul.f32 %v5927_v28, %v12171_v23  ;;  %v5935_v18 = vmul.f32 %v5927_v28, %v12193_v51  ;;  %v5934_v47 = vmul.f32 %v5927_v28, %v12183_v15  ;;  %v6620_v15 = vpop.f32.mrb[40].mxu0 }
 0xa94   :  { %v5937_v1 = vadd.f32 %v5929_v35, %v5726_v34  ;;  %v5936_v27 = vadd.f32 %v5928_v7, %v5725_v53  ;;  %v5939_v43 = vadd.f32 %v5931_v44, %v5728_v50  ;;  %v5938_v11 = vadd.f32 %v5930_v41, %v5727_v13  ;;  %v5624_v51 = vpop.f32.mrb[41].mxu0 }
 0xa95   :  { %v5941_v9 = vadd.f32 %v5933_v22, %v5730_v60  ;;  %v5940_v16 = vadd.f32 %v5932_v31, %v5729_v63  ;;  %v5943_v56 = vadd.f32 %v5935_v18, %v5732_v58  ;;  %v5942_v48 = vadd.f32 %v5934_v47, %v5731_v49  ;;  %v6623_v17 = vpop.f32.mrb[42].mxu0 }
 0xa96   :  { %v5945_v12 = vmax.f32 %v5937_v1, 0.0  ;;  %v5944_v36 = vmax.f32 %v5936_v27, 0.0  ;;  %v5947_v2 = vmax.f32 %v5939_v43, 0.0  ;;  %v5946_v40 = vmax.f32 %v5938_v11, 0.0  ;;  %v5634_v54 = vpop.f32.mrb[43].mxu0 }
 0xa97   :  { %v5949_v24 = vmax.f32 %v5941_v9, 0.0  ;;  %v5948_v29 = vmax.f32 %v5940_v16, 0.0  ;;  %v5951_v61 = vmax.f32 %v5943_v56, 0.0  ;;  %v5950_v23 = vmax.f32 %v5942_v48, 0.0  ;;  %v6626_v26 = vpop.f32.mrb[44].mxu0 }
 0xa98   :  { %5953 = vst.msk [vmem:[%s12517_s14 + $0x8] sm:$0xff] %vm1482_vm2, %v5945_v12  ;;  %5952 = vst.msk [vmem:[%s12517_s14] sm:$0xff] %vm1482_vm2, %v5944_v36  ;;  %v5644_v55 = vpop.f32.mrb[45].mxu0  ;;  %v5655_v53 = vadd.f32 %v12337_v42, %v12235_v4  ;;  %v5630_v50 = vadd.f32 %v6620_v15, %v12337_v42  ;;  %v5625_v13 = vadd.f32 %v12337_v42, %v5624_v51 }
 0xa99   :  { %5955 = vst.msk [vmem:[%s12517_s14 + $0x18] sm:$0xff] %vm1482_vm2, %v5947_v2  ;;  %5954 = vst.msk [vmem:[%s12517_s14 + $0x10] sm:$0xff] %vm1482_vm2, %v5946_v40  ;;  %v5640_v60 = vadd.f32 %v6623_v17, %v12337_v42  ;;  %v5635_v63 = vadd.f32 %v12337_v42, %v5634_v54  ;;  %v5650_v58 = vadd.f32 %v6626_v26, %v12337_v42 }
 0xa9a   :  { %5957 = vst.msk [vmem:[%s12517_s14 + $0x28] sm:$0xff] %vm1482_vm2, %v5949_v24  ;;  %5956 = vst.msk [vmem:[%s12517_s14 + $0x20] sm:$0xff] %vm1482_vm2, %v5948_v29  ;;  %v5645_v49 = vadd.f32 %v12337_v42, %v5644_v55  ;;  %v5685_v7 = vmul.f32 %v12350_v8, %v5660_v30  ;;  %v5684_v0 = vmul.f32 %v12350_v8, %v5655_v53 }
 0xa9b   :  { %5959 = vst.msk [vmem:[%s12517_s14 + $0x38] sm:$0xff] %vm1482_vm2, %v5951_v61  ;;  %5958 = vst.msk [vmem:[%s12517_s14 + $0x30] sm:$0xff] %vm1482_vm2, %v5950_v23  ;;  %v5679_v4 = vmul.f32 %v12350_v8, %v5630_v50  ;;  %v5678_v41 = vmul.f32 %v12350_v8, %v5625_v13  ;;  %v5681_v22 = vmul.f32 %v12350_v8, %v5640_v60 }
 0xa9c   :  { %v5680_v31 = vmul.f32 %v12350_v8, %v5635_v63  ;;  %v5683_v18 = vmul.f32 %v12350_v8, %v5650_v58  ;;  %v5682_v47 = vmul.f32 %v12350_v8, %v5645_v49  ;;  %v5708_v42 = vadd.f32 %v12364_v20, %v5685_v7 }
 0xa9d   :  { %v5707_v1 = vadd.f32 %v12364_v20, %v5684_v0  ;;  %v5702_v27 = vadd.f32 %v12364_v20, %v5679_v4  ;;  %v5701_v43 = vadd.f32 %v12364_v20, %v5678_v41  ;;  %v5704_v11 = vadd.f32 %v12364_v20, %v5681_v22 }
 0xa9e   :  { %v5703_v9 = vadd.f32 %v12364_v20, %v5680_v31  ;;  %v5706_v16 = vadd.f32 %v12364_v20, %v5683_v18  ;;  %v5705_v56 = vadd.f32 %v12364_v20, %v5682_v47  ;;  %v5724_v48 = vmax.f32 %v5708_v42, 0.0 }
 0xa9f   :  { %v5723_v12 = vmax.f32 %v5707_v1, 0.0  ;;  %v5718_v36 = vmax.f32 %v5702_v27, 0.0  ;;  %v5717_v8 = vmax.f32 %v5701_v43, 0.0  ;;  %v5720_v2 = vmax.f32 %v5704_v11, 0.0 }
 0xaa0   :  { %v5719_v40 = vmax.f32 %v5703_v9, 0.0  ;;  %v5722_v24 = vmax.f32 %v5706_v16, 0.0  ;;  %v5721_v29 = vmax.f32 %v5705_v56, 0.0  ;;  %v5740_v23 = vadd.f32 %v12088_v45, %v5724_v48 }
 0xaa1   :  { %v5739_v15 = vadd.f32 %v12060_v32, %v5723_v12  ;;  %v5734_v17 = vadd.f32 %v12053_v6, %v5718_v36  ;;  %v5733_v20 = vadd.f32 %v12036_v3, %v5717_v8  ;;  %v5736_v54 = vadd.f32 %v12095_v57, %v5720_v2 }
 0xaa2   :  { %v5735_v26 = vadd.f32 %v12073_v14, %v5719_v40  ;;  %v5738_v55 = vadd.f32 %v12113_v5, %v5722_v24 }
 0xb56   :  { %v6131_v25 = vpop.f32.mrb[56].mxu1 }
 0xb57   :  { %v6408_v34 = vmul.f32 -1.442695, %v6131_v25  ;;  %v6653_v28 = vpop.f32.mrb[57].mxu1  ;;  %v5737_v25 = vadd.f32 %v12106_v59, %v5721_v29 }
 0xb59   :  { %7007 = vpow2.f32 %v6408_v34 }
 0xb63   :  { %v7008_v35 = vpop.eup %7007 }
 0xb64   :  { %v6138_v44 = vadd.f32 1.0, %v7008_v35 }
 0xb66   :  { %7009 = vrcp.f32 %v6138_v44 }
 0xb70   :  { %v7010_v61 = vpop.eup %7009 }
 0xb71   :  { %v6144_v51 = vrot.slane %v7010_v61, %v5926_v52 }
 0xb73   :  { %v6151_v34 = vmul.f32 %v6144_v51, %v12308_v37  ;;  %v6152_v45 = vmul.f32 %v6144_v51, %v12318_v19  ;;  %v6146_v32 = vmul.f32 %v6144_v51, %v12256_v33  ;;  %v6145_v21 = vmul.f32 %v6144_v51, %v12260_v39 }
 0xb74   :  { %v6148_v6 = vmul.f32 %v6144_v51, %v12281_v46  ;;  %v6147_v3 = vmul.f32 %v6144_v51, %v12264_v10  ;;  %v6150_v57 = vmul.f32 %v6144_v51, %v12292_v62  ;;  %v6149_v14 = vmul.f32 %v6144_v51, %v12296_v38 }
 0xb75   :  { %v6159_v52 = vadd.f32 %v6151_v34, %v5739_v15  ;;  %v6160_v5 = vadd.f32 %v6152_v45, %v5740_v23  ;;  %v6154_v28 = vadd.f32 %v6146_v32, %v5734_v17  ;;  %v6153_v59 = vadd.f32 %v6145_v21, %v5733_v20 }
 0xb76   :  { %v6156_v30 = vadd.f32 %v6148_v6, %v5736_v54  ;;  %v6155_v37 = vadd.f32 %v6147_v3, %v5735_v26  ;;  %v6158_v53 = vadd.f32 %v6150_v57, %v5738_v55  ;;  %v6157_v19 = vadd.f32 %v6149_v14, %v5737_v25 }
 0xb77   :  { %v6167_v50 = vmax.f32 %v6159_v52, 0.0  ;;  %v6168_v33 = vmax.f32 %v6160_v5, 0.0  ;;  %v6162_v13 = vmax.f32 %v6154_v28, 0.0  ;;  %v6161_v39 = vmax.f32 %v6153_v59, 0.0 }
 0xb78   :  { %v6164_v60 = vmax.f32 %v6156_v30, 0.0  ;;  %v6163_v46 = vmax.f32 %v6155_v37, 0.0  ;;  %v6166_v63 = vmax.f32 %v6158_v53, 0.0  ;;  %v6165_v10 = vmax.f32 %v6157_v19, 0.0 }
 0xb79   :  { %6175 = vst.msk [vmem:[%s12517_s14 + $0x70] sm:$0xff] %vm1482_vm2, %v6167_v50  ;;  %6176 = vst.msk [vmem:[%s12517_s14 + $0x78] sm:$0xff] %vm1482_vm2, %v6168_v33 }
 0xb7a   :  { %6170 = vst.msk [vmem:[%s12517_s14 + $0x48] sm:$0xff] %vm1482_vm2, %v6162_v13  ;;  %6169 = vst.msk [vmem:[%s12517_s14 + $0x40] sm:$0xff] %vm1482_vm2, %v6161_v39 }
 0xb7b   :  { %6172 = vst.msk [vmem:[%s12517_s14 + $0x58] sm:$0xff] %vm1482_vm2, %v6164_v60  ;;  %6171 = vst.msk [vmem:[%s12517_s14 + $0x50] sm:$0xff] %vm1482_vm2, %v6163_v46 }
 0xb7c   :  { %6174 = vst.msk [vmem:[%s12517_s14 + $0x68] sm:$0xff] %vm1482_vm2, %v6166_v63  ;;  %6173 = vst.msk [vmem:[%s12517_s14 + $0x60] sm:$0xff] %vm1482_vm2, %v6165_v10 }

</bundles_post_ra>
